<compile_context>
chip_gen: v6e
topology: v6e:2x2x1
jax: 0.10.0
libtpu: 0.0.40
codegen_flags: <defaults>
</compile_context>

<pallas_src>
import jax
import jax.numpy as jnp
from jax.experimental import pallas as pl
from jax.experimental.pallas import tpu as pltpu

EPS = 1e-5            # PyTorch BatchNorm default eps
K1_PAD = 16           # conv1 fused contraction (9 taps * Cin=1) zero-padded to 16
NCLS_PAD = 128        # fc2 output padded to a lane-dense 128-wide store


# ------------------------------- param folding -------------------------------------
def fold_bn(gamma, beta, mean, var, bias):
    # BN(conv(x)+bias) with running stats  ==  conv(x)*scale + shift
    scale = gamma / jnp.sqrt(var + EPS)
    shift = beta + scale * (bias - mean)
    return scale, shift


def init_params(key, num_classes=2):
    def conv_block(k, cin, cout):
        k1, k2, k3, k4, k5, k6 = jax.random.split(k, 6)
        w = jax.random.normal(k1, (3, 3, cin, cout), jnp.float32) / jnp.sqrt(9.0 * cin)
        b = 0.05 * jax.random.normal(k2, (cout,), jnp.float32)
        gamma = 1.0 + 0.1 * jax.random.normal(k3, (cout,), jnp.float32)
        beta = 0.1 * jax.random.normal(k4, (cout,), jnp.float32)
        mean = 0.05 * jax.random.normal(k5, (cout,), jnp.float32)
        var = 1.0 + 0.1 * jnp.abs(jax.random.normal(k6, (cout,), jnp.float32))
        scale, shift = fold_bn(gamma, beta, mean, var, b)
        return (w, scale, shift)

    kc1, kc2, kc3, kf1, kf2 = jax.random.split(key, 5)
    convs = [conv_block(kc1, 1, 64), conv_block(kc2, 64, 128), conv_block(kc3, 128, 256)]

    k1, k2, k3, k4, k5, k6 = jax.random.split(kf1, 6)
    w1 = jax.random.normal(k1, (256, 128), jnp.float32) / jnp.sqrt(256.0)
    b1 = 0.05 * jax.random.normal(k2, (128,), jnp.float32)
    g1 = 1.0 + 0.1 * jax.random.normal(k3, (128,), jnp.float32)
    be1 = 0.1 * jax.random.normal(k4, (128,), jnp.float32)
    m1 = 0.05 * jax.random.normal(k5, (128,), jnp.float32)
    v1 = 1.0 + 0.1 * jnp.abs(jax.random.normal(k6, (128,), jnp.float32))
    s1, t1 = fold_bn(g1, be1, m1, v1, b1)

    kw2, kb2 = jax.random.split(kf2)
    w2 = jax.random.normal(kw2, (128, num_classes), jnp.float32) / jnp.sqrt(128.0)
    b2 = 0.05 * jax.random.normal(kb2, (num_classes,), jnp.float32)
    return {"convs": convs, "w1": w1, "s1": s1, "t1": t1, "w2": w2, "b2": b2}


# ------------------------------- fused forward --------------------------------------
def pallas_forward(x, params):
    B, H, W = x.shape
    M = H * W
    (cw1, csc1, csh1), (cw2, csc2, csh2), (cw3, csc3, csh3) = params["convs"]
    C1, C2, C3 = cw1.shape[-1], cw2.shape[-1], cw3.shape[-1]
    HID = params["w1"].shape[-1]
    NC = params["w2"].shape[-1]
    assert NC <= NCLS_PAD
    bf16 = jnp.bfloat16

    # ---- wrapper-side prep (tiny XLA glue, constant-folded under jit) ---------------
    # conv1 special case (Cin=1): im2col of the raw input is only (B, M, 9) floats.
    xp = jnp.pad(x, ((0, 0), (1, 1), (1, 1)))
    taps1 = jnp.stack([xp[:, kh:kh + H, kw:kw + W].reshape(B, M)
                       for kh in range(3) for kw in range(3)], axis=-1)      # (B, M, 9)
    taps1 = jnp.pad(taps1, ((0, 0), (0, 0), (0, K1_PAD - 9)))                # (B, M, 16)

    w1r = jnp.pad(cw1.reshape(9, C1), ((0, K1_PAD - 9), (0, 0))).astype(bf16)  # (16,C1)
    w2r = cw2.reshape(9 * C1, C2).astype(bf16)                                  # (576,C2)
    w3r = cw3.reshape(9 * C2, C3).astype(bf16)                                  # (1152,C3)
    wf1 = params["w1"].astype(bf16)                                             # (C3,HID)
    wf2 = jnp.zeros((HID, NCLS_PAD), jnp.float32).at[:, :NC].set(params["w2"]).astype(bf16)
    bf2 = jnp.zeros((1, NCLS_PAD), jnp.float32).at[:, :NC].set(params["b2"])

    # width coordinate of every im2col row (row = h*W + w); drives the border masks
    wcol = jnp.tile(jnp.arange(W, dtype=jnp.int32), H).reshape(M, 1)

    row = lambda v: v.reshape(1, -1).astype(jnp.float32)
    pad_rows = ((W + 1 + 7) // 8) * 8     # zero rows above/below for the 9 row shifts

    # ---- the single fused kernel ------------------------------------------------------
    def kernel(wcol_ref, taps1_ref,
               w1_ref, sc1_ref, sh1_ref,
               w2_ref, sc2_ref, sh2_ref,
               w3_ref, sc3_ref, sh3_ref,
               wf1_ref, scf1_ref, shf1_ref,
               wf2_ref, bfc2_ref,
               out_ref):
        col = wcol_ref[...]                       # (M, 1) int32
        not_first = col > 0                       # column w-1 is inside the image
        not_last = col < (W - 1)                  # column w+1 is inside the image

        def conv_epi(y, sc_ref, sh_ref):          # folded BN(+bias) + ReLU, in f32
            return jnp.maximum(y * sc_ref[...] + sh_ref[...], 0.0)

        def im2col(act, cin):
            # act: (M, cin) f32, row index = h*W + w.  Build all 9 taps as value-level
            # row shifts of a zero-extended copy plus left/right border masks, fused
            # into one (M, 9*cin) matrix so the conv is a single large-K matmul.
            zpad = jnp.zeros((pad_rows, cin), jnp.float32)
            ext = jnp.concatenate([zpad, act, zpad], axis=0)
            cols = []
            for kh in range(3):
                for kw in range(3):
                    s = (kh - 1) * W + (kw - 1)
                    tap = ext[pad_rows + s: pad_rows + s + M, :]
                    if kw == 0:
                        tap = jnp.where(not_first, tap, 0.0)
                    elif kw == 2:
                        tap = jnp.where(not_last, tap, 0.0)
                    cols.append(tap)
            return jnp.concatenate(cols, axis=-1).astype(jnp.bfloat16)   # (M, 9*cin)

        # conv1: (M, 16) @ (16, C1)   (bf16 operands, f32 accumulation)
        y1 = jnp.dot(taps1_ref[0].astype(jnp.bfloat16), w1_ref[...],
                     preferred_element_type=jnp.float32)
        a1 = conv_epi(y1, sc1_ref, sh1_ref)                               # (M, C1) f32

        # conv2: (M, 9*C1) @ (9*C1, C2)
        y2 = jnp.dot(im2col(a1, C1), w2_ref[...], preferred_element_type=jnp.float32)
        a2 = conv_epi(y2, sc2_ref, sh2_ref)                               # (M, C2) f32

        # conv3: (M, 9*C2) @ (9*C2, C3)
        y3 = jnp.dot(im2col(a2, C2), w3_ref[...], preferred_element_type=jnp.float32)
        a3 = conv_epi(y3, sc3_ref, sh3_ref)                               # (M, C3) f32

        # global average pool fused here -> the (M, C3) activation never leaves VMEM
        pooled = jnp.mean(a3, axis=0, keepdims=True)                      # (1, C3) f32

        # fc1 + folded BN1d + ReLU, then fc2 (+bias) into the 128-wide padded output
        h = jnp.dot(pooled.astype(jnp.bfloat16), wf1_ref[...],
                    preferred_element_type=jnp.float32)
        h = jnp.maximum(h * scf1_ref[...] + shf1_ref[...], 0.0)           # (1, HID) f32
        logits = jnp.dot(h.astype(jnp.bfloat16), wf2_ref[...],
                         preferred_element_type=jnp.float32) + bfc2_ref[...]
        out_ref[0] = logits                                               # (1, NCLS_PAD)

    const = lambda r, c: pl.BlockSpec((r, c), lambda b: (0, 0))

    out = pl.pallas_call(
        kernel,
        out_shape=jax.ShapeDtypeStruct((B, 1, NCLS_PAD), jnp.float32),
        grid=(B,),                     # one image per grid step
        in_specs=[
            const(M, 1),                                       # wcol (border masks)
            pl.BlockSpec((1, M, K1_PAD), lambda b: (b, 0, 0)),  # conv1 im2col taps
            const(K1_PAD, C1), const(1, C1), const(1, C1),
            const(9 * C1, C2), const(1, C2), const(1, C2),
            const(9 * C2, C3), const(1, C3), const(1, C3),
            const(C3, HID), const(1, HID), const(1, HID),
            const(HID, NCLS_PAD), const(1, NCLS_PAD),
        ],
        out_specs=pl.BlockSpec((1, 1, NCLS_PAD), lambda b: (b, 0, 0)),
        compiler_params=pltpu.CompilerParams(
            # batch axis is fully independent in eval mode -> v7x dual-TC sharding
            dimension_semantics=("parallel",),
            # explicit VMEM budget; per-step footprint here is only a few MiB.
            # For larger B/H/W, add an M-tiling grid axis and re-derive this limit.
            vmem_limit_bytes=32 * 1024 * 1024,
        ),
    )(wcol, taps1,
      w1r, row(csc1), row(csh1),
      w2r, row(csc2), row(csh2),
      w3r, row(csc3), row(csh3),
      wf1, row(params["s1"]), row(params["t1"]),
      wf2, bf2)
    return out.reshape(B, NCLS_PAD)[:, :NC]


# ------------------------------- reference ------------------------------------------
def ref_forward(x, params):
    # Pure-JAX reference mirroring the kernel's quantization points:
    # bf16 matmul/conv operands, f32 accumulation, f32 elementwise epilogue.
    a = x[..., None]                                            # (B,H,W,1) f32
    for (w, scale, shift) in params["convs"]:
        y = jax.lax.conv_general_dilated(
            a.astype(jnp.bfloat16), w.astype(jnp.bfloat16), (1, 1), "SAME",
            dimension_numbers=("NHWC", "HWIO", "NHWC"),
            preferred_element_type=jnp.float32)
        a = jnp.maximum(y * scale + shift, 0.0)
    pooled = jnp.mean(a, axis=(1, 2))
    h = jnp.dot(pooled.astype(jnp.bfloat16), params["w1"].astype(jnp.bfloat16),
                preferred_element_type=jnp.float32)
    h = jnp.maximum(h * params["s1"] + params["t1"], 0.0)
    return jnp.dot(h.astype(jnp.bfloat16), params["w2"].astype(jnp.bfloat16),
                   preferred_element_type=jnp.float32) + params["b2"]


if __name__ == "__main__":
    key = jax.random.PRNGKey(0)
    kx, kp = jax.random.split(key)
    B, H, W = 2, 16, 16
    x = jax.random.normal(kx, (B, H, W), jnp.float32)
    params = init_params(kp, num_classes=2)

    out = jax.jit(pallas_forward)(x, params)
    out = jax.block_until_ready(out)

    ref = ref_forward(x, params)
    assert out.shape == (B, 2), out.shape
    assert jnp.allclose(out, ref, atol=2e-3, rtol=2e-3), (out, ref)
    print("KERNEL_OK")
</pallas_src>

<mosaic_0001>
module attributes {stable_mosaic.version = 11 : i64} {
  func.func @kernel(%arg0: i32, %arg1: memref<256x1xi32, #tpu.memory_space<vmem>>, %arg2: memref<1x256x16xf32, #tpu.memory_space<vmem>>, %arg3: memref<16x64xbf16, #tpu.memory_space<vmem>>, %arg4: memref<1x64xf32, #tpu.memory_space<vmem>>, %arg5: memref<1x64xf32, #tpu.memory_space<vmem>>, %arg6: memref<576x128xbf16, #tpu.memory_space<vmem>>, %arg7: memref<1x128xf32, #tpu.memory_space<vmem>>, %arg8: memref<1x128xf32, #tpu.memory_space<vmem>>, %arg9: memref<1152x256xbf16, #tpu.memory_space<vmem>>, %arg10: memref<1x256xf32, #tpu.memory_space<vmem>>, %arg11: memref<1x256xf32, #tpu.memory_space<vmem>>, %arg12: memref<256x128xbf16, #tpu.memory_space<vmem>>, %arg13: memref<1x128xf32, #tpu.memory_space<vmem>>, %arg14: memref<1x128xf32, #tpu.memory_space<vmem>>, %arg15: memref<128x128xbf16, #tpu.memory_space<vmem>>, %arg16: memref<1x128xf32, #tpu.memory_space<vmem>>, %arg17: memref<1x1x128xf32, #tpu.memory_space<vmem>>) attributes {dimension_semantics = [#tpu.dimension_semantics<parallel>], iteration_bounds = array<i64: 2>, scalar_prefetch = 0 : i64, scratch_operands = 0 : i64, tpu.core_type = #tpu.core_type<tc>, window_params = [{pipeline_mode = #tpu.pipeline_mode<synchronous>, transform_indices = @transform_0, window_bounds = array<i64: 256, 1>}, {transform_indices = @transform_1, window_bounds = array<i64: 1, 256, 16>}, {pipeline_mode = #tpu.pipeline_mode<synchronous>, transform_indices = @transform_2, window_bounds = array<i64: 16, 64>}, {pipeline_mode = #tpu.pipeline_mode<synchronous>, transform_indices = @transform_3, window_bounds = array<i64: 1, 64>}, {pipeline_mode = #tpu.pipeline_mode<synchronous>, transform_indices = @transform_4, window_bounds = array<i64: 1, 64>}, {pipeline_mode = #tpu.pipeline_mode<synchronous>, transform_indices = @transform_5, window_bounds = array<i64: 576, 128>}, {pipeline_mode = #tpu.pipeline_mode<synchronous>, transform_indices = @transform_6, window_bounds = array<i64: 1, 128>}, {pipeline_mode = #tpu.pipeline_mode<synchronous>, transform_indices = @transform_7, window_bounds = array<i64: 1, 128>}, {pipeline_mode = #tpu.pipeline_mode<synchronous>, transform_indices = @transform_8, window_bounds = array<i64: 1152, 256>}, {pipeline_mode = #tpu.pipeline_mode<synchronous>, transform_indices = @transform_9, window_bounds = array<i64: 1, 256>}, {pipeline_mode = #tpu.pipeline_mode<synchronous>, transform_indices = @transform_10, window_bounds = array<i64: 1, 256>}, {pipeline_mode = #tpu.pipeline_mode<synchronous>, transform_indices = @transform_11, window_bounds = array<i64: 256, 128>}, {pipeline_mode = #tpu.pipeline_mode<synchronous>, transform_indices = @transform_12, window_bounds = array<i64: 1, 128>}, {pipeline_mode = #tpu.pipeline_mode<synchronous>, transform_indices = @transform_13, window_bounds = array<i64: 1, 128>}, {pipeline_mode = #tpu.pipeline_mode<synchronous>, transform_indices = @transform_14, window_bounds = array<i64: 128, 128>}, {pipeline_mode = #tpu.pipeline_mode<synchronous>, transform_indices = @transform_15, window_bounds = array<i64: 1, 128>}, {transform_indices = @transform_16, window_bounds = array<i64: 1, 1, 128>}]} {
    %c0 = arith.constant 0 : index
    %c0_0 = arith.constant 0 : index
    %0 = vector.load %arg1[%c0, %c0_0] : memref<256x1xi32, #tpu.memory_space<vmem>>, vector<256x1xi32>
    %c0_i32 = arith.constant 0 : i32
    %1 = vector.broadcast %c0_i32 : i32 to vector<256x1xi32>
    %2 = arith.cmpi sgt, %0, %1 : vector<256x1xi32>
    %c15_i32 = arith.constant 15 : i32
    %3 = vector.broadcast %c15_i32 : i32 to vector<256x1xi32>
    %4 = arith.cmpi slt, %0, %3 : vector<256x1xi32>
    %c0_1 = arith.constant 0 : index
    %c0_2 = arith.constant 0 : index
    %c0_3 = arith.constant 0 : index
    %5 = vector.load %arg2[%c0_1, %c0_2, %c0_3] : memref<1x256x16xf32, #tpu.memory_space<vmem>>, vector<1x256x16xf32>
    %6 = vector.shape_cast %5 : vector<1x256x16xf32> to vector<256x16xf32>
    %7 = arith.truncf %6 : vector<256x16xf32> to vector<256x16xbf16>
    %c0_4 = arith.constant 0 : index
    %c0_5 = arith.constant 0 : index
    %8 = vector.load %arg3[%c0_4, %c0_5] : memref<16x64xbf16, #tpu.memory_space<vmem>>, vector<16x64xbf16>
    %cst = arith.constant dense<0.000000e+00> : vector<256x64xf32>
    %9 = tpu.matmul %7, %8, %cst {dimension_numbers = #tpu.dot_dimension_numbers<[1], [0], [0], [1], [0, 0, 1, 1], [], []>} : vector<256x16xbf16>, vector<16x64xbf16>, vector<256x64xf32> -> vector<256x64xf32>
    %c0_6 = arith.constant 0 : index
    %c0_7 = arith.constant 0 : index
    %10 = vector.load %arg4[%c0_6, %c0_7] : memref<1x64xf32, #tpu.memory_space<vmem>>, vector<1x64xf32>
    %11 = vector.broadcast %10 : vector<1x64xf32> to vector<256x64xf32>
    %12 = arith.mulf %9, %11 : vector<256x64xf32>
    %c0_8 = arith.constant 0 : index
    %c0_9 = arith.constant 0 : index
    %13 = vector.load %arg5[%c0_8, %c0_9] : memref<1x64xf32, #tpu.memory_space<vmem>>, vector<1x64xf32>
    %14 = vector.broadcast %13 : vector<1x64xf32> to vector<256x64xf32>
    %15 = arith.addf %12, %14 : vector<256x64xf32>
    %cst_10 = arith.constant 0.000000e+00 : f32
    %16 = vector.broadcast %cst_10 : f32 to vector<256x64xf32>
    %17 = arith.maximumf %15, %16 : vector<256x64xf32>
    %cst_11 = arith.constant 0.000000e+00 : f32
    %18 = vector.broadcast %cst_11 : f32 to vector<24x64xf32>
    %19 = tpu.concatenate %18, %17, %18 in 0 : vector<24x64xf32>, vector<256x64xf32>, vector<24x64xf32> -> vector<304x64xf32>
    %20 = vector.extract_strided_slice %19 {offsets = [7, 0], sizes = [256, 64], strides = [1, 1]} : vector<304x64xf32> to vector<256x64xf32>
    %cst_12 = arith.constant 0.000000e+00 : f32
    %21 = vector.shape_cast %2 : vector<256x1xi1> to vector<256x1xi1>
    %22 = vector.broadcast %21 : vector<256x1xi1> to vector<256x64xi1>
    %23 = vector.broadcast %cst_12 : f32 to vector<256x64xf32>
    %24 = arith.select %22, %20, %23 : vector<256x64xi1>, vector<256x64xf32>
    %25 = vector.extract_strided_slice %19 {offsets = [8, 0], sizes = [256, 64], strides = [1, 1]} : vector<304x64xf32> to vector<256x64xf32>
    %26 = vector.extract_strided_slice %19 {offsets = [9, 0], sizes = [256, 64], strides = [1, 1]} : vector<304x64xf32> to vector<256x64xf32>
    %cst_13 = arith.constant 0.000000e+00 : f32
    %27 = vector.shape_cast %4 : vector<256x1xi1> to vector<256x1xi1>
    %28 = vector.broadcast %27 : vector<256x1xi1> to vector<256x64xi1>
    %29 = vector.broadcast %cst_13 : f32 to vector<256x64xf32>
    %30 = arith.select %28, %26, %29 : vector<256x64xi1>, vector<256x64xf32>
    %31 = vector.extract_strided_slice %19 {offsets = [23, 0], sizes = [256, 64], strides = [1, 1]} : vector<304x64xf32> to vector<256x64xf32>
    %cst_14 = arith.constant 0.000000e+00 : f32
    %32 = vector.shape_cast %2 : vector<256x1xi1> to vector<256x1xi1>
    %33 = vector.broadcast %32 : vector<256x1xi1> to vector<256x64xi1>
    %34 = vector.broadcast %cst_14 : f32 to vector<256x64xf32>
    %35 = arith.select %33, %31, %34 : vector<256x64xi1>, vector<256x64xf32>
    %36 = vector.extract_strided_slice %19 {offsets = [24, 0], sizes = [256, 64], strides = [1, 1]} : vector<304x64xf32> to vector<256x64xf32>
    %37 = vector.extract_strided_slice %19 {offsets = [25, 0], sizes = [256, 64], strides = [1, 1]} : vector<304x64xf32> to vector<256x64xf32>
    %cst_15 = arith.constant 0.000000e+00 : f32
    %38 = vector.shape_cast %4 : vector<256x1xi1> to vector<256x1xi1>
    %39 = vector.broadcast %38 : vector<256x1xi1> to vector<256x64xi1>
    %40 = vector.broadcast %cst_15 : f32 to vector<256x64xf32>
    %41 = arith.select %39, %37, %40 : vector<256x64xi1>, vector<256x64xf32>
    %42 = vector.extract_strided_slice %19 {offsets = [39, 0], sizes = [256, 64], strides = [1, 1]} : vector<304x64xf32> to vector<256x64xf32>
    %cst_16 = arith.constant 0.000000e+00 : f32
    %43 = vector.shape_cast %2 : vector<256x1xi1> to vector<256x1xi1>
    %44 = vector.broadcast %43 : vector<256x1xi1> to vector<256x64xi1>
    %45 = vector.broadcast %cst_16 : f32 to vector<256x64xf32>
    %46 = arith.select %44, %42, %45 : vector<256x64xi1>, vector<256x64xf32>
    %47 = vector.extract_strided_slice %19 {offsets = [40, 0], sizes = [256, 64], strides = [1, 1]} : vector<304x64xf32> to vector<256x64xf32>
    %48 = vector.extract_strided_slice %19 {offsets = [41, 0], sizes = [256, 64], strides = [1, 1]} : vector<304x64xf32> to vector<256x64xf32>
    %cst_17 = arith.constant 0.000000e+00 : f32
    %49 = vector.shape_cast %4 : vector<256x1xi1> to vector<256x1xi1>
    %50 = vector.broadcast %49 : vector<256x1xi1> to vector<256x64xi1>
    %51 = vector.broadcast %cst_17 : f32 to vector<256x64xf32>
    %52 = arith.select %50, %48, %51 : vector<256x64xi1>, vector<256x64xf32>
    %53 = tpu.concatenate %24, %25, %30, %35, %36, %41, %46, %47, %52 in 1 : vector<256x64xf32>, vector<256x64xf32>, vector<256x64xf32>, vector<256x64xf32>, vector<256x64xf32>, vector<256x64xf32>, vector<256x64xf32>, vector<256x64xf32>, vector<256x64xf32> -> vector<256x576xf32>
    %54 = arith.truncf %53 : vector<256x576xf32> to vector<256x576xbf16>
    %c0_18 = arith.constant 0 : index
    %c0_19 = arith.constant 0 : index
    %55 = vector.load %arg6[%c0_18, %c0_19] : memref<576x128xbf16, #tpu.memory_space<vmem>>, vector<576x128xbf16>
    %cst_20 = arith.constant dense<0.000000e+00> : vector<256x128xf32>
    %56 = tpu.matmul %54, %55, %cst_20 {dimension_numbers = #tpu.dot_dimension_numbers<[1], [0], [0], [1], [0, 0, 1, 1], [], []>} : vector<256x576xbf16>, vector<576x128xbf16>, vector<256x128xf32> -> vector<256x128xf32>
    %c0_21 = arith.constant 0 : index
    %c0_22 = arith.constant 0 : index
    %57 = vector.load %arg7[%c0_21, %c0_22] : memref<1x128xf32, #tpu.memory_space<vmem>>, vector<1x128xf32>
    %58 = vector.broadcast %57 : vector<1x128xf32> to vector<256x128xf32>
    %59 = arith.mulf %56, %58 : vector<256x128xf32>
    %c0_23 = arith.constant 0 : index
    %c0_24 = arith.constant 0 : index
    %60 = vector.load %arg8[%c0_23, %c0_24] : memref<1x128xf32, #tpu.memory_space<vmem>>, vector<1x128xf32>
    %61 = vector.broadcast %60 : vector<1x128xf32> to vector<256x128xf32>
    %62 = arith.addf %59, %61 : vector<256x128xf32>
    %cst_25 = arith.constant 0.000000e+00 : f32
    %63 = vector.broadcast %cst_25 : f32 to vector<256x128xf32>
    %64 = arith.maximumf %62, %63 : vector<256x128xf32>
    %cst_26 = arith.constant 0.000000e+00 : f32
    %65 = vector.broadcast %cst_26 : f32 to vector<24x128xf32>
    %66 = tpu.concatenate %65, %64, %65 in 0 : vector<24x128xf32>, vector<256x128xf32>, vector<24x128xf32> -> vector<304x128xf32>
    %67 = vector.extract_strided_slice %66 {offsets = [7, 0], sizes = [256, 128], strides = [1, 1]} : vector<304x128xf32> to vector<256x128xf32>
    %cst_27 = arith.constant 0.000000e+00 : f32
    %68 = vector.shape_cast %2 : vector<256x1xi1> to vector<256x1xi1>
    %69 = vector.broadcast %68 : vector<256x1xi1> to vector<256x128xi1>
    %70 = vector.broadcast %cst_27 : f32 to vector<256x128xf32>
    %71 = arith.select %69, %67, %70 : vector<256x128xi1>, vector<256x128xf32>
    %72 = vector.extract_strided_slice %66 {offsets = [8, 0], sizes = [256, 128], strides = [1, 1]} : vector<304x128xf32> to vector<256x128xf32>
    %73 = vector.extract_strided_slice %66 {offsets = [9, 0], sizes = [256, 128], strides = [1, 1]} : vector<304x128xf32> to vector<256x128xf32>
    %cst_28 = arith.constant 0.000000e+00 : f32
    %74 = vector.shape_cast %4 : vector<256x1xi1> to vector<256x1xi1>
    %75 = vector.broadcast %74 : vector<256x1xi1> to vector<256x128xi1>
    %76 = vector.broadcast %cst_28 : f32 to vector<256x128xf32>
    %77 = arith.select %75, %73, %76 : vector<256x128xi1>, vector<256x128xf32>
    %78 = vector.extract_strided_slice %66 {offsets = [23, 0], sizes = [256, 128], strides = [1, 1]} : vector<304x128xf32> to vector<256x128xf32>
    %cst_29 = arith.constant 0.000000e+00 : f32
    %79 = vector.shape_cast %2 : vector<256x1xi1> to vector<256x1xi1>
    %80 = vector.broadcast %79 : vector<256x1xi1> to vector<256x128xi1>
    %81 = vector.broadcast %cst_29 : f32 to vector<256x128xf32>
    %82 = arith.select %80, %78, %81 : vector<256x128xi1>, vector<256x128xf32>
    %83 = vector.extract_strided_slice %66 {offsets = [24, 0], sizes = [256, 128], strides = [1, 1]} : vector<304x128xf32> to vector<256x128xf32>
    %84 = vector.extract_strided_slice %66 {offsets = [25, 0], sizes = [256, 128], strides = [1, 1]} : vector<304x128xf32> to vector<256x128xf32>
    %cst_30 = arith.constant 0.000000e+00 : f32
    %85 = vector.shape_cast %4 : vector<256x1xi1> to vector<256x1xi1>
    %86 = vector.broadcast %85 : vector<256x1xi1> to vector<256x128xi1>
    %87 = vector.broadcast %cst_30 : f32 to vector<256x128xf32>
    %88 = arith.select %86, %84, %87 : vector<256x128xi1>, vector<256x128xf32>
    %89 = vector.extract_strided_slice %66 {offsets = [39, 0], sizes = [256, 128], strides = [1, 1]} : vector<304x128xf32> to vector<256x128xf32>
    %cst_31 = arith.constant 0.000000e+00 : f32
    %90 = vector.shape_cast %2 : vector<256x1xi1> to vector<256x1xi1>
    %91 = vector.broadcast %90 : vector<256x1xi1> to vector<256x128xi1>
    %92 = vector.broadcast %cst_31 : f32 to vector<256x128xf32>
    %93 = arith.select %91, %89, %92 : vector<256x128xi1>, vector<256x128xf32>
    %94 = vector.extract_strided_slice %66 {offsets = [40, 0], sizes = [256, 128], strides = [1, 1]} : vector<304x128xf32> to vector<256x128xf32>
    %95 = vector.extract_strided_slice %66 {offsets = [41, 0], sizes = [256, 128], strides = [1, 1]} : vector<304x128xf32> to vector<256x128xf32>
    %cst_32 = arith.constant 0.000000e+00 : f32
    %96 = vector.shape_cast %4 : vector<256x1xi1> to vector<256x1xi1>
    %97 = vector.broadcast %96 : vector<256x1xi1> to vector<256x128xi1>
    %98 = vector.broadcast %cst_32 : f32 to vector<256x128xf32>
    %99 = arith.select %97, %95, %98 : vector<256x128xi1>, vector<256x128xf32>
    %100 = tpu.concatenate %71, %72, %77, %82, %83, %88, %93, %94, %99 in 1 : vector<256x128xf32>, vector<256x128xf32>, vector<256x128xf32>, vector<256x128xf32>, vector<256x128xf32>, vector<256x128xf32>, vector<256x128xf32>, vector<256x128xf32>, vector<256x128xf32> -> vector<256x1152xf32>
    %101 = arith.truncf %100 : vector<256x1152xf32> to vector<256x1152xbf16>
    %c0_33 = arith.constant 0 : index
    %c0_34 = arith.constant 0 : index
    %102 = vector.load %arg9[%c0_33, %c0_34] : memref<1152x256xbf16, #tpu.memory_space<vmem>>, vector<1152x256xbf16>
    %cst_35 = arith.constant dense<0.000000e+00> : vector<256x256xf32>
    %103 = tpu.matmul %101, %102, %cst_35 {dimension_numbers = #tpu.dot_dimension_numbers<[1], [0], [0], [1], [0, 0, 1, 1], [], []>} : vector<256x1152xbf16>, vector<1152x256xbf16>, vector<256x256xf32> -> vector<256x256xf32>
    %c0_36 = arith.constant 0 : index
    %c0_37 = arith.constant 0 : index
    %104 = vector.load %arg10[%c0_36, %c0_37] : memref<1x256xf32, #tpu.memory_space<vmem>>, vector<1x256xf32>
    %105 = vector.broadcast %104 : vector<1x256xf32> to vector<256x256xf32>
    %106 = arith.mulf %103, %105 : vector<256x256xf32>
    %c0_38 = arith.constant 0 : index
    %c0_39 = arith.constant 0 : index
    %107 = vector.load %arg11[%c0_38, %c0_39] : memref<1x256xf32, #tpu.memory_space<vmem>>, vector<1x256xf32>
    %108 = vector.broadcast %107 : vector<1x256xf32> to vector<256x256xf32>
    %109 = arith.addf %106, %108 : vector<256x256xf32>
    %cst_40 = arith.constant 0.000000e+00 : f32
    %110 = vector.broadcast %cst_40 : f32 to vector<256x256xf32>
    %111 = arith.maximumf %109, %110 : vector<256x256xf32>
    %cst_41 = arith.constant dense<0.000000e+00> : vector<256xf32>
    %112 = vector.multi_reduction <add>, %111, %cst_41 [0] : vector<256x256xf32> to vector<256xf32>
    %113 = vector.shape_cast %112 : vector<256xf32> to vector<1x256xf32>
    %cst_42 = arith.constant 2.560000e+02 : f32
    %114 = vector.broadcast %cst_42 : f32 to vector<1x256xf32>
    %115 = arith.divf %113, %114 : vector<1x256xf32>
    %116 = arith.truncf %115 : vector<1x256xf32> to vector<1x256xbf16>
    %c0_43 = arith.constant 0 : index
    %c0_44 = arith.constant 0 : index
    %117 = vector.load %arg12[%c0_43, %c0_44] : memref<256x128xbf16, #tpu.memory_space<vmem>>, vector<256x128xbf16>
    %cst_45 = arith.constant dense<0.000000e+00> : vector<1x128xf32>
    %118 = tpu.matmul %116, %117, %cst_45 {dimension_numbers = #tpu.dot_dimension_numbers<[1], [0], [0], [1], [0, 0, 1, 1], [], []>} : vector<1x256xbf16>, vector<256x128xbf16>, vector<1x128xf32> -> vector<1x128xf32>
    %c0_46 = arith.constant 0 : index
    %c0_47 = arith.constant 0 : index
    %119 = vector.load %arg13[%c0_46, %c0_47] : memref<1x128xf32, #tpu.memory_space<vmem>>, vector<1x128xf32>
    %120 = arith.mulf %118, %119 : vector<1x128xf32>
    %c0_48 = arith.constant 0 : index
    %c0_49 = arith.constant 0 : index
    %121 = vector.load %arg14[%c0_48, %c0_49] : memref<1x128xf32, #tpu.memory_space<vmem>>, vector<1x128xf32>
    %122 = arith.addf %120, %121 : vector<1x128xf32>
    %cst_50 = arith.constant 0.000000e+00 : f32
    %123 = vector.broadcast %cst_50 : f32 to vector<1x128xf32>
    %124 = arith.maximumf %122, %123 : vector<1x128xf32>
    %125 = arith.truncf %124 : vector<1x128xf32> to vector<1x128xbf16>
    %c0_51 = arith.constant 0 : index
    %c0_52 = arith.constant 0 : index
    %126 = vector.load %arg15[%c0_51, %c0_52] : memref<128x128xbf16, #tpu.memory_space<vmem>>, vector<128x128xbf16>
    %cst_53 = arith.constant dense<0.000000e+00> : vector<1x128xf32>
    %127 = tpu.matmul %125, %126, %cst_53 {dimension_numbers = #tpu.dot_dimension_numbers<[1], [0], [0], [1], [0, 0, 1, 1], [], []>} : vector<1x128xbf16>, vector<128x128xbf16>, vector<1x128xf32> -> vector<1x128xf32>
    %c0_54 = arith.constant 0 : index
    %c0_55 = arith.constant 0 : index
    %128 = vector.load %arg16[%c0_54, %c0_55] : memref<1x128xf32, #tpu.memory_space<vmem>>, vector<1x128xf32>
    %129 = arith.addf %127, %128 : vector<1x128xf32>
    %c0_56 = arith.constant 0 : index
    %c0_57 = arith.constant 0 : index
    %c0_58 = arith.constant 0 : index
    %130 = vector.load %arg17[%c0_56, %c0_57, %c0_58] : memref<1x1x128xf32, #tpu.memory_space<vmem>>, vector<1x1x128xf32>
    %131 = vector.shape_cast %130 : vector<1x1x128xf32> to vector<1x128xf32>
    %132 = vector.shape_cast %129 : vector<1x128xf32> to vector<1x1x128xf32>
    tpu.vector_store %arg17[%c0_56, %c0_57, %c0_58], %132 {strides = array<i32>} : memref<1x1x128xf32, #tpu.memory_space<vmem>>, vector<1x1x128xf32>,
    return
  }
  func.func @transform_0(%arg0: i32) -> (i32, i32) {
    %c0_i32 = arith.constant 0 : i32
    %c0_i32_0 = arith.constant 0 : i32
    %c0_i32_1 = arith.constant 0 : i32
    return %c0_i32, %c0_i32_0 : i32, i32
  }
  func.func @transform_1(%arg0: i32) -> (i32, i32, i32) {
    %c0_i32 = arith.constant 0 : i32
    %c0_i32_0 = arith.constant 0 : i32
    %c0_i32_1 = arith.constant 0 : i32
    return %arg0, %c0_i32, %c0_i32_0 : i32, i32, i32
  }
  func.func @transform_2(%arg0: i32) -> (i32, i32) {
    %c0_i32 = arith.constant 0 : i32
    %c0_i32_0 = arith.constant 0 : i32
    %c0_i32_1 = arith.constant 0 : i32
    return %c0_i32, %c0_i32_0 : i32, i32
  }
  func.func @transform_3(%arg0: i32) -> (i32, i32) {
    %c0_i32 = arith.constant 0 : i32
    %c0_i32_0 = arith.constant 0 : i32
    %c0_i32_1 = arith.constant 0 : i32
    return %c0_i32, %c0_i32_0 : i32, i32
  }
  func.func @transform_4(%arg0: i32) -> (i32, i32) {
    %c0_i32 = arith.constant 0 : i32
    %c0_i32_0 = arith.constant 0 : i32
    %c0_i32_1 = arith.constant 0 : i32
    return %c0_i32, %c0_i32_0 : i32, i32
  }
  func.func @transform_5(%arg0: i32) -> (i32, i32) {
    %c0_i32 = arith.constant 0 : i32
    %c0_i32_0 = arith.constant 0 : i32
    %c0_i32_1 = arith.constant 0 : i32
    return %c0_i32, %c0_i32_0 : i32, i32
  }
  func.func @transform_6(%arg0: i32) -> (i32, i32) {
    %c0_i32 = arith.constant 0 : i32
    %c0_i32_0 = arith.constant 0 : i32
    %c0_i32_1 = arith.constant 0 : i32
    return %c0_i32, %c0_i32_0 : i32, i32
  }
  func.func @transform_7(%arg0: i32) -> (i32, i32) {
    %c0_i32 = arith.constant 0 : i32
    %c0_i32_0 = arith.constant 0 : i32
    %c0_i32_1 = arith.constant 0 : i32
    return %c0_i32, %c0_i32_0 : i32, i32
  }
  func.func @transform_8(%arg0: i32) -> (i32, i32) {
    %c0_i32 = arith.constant 0 : i32
    %c0_i32_0 = arith.constant 0 : i32
    %c0_i32_1 = arith.constant 0 : i32
    return %c0_i32, %c0_i32_0 : i32, i32
  }
  func.func @transform_9(%arg0: i32) -> (i32, i32) {
    %c0_i32 = arith.constant 0 : i32
    %c0_i32_0 = arith.constant 0 : i32
    %c0_i32_1 = arith.constant 0 : i32
    return %c0_i32, %c0_i32_0 : i32, i32
  }
  func.func @transform_10(%arg0: i32) -> (i32, i32) {
    %c0_i32 = arith.constant 0 : i32
    %c0_i32_0 = arith.constant 0 : i32
    %c0_i32_1 = arith.constant 0 : i32
    return %c0_i32, %c0_i32_0 : i32, i32
  }
  func.func @transform_11(%arg0: i32) -> (i32, i32) {
    %c0_i32 = arith.constant 0 : i32
    %c0_i32_0 = arith.constant 0 : i32
    %c0_i32_1 = arith.constant 0 : i32
    return %c0_i32, %c0_i32_0 : i32, i32
  }
  func.func @transform_12(%arg0: i32) -> (i32, i32) {
    %c0_i32 = arith.constant 0 : i32
    %c0_i32_0 = arith.constant 0 : i32
    %c0_i32_1 = arith.constant 0 : i32
    return %c0_i32, %c0_i32_0 : i32, i32
  }
  func.func @transform_13(%arg0: i32) -> (i32, i32) {
    %c0_i32 = arith.constant 0 : i32
    %c0_i32_0 = arith.constant 0 : i32
    %c0_i32_1 = arith.constant 0 : i32
    return %c0_i32, %c0_i32_0 : i32, i32
  }
  func.func @transform_14(%arg0: i32) -> (i32, i32) {
    %c0_i32 = arith.constant 0 : i32
    %c0_i32_0 = arith.constant 0 : i32
    %c0_i32_1 = arith.constant 0 : i32
    return %c0_i32, %c0_i32_0 : i32, i32
  }
  func.func @transform_15(%arg0: i32) -> (i32, i32) {
    %c0_i32 = arith.constant 0 : i32
    %c0_i32_0 = arith.constant 0 : i32
    %c0_i32_1 = arith.constant 0 : i32
    return %c0_i32, %c0_i32_0 : i32, i32
  }
  func.func @transform_16(%arg0: i32) -> (i32, i32, i32) {
    %c0_i32 = arith.constant 0 : i32
    %c0_i32_0 = arith.constant 0 : i32
    %c0_i32_1 = arith.constant 0 : i32
    return %arg0, %c0_i32, %c0_i32_0 : i32, i32, i32
  }
}

</mosaic_0001>

<bundles_post_ra>
// kernel: tile.0
= control target key start
LH: loop header
LB: loop body
LE: loop exit
PB: predicated region body
PF: predicated region fallthrough
CT: control target
= control target key end

     0   :  { %vm3_vm0 = vcmask 7168   ;;  %s550_s10 = smov 127   ;;  %s551_s27 = smov 125   ;;  %s1092_s0 = inlined_call_operand.vmem [shape: s32[16,16], index: 0, kind: input, shape index: {}]   ;;  %s1093_s1 = inlined_call_operand.vmem [shape: s32[256,1], index: 1, kind: output, shape index: {}]  }
   0x1   :  { %v44_v0 = vld [vmem:[%s1092_s0] sm:$0xff]   ;;  %v412_v1 = vld [vmem:[%s1092_s0 + $0x8] sm:$0xff]   ;;  %s549_s0 = smov 126   ;;  %s552_s28 = smov 124  }
   0x2   :  { %45 = vrot.lane.b32.xlu1 %v44_v0, %s549_s0  ;;  %20 = vrot.lane.b32.xlu0 %v44_v0, %s550_s10  ;;  %4 = vst.msk [vmem:[%s1093_s1] ss:$16 sm:$0x3] %vm3_vm0, %v44_v0   ;;  %5 = vst.msk [vmem:[%s1093_s1] ss:$16 sm:$0xc] %vm3_vm0, %v44_v0  }
   0x3   :  { %6 = vst.msk [vmem:[%s1093_s1] ss:$16 sm:$0x30] %vm3_vm0, %v44_v0   ;;  %7 = vst.msk [vmem:[%s1093_s1] ss:$16 sm:$0xc0] %vm3_vm0, %v44_v0  }
   0x4   :  { %395 = vst.msk [vmem:[%s1093_s1 + $0x80] ss:$16 sm:$0x3] %vm3_vm0, %v412_v1   ;;  %396 = vst.msk [vmem:[%s1093_s1 + $0x80] ss:$16 sm:$0xc] %vm3_vm0, %v412_v1  }
   0x5   :  { %397 = vst.msk [vmem:[%s1093_s1 + $0x80] ss:$16 sm:$0x30] %vm3_vm0, %v412_v1   ;;  %398 = vst.msk [vmem:[%s1093_s1 + $0x80] ss:$16 sm:$0xc0] %vm3_vm0, %v412_v1  }
   0x6   :  { %58 = vrot.lane.b32.xlu1 %v412_v1, %s549_s0  ;;  %33 = vrot.lane.b32.xlu0 %v412_v1, %s550_s10  ;;  %s553_s29 = smov 123   ;;  %s554_s30 = smov 122  }
   0x7   :  { %s555_s2 = smov 121   ;;  %s556_s3 = smov 120  }
   0x8   :  { %s557_s4 = smov 119   ;;  %s558_s5 = smov 118  }
   0x9   :  { %s559_s6 = smov 117   ;;  %s560_s7 = smov 116  }
   0xa   :  { %83 = vrot.lane.b32.xlu1 %v412_v1, %s551_s27  ;;  %70 = vrot.lane.b32.xlu0 %v44_v0, %s551_s27  ;;  %s561_s8 = smov 115   ;;  %s562_s9 = smov 114  }
   0xb   :  { %s563_s0 = smov 113  }
   0xe   :  { %108 = vrot.lane.b32.xlu1 %v412_v1, %s552_s28  ;;  %95 = vrot.lane.b32.xlu0 %v44_v0, %s552_s28 }
  0x12   :  { %133 = vrot.lane.b32.xlu1 %v412_v1, %s553_s29  ;;  %120 = vrot.lane.b32.xlu0 %v44_v0, %s553_s29 }
  0x16   :  { %158 = vrot.lane.b32.xlu1 %v412_v1, %s554_s30  ;;  %145 = vrot.lane.b32.xlu0 %v44_v0, %s554_s30 }
  0x1a   :  { %183 = vrot.lane.b32.xlu1 %v412_v1, %s555_s2  ;;  %170 = vrot.lane.b32.xlu0 %v44_v0, %s555_s2 }
  0x1e   :  { %208 = vrot.lane.b32.xlu1 %v412_v1, %s556_s3  ;;  %195 = vrot.lane.b32.xlu0 %v44_v0, %s556_s3 }
  0x22   :  { %233 = vrot.lane.b32.xlu1 %v412_v1, %s557_s4  ;;  %220 = vrot.lane.b32.xlu0 %v44_v0, %s557_s4 }
  0x26   :  { %258 = vrot.lane.b32.xlu1 %v412_v1, %s558_s5  ;;  %245 = vrot.lane.b32.xlu0 %v44_v0, %s558_s5 }
  0x2a   :  { %283 = vrot.lane.b32.xlu1 %v412_v1, %s559_s6  ;;  %270 = vrot.lane.b32.xlu0 %v44_v0, %s559_s6 }
  0x2e   :  { %308 = vrot.lane.b32.xlu1 %v412_v1, %s560_s7  ;;  %295 = vrot.lane.b32.xlu0 %v44_v0, %s560_s7 }
  0x32   :  { %333 = vrot.lane.b32.xlu1 %v412_v1, %s561_s8  ;;  %320 = vrot.lane.b32.xlu0 %v44_v0, %s561_s8 }
  0x36   :  { %358 = vrot.lane.b32.xlu1 %v412_v1, %s562_s9  ;;  %345 = vrot.lane.b32.xlu0 %v44_v0, %s562_s9 }
  0x3a   :  { %383 = vrot.lane.b32.xlu1 %v412_v1, %s563_s0  ;;  %370 = vrot.lane.b32.xlu0 %v44_v0, %s563_s0 }
  0x74   :  { %v46_v2 = vpop.permute.xlu1 %45   ;;  %v21_v3 = vpop.permute.xlu0 %20  }
  0x75   :  { %408 = vst.msk [vmem:[%s1093_s1 + $0x2] ss:$16 sm:$0x3] %vm3_vm0, %v46_v2   ;;  %409 = vst.msk [vmem:[%s1093_s1 + $0x2] ss:$16 sm:$0xc] %vm3_vm0, %v46_v2  }
  0x76   :  { %410 = vst.msk [vmem:[%s1093_s1 + $0x2] ss:$16 sm:$0x30] %vm3_vm0, %v46_v2   ;;  %411 = vst.msk [vmem:[%s1093_s1 + $0x2] ss:$16 sm:$0xc0] %vm3_vm0, %v46_v2  }
  0x77   :  { %399 = vst.msk [vmem:[%s1093_s1 + $0x1] ss:$16 sm:$0x3] %vm3_vm0, %v21_v3   ;;  %400 = vst.msk [vmem:[%s1093_s1 + $0x1] ss:$16 sm:$0xc] %vm3_vm0, %v21_v3  }
  0x78   :  { %401 = vst.msk [vmem:[%s1093_s1 + $0x1] ss:$16 sm:$0x30] %vm3_vm0, %v21_v3   ;;  %402 = vst.msk [vmem:[%s1093_s1 + $0x1] ss:$16 sm:$0xc0] %vm3_vm0, %v21_v3   ;;  %v59_v4 = vpop.permute.xlu1 %58   ;;  %v34_v5 = vpop.permute.xlu0 %33  }
  0x79   :  { %413 = vst.msk [vmem:[%s1093_s1 + $0x82] ss:$16 sm:$0x3] %vm3_vm0, %v59_v4   ;;  %414 = vst.msk [vmem:[%s1093_s1 + $0x82] ss:$16 sm:$0xc] %vm3_vm0, %v59_v4  }
  0x7a   :  { %415 = vst.msk [vmem:[%s1093_s1 + $0x82] ss:$16 sm:$0x30] %vm3_vm0, %v59_v4   ;;  %416 = vst.msk [vmem:[%s1093_s1 + $0x82] ss:$16 sm:$0xc0] %vm3_vm0, %v59_v4  }
  0x7b   :  { %404 = vst.msk [vmem:[%s1093_s1 + $0x81] ss:$16 sm:$0x3] %vm3_vm0, %v34_v5   ;;  %405 = vst.msk [vmem:[%s1093_s1 + $0x81] ss:$16 sm:$0xc] %vm3_vm0, %v34_v5  }
  0x7c   :  { %406 = vst.msk [vmem:[%s1093_s1 + $0x81] ss:$16 sm:$0x30] %vm3_vm0, %v34_v5   ;;  %407 = vst.msk [vmem:[%s1093_s1 + $0x81] ss:$16 sm:$0xc0] %vm3_vm0, %v34_v5   ;;  %v84_v6 = vpop.permute.xlu1 %83   ;;  %v71_v7 = vpop.permute.xlu0 %70  }
  0x7d   :  { %422 = vst.msk [vmem:[%s1093_s1 + $0x83] ss:$16 sm:$0x3] %vm3_vm0, %v84_v6   ;;  %423 = vst.msk [vmem:[%s1093_s1 + $0x83] ss:$16 sm:$0xc] %vm3_vm0, %v84_v6  }
  0x7e   :  { %424 = vst.msk [vmem:[%s1093_s1 + $0x83] ss:$16 sm:$0x30] %vm3_vm0, %v84_v6   ;;  %425 = vst.msk [vmem:[%s1093_s1 + $0x83] ss:$16 sm:$0xc0] %vm3_vm0, %v84_v6  }
  0x7f   :  { %417 = vst.msk [vmem:[%s1093_s1 + $0x3] ss:$16 sm:$0x3] %vm3_vm0, %v71_v7   ;;  %418 = vst.msk [vmem:[%s1093_s1 + $0x3] ss:$16 sm:$0xc] %vm3_vm0, %v71_v7  }
  0x80   :  { %419 = vst.msk [vmem:[%s1093_s1 + $0x3] ss:$16 sm:$0x30] %vm3_vm0, %v71_v7   ;;  %420 = vst.msk [vmem:[%s1093_s1 + $0x3] ss:$16 sm:$0xc0] %vm3_vm0, %v71_v7   ;;  %v109_v8 = vpop.permute.xlu1 %108   ;;  %v96_v9 = vpop.permute.xlu0 %95  }
  0x81   :  { %431 = vst.msk [vmem:[%s1093_s1 + $0x84] ss:$16 sm:$0x3] %vm3_vm0, %v109_v8   ;;  %432 = vst.msk [vmem:[%s1093_s1 + $0x84] ss:$16 sm:$0xc] %vm3_vm0, %v109_v8  }
  0x82   :  { %433 = vst.msk [vmem:[%s1093_s1 + $0x84] ss:$16 sm:$0x30] %vm3_vm0, %v109_v8   ;;  %434 = vst.msk [vmem:[%s1093_s1 + $0x84] ss:$16 sm:$0xc0] %vm3_vm0, %v109_v8  }
  0x83   :  { %426 = vst.msk [vmem:[%s1093_s1 + $0x4] ss:$16 sm:$0x3] %vm3_vm0, %v96_v9   ;;  %427 = vst.msk [vmem:[%s1093_s1 + $0x4] ss:$16 sm:$0xc] %vm3_vm0, %v96_v9  }
  0x84   :  { %428 = vst.msk [vmem:[%s1093_s1 + $0x4] ss:$16 sm:$0x30] %vm3_vm0, %v96_v9   ;;  %429 = vst.msk [vmem:[%s1093_s1 + $0x4] ss:$16 sm:$0xc0] %vm3_vm0, %v96_v9   ;;  %v134_v10 = vpop.permute.xlu1 %133   ;;  %v121_v11 = vpop.permute.xlu0 %120  }
  0x85   :  { %440 = vst.msk [vmem:[%s1093_s1 + $0x85] ss:$16 sm:$0x3] %vm3_vm0, %v134_v10   ;;  %441 = vst.msk [vmem:[%s1093_s1 + $0x85] ss:$16 sm:$0xc] %vm3_vm0, %v134_v10  }
  0x86   :  { %442 = vst.msk [vmem:[%s1093_s1 + $0x85] ss:$16 sm:$0x30] %vm3_vm0, %v134_v10   ;;  %443 = vst.msk [vmem:[%s1093_s1 + $0x85] ss:$16 sm:$0xc0] %vm3_vm0, %v134_v10  }
  0x87   :  { %435 = vst.msk [vmem:[%s1093_s1 + $0x5] ss:$16 sm:$0x3] %vm3_vm0, %v121_v11   ;;  %436 = vst.msk [vmem:[%s1093_s1 + $0x5] ss:$16 sm:$0xc] %vm3_vm0, %v121_v11  }
  0x88   :  { %437 = vst.msk [vmem:[%s1093_s1 + $0x5] ss:$16 sm:$0x30] %vm3_vm0, %v121_v11   ;;  %438 = vst.msk [vmem:[%s1093_s1 + $0x5] ss:$16 sm:$0xc0] %vm3_vm0, %v121_v11   ;;  %v159_v12 = vpop.permute.xlu1 %158   ;;  %v146_v13 = vpop.permute.xlu0 %145  }
  0x89   :  { %449 = vst.msk [vmem:[%s1093_s1 + $0x86] ss:$16 sm:$0x3] %vm3_vm0, %v159_v12   ;;  %450 = vst.msk [vmem:[%s1093_s1 + $0x86] ss:$16 sm:$0xc] %vm3_vm0, %v159_v12  }
  0x8a   :  { %451 = vst.msk [vmem:[%s1093_s1 + $0x86] ss:$16 sm:$0x30] %vm3_vm0, %v159_v12   ;;  %452 = vst.msk [vmem:[%s1093_s1 + $0x86] ss:$16 sm:$0xc0] %vm3_vm0, %v159_v12  }
  0x8b   :  { %444 = vst.msk [vmem:[%s1093_s1 + $0x6] ss:$16 sm:$0x3] %vm3_vm0, %v146_v13   ;;  %445 = vst.msk [vmem:[%s1093_s1 + $0x6] ss:$16 sm:$0xc] %vm3_vm0, %v146_v13  }
  0x8c   :  { %446 = vst.msk [vmem:[%s1093_s1 + $0x6] ss:$16 sm:$0x30] %vm3_vm0, %v146_v13   ;;  %447 = vst.msk [vmem:[%s1093_s1 + $0x6] ss:$16 sm:$0xc0] %vm3_vm0, %v146_v13   ;;  %v184_v14 = vpop.permute.xlu1 %183   ;;  %v171_v15 = vpop.permute.xlu0 %170  }
  0x8d   :  { %458 = vst.msk [vmem:[%s1093_s1 + $0x87] ss:$16 sm:$0x3] %vm3_vm0, %v184_v14   ;;  %459 = vst.msk [vmem:[%s1093_s1 + $0x87] ss:$16 sm:$0xc] %vm3_vm0, %v184_v14  }
  0x8e   :  { %460 = vst.msk [vmem:[%s1093_s1 + $0x87] ss:$16 sm:$0x30] %vm3_vm0, %v184_v14   ;;  %461 = vst.msk [vmem:[%s1093_s1 + $0x87] ss:$16 sm:$0xc0] %vm3_vm0, %v184_v14  }
  0x8f   :  { %453 = vst.msk [vmem:[%s1093_s1 + $0x7] ss:$16 sm:$0x3] %vm3_vm0, %v171_v15   ;;  %454 = vst.msk [vmem:[%s1093_s1 + $0x7] ss:$16 sm:$0xc] %vm3_vm0, %v171_v15  }
  0x90   :  { %455 = vst.msk [vmem:[%s1093_s1 + $0x7] ss:$16 sm:$0x30] %vm3_vm0, %v171_v15   ;;  %456 = vst.msk [vmem:[%s1093_s1 + $0x7] ss:$16 sm:$0xc0] %vm3_vm0, %v171_v15   ;;  %v209_v16 = vpop.permute.xlu1 %208   ;;  %v196_v17 = vpop.permute.xlu0 %195  }
  0x91   :  { %467 = vst.msk [vmem:[%s1093_s1 + $0x88] ss:$16 sm:$0x3] %vm3_vm0, %v209_v16   ;;  %468 = vst.msk [vmem:[%s1093_s1 + $0x88] ss:$16 sm:$0xc] %vm3_vm0, %v209_v16  }
  0x92   :  { %469 = vst.msk [vmem:[%s1093_s1 + $0x88] ss:$16 sm:$0x30] %vm3_vm0, %v209_v16   ;;  %470 = vst.msk [vmem:[%s1093_s1 + $0x88] ss:$16 sm:$0xc0] %vm3_vm0, %v209_v16  }
  0x93   :  { %462 = vst.msk [vmem:[%s1093_s1 + $0x8] ss:$16 sm:$0x3] %vm3_vm0, %v196_v17   ;;  %463 = vst.msk [vmem:[%s1093_s1 + $0x8] ss:$16 sm:$0xc] %vm3_vm0, %v196_v17  }
  0x94   :  { %464 = vst.msk [vmem:[%s1093_s1 + $0x8] ss:$16 sm:$0x30] %vm3_vm0, %v196_v17   ;;  %465 = vst.msk [vmem:[%s1093_s1 + $0x8] ss:$16 sm:$0xc0] %vm3_vm0, %v196_v17   ;;  %v234_v18 = vpop.permute.xlu1 %233   ;;  %v221_v19 = vpop.permute.xlu0 %220  }
  0x95   :  { %476 = vst.msk [vmem:[%s1093_s1 + $0x89] ss:$16 sm:$0x3] %vm3_vm0, %v234_v18   ;;  %477 = vst.msk [vmem:[%s1093_s1 + $0x89] ss:$16 sm:$0xc] %vm3_vm0, %v234_v18  }
  0x96   :  { %478 = vst.msk [vmem:[%s1093_s1 + $0x89] ss:$16 sm:$0x30] %vm3_vm0, %v234_v18   ;;  %479 = vst.msk [vmem:[%s1093_s1 + $0x89] ss:$16 sm:$0xc0] %vm3_vm0, %v234_v18  }
  0x97   :  { %471 = vst.msk [vmem:[%s1093_s1 + $0x9] ss:$16 sm:$0x3] %vm3_vm0, %v221_v19   ;;  %472 = vst.msk [vmem:[%s1093_s1 + $0x9] ss:$16 sm:$0xc] %vm3_vm0, %v221_v19  }
  0x98   :  { %473 = vst.msk [vmem:[%s1093_s1 + $0x9] ss:$16 sm:$0x30] %vm3_vm0, %v221_v19   ;;  %474 = vst.msk [vmem:[%s1093_s1 + $0x9] ss:$16 sm:$0xc0] %vm3_vm0, %v221_v19   ;;  %v259_v20 = vpop.permute.xlu1 %258   ;;  %v246_v21 = vpop.permute.xlu0 %245  }
  0x99   :  { %485 = vst.msk [vmem:[%s1093_s1 + $0x8a] ss:$16 sm:$0x3] %vm3_vm0, %v259_v20   ;;  %486 = vst.msk [vmem:[%s1093_s1 + $0x8a] ss:$16 sm:$0xc] %vm3_vm0, %v259_v20  }
  0x9a   :  { %487 = vst.msk [vmem:[%s1093_s1 + $0x8a] ss:$16 sm:$0x30] %vm3_vm0, %v259_v20   ;;  %488 = vst.msk [vmem:[%s1093_s1 + $0x8a] ss:$16 sm:$0xc0] %vm3_vm0, %v259_v20  }
  0x9b   :  { %480 = vst.msk [vmem:[%s1093_s1 + $0xa] ss:$16 sm:$0x3] %vm3_vm0, %v246_v21   ;;  %481 = vst.msk [vmem:[%s1093_s1 + $0xa] ss:$16 sm:$0xc] %vm3_vm0, %v246_v21  }
  0x9c   :  { %482 = vst.msk [vmem:[%s1093_s1 + $0xa] ss:$16 sm:$0x30] %vm3_vm0, %v246_v21   ;;  %483 = vst.msk [vmem:[%s1093_s1 + $0xa] ss:$16 sm:$0xc0] %vm3_vm0, %v246_v21   ;;  %v284_v22 = vpop.permute.xlu1 %283   ;;  %v271_v23 = vpop.permute.xlu0 %270  }
  0x9d   :  { %494 = vst.msk [vmem:[%s1093_s1 + $0x8b] ss:$16 sm:$0x3] %vm3_vm0, %v284_v22   ;;  %495 = vst.msk [vmem:[%s1093_s1 + $0x8b] ss:$16 sm:$0xc] %vm3_vm0, %v284_v22  }
  0x9e   :  { %496 = vst.msk [vmem:[%s1093_s1 + $0x8b] ss:$16 sm:$0x30] %vm3_vm0, %v284_v22   ;;  %497 = vst.msk [vmem:[%s1093_s1 + $0x8b] ss:$16 sm:$0xc0] %vm3_vm0, %v284_v22  }
  0x9f   :  { %489 = vst.msk [vmem:[%s1093_s1 + $0xb] ss:$16 sm:$0x3] %vm3_vm0, %v271_v23   ;;  %490 = vst.msk [vmem:[%s1093_s1 + $0xb] ss:$16 sm:$0xc] %vm3_vm0, %v271_v23  }
  0xa0   :  { %491 = vst.msk [vmem:[%s1093_s1 + $0xb] ss:$16 sm:$0x30] %vm3_vm0, %v271_v23   ;;  %492 = vst.msk [vmem:[%s1093_s1 + $0xb] ss:$16 sm:$0xc0] %vm3_vm0, %v271_v23   ;;  %v309_v24 = vpop.permute.xlu1 %308   ;;  %v296_v25 = vpop.permute.xlu0 %295  }
  0xa1   :  { %503 = vst.msk [vmem:[%s1093_s1 + $0x8c] ss:$16 sm:$0x3] %vm3_vm0, %v309_v24   ;;  %504 = vst.msk [vmem:[%s1093_s1 + $0x8c] ss:$16 sm:$0xc] %vm3_vm0, %v309_v24  }
  0xa2   :  { %505 = vst.msk [vmem:[%s1093_s1 + $0x8c] ss:$16 sm:$0x30] %vm3_vm0, %v309_v24   ;;  %506 = vst.msk [vmem:[%s1093_s1 + $0x8c] ss:$16 sm:$0xc0] %vm3_vm0, %v309_v24  }
  0xa3   :  { %498 = vst.msk [vmem:[%s1093_s1 + $0xc] ss:$16 sm:$0x3] %vm3_vm0, %v296_v25   ;;  %499 = vst.msk [vmem:[%s1093_s1 + $0xc] ss:$16 sm:$0xc] %vm3_vm0, %v296_v25  }
  0xa4   :  { %500 = vst.msk [vmem:[%s1093_s1 + $0xc] ss:$16 sm:$0x30] %vm3_vm0, %v296_v25   ;;  %501 = vst.msk [vmem:[%s1093_s1 + $0xc] ss:$16 sm:$0xc0] %vm3_vm0, %v296_v25   ;;  %v334_v26 = vpop.permute.xlu1 %333   ;;  %v321_v27 = vpop.permute.xlu0 %320  }
  0xa5   :  { %512 = vst.msk [vmem:[%s1093_s1 + $0x8d] ss:$16 sm:$0x3] %vm3_vm0, %v334_v26   ;;  %513 = vst.msk [vmem:[%s1093_s1 + $0x8d] ss:$16 sm:$0xc] %vm3_vm0, %v334_v26  }
  0xa6   :  { %514 = vst.msk [vmem:[%s1093_s1 + $0x8d] ss:$16 sm:$0x30] %vm3_vm0, %v334_v26   ;;  %515 = vst.msk [vmem:[%s1093_s1 + $0x8d] ss:$16 sm:$0xc0] %vm3_vm0, %v334_v26  }
  0xa7   :  { %507 = vst.msk [vmem:[%s1093_s1 + $0xd] ss:$16 sm:$0x3] %vm3_vm0, %v321_v27   ;;  %508 = vst.msk [vmem:[%s1093_s1 + $0xd] ss:$16 sm:$0xc] %vm3_vm0, %v321_v27  }
  0xa8   :  { %509 = vst.msk [vmem:[%s1093_s1 + $0xd] ss:$16 sm:$0x30] %vm3_vm0, %v321_v27   ;;  %510 = vst.msk [vmem:[%s1093_s1 + $0xd] ss:$16 sm:$0xc0] %vm3_vm0, %v321_v27   ;;  %v359_v28 = vpop.permute.xlu1 %358   ;;  %v346_v29 = vpop.permute.xlu0 %345  }
  0xa9   :  { %521 = vst.msk [vmem:[%s1093_s1 + $0x8e] ss:$16 sm:$0x3] %vm3_vm0, %v359_v28   ;;  %522 = vst.msk [vmem:[%s1093_s1 + $0x8e] ss:$16 sm:$0xc] %vm3_vm0, %v359_v28  }
  0xaa   :  { %523 = vst.msk [vmem:[%s1093_s1 + $0x8e] ss:$16 sm:$0x30] %vm3_vm0, %v359_v28   ;;  %524 = vst.msk [vmem:[%s1093_s1 + $0x8e] ss:$16 sm:$0xc0] %vm3_vm0, %v359_v28  }
  0xab   :  { %516 = vst.msk [vmem:[%s1093_s1 + $0xe] ss:$16 sm:$0x3] %vm3_vm0, %v346_v29   ;;  %517 = vst.msk [vmem:[%s1093_s1 + $0xe] ss:$16 sm:$0xc] %vm3_vm0, %v346_v29  }
  0xac   :  { %518 = vst.msk [vmem:[%s1093_s1 + $0xe] ss:$16 sm:$0x30] %vm3_vm0, %v346_v29   ;;  %519 = vst.msk [vmem:[%s1093_s1 + $0xe] ss:$16 sm:$0xc0] %vm3_vm0, %v346_v29   ;;  %v384_v30 = vpop.permute.xlu1 %383   ;;  %v371_v31 = vpop.permute.xlu0 %370  }
  0xad   :  { %530 = vst.msk [vmem:[%s1093_s1 + $0x8f] ss:$16 sm:$0x3] %vm3_vm0, %v384_v30   ;;  %531 = vst.msk [vmem:[%s1093_s1 + $0x8f] ss:$16 sm:$0xc] %vm3_vm0, %v384_v30  }
  0xae   :  { %532 = vst.msk [vmem:[%s1093_s1 + $0x8f] ss:$16 sm:$0x30] %vm3_vm0, %v384_v30   ;;  %533 = vst.msk [vmem:[%s1093_s1 + $0x8f] ss:$16 sm:$0xc0] %vm3_vm0, %v384_v30  }
  0xaf   :  { %525 = vst.msk [vmem:[%s1093_s1 + $0xf] ss:$16 sm:$0x3] %vm3_vm0, %v371_v31   ;;  %526 = vst.msk [vmem:[%s1093_s1 + $0xf] ss:$16 sm:$0xc] %vm3_vm0, %v371_v31  }
  0xb0   :  { %527 = vst.msk [vmem:[%s1093_s1 + $0xf] ss:$16 sm:$0x30] %vm3_vm0, %v371_v31   ;;  %528 = vst.msk [vmem:[%s1093_s1 + $0xf] ss:$16 sm:$0xc0] %vm3_vm0, %v371_v31  }

// kernel: pallas_forward.1
= control target key start
LH: loop header
LB: loop body
LE: loop exit
PB: predicated region body
PF: predicated region fallthrough
CT: control target
= control target key end

     0   :  { %s12627_s0 = inlined_call_operand.vmem [shape: s32[256,1], index: 0, kind: input, shape index: {}]   ;;  %s12628_s1 = inlined_call_operand.vmem [shape: f32[2,256,16], index: 1, kind: input, shape index: {}]   ;;  %s12629_s2 = inlined_call_operand.vmem [shape: bf16[16,64], index: 2, kind: input, shape index: {}]   ;;  %s12630_s3 = inlined_call_operand.vmem [shape: f32[1,64], index: 3, kind: input, shape index: {}]   ;;  %s12631_s4 = inlined_call_operand.vmem [shape: f32[1,64], index: 4, kind: input, shape index: {}]   ;;  %s12632_s5 = inlined_call_operand.vmem [shape: bf16[576,128], index: 5, kind: input, shape index: {}]   ;;  %s12633_s6 = inlined_call_operand.vmem [shape: f32[1,128], index: 6, kind: input, shape index: {}]   ;;  %s12634_s7 = inlined_call_operand.vmem [shape: f32[1,128], index: 7, kind: input, shape index: {}]   ;;  %s12635_s8 = inlined_call_operand.vmem [shape: bf16[1152,256], index: 8, kind: input, shape index: {}]   ;;  %s12636_s9 = inlined_call_operand.vmem [shape: f32[1,256], index: 9, kind: input, shape index: {}]   ;;  %s12637_s10 = inlined_call_operand.vmem [shape: f32[1,256], index: 10, kind: input, shape index: {}]   ;;  %s12638_s11 = inlined_call_operand.vmem [shape: bf16[256,128], index: 11, kind: input, shape index: {}]   ;;  %s12639_s12 = inlined_call_operand.vmem [shape: f32[1,128], index: 12, kind: input, shape index: {}]   ;;  %s12640_s13 = inlined_call_operand.vmem [shape: f32[1,128], index: 13, kind: input, shape index: {}]   ;;  %s12641_s14 = inlined_call_operand.vmem [shape: bf16[128,128], index: 14, kind: input, shape index: {}]   ;;  %s12642_s15 = inlined_call_operand.vmem [shape: f32[1,128], index: 15, kind: input, shape index: {}]   ;;  %s12643_s16 = inlined_call_operand.hbm [shape: f32[2,1,128], index: 16, kind: output, shape index: {}]  }
   0x1   :  { %13055 = sst [smem:[#allocation134_spill]] %s12627_s0 }
   0x2   :  { %13056 = sst [smem:[#allocation135_spill]] %s12628_s1 }
   0x3   :  { %13057 = sst [smem:[#allocation136_spill]] %s12629_s2 }
   0x4   :  { %13058 = sst [smem:[#allocation137_spill]] %s12630_s3 }
   0x5   :  { %21 = vsyncpa [#allocation3], 0 }
   0x6   :  { %23 = vsyncpa [#allocation3 + $0x1], 0  ;;  %s7891_s21 = smov 0   ;;  %s7893_s22 = smov 0  }
   0x7   :  { %s7895_s23 = smov 0   ;;  %s7897_s24 = smov 0  }
   0x8 LB: > { %13059 = sst [smem:[#allocation5_spill]] %s7794_s23  ;;  %s7912_s25 = sadd.s32 4294967295, %s7798_s24   ;;  %s7798_s24 = sphi %s7897_s24, %s14105_s24   ;;  %s7794_s23 = sphi %s7895_s23, %s14107_s23   ;;  %s7790_s22 = sphi %s7893_s22, %s14109_s22   ;;  %s7786_s21 = sphi %s7891_s21, %s14108_s21  }
   0x9   : > { %s6232_s26 = sadd.s32 4294967294, %s7798_s24   ;;  %s7916_s27 = sadd.s32 1, %s7798_s24  }
   0xa   : > { %13060 = sst [smem:[#allocation6_spill]] %s7916_s27  ;;  %s377_s28 = sadd.s32 1, %s7794_s23 }
   0xb   : > { %s374_s29 = ssub.s32 %s7798_s24, %s7916_s27  ;;  %p387_p0 = scmp.ne.s32.totalorder %s7794_s23, %s7790_s22 }
   0xc   : > { %p375_p1 = scmp.eq.s32.totalorder %s374_s29, 0  ;;  %p388_p2 = scmp.eq.s32.totalorder %s7912_s25, 1 }
   0xd   : > { %p393_p3 = scmp.ne.s32.totalorder %s7790_s22, %s7786_s21  ;;  %p394_p4 = scmp.eq.s32.totalorder %s6232_s26, 1 }
   0xe   : > { %s7927_s30 = scalar_select %p375_p1, %s7794_s23, %s377_s28  }
   0xf   : > { %p7929_p5 = por %p388_p2, %p387_p0  ;;  %p7933_p6 = por %p394_p4, %p393_p3 }
  0x10   : > { %13061 = sst [smem:[#allocation7_spill]] %s7927_s30  ;;  %p6235_p7 = scmp.ge.s32.totalorder %s7798_s24, 1 }
  0x11   : > { %p465_p8 = scmp.lt.s32.totalorder %s7798_s24, 3 }
  0x13   : > { %p466_p9 = pnand %p6235_p7, %p465_p8 }
  0x15   : > { %469 = sbr.rel (%p466_p9) target bundleno = 1810 (0x712), region = 84 }
  0x1a   : > { %s13064_s2 = sld [smem:[#allocation136_spill]]  ;;  %p514_p10 = scmp.lt.s32.totalorder %s7912_s25, 1  ;;  %v12650_v5 = vmov 0   ;;  %vm672_vm4 = vcmask 130048  }
  0x1b   : > { %s13065_s28 = sld [smem:[#allocation134_spill]]  ;;  %7204 = vset.pattern.permute.xlu1 %v12650_v5  ;;  %7203 = vset.pattern.permute.xlu0 %v12650_v5  ;;  %s6767_s29 = sshll.u32 %s7912_s25, 4 }
  0x1c   : > { %s515_s18 = scalar_select %p514_p10, %s7912_s25, 1 }
  0x1d   : > { %s13066_s1 = sld [smem:[#allocation135_spill]]  ;;  %s7805_s25 = smov [#allocation2]  }
  0x1e   : > { %s6770_s23 = sshll.u32 %s515_s18, 8  ;;  %s13067_s3 = sld [smem:[#allocation137_spill]] }
  0x1f   : > { %s7802_s18 = smov 64   ;;  %s7742_s26 = sshll.u32 %s7805_s25, 4  ;;  %s7743_s26 = int_to_ptr.vmem [resolvable:$false] %s7742_s26 }
  0x20   : > { %v7445_v0 = vld [vmem:[%s13064_s2] sm:$0xff]  }
  0x21   : > { %v7946_v1 = vld [vmem:[%s13065_s28 + $0x10] sm:$0xff]  ;;  %v7951_v2 = vld [vmem:[%s13065_s28 + $0x18] sm:$0xff]  ;;  %v7956_v3 = vld [vmem:[%s13065_s28] sm:$0xff]  ;;  %7063 = vmatprep.subr.bf16.mxu0 %v7445_v0  ;;  %7157 = vmatprep.subr.bf16.mxu1 %v7445_v0 }
  0x22   : > { %vm554_vm0 = vcmp.gt.s32.totalorder %v7946_v1, 0  ;;  %vm552_vm1 = vcmp.gt.s32.totalorder %v7956_v3, 0  ;;  %v7964_v4 = vld [vmem:[%s13065_s28 + $0x8] sm:$0xff]  ;;  %7064 = vmatpush3.bf16.msra.mxu0 %v7445_v0  ;;  %7158 = vmatpush3.bf16.msra.mxu1 %v7445_v0  ;;  %vm555_vm2 = vcmp.gt.s32.totalorder %v7951_v2, 0  ;;  %v7985_v9 = vld [vmem:[%s13065_s28 + $0x38] sm:$0xff]  ;;  %v7990_v10 = vld [vmem:[%s13065_s28 + $0x20] sm:$0xff] }
  0x23   : > { %v994_v6 = vsel %vm554_vm0, 1, %v12650_v5  ;;  %v992_v7 = vsel %vm552_vm1, 1, %v12650_v5  ;;  %v7974_v8 = vld [vmem:[%s13065_s28 + $0x28] sm:$0xff]  ;;  %s7979_s19 = scalar_lea.vmem %s13066_s1, %s6770_s23  ;;  %vm553_vm3 = vcmp.gt.s32.totalorder %v7964_v4, 0  ;;  %v995_v14 = vsel %vm555_vm2, 1, %v12650_v5  ;;  %v8027_v33 = vld [vmem:[%s13065_s28 + $0x30] sm:$0xff] }
  0x24   : > { %1031 = vperm.xlu1 %7204, %v994_v6   ;;  %1025 = vperm.xlu0 %7203, %v992_v7   ;;  %v616_v11 = vld [vmem:[%s7979_s19] sm:$0xff]  ;;  %v617_v12 = vld [vmem:[%s7979_s19 + $0x8] sm:$0xff]  ;;  %v618_v17 = vld [vmem:[%s7979_s19 + $0x10] sm:$0xff]  ;;  %vm557_vm5 = vcmp.gt.s32.totalorder %v7974_v8, 0  ;;  %v993_v24 = vsel %vm553_vm3, 1, %v12650_v5  ;;  %vm556_vm6 = vcmp.gt.s32.totalorder %v7990_v10, 0 }
  0x25   : > { %v632_v13 = vld [vmem:[%s7979_s19 + $0x80] sm:$0xff]  ;;  %v648_v15 = vpack.c.bf16 %v617_v12, %v616_v11  ;;  %v633_v16 = vld [vmem:[%s7979_s19 + $0x88] sm:$0xff]  ;;  %v619_v18 = vld [vmem:[%s7979_s19 + $0x18] sm:$0xff]  ;;  %v997_v31 = vsel %vm557_vm5, 1, %v12650_v5  ;;  %vm559_vm7 = vcmp.gt.s32.totalorder %v7985_v9, 0  ;;  %v996_v41 = vsel %vm556_vm6, 1, %v12650_v5 }
  0x26   : > { %v656_v19 = vpack.c.bf16 %v633_v16, %v632_v13  ;;  %v649_v20 = vpack.c.bf16 %v619_v18, %v618_v17  ;;  %v634_v21 = vld [vmem:[%s7979_s19 + $0x90] sm:$0xff]  ;;  %v635_v22 = vld [vmem:[%s7979_s19 + $0x98] sm:$0xff]  ;;  %v620_v23 = vld [vmem:[%s7979_s19 + $0x20] sm:$0xff]  ;;  %v999_v44 = vsel %vm559_vm7, 1, %v12650_v5  ;;  %vm558_vm9 = vcmp.gt.s32.totalorder %v8027_v33, 0  ;;  %s512_s23 = sand.u32 1, %s7790_s22  }
  0x27   : > { %7065 = vmatprep.mubr.msk.bf16.mxu0 %vm672_vm4, %v648_v15  ;;  %v657_v25 = vpack.c.bf16 %v635_v22, %v634_v21  ;;  %v621_v26 = vld [vmem:[%s7979_s19 + $0x28] sm:$0xff]  ;;  %v636_v27 = vld [vmem:[%s7979_s19 + $0xa0] sm:$0xff]  ;;  %v531_v34 = vld [vmem:[%s13065_s28 + $0x58] sm:$0xff]  ;;  %vm585_vm11 = vcmp.lt.s32.totalorder %v7964_v4, 15  ;;  %vm584_vm12 = vcmp.lt.s32.totalorder %v7956_v3, 15  ;;  %vm586_vm13 = vcmp.lt.s32.totalorder %v7946_v1, 15 }
  0x28   : > { %v637_v28 = vld [vmem:[%s7979_s19 + $0xa8] sm:$0xff]  ;;  %1034 = vperm.xlu1 %7204, %v995_v14   ;;  %7081 = vmatprep.mubr.msk.bf16.mxu1 %vm672_vm4, %v656_v19  ;;  %v650_v29 = vpack.c.bf16 %v621_v26, %v620_v23  ;;  %v622_v35 = vld [vmem:[%s7979_s19 + $0x30] sm:$0xff]  ;;  %v623_v36 = vld [vmem:[%s7979_s19 + $0x38] sm:$0xff]  ;;  %vm563_vm10 = vcmp.gt.s32.totalorder %v531_v34, 0  ;;  %v998_v55 = vsel %vm558_vm9, 1, %v12650_v5  ;;  %v1310_v61 = vsel %vm585_vm11, 1, %v12650_v5 }
  0x29   : > { %7066 = vmatmul.mubr.msk.bf16.vlgmr.msra.gmra.mxu0 %vm672_vm4, %v649_v20  ;;  %v658_v30 = vpack.c.bf16 %v637_v28, %v636_v27  ;;  %v8022_v32 = vld [vmem:[%s13065_s28 + $0x48] sm:$0xff]  ;;  %7082 = vmatmul.mubr.msk.bf16.vlgmr.msra.gmra.mxu1 %vm672_vm4, %v657_v25  ;;  %v638_v37 = vld [vmem:[%s7979_s19 + $0xb0] sm:$0xff]  ;;  %v639_v38 = vld [vmem:[%s7979_s19 + $0xb8] sm:$0xff]  ;;  %v651_v45 = vpack.c.bf16 %v623_v36, %v622_v35  ;;  %v1003_v56 = vsel %vm563_vm10, 1, %v12650_v5  ;;  %vm587_vm15 = vcmp.lt.s32.totalorder %v7951_v2, 15  ;;  %s513_s1 = scalar_lea.vmem [#allocation2], %s512_s23 }
  0x2a   : > { %1028 = vperm.xlu0 %7203, %v993_v24   ;;  %7069 = vmatprep.mubr.msk.bf16.mxu0 %vm672_vm4, %v650_v29  ;;  %v624_v39 = vld [vmem:[%s7979_s19 + $0x40] sm:$0xff]  ;;  %v625_v40 = vld [vmem:[%s7979_s19 + $0x48] sm:$0xff]  ;;  %vm561_vm8 = vcmp.gt.s32.totalorder %v8022_v32, 0  ;;  %v659_v46 = vpack.c.bf16 %v639_v38, %v638_v37  ;;  %v8063_v51 = vld [vmem:[%s13065_s28 + $0x50] sm:$0xff]  ;;  %v1309_v4 = vsel %vm584_vm12, 1, %v12650_v5  ;;  %v1311_v11 = vsel %vm586_vm13, 1, %v12650_v5 }
  0x2b   : > { %7085 = vmatprep.mubr.msk.bf16.mxu1 %vm672_vm4, %v658_v30  ;;  %v640_v42 = vld [vmem:[%s7979_s19 + $0xc0] sm:$0xff]  ;;  %v641_v43 = vld [vmem:[%s7979_s19 + $0xc8] sm:$0xff]  ;;  %v652_v47 = vpack.c.bf16 %v625_v40, %v624_v39  ;;  %v626_v52 = vld [vmem:[%s7979_s19 + $0x50] sm:$0xff]  ;;  %v1001_v54 = vsel %vm561_vm8, 1, %v12650_v5  ;;  %vm562_vm1 = vcmp.gt.s32.totalorder %v8063_v51, 0  ;;  %v1312_v1 = vsel %vm587_vm15, 1, %v12650_v5 }
  0x2c   : > { %1040 = vperm.xlu1 %7204, %v997_v31   ;;  %v8054_v48 = vld [vmem:[%s13065_s28 + $0x40] sm:$0xff]  ;;  %v660_v49 = vpack.c.bf16 %v641_v43, %v640_v42  ;;  %v533_v50 = vld [vmem:[%s13065_s28 + $0x68] sm:$0xff]  ;;  %v627_v53 = vld [vmem:[%s7979_s19 + $0x58] sm:$0xff]  ;;  %v1002_v18 = vsel %vm562_vm1, 1, %v12650_v5  ;;  %vm588_vm10 = vcmp.lt.s32.totalorder %v7990_v10, 15  ;;  %vm590_vm13 = vcmp.lt.s32.totalorder %v8027_v33, 15 }
  0x2d   : > { %v535_v57 = vld [vmem:[%s13065_s28 + $0x78] sm:$0xff]  ;;  %v532_v58 = vld [vmem:[%s13065_s28 + $0x60] sm:$0xff]  ;;  %v534_v59 = vld [vmem:[%s13065_s28 + $0x70] sm:$0xff]  ;;  %vm560_vm14 = vcmp.gt.s32.totalorder %v8054_v48, 0  ;;  %vm565_vm0 = vcmp.gt.s32.totalorder %v533_v50, 0  ;;  %v653_v12 = vpack.c.bf16 %v627_v53, %v626_v52  ;;  %v1313_v38 = vsel %vm588_vm10, 1, %v12650_v5 }
  0x2e   : > { %1037 = vperm.xlu0 %7203, %v996_v41   ;;  %v642_v60 = vld [vmem:[%s7979_s19 + $0xd0] sm:$0xff]  ;;  %v537_v62 = vld [vmem:[%s13065_s28 + $0x88] sm:$0xff]  ;;  %v536_v63 = vld [vmem:[%s13065_s28 + $0x80] sm:$0xff]  ;;  %vm567_vm2 = vcmp.gt.s32.totalorder %v535_v57, 0  ;;  %vm564_vm3 = vcmp.gt.s32.totalorder %v532_v58, 0  ;;  %vm566_vm5 = vcmp.gt.s32.totalorder %v534_v59, 0 }
  0x2f   : > { %v643_v0 = vld [vmem:[%s7979_s19 + $0xd8] sm:$0xff]  ;;  %v628_v6 = vld [vmem:[%s7979_s19 + $0x60] sm:$0xff]  ;;  %v629_v7 = vld [vmem:[%s7979_s19 + $0x68] sm:$0xff]  ;;  %v1000_v3 = vsel %vm560_vm14, 1, %v12650_v5  ;;  %vm569_vm6 = vcmp.gt.s32.totalorder %v537_v62, 0  ;;  %vm568_vm7 = vcmp.gt.s32.totalorder %v536_v63, 0 }
  0x30   : > { %1046 = vperm.xlu1 %7204, %v999_v44   ;;  %v661_v13 = vpack.c.bf16 %v643_v0, %v642_v60  ;;  %v654_v14 = vpack.c.bf16 %v629_v7, %v628_v6  ;;  %v1005_v15 = vsel %vm565_vm0, 1, %v12650_v5  ;;  %v644_v16 = vld [vmem:[%s7979_s19 + $0xe0] sm:$0xff]  ;;  %v645_v17 = vld [vmem:[%s7979_s19 + $0xe8] sm:$0xff]  ;;  %v1007_v19 = vsel %vm567_vm2, 1, %v12650_v5  ;;  %v539_v21 = vld [vmem:[%s13065_s28 + $0x98] sm:$0xff]  ;;  %s6177_s2 = sshll.u32 %s513_s1, 4  ;;  %s12588_s2 = int_to_ptr.vmem [resolvable:$true] %s6177_s2 }
  0x31   : > { %7070 = vmatmul.mubr.msk.bf16.gmra.mxu0 %vm672_vm4, %v651_v45  ;;  %7086 = vmatmul.mubr.msk.bf16.gmra.mxu1 %vm672_vm4, %v659_v46  ;;  %v1004_v20 = vsel %vm564_vm3, 1, %v12650_v5  ;;  %v1006_v2 = vsel %vm566_vm5, 1, %v12650_v5  ;;  %v1009_v22 = vsel %vm569_vm6, 1, %v12650_v5  ;;  %v1008_v23 = vsel %vm568_vm7, 1, %v12650_v5  ;;  %v630_v25 = vld [vmem:[%s7979_s19 + $0x70] sm:$0xff]  ;;  %v631_v26 = vld [vmem:[%s7979_s19 + $0x78] sm:$0xff]  ;;  %p7745_p0 = scmp.lt.s32.totalorder %s12588_s2, %s7743_s26 }
  0x32   : > { %7073 = vmatprep.mubr.msk.bf16.mxu0 %vm672_vm4, %v652_v47  ;;  %7089 = vmatprep.mubr.msk.bf16.mxu1 %vm672_vm4, %v660_v49  ;;  %v662_v24 = vpack.c.bf16 %v645_v17, %v644_v16  ;;  %vm571_vm8 = vcmp.gt.s32.totalorder %v539_v21, 0  ;;  %v646_v27 = vld [vmem:[%s7979_s19 + $0xf0] sm:$0xff]  ;;  %v647_v28 = vld [vmem:[%s7979_s19 + $0xf8] sm:$0xff]  ;;  %v655_v29 = vpack.c.bf16 %v631_v26, %v630_v25  ;;  %v541_v35 = vld [vmem:[%s13065_s28 + $0xa8] sm:$0xff]  ;;  %v1315_v42 = vsel %vm590_vm13, 1, %v12650_v5  ;;  %s12586_s19 = scalar_lea.hbm %s12643_s16, %s6767_s29  ;;  %s6165_s27 = scalar_lea.sflag [#allocation3], %s512_s23 }
  0x33   : > { %1043 = vperm.xlu0 %7203, %v998_v55   ;;  %v663_v30 = vpack.c.bf16 %v647_v28, %v646_v27  ;;  %v538_v31 = vld [vmem:[%s13065_s28 + $0x90] sm:$0xff]  ;;  %v1011_v34 = vsel %vm571_vm8, 1, %v12650_v5  ;;  %v540_v37 = vld [vmem:[%s13065_s28 + $0xa0] sm:$0xff]  ;;  %vm573_vm11 = vcmp.gt.s32.totalorder %v541_v35, 0  ;;  %v543_v40 = vld [vmem:[%s13065_s28 + $0xb8] sm:$0xff]  ;;  %vm591_vm14 = vcmp.lt.s32.totalorder %v7985_v9, 15 }
  0x34   : > { %1052 = vperm.xlu1 %7204, %v1001_v54   ;;  %vm570_vm9 = vcmp.gt.s32.totalorder %v538_v31, 0  ;;  %v1013_v39 = vsel %vm573_vm11, 1, %v12650_v5  ;;  %vm572_vm12 = vcmp.gt.s32.totalorder %v540_v37, 0  ;;  %vm575_vm15 = vcmp.gt.s32.totalorder %v543_v40, 0  ;;  %v545_v33 = vld [vmem:[%s13065_s28 + $0xc8] sm:$0xff]  ;;  %v7447_v49 = vld [vmem:[%s12632_s5 + $0x38] sm:$0xff]  }
  0x35   : > { %v1010_v36 = vsel %vm570_vm9, 1, %v12650_v5  ;;  %v1012_v41 = vsel %vm572_vm12, 1, %v12650_v5  ;;  %v1316_v43 = vsel %vm591_vm14, 1, %v12650_v5  ;;  %v1015_v44 = vsel %vm575_vm15, 1, %v12650_v5  ;;  %v7449_v50 = vld [vmem:[%s12632_s5 + $0x30] sm:$0xff]   ;;  %v7450_v59 = vld [vmem:[%s12632_s5 + $0x68] sm:$0xff]  }
  0x36   : > { %vm592_vm1 = vcmp.lt.s32.totalorder %v8054_v48, 15  ;;  %vm593_vm2 = vcmp.lt.s32.totalorder %v8022_v32, 15  ;;  %vm577_vm3 = vcmp.gt.s32.totalorder %v545_v33, 0  ;;  %v7446_v48 = vld [vmem:[%s12632_s5 + $0x78] sm:$0xff]   ;;  %v7448_v32 = vld [vmem:[%s12632_s5 + $0x70] sm:$0xff]   ;;  %v7451_v60 = vld [vmem:[%s12632_s5 + $0x28] sm:$0xff]  }
  0x37   : > { %1049 = vperm.xlu0 %7203, %v1000_v3   ;;  %v1317_v9 = vsel %vm592_vm1, 1, %v12650_v5  ;;  %v1318_v46 = vsel %vm593_vm2, 1, %v12650_v5  ;;  %v1017_v47 = vsel %vm577_vm3, 1, %v12650_v5  ;;  %6788 = vmatprep.subr.bf16.mxu1 %v7446_v48  ;;  %v8194_v53 = vld [vmem:[%s13067_s3] ss:$0 sm:$0xff]  ;;  %vm12909_vm6 = vcmask 1040384  }
  0x38   : > { %1058 = vperm.xlu1 %7204, %v1003_v56   ;;  %6789 = vmatpush3.bf16.msra.mxu1 %v7447_v49  ;;  %v8199_v55 = vld [vmem:[%s12631_s4] ss:$0 sm:$0xff]  ;;  %vm594_vm9 = vcmp.lt.s32.totalorder %v8063_v51, 15  ;;  %v8398_v51 = vld [vmem:[%s13065_s28 + $0xd8] sm:$0xff]  ;;  %s7738_s30 = scalar_lea.vmem %s12588_s2, 16 }
  0x39   : > { %7074 = vmatmul.mubr.msk.bf16.gmra.mxu0 %vm672_vm4, %v653_v12  ;;  %7090 = vmatmul.mubr.msk.bf16.gmra.mxu1 %vm672_vm4, %v661_v13  ;;  %v7453_v3 = vld [vmem:[%s12632_s5 + $0x20] sm:$0xff]   ;;  %vm579_vm13 = vcmp.gt.s32.totalorder %v8398_v51, 0  ;;  %p7739_p11 = scmp.ne.s32.totalorder %s12588_s2, %s7738_s30 }
  0x3a   : > { %7077 = vmatprep.mubr.msk.bf16.mxu0 %vm672_vm4, %v654_v14  ;;  %7093 = vmatprep.mubr.msk.bf16.mxu1 %vm672_vm4, %v662_v24  ;;  %v7454_v14 = vld [vmem:[%s12632_s5 + $0x58] sm:$0xff]   ;;  %v7456_v24 = vld [vmem:[%s12632_s5 + $0x50] sm:$0xff]  }
  0x3b   : > { %1055 = vperm.xlu0 %7203, %v1002_v18   ;;  %6790 = vmatprep.subr.bf16.mxu1 %v7448_v32  ;;  %p7740_p12 = pnand %p7739_p11, %p7929_p5 }
  0x3c   : > { %1064 = vperm.xlu1 %7204, %v1005_v15   ;;  %6791 = vmatpush3.bf16.msra.mxu1 %v7449_v50 }
  0x3d   : > { %6792 = vmatprep.subr.bf16.mxu1 %v7450_v59  ;;  %v7458_v59 = vld [vmem:[%s12632_s5 + $0x48] sm:$0xff]   ;;  %p7741_p13 = pneg %p7740_p12 }
  0x3f   : > { %1061 = vperm.xlu0 %7203, %v1004_v20  }
  0x40   : > { %1070 = vperm.xlu1 %7204, %v1007_v19   ;;  %6793 = vmatpush3.bf16.msra.mxu1 %v7451_v60  ;;  %v7459_v60 = vld [vmem:[%s12632_s5 + $0x8] sm:$0xff]  }
  0x41   : > { %7078 = vmatmul.mubr.msk.bf16.gmra.mxu0 %vm672_vm4, %v655_v29  ;;  %7094 = vmatmul.mubr.msk.bf16.gmra.mxu1 %vm672_vm4, %v663_v30  ;;  %vm589_vm4 = vcmp.lt.s32.totalorder %v7974_v8, 15  ;;  %v542_v8 = vld [vmem:[%s13065_s28 + $0xb0] sm:$0xff] }
  0x42   : > { %v1314_v10 = vsel %vm589_vm4, 1, %v12650_v5  ;;  %vm574_vm0 = vcmp.gt.s32.totalorder %v542_v8, 0 }
  0x43   : > { %1067 = vperm.xlu0 %7203, %v1006_v2   ;;  %v1014_v45 = vsel %vm574_vm0, 1, %v12650_v5  ;;  %v7455_v2 = vld [vmem:[%s12632_s5 + $0x18] sm:$0xff]  }
  0x44   : > { %1345 = vperm.xlu1 %7204, %v1310_v61   ;;  %v7452_v61 = vld [vmem:[%s12632_s5 + $0x60] sm:$0xff]  }
  0x45   : > { %6794 = vmatprep.subr.bf16.mxu1 %v7452_v61 }
  0x46   : > { %6795 = vmatpush3.bf16.msra.mxu1 %v7453_v3 }
  0x47   : > { %1342 = vperm.xlu0 %7203, %v1309_v4   ;;  %6796 = vmatprep.subr.bf16.mxu1 %v7454_v14 }
  0x48   : > { %1076 = vperm.xlu1 %7204, %v1009_v22  }
  0x4a   : > { %6797 = vmatpush3.bf16.msra.mxu1 %v7455_v2 }
  0x4b   : > { %1073 = vperm.xlu0 %7203, %v1008_v23   ;;  %6798 = vmatprep.subr.bf16.mxu1 %v7456_v24 }
  0x4c   : > { %1348 = vperm.xlu1 %7204, %v1311_v11  }
  0x4f   : > { %1351 = vperm.xlu0 %7203, %v1312_v1  }
  0x50   : > { %1082 = vperm.xlu1 %7204, %v1011_v34  }
  0x53   : > { %1079 = vperm.xlu0 %7203, %v1010_v36  }
  0x54   : > { %1354 = vperm.xlu1 %7204, %v1313_v38   ;;  %v7457_v38 = vld [vmem:[%s12632_s5 + $0x10] sm:$0xff]  }
  0x55   : > { %6799 = vmatpush3.bf16.msra.mxu1 %v7457_v38 }
  0x56   : > { %6800 = vmatprep.subr.bf16.mxu1 %v7458_v59 }
  0x57   : > { %1357 = vperm.xlu0 %7203, %v1314_v10  }
  0x58   : > { %1088 = vperm.xlu1 %7204, %v1013_v39  }
  0x59   : > { %6801 = vmatpush3.bf16.msra.mxu1 %v7459_v60 }
  0x5b   : > { %1085 = vperm.xlu0 %7203, %v1012_v41  }
  0x5c   : > { %1360 = vperm.xlu1 %7204, %v1315_v42  }
  0x5f   : > { %1363 = vperm.xlu0 %7203, %v1316_v43  }
  0x60   : > { %1094 = vperm.xlu1 %7204, %v1015_v44  }
  0x63   : > { %1091 = vperm.xlu0 %7203, %v1014_v45  }
  0x64   : > { %1366 = vperm.xlu1 %7204, %v1317_v9  }
  0x67   : > { %1369 = vperm.xlu0 %7203, %v1318_v46  }
  0x68   : > { %1100 = vperm.xlu1 %7204, %v1017_v47  }
  0x9f   : > { %v8217_v7 = vpop.permute.xlu1 %1031  ;;  %v8223_v1 = vpop.permute.xlu0 %1025 }
  0xa0   : > { %13068 = vst [vmem:[#allocation8_spill] sm:$0xff] %v8217_v7  ;;  %13069 = vst [vmem:[#allocation9_spill] sm:$0xff] %v8223_v1  ;;  %vm12876_vm7 = vcmp.eq.s32.totalorder %v8217_v7, 1  ;;  %vm12829_vm8 = vcmp.eq.s32.totalorder %v8223_v1, 1 }
  0xa3   : > { %v8244_v25 = vpop.permute.xlu1 %1034 }
  0xa4   : > { %13070 = vst [vmem:[#allocation10_spill] sm:$0xff] %v8244_v25  ;;  %vm12875_vm5 = vcmp.eq.s32.totalorder %v8244_v25, 1 }
  0xa5   : > { %v8249_v29 = vpop.permute.xlu0 %1028 }
  0xa6   : > { %13071 = vst [vmem:[#allocation11_spill] sm:$0xff] %v8249_v29  ;;  %vm12830_vm10 = vcmp.eq.s32.totalorder %v8249_v29, 1 }
  0xa7   : > { %v8272_v33 = vpop.permute.xlu1 %1040 }
  0xa8   : > { %13074 = vst [vmem:[#allocation14_spill] sm:$0xff] %v8272_v33  ;;  %vm12743_vm0 = vcmp.eq.s32.totalorder %v8272_v33, 1 }
  0xa9   : > { %v8276_v47 = vpop.permute.xlu0 %1037 }
  0xaa   : > { %13075 = vst [vmem:[#allocation15_spill] sm:$0xff] %v8276_v47  ;;  %vm12744_vm11 = vcmp.eq.s32.totalorder %v8276_v47, 1 }
  0xe9   : > { %v7067_v52 = vpop.f32.mrf.mxu0  ;;  %v7083_v54 = vpop.f32.mrf.mxu1 }
  0xea   : > { %v907_v56 = vmul.f32 %v7083_v54, %v8194_v53  ;;  %v891_v12 = vmul.f32 %v7067_v52, %v8194_v53 }
  0xeb   : > { %v755_v57 = vpop.f32.mrf.mxu0  ;;  %v8202_v58 = vpop.f32.mrf.mxu1 }
  0xec   : > { %v8214_v62 = vadd.f32 %v8199_v55, %v907_v56  ;;  %v930_v21 = vadd.f32 %v8199_v55, %v891_v12  ;;  %v889_v26 = vmul.f32 %v8194_v53, %v755_v57 }
  0xed   : > { %v7068_v63 = vpop.f32.mrf.mxu0  ;;  %v7084_v6 = vpop.f32.mrf.mxu1 }
  0xee   : > { %v892_v0 = vmul.f32 %v7068_v63, %v8194_v53  ;;  %v908_v4 = vmul.f32 %v7084_v6, %v8194_v53  ;;  %v8261_v10 = vmax.f32 %v930_v21, 0.0  ;;  %v928_v41 = vadd.f32 %v8199_v55, %v889_v26 }
  0xef   : > { %v758_v11 = vpop.f32.mrf.mxu0  ;;  %v822_v13 = vpop.f32.mrf.mxu1 }
  0xf0   : > { %v8230_v15 = vadd.f32 %v8199_v55, %v908_v4  ;;  %v931_v17 = vadd.f32 %v8199_v55, %v892_v0  ;;  %v906_v18 = vmul.f32 %v8194_v53, %v822_v13  ;;  %v890_v27 = vmul.f32 %v8194_v53, %v758_v11  ;;  %13073 = vst [vmem:[#allocation13_spill] sm:$0xff] %v8261_v10  ;;  %v7460_v4 = vld [vmem:[%s12632_s5 + $0x40] sm:$0xff]  }
  0xf1   : > { %v7071_v16 = vpop.f32.mrf.mxu0  ;;  %v7087_v19 = vpop.f32.mrf.mxu1  ;;  %v1190_v48 = vrot.slane %v8261_v10, 7  ;;  %v8280_v32 = vmax.f32 %v928_v41, 0.0  ;;  %6802 = vmatprep.subr.bf16.mxu1 %v7460_v4 }
  0xf2   : > { %v8239_v22 = vadd.f32 %v8199_v55, %v906_v18  ;;  %v911_v28 = vmul.f32 %v7087_v19, %v8194_v53  ;;  %v8251_v30 = vmax.f32 %v931_v17, 0.0  ;;  %v929_v8 = vadd.f32 %v8199_v55, %v890_v27  ;;  %v8322_v19 = vpop.permute.xlu1 %1046 }
  0xf3   : > { %v771_v20 = vpop.f32.mrf.mxu0  ;;  %v835_v23 = vpop.f32.mrf.mxu1  ;;  %13076 = vst [vmem:[#allocation16_spill] sm:$0xff] %v8280_v32  ;;  %v895_v52 = vmul.f32 %v7071_v16, %v8194_v53  ;;  %v7461_v16 = vld [vmem:[%s12632_s5] sm:$0xff]   ;;  %v12648_v17 = vmov 0.0   ;;  %13080 = vst [vmem:[#allocation20_spill] sm:$0xff] %v8322_v19  ;;  %vm12721_vm14 = vcmp.eq.s32.totalorder %v8322_v19, 1 }
  0xf4   : > { %13072 = vst [vmem:[#allocation12_spill] sm:$0xff] %v8251_v30  ;;  %v909_v31 = vmul.f32 %v8194_v53, %v835_v23  ;;  %v8255_v35 = vadd.f32 %v8199_v55, %v911_v28  ;;  %v1192_v42 = vrot.slane %v8251_v30, 7  ;;  %v893_v45 = vmul.f32 %v8194_v53, %v771_v20  ;;  %v8324_v20 = vpop.permute.xlu0 %1043  ;;  %6803 = vmatpush3.bf16.msra.mxu1 %v7461_v16 }
  0xf5   : > { %v7088_v34 = vpop.f32.mrf.mxu1  ;;  %v7072_v36 = vpop.f32.mrf.mxu0  ;;  %v8282_v50 = vmax.f32 %v929_v8, 0.0  ;;  %v8320_v18 = vrot.slane %v12648_v17, 7  ;;  %13081 = vst [vmem:[#allocation21_spill] sm:$0xff] %v8324_v20  ;;  %v934_v2 = vadd.f32 %v8199_v55, %v895_v52  ;;  %v1186_v23 = vrot.slane %v8280_v32, 7 }
  0xf6   : > { %v912_v37 = vmul.f32 %v7088_v34, %v8194_v53  ;;  %v8264_v39 = vadd.f32 %v8199_v55, %v909_v31  ;;  %v8292_v57 = vsel %vm12909_vm6, %v1190_v48, %v1192_v42  ;;  %v932_v61 = vadd.f32 %v8199_v55, %v893_v45 }
  0xf7   : > { %v838_v40 = vpop.f32.mrf.mxu1  ;;  %v774_v9 = vpop.f32.mrf.mxu0  ;;  %13077 = vst [vmem:[#allocation17_spill] sm:$0xff] %v8282_v50  ;;  %13078 = vst [vmem:[#allocation18_spill] sm:$0xff] %v8292_v57  ;;  %v1609_v0 = vsel %vm12875_vm5, %v8292_v57, 0.0  ;;  %v896_v11 = vmul.f32 %v7072_v36, %v8194_v53  ;;  %v1188_v14 = vrot.slane %v8282_v50, 7  ;;  %v8357_v8 = vmax.f32 %v934_v2, 0.0  ;;  %v7724_v57 = vld [vmem:[%s13065_s28 + $0x68] sm:$0xff] }
  0xf8   : > { %v8270_v43 = vadd.f32 %v8199_v55, %v912_v37  ;;  %v910_v46 = vmul.f32 %v8194_v53, %v838_v40  ;;  %v7205_v12 = vpack.i.bf16 %v8280_v32, %v1609_v0  ;;  %13079 = vst [vmem:[#allocation19_spill] sm:$0xff] %v8320_v18  ;;  %v8330_v24 = vmax.f32 %v932_v61, 0.0  ;;  %v8369_v52 = vpop.permute.xlu0 %1049 }
  0xf9   : > { %v7091_v44 = vpop.f32.mrf.mxu1  ;;  %v8301_v63 = vpop.f32.mrf.mxu0  ;;  %v894_v26 = vmul.f32 %v8194_v53, %v774_v9  ;;  %v8337_v31 = vsel %vm12909_vm6, %v1188_v14, %v1190_v48  ;;  %v935_v34 = vadd.f32 %v8199_v55, %v896_v11  ;;  %v8352_v40 = vsel %vm12909_vm6, %v8320_v18, %v1186_v23  ;;  %13085 = vst [vmem:[#allocation25_spill] sm:$0xff] %v8357_v8  ;;  %v8364_v48 = vld [vmem:[%s13065_s28 + $0xc0] sm:$0xff] }
  0xfa   : > { %v8286_v54 = vadd.f32 %v8199_v55, %v910_v46  ;;  %v915_v56 = vmul.f32 %v7091_v44, %v8194_v53  ;;  %7206 = vrot.lane.b32.xlu0 %v7205_v12, %s7802_s18  ;;  %13082 = vst [vmem:[#allocation22_spill] sm:$0xff] %v8330_v24  ;;  %13083 = vst [vmem:[#allocation23_spill] sm:$0xff] %v8337_v31  ;;  %v1608_v36 = vsel %vm12876_vm7, %v8337_v31, 0.0  ;;  %v1194_v44 = vrot.slane %v8330_v24, 7 }
  0xfb   : > { %v851_v49 = vpop.f32.mrf.mxu1  ;;  %v787_v27 = vpop.f32.mrf.mxu0  ;;  %v7215_v37 = vpack.i.bf16 %v1608_v36, %v12648_v17  ;;  %v8355_v41 = vsel %vm12909_vm6, %v1186_v23, %v1188_v14  ;;  %v933_v45 = vadd.f32 %v8199_v55, %v894_v26  ;;  %13087 = vst [vmem:[#allocation27_spill] sm:$0xff] %v8369_v52  ;;  %v1606_v60 = vsel %vm12829_vm8, %v8352_v40, 0.0  ;;  %v7722_v36 = vld [vmem:[%s13065_s28 + $0x58] sm:$0xff] }
  0xfc   : > { %v8311_v3 = vadd.f32 %v8199_v55, %v915_v56  ;;  %v913_v13 = vmul.f32 %v8194_v53, %v851_v49  ;;  %13084 = vst [vmem:[#allocation24_spill] sm:$0xff] %v8355_v41  ;;  %v8367_v49 = vpop.permute.xlu1 %1052  ;;  %v8371_v56 = vmax.f32 %v935_v34, 0.0  ;;  %v897_v59 = vmul.f32 %v8194_v53, %v787_v27  ;;  %v8412_v27 = vpop.permute.xlu0 %1055 }
  0xfd   : > { %v7092_v6 = vpop.f32.mrf.mxu1  ;;  %v7076_v9 = vpop.f32.mrf.mxu0  ;;  %13086 = vst [vmem:[#allocation26_spill] sm:$0xff] %v8367_v49  ;;  %7216 = vrot.lane.b32.xlu1 %v7215_v37, %s7802_s18  ;;  %v1607_v61 = vsel %vm12830_vm10, %v8355_v41, 0.0  ;;  %v1319_v0 = vsel %vm594_vm9, 1, %v12650_v5  ;;  %vm576_vm4 = vcmp.gt.s32.totalorder %v8364_v48, 0  ;;  %v1198_v11 = vrot.slane %v8357_v8, 7  ;;  %13092 = vst [vmem:[#allocation32_spill] sm:$0xff] %v8412_v27 }
  0xfe   : > { %v916_v21 = vmul.f32 %v7092_v6, %v8194_v53  ;;  %v8334_v28 = vadd.f32 %v8199_v55, %v913_v13  ;;  %13088 = vst [vmem:[#allocation28_spill] sm:$0xff] %v8371_v56  ;;  %v7210_v6 = vpack.i.bf16 %v1607_v61, %v1606_v60  ;;  %v8388_v12 = vmax.f32 %v933_v45, 0.0 }
  0xff   : > { %v854_v46 = vpop.f32.mrf.mxu1  ;;  %v790_v13 = vpop.f32.mrf.mxu0  ;;  %v8393_v14 = vsel %vm12909_vm6, %v1192_v42, %v1194_v44  ;;  %v1200_v16 = vrot.slane %v8371_v56, 7  ;;  %v936_v2 = vadd.f32 %v8199_v55, %v897_v59  ;;  %v1016_v23 = vsel %vm576_vm4, 1, %v12650_v5 }
 0x100   : > { %v8348_v38 = vadd.f32 %v8199_v55, %v916_v21  ;;  %v914_v4 = vmul.f32 %v8194_v53, %v854_v46  ;;  %13089 = vst [vmem:[#allocation29_spill] sm:$0xff] %v8388_v12  ;;  %13090 = vst [vmem:[#allocation30_spill] sm:$0xff] %v8393_v14  ;;  %7211 = vrot.lane.b32.xlu0 %v7210_v6, %s7802_s18  ;;  %v1610_v42 = vsel %vm12744_vm11, %v8393_v14, 0.0  ;;  %v8410_v26 = vpop.permute.xlu1 %1058  ;;  %vm595_vm12 = vcmp.lt.s32.totalorder %v7722_v36, 15  ;;  %v7723_v36 = vld [vmem:[%s13065_s28 + $0x60] sm:$0xff] }
 0x101   : > { %1372 = vperm.xlu1 %7204, %v1319_v0   ;;  %13091 = vst [vmem:[#allocation31_spill] sm:$0xff] %v8410_v26  ;;  %v7220_v34 = vpack.i.bf16 %v1610_v42, %v8282_v50  ;;  %v899_v37 = vmul.f32 %v8301_v63, %v8194_v53  ;;  %v8421_v45 = vpop.f32.mrf.mxu0  ;;  %v1196_v46 = vrot.slane %v8388_v12, 7  ;;  %v8424_v59 = vmax.f32 %v936_v2, 0.0 }
 0x102   : > { %v8404_v21 = vadd.f32 %v8199_v55, %v914_v4  ;;  %v900_v60 = vmul.f32 %v7076_v9, %v8194_v53  ;;  %v898_v61 = vmul.f32 %v8194_v53, %v790_v13  ;;  %v8430_v0 = vsel %vm12909_vm6, %v1198_v11, %v1200_v16 }
 0x103   : > { %13093 = vst [vmem:[#allocation33_spill] sm:$0xff] %v8424_v59  ;;  %13094 = vst [vmem:[#allocation34_spill] sm:$0xff] %v8430_v0  ;;  %v1320_v6 = vsel %vm595_vm12, 1, %v12650_v5  ;;  %v1019_v63 = vsel %vm579_vm13, 1, %v12650_v5  ;;  %vm12738_vm15 = vcmp.eq.s32.totalorder %v8324_v20, 1  ;;  %v8437_v4 = vsel %vm12909_vm6, %v1196_v46, %v1198_v11  ;;  %v803_v13 = vpop.f32.mrf.mxu0  ;;  %v7095_v5 = vpop.f32.mrf.mxu1 }
 0x104   : > { %1097 = vperm.xlu0 %7203, %v1016_v23   ;;  %13095 = vst [vmem:[#allocation35_spill] sm:$0xff] %v8437_v4  ;;  %v938_v9 = vadd.f32 %v8199_v55, %v899_v37  ;;  %v1613_v2 = vsel %vm12721_vm14, %v8430_v0, 0.0  ;;  %v1612_v42 = vsel %vm12738_vm15, %v8437_v4, 0.0  ;;  %v8446_v23 = vpop.permute.xlu1 %1064  ;;  %v939_v11 = vadd.f32 %v8199_v55, %v900_v60 }
 0x105   : > { %7221 = vrot.lane.b32.xlu1 %v7220_v34, %s7802_s18  ;;  %13096 = vst [vmem:[#allocation36_spill] sm:$0xff] %v8446_v23  ;;  %v8448_v34 = vpop.permute.xlu0 %1061  ;;  %v937_v17 = vadd.f32 %v8199_v55, %v898_v61  ;;  %v8454_v37 = vsel %vm12909_vm6, %v1194_v44, %v1196_v46  ;;  %v7225_v0 = vpack.i.bf16 %v8330_v24, %v1613_v2  ;;  %vm596_vm1 = vcmp.lt.s32.totalorder %v7723_v36, 15  ;;  %v8464_v61 = vpop.f32.mrf.mxu0  ;;  %v8472_v46 = vld [vmem:[%s13065_s28 + $0xd0] sm:$0xff] }
 0x106   : > { %13097 = vst [vmem:[#allocation37_spill] sm:$0xff] %v8448_v34  ;;  %13098 = vst [vmem:[#allocation38_spill] sm:$0xff] %v8454_v37  ;;  %v7235_v4 = vpack.i.bf16 %v1612_v42, %v8251_v30  ;;  %v8462_v60 = vmax.f32 %v938_v9, 0.0  ;;  %v1611_v44 = vsel %vm12743_vm0, %v8454_v37, 0.0  ;;  %v901_v2 = vmul.f32 %v8194_v53, %v803_v13  ;;  %v867_v37 = vpop.f32.mrf.mxu1 }
 0x107   : > { %13100 = vst [vmem:[#allocation40_spill] sm:$0xff] %v8472_v46  ;;  %v13103_v9 = vrot.slane %v8424_v59, 7  ;;  %v13105_v36 = vmov 0   ;;  %vm12709_vm2 = vcmp.eq.s32.totalorder %v8369_v52, 1  ;;  %v7230_v13 = vpack.i.bf16 %v8261_v10, %v1611_v44 }
 0x108   : > { %1375 = vperm.xlu0 %7203, %v1320_v6   ;;  %13099 = vst [vmem:[#allocation39_spill] sm:$0xff] %v8462_v60  ;;  %v8474_v6 = vmax.f32 %v939_v11, 0.0  ;;  %v1321_v19 = vsel %vm596_vm1, 1, %v13105_v36  ;;  %v8488_v11 = vpop.permute.xlu1 %1070  ;;  %vm578_vm3 = vcmp.gt.s32.totalorder %v8472_v46, 0  ;;  %v940_v14 = vadd.f32 %v8199_v55, %v901_v2  ;;  %v7096_v52 = vpop.f32.mrf.mxu1 }
 0x109   : > { %1106 = vperm.xlu1 %7204, %v1019_v63   ;;  %v8476_v63 = vmax.f32 %v937_v17, 0.0  ;;  %v8484_v42 = vsel %vm12909_vm6, %v1200_v16, %v13103_v9  ;;  %13106 = vst [vmem:[#allocation44_spill] sm:$0xff] %v8488_v11  ;;  %v8490_v17 = vpop.permute.xlu0 %1067  ;;  %v8500_v16 = vld [vmem:[%s13065_s28 + $0xe8] sm:$0xff]  ;;  %v1206_v9 = vrot.slane %v8462_v60, 7  ;;  %v1018_v33 = vsel %vm578_vm3, 1, %v13105_v36 }
 0x10a   : > { %13101 = vst [vmem:[#allocation41_spill] sm:$0xff] %v8474_v6  ;;  %13104 = vst [vmem:[#allocation43_spill] sm:$0xff] %v8484_v42  ;;  %v1208_v20 = vrot.slane %v8474_v6, 7  ;;  %vm597_vm9 = vcmp.lt.s32.totalorder %v7724_v57, 15  ;;  %vm581_vm4 = vcmp.gt.s32.totalorder %v8500_v16, 0  ;;  %vm12691_vm12 = vcmp.eq.s32.totalorder %v8410_v26, 1  ;;  %v870_v46 = vpop.f32.mrf.mxu1 }
 0x10b   : > { %13102 = vst [vmem:[#allocation42_spill] sm:$0xff] %v8476_v63  ;;  %13107 = vst [vmem:[#allocation45_spill] sm:$0xff] %v8490_v17  ;;  %v1204_v44 = vrot.slane %v8476_v63, 7  ;;  %v1322_v57 = vsel %vm597_vm9, 1, %v13105_v36  ;;  %v1021_v31 = vsel %vm581_vm4, 1, %v13105_v36  ;;  %vm12698_vm13 = vcmp.eq.s32.totalorder %v8412_v27, 1 }
 0x10c   : > { %7226 = vrot.lane.b32.xlu0 %v7225_v0, %s7802_s18  ;;  %v806_v0 = vpop.f32.mrf.mxu0  ;;  %13108 = vst [vmem:[#allocation46_spill] sm:$0xff] %v8500_v16  ;;  %v8514_v2 = vpop.permute.xlu1 %1345  ;;  %v919_v16 = vmul.f32 %v7095_v5, %v8194_v53  ;;  %v13114_v5 = vrot.slane %v8424_v59, 7  ;;  %vm12706_vm1 = vcmp.eq.s32.totalorder %v8367_v49, 1  ;;  %v904_v26 = vmul.f32 %v8464_v61, %v8194_v53 }
 0x10d   : > { %7236 = vrot.lane.b32.xlu1 %v7235_v4, %s7802_s18  ;;  %v1614_v4 = vsel %vm12709_vm2, %v8484_v42, 0.0  ;;  %v902_v42 = vmul.f32 %v8194_v53, %v806_v0  ;;  %13109 = vst [vmem:[#allocation47_spill] sm:$0xff] %v8514_v2  ;;  %v8522_v0 = vsel %vm12909_vm6, %v1206_v9, %v1208_v20  ;;  %vm12695_vm4 = vcmp.eq.s32.totalorder %v8448_v34, 1 }
 0x10e   : > { %v7240_v47 = vpack.i.bf16 %v1614_v4, %v8388_v12  ;;  %13112 = vst [vmem:[#allocation50_spill] sm:$0xff] %v8522_v0  ;;  %v8525_v4 = vsel %vm12909_vm6, %v1204_v44, %v1206_v9  ;;  %v1617_v9 = vsel %vm12691_vm12, %v8522_v0, 0.0  ;;  %v8545_v41 = vsel %vm12909_vm6, %v13114_v5, %v1204_v44 }
 0x10f   : > { %13113 = vst [vmem:[#allocation51_spill] sm:$0xff] %v8525_v4  ;;  %v1616_v25 = vsel %vm12698_vm13, %v8525_v4, 0.0  ;;  %13115 = vst [vmem:[#allocation52_spill] sm:$0xff] %v8545_v41  ;;  %v8548_v7 = vadd.f32 %v8199_v55, %v919_v16  ;;  %v920_v0 = vmul.f32 %v7096_v52, %v8194_v53  ;;  %v918_v44 = vmul.f32 %v8194_v53, %v870_v46  ;;  %v7725_v16 = vld [vmem:[%s13065_s28 + $0x70] sm:$0xff] }
 0x110   : > { %7231 = vrot.lane.b32.xlu0 %v7230_v13, %s7802_s18  ;;  %v8516_v13 = vpop.permute.xlu0 %1342  ;;  %vm598_vm3 = vcmp.lt.s32.totalorder %v7725_v16, 15  ;;  %v7245_v5 = vpack.i.bf16 %v8424_v59, %v1617_v9  ;;  %v1615_v46 = vsel %vm12706_vm1, %v8545_v41, 0.0  ;;  %v1483_v61 = vrot.slane %v8388_v12, 1 }
 0x111   : > { %1378 = vperm.xlu1 %7204, %v1321_v19   ;;  %13110 = vst [vmem:[#allocation48_spill] sm:$0xff] %v8516_v13  ;;  %v8518_v19 = vmax.f32 %v940_v14, 0.0  ;;  %v917_v14 = vmul.f32 %v8194_v53, %v867_v37  ;;  %v8554_v37 = vld [vmem:[%s13065_s28 + $0xe0] sm:$0xff]  ;;  %v8575_v52 = vadd.f32 %v8199_v55, %v918_v44  ;;  %v905_v44 = vmul.f32 %v8194_v53, %v8202_v58  ;;  %v7726_v58 = vld [vmem:[%s13065_s28 + $0x78] sm:$0xff] }
 0x112   : > { %vm580_vm9 = vcmp.gt.s32.totalorder %v8554_v37, 0  ;;  %vm12938_vm12 = vcmask 1046528   ;;  %vm12712_vm1 = vcmp.eq.s32.totalorder %v8490_v17, 1  ;;  %v7728_v17 = vld [vmem:[%s13065_s28 + $0x88] sm:$0xff] }
 0x113   : > { %13111 = vst [vmem:[#allocation49_spill] sm:$0xff] %v8518_v19  ;;  %v944_v34 = vadd.f32 %v8199_v55, %v905_v44 }
 0x114   : > { %1103 = vperm.xlu0 %7203, %v1018_v33   ;;  %v903_v33 = vmul.f32 %v8421_v45, %v8194_v53  ;;  %v8572_v45 = vadd.f32 %v8199_v55, %v920_v0 }
 0x115   : > { %7241 = vrot.lane.b32.xlu1 %v7240_v47, %s7802_s18  ;;  %v941_v47 = vadd.f32 %v8199_v55, %v902_v42  ;;  %v8557_v42 = vadd.f32 %v8199_v55, %v917_v14  ;;  %v7255_v14 = vpack.i.bf16 %v1616_v25, %v8371_v56  ;;  %v13119_v25 = vrot.slane %v8518_v19, 7 }
 0x116   : > { %v942_v4 = vadd.f32 %v8199_v55, %v903_v33  ;;  %v1323_v33 = vsel %vm598_vm3, 1, %v13105_v36  ;;  %vm599_vm3 = vcmp.lt.s32.totalorder %v7726_v58, 15 }
 0x117   : > { %v8584_v9 = vmax.f32 %v941_v47, 0.0  ;;  %v8591_v0 = vsel %vm12909_vm6, %v1208_v20, %v13119_v25  ;;  %v7250_v47 = vpack.i.bf16 %v8357_v8, %v1615_v46  ;;  %v12701_v25 = vrot.slane %v8330_v24, 1 }
 0x118   : > { %1381 = vperm.xlu0 %7203, %v1322_v57   ;;  %v8567_v57 = vpop.permute.xlu0 %1073  ;;  %13120 = vst [vmem:[#allocation56_spill] sm:$0xff] %v8591_v0  ;;  %v1618_v53 = vsel %vm12695_vm4, %v8591_v0, 0.0  ;;  %v8618_v12 = vmax.f32 %v942_v4, 0.0  ;;  %v943_v20 = vadd.f32 %v8199_v55, %v904_v26  ;;  %v8642_v55 = vld [vmem:[%s13065_s28 + $0xf0] sm:$0xff]  ;;  %v1324_v27 = vsel %vm599_vm3, 1, %v13105_v36 }
 0x119   : > { %1112 = vperm.xlu1 %7204, %v1021_v31   ;;  %v8565_v31 = vpop.permute.xlu1 %1076  ;;  %13117 = vst [vmem:[#allocation54_spill] sm:$0xff] %v8567_v57  ;;  %13118 = vst [vmem:[#allocation55_spill] sm:$0xff] %v8584_v9  ;;  %v1212_v0 = vrot.slane %v8584_v9, 7  ;;  %v7260_v4 = vpack.i.bf16 %v1618_v53, %v8476_v63  ;;  %v8632_v26 = vsel %vm12938_vm12, %v12701_v25, %v1483_v61  ;;  %vm582_vm2 = vcmp.gt.s32.totalorder %v8642_v55, 0 }
 0x11a   : > { %13116 = vst [vmem:[#allocation53_spill] sm:$0xff] %v8565_v31  ;;  %13124 = vst [vmem:[#allocation60_spill] sm:$0xff] %v8618_v12  ;;  %v1214_v41 = vrot.slane %v8618_v12, 7  ;;  %v8654_v25 = vmax.f32 %v943_v20, 0.0 }
 0x11b   : > { %13126 = vst [vmem:[#allocation61_spill] sm:$0xff] %v8642_v55 }
 0x11c   : > { %7246 = vrot.lane.b32.xlu0 %v7245_v5, %s7802_s18  ;;  %v8603_v5 = vld [vmem:[%s13065_s28 + $0xf8] sm:$0xff]  ;;  %v8615_v46 = vpop.permute.xlu0 %1351  ;;  %13129 = vst [vmem:[#allocation64_spill] sm:$0xff] %v8654_v25 }
 0x11d   : > { %7256 = vrot.lane.b32.xlu1 %v7255_v14, %s7802_s18  ;;  %13121 = vst [vmem:[#allocation57_spill] sm:$0xff] %v8603_v5  ;;  %v1020_v14 = vsel %vm580_vm9, 1, %v13105_v36  ;;  %v8613_v16 = vpop.permute.xlu1 %1348  ;;  %13123 = vst [vmem:[#allocation59_spill] sm:$0xff] %v8615_v46  ;;  %vm12813_vm4 = vcmp.eq.s32.totalorder %v8615_v46, 1  ;;  %vm583_vm13 = vcmp.gt.s32.totalorder %v8603_v5, 0  ;;  %v8666_v5 = vmax.f32 %v944_v34, 0.0 }
 0x11e   : > { %13122 = vst [vmem:[#allocation58_spill] sm:$0xff] %v8613_v16  ;;  %vm12814_vm9 = vcmp.eq.s32.totalorder %v8613_v16, 1  ;;  %v1023_v49 = vsel %vm583_vm13, 1, %v13105_v36  ;;  %vm12719_vm13 = vcmp.eq.s32.totalorder %v8446_v23, 1  ;;  %v13143_v23 = vrot.slane %v8357_v8, 1 }
 0x11f   : > { %v8647_v44 = vsel %vm12814_vm9, %v8632_v26, 0.0  ;;  %13131 = vst [vmem:[#allocation66_spill] sm:$0xff] %v8666_v5  ;;  %v1218_v34 = vrot.slane %v8666_v5, 7 }
 0x120   : > { %7251 = vrot.lane.b32.xlu0 %v7250_v47, %s7802_s18  ;;  %13127 = vst [vmem:[#allocation62_spill] sm:$0xff] %v8647_v44 }
 0x121   : > { %1384 = vperm.xlu1 %7204, %v1323_v33   ;;  %v13125_v33 = vrot.slane %v8357_v8, 1 }
 0x123   : > { %v8637_v47 = vsel %vm12938_vm12, %v1483_v61, %v13125_v33  ;;  %v8658_v61 = vsel %vm12909_vm6, %v1212_v0, %v1214_v41  ;;  %v1022_v33 = vsel %vm582_vm2, 1, %v13105_v36  ;;  %vm601_vm2 = vcmp.lt.s32.totalorder %v7728_v17, 15 }
 0x124   : > { %v8652_v53 = vsel %vm12813_vm4, %v8637_v47, 0.0  ;;  %1109 = vperm.xlu0 %7203, %v1020_v14   ;;  %13130 = vst [vmem:[#allocation65_spill] sm:$0xff] %v8658_v61  ;;  %v1620_v20 = vsel %vm12712_vm1, %v8658_v61, 0.0  ;;  %v1216_v14 = vrot.slane %v8654_v25, 7  ;;  %vm12737_vm1 = vcmp.eq.s32.totalorder %v8488_v11, 1 }
 0x125   : > { %13128 = vst [vmem:[#allocation63_spill] sm:$0xff] %v8652_v53  ;;  %7261 = vrot.lane.b32.xlu1 %v7260_v4, %s7802_s18  ;;  %v13132_v4 = vrot.slane %v8518_v19, 7  ;;  %v7275_v44 = vpack.i.bf16 %v1620_v20, %v8474_v6  ;;  %v7727_v53 = vld [vmem:[%s13065_s28 + $0x80] sm:$0xff]  ;;  %v8702_v61 = vmax.f32 %v8239_v22, 0.0  ;;  %v8714_v22 = vmax.f32 %v8214_v62, 0.0  ;;  %v7729_v62 = vld [vmem:[%s13065_s28 + $0x90] sm:$0xff] }
 0x126   : > { %vm600_vm3 = vcmp.lt.s32.totalorder %v7727_v53, 15  ;;  %v8695_v20 = vsel %vm12909_vm6, %v1214_v41, %v1216_v14  ;;  %v1479_v53 = vrot.slane %v8251_v30, 1  ;;  %v1487_v41 = vrot.slane %v8371_v56, 1 }
 0x127   : > { %v8676_v58 = vsel %vm12909_vm6, %v13132_v4, %v1212_v0  ;;  %v8691_v0 = vpop.permute.xlu0 %1079  ;;  %13136 = vst [vmem:[#allocation70_spill] sm:$0xff] %v8695_v20  ;;  %v8698_v4 = vsel %vm12909_vm6, %v1216_v14, %v1218_v34  ;;  %13138 = vst [vmem:[#allocation72_spill] sm:$0xff] %v8702_v61  ;;  %v12734_v14 = vrot.slane %v8261_v10, 1  ;;  %v1621_v30 = vsel %vm12737_vm1, %v8695_v20, 0.0 }
 0x128   : > { %1387 = vperm.xlu0 %7203, %v1324_v27   ;;  %13133 = vst [vmem:[#allocation67_spill] sm:$0xff] %v8676_v58  ;;  %v8689_v27 = vpop.permute.xlu1 %1082  ;;  %13135 = vst [vmem:[#allocation69_spill] sm:$0xff] %v8691_v0  ;;  %vm602_vm14 = vcmp.lt.s32.totalorder %v7729_v62, 15  ;;  %v8748_v55 = vsel %vm12938_vm12, %v13143_v23, %v1487_v41  ;;  %vm12748_vm15 = vcmp.eq.s32.totalorder %v8691_v0, 1 }
 0x129   : > { %1118 = vperm.xlu1 %7204, %v1023_v49   ;;  %v1619_v49 = vsel %vm12719_vm13, %v8676_v58, 0.0  ;;  %13134 = vst [vmem:[#allocation68_spill] sm:$0xff] %v8689_v27  ;;  %13137 = vst [vmem:[#allocation71_spill] sm:$0xff] %v8698_v4  ;;  %v1325_v58 = vsel %vm600_vm3, 1, %v13105_v36  ;;  %vm12736_vm13 = vcmp.eq.s32.totalorder %v8567_v57, 1  ;;  %vm12819_vm3 = vcmp.eq.s32.totalorder %v8514_v2, 1 }
 0x12a   : > { %13139 = vst [vmem:[#allocation73_spill] sm:$0xff] %v8714_v22  ;;  %v1622_v17 = vsel %vm12736_vm13, %v8698_v4, 0.0  ;;  %v8732_v56 = vsel %vm12938_vm12, %v12734_v14, %v1479_v53  ;;  %v13140_v4 = vrot.slane %v8330_v24, 1  ;;  %v7270_v57 = vpack.i.bf16 %v8518_v19, %v1621_v30  ;;  %13144 = vst [vmem:[#allocation76_spill] sm:$0xff] %v8748_v55 }
 0x12b   : > { %v7280_v11 = vpack.i.bf16 %v1622_v17, %v8584_v9  ;;  %v13145_v14 = vrot.slane %v8424_v59, 1  ;;  %v1222_v30 = vrot.slane %v8714_v22, 7 }
 0x12c   : > { %1115 = vperm.xlu0 %7203, %v1022_v33   ;;  %v7265_v33 = vpack.i.bf16 %v8462_v60, %v1619_v49  ;;  %v1326_v49 = vsel %vm601_vm2, 1, %v13105_v36  ;;  %v8737_v20 = vsel %vm12938_vm12, %v1479_v53, %v13140_v4  ;;  %vm12886_vm2 = vcmp.eq.s32.totalorder %v8516_v13, 1 }
 0x12d   : > { %7276 = vrot.lane.b32.xlu1 %v7275_v44, %s7802_s18  ;;  %v1220_v44 = vrot.slane %v8702_v61, 7  ;;  %v8753_v24 = vsel %vm12938_vm12, %v1487_v41, %v13145_v14  ;;  %v8760_v4 = vmax.f32 %v8230_v15, 0.0  ;;  %v8763_v53 = vmax.f32 %v8264_v39, 0.0 }
 0x12e   : > { %13146 = vst [vmem:[#allocation77_spill] sm:$0xff] %v8753_v24  ;;  %v8770_v23 = vsel %vm12886_vm2, %v8732_v56, 0.0  ;;  %v8775_v41 = vsel %vm12819_vm3, %v8737_v20, 0.0  ;;  %v1327_v15 = vsel %vm602_vm14, 1, %v13105_v36  ;;  %vm12749_vm14 = vcmp.eq.s32.totalorder %v8565_v31, 1  ;;  %v7734_v31 = vld [vmem:[%s13065_s28 + $0xb8] sm:$0xff] }
 0x12f   : > { %13147 = vst [vmem:[#allocation78_spill] sm:$0xff] %v8760_v4  ;;  %13148 = vst [vmem:[#allocation79_spill] sm:$0xff] %v8763_v53  ;;  %v8792_v14 = vsel %vm12909_vm6, %v1218_v34, %v1220_v44  ;;  %v8795_v17 = vsel %vm12909_vm6, %v1220_v44, %v1222_v30  ;;  %v1224_v39 = vrot.slane %v8760_v4, 7  ;;  %v1226_v8 = vrot.slane %v8763_v53, 7 }
 0x130   : > { %7266 = vrot.lane.b32.xlu0 %v7265_v33, %s7802_s18  ;;  %v8741_v33 = vpop.permute.xlu0 %1357  ;;  %13149 = vst [vmem:[#allocation80_spill] sm:$0xff] %v8770_v23  ;;  %13150 = vst [vmem:[#allocation81_spill] sm:$0xff] %v8775_v41  ;;  %v1623_v34 = vsel %vm12749_vm14, %v8792_v14, 0.0  ;;  %v1624_v44 = vsel %vm12748_vm15, %v8795_v17, 0.0  ;;  %vm12763_vm15 = vcmp.eq.s32.totalorder %v8689_v27, 1 }
 0x131   : > { %1390 = vperm.xlu1 %7204, %v1325_v58   ;;  %v8739_v58 = vpop.permute.xlu1 %1354  ;;  %13142 = vst [vmem:[#allocation75_spill] sm:$0xff] %v8741_v33  ;;  %vm12907_vm1 = vcmp.eq.s32.totalorder %v8741_v33, 1  ;;  %13153 = vst [vmem:[#allocation84_spill] sm:$0xff] %v8792_v14  ;;  %v7285_v62 = vpack.i.bf16 %v8618_v12, %v1623_v34  ;;  %v8827_v34 = vmax.f32 %v8286_v54, 0.0  ;;  %v8843_v54 = vmax.f32 %v8255_v35, 0.0  ;;  %v7732_v35 = vld [vmem:[%s13065_s28 + $0xa8] sm:$0xff] }
 0x132   : > { %13141 = vst [vmem:[#allocation74_spill] sm:$0xff] %v8739_v58  ;;  %vm12908_vm13 = vcmp.eq.s32.totalorder %v8739_v58, 1  ;;  %13154 = vst [vmem:[#allocation85_spill] sm:$0xff] %v8795_v17 }
 0x133   : > { %13157 = vst [vmem:[#allocation88_spill] sm:$0xff] %v8827_v34  ;;  %13160 = vst [vmem:[#allocation91_spill] sm:$0xff] %v8843_v54  ;;  %v1230_v0 = vrot.slane %v8843_v54, 7 }
 0x134   : > { %7271 = vrot.lane.b32.xlu0 %v7270_v57, %s7802_s18  ;;  %v8789_v57 = vsel %vm12907_vm1, %v8753_v24, 0.0  ;;  %v8803_v23 = vpop.permute.xlu0 %1085 }
 0x135   : > { %7281 = vrot.lane.b32.xlu1 %v7280_v11, %s7802_s18  ;;  %v8784_v11 = vsel %vm12908_vm13, %v8748_v55, 0.0  ;;  %13152 = vst [vmem:[#allocation83_spill] sm:$0xff] %v8789_v57  ;;  %13155 = vst [vmem:[#allocation86_spill] sm:$0xff] %v8803_v23  ;;  %v7730_v57 = vld [vmem:[%s13065_s28 + $0x98] sm:$0xff]  ;;  %v8824_v41 = vpop.permute.xlu1 %1088  ;;  %vm12762_vm14 = vcmp.eq.s32.totalorder %v8803_v23, 1 }
 0x136   : > { %13151 = vst [vmem:[#allocation82_spill] sm:$0xff] %v8784_v11  ;;  %v7290_v11 = vpack.i.bf16 %v1624_v44, %v8654_v25  ;;  %vm603_vm0 = vcmp.lt.s32.totalorder %v7730_v57, 15  ;;  %13156 = vst [vmem:[#allocation87_spill] sm:$0xff] %v8824_v41  ;;  %v8832_v57 = vsel %vm12909_vm6, %v1222_v30, %v1224_v39  ;;  %v8835_v44 = vsel %vm12909_vm6, %v1224_v39, %v1226_v8 }
 0x137   : > { %13158 = vst [vmem:[#allocation89_spill] sm:$0xff] %v8832_v57  ;;  %13159 = vst [vmem:[#allocation90_spill] sm:$0xff] %v8835_v44  ;;  %v1625_v30 = vsel %vm12763_vm15, %v8832_v57, 0.0  ;;  %v1626_v39 = vsel %vm12762_vm14, %v8835_v44, 0.0  ;;  %vm12812_vm14 = vcmp.eq.s32.totalorder %v8824_v41, 1 }
 0x138   : > { %1393 = vperm.xlu0 %7203, %v1326_v49   ;;  %v7731_v49 = vld [vmem:[%s13065_s28 + $0xa0] sm:$0xff]  ;;  %v7295_v27 = vpack.i.bf16 %v8666_v5, %v1625_v30  ;;  %v7300_v57 = vpack.i.bf16 %v1626_v39, %v8702_v61 }
 0x139   : > { %1396 = vperm.xlu1 %7204, %v1327_v15   ;;  %vm604_vm11 = vcmp.lt.s32.totalorder %v7731_v49, 15  ;;  %v8822_v15 = vld [vmem:[%s12632_s5 + $0x118] sm:$0xff]   ;;  %v1328_v49 = vsel %vm603_vm0, 1, %v13105_v36  ;;  %v8854_v14 = vpop.permute.xlu1 %1360 }
 0x13a   : > { %v1329_v17 = vsel %vm604_vm11, 1, %v13105_v36  ;;  %7097 = vmatprep.subr.bf16.mxu1 %v8822_v15  ;;  %13162 = vst [vmem:[#allocation93_spill] sm:$0xff] %v8854_v14  ;;  %vm605_vm11 = vcmp.lt.s32.totalorder %v7732_v35, 15 }
 0x13b   : > { %v1330_v39 = vsel %vm605_vm11, 1, %v13105_v36  ;;  %vm607_vm11 = vcmp.lt.s32.totalorder %v7734_v31, 15 }
 0x13c   : > { %7286 = vrot.lane.b32.xlu0 %v7285_v62, %s7802_s18  ;;  %v1228_v62 = vrot.slane %v8827_v34, 7 }
 0x13d   : > { %7291 = vrot.lane.b32.xlu1 %v7290_v11, %s7802_s18  ;;  %v8845_v11 = vpop.permute.xlu0 %1363 }
 0x13e   : > { %13161 = vst [vmem:[#allocation92_spill] sm:$0xff] %v8845_v11  ;;  %v8871_v35 = vsel %vm12909_vm6, %v1226_v8, %v1228_v62  ;;  %v8874_v44 = vsel %vm12909_vm6, %v1228_v62, %v1230_v0 }
 0x13f   : > { %13164 = vst [vmem:[#allocation95_spill] sm:$0xff] %v8871_v35  ;;  %13165 = vst [vmem:[#allocation96_spill] sm:$0xff] %v8874_v44  ;;  %v1627_v8 = vsel %vm12812_vm14, %v8871_v35, 0.0  ;;  %v8898_v35 = vmax.f32 %v8404_v21, 0.0 }
 0x140   : > { %1399 = vperm.xlu0 %7203, %v1328_v49   ;;  %v7733_v49 = vld [vmem:[%s13065_s28 + $0xb0] sm:$0xff]  ;;  %v7305_v62 = vpack.i.bf16 %v8714_v22, %v1627_v8  ;;  %v1332_v8 = vsel %vm607_vm11, 1, %v13105_v36 }
 0x141   : > { %1402 = vperm.xlu1 %7204, %v1329_v17   ;;  %vm606_vm0 = vcmp.lt.s32.totalorder %v7733_v49, 15  ;;  %v8866_v17 = vmax.f32 %v8270_v43, 0.0  ;;  %v8876_v30 = vpop.permute.xlu0 %1091  ;;  %v8882_v43 = vpop.permute.xlu1 %1094  ;;  %13168 = vst [vmem:[#allocation99_spill] sm:$0xff] %v8898_v35 }
 0x142   : > { %13166 = vst [vmem:[#allocation97_spill] sm:$0xff] %v8876_v30  ;;  %v1331_v23 = vsel %vm606_vm0, 1, %v13105_v36  ;;  %vm12768_vm15 = vcmp.eq.s32.totalorder %v8876_v30, 1  ;;  %13167 = vst [vmem:[#allocation98_spill] sm:$0xff] %v8882_v43  ;;  %vm608_vm0 = vcmp.lt.s32.totalorder %v8364_v48, 15  ;;  %v8913_v48 = vmax.f32 %v8334_v28, 0.0 }
 0x143   : > { %13163 = vst [vmem:[#allocation94_spill] sm:$0xff] %v8866_v17  ;;  %v1333_v31 = vsel %vm608_vm0, 1, %v13105_v36 }
 0x144   : > { %7296 = vrot.lane.b32.xlu0 %v7295_v27, %s7802_s18  ;;  %v1628_v27 = vsel %vm12768_vm15, %v8874_v44, 0.0  ;;  %vm12770_vm15 = vcmp.eq.s32.totalorder %v8882_v43, 1  ;;  %13171 = vst [vmem:[#allocation102_spill] sm:$0xff] %v8913_v48 }
 0x145   : > { %7301 = vrot.lane.b32.xlu1 %v7300_v57, %s7802_s18  ;;  %v12769_v57 = vrot.slane %v8866_v17, 7  ;;  %v7310_v49 = vpack.i.bf16 %v1628_v27, %v8760_v4  ;;  %v12772_v27 = vrot.slane %v8913_v48, 7 }
 0x148   : > { %1405 = vperm.xlu0 %7203, %v1330_v39   ;;  %v8907_v39 = vpop.permute.xlu1 %1366 }
 0x149   : > { %1408 = vperm.xlu1 %7204, %v1331_v23   ;;  %v8905_v23 = vsel %vm12909_vm6, %v1230_v0, %v12769_v57  ;;  %13170 = vst [vmem:[#allocation101_spill] sm:$0xff] %v8907_v39  ;;  %v12771_v0 = vrot.slane %v8898_v35, 7 }
 0x14a   : > { %13169 = vst [vmem:[#allocation100_spill] sm:$0xff] %v8905_v23  ;;  %v1629_v21 = vsel %vm12770_vm15, %v8905_v23, 0.0  ;;  %vm611_vm15 = vcmp.lt.s32.totalorder %v8398_v51, 15  ;;  %v1277_v51 = vsel %vm12829_vm8, %v8320_v18, 0.0 }
 0x14b   : > { %v8932_v28 = vsel %vm12909_vm6, %v12772_v27, %v12771_v0  ;;  %v13175_v27 = vmov 0.0  }
 0x14c   : > { %7306 = vrot.lane.b32.xlu0 %v7305_v62, %s7802_s18  ;;  %v7315_v62 = vpack.i.bf16 %v8763_v53, %v1629_v21  ;;  %v8924_v57 = vpop.permute.xlu1 %1100  ;;  %13173 = vst [vmem:[#allocation104_spill] sm:$0xff] %v8932_v28  ;;  %v8948_v44 = vrot.slane %v13175_v27, 1 }
 0x14d   : > { %7311 = vrot.lane.b32.xlu1 %v7310_v49, %s7802_s18  ;;  %v7735_v49 = vld [vmem:[%s13065_s28 + $0xc8] sm:$0xff]  ;;  %13172 = vst [vmem:[#allocation103_spill] sm:$0xff] %v8924_v57  ;;  %vm12810_vm0 = vcmp.eq.s32.totalorder %v8924_v57, 1  ;;  %v1473_v57 = vrot.slane %v8280_v32, 1 }
 0x14e   : > { %vm609_vm11 = vcmp.lt.s32.totalorder %v7735_v49, 15  ;;  %v8943_v49 = vpop.permute.xlu0 %1369  ;;  %13176 = vst [vmem:[#allocation106_spill] sm:$0xff] %v8948_v44 }
 0x14f   : > { %13174 = vst [vmem:[#allocation105_spill] sm:$0xff] %v8943_v49  ;;  %v1474_v32 = vsel %vm12938_vm12, %v8948_v44, %v1473_v57 }
 0x150   : > { %1411 = vperm.xlu0 %7203, %v1332_v8   ;;  %v1334_v8 = vsel %vm609_vm11, 1, %v13105_v36  ;;  %v1568_v30 = vsel %vm12819_vm3, %v1474_v32, 0.0 }
 0x151   : > { %1414 = vperm.xlu1 %7204, %v1333_v31   ;;  %v1631_v31 = vsel %vm12810_vm0, %v8932_v28, 0.0 }
 0x152   : > { %v7325_v21 = vpack.i.bf16 %v8843_v54, %v1631_v31  ;;  %v1278_v31 = vsel %vm12830_vm10, %v8320_v18, 0.0 }
 0x154   : > { %7316 = vrot.lane.b32.xlu0 %v7315_v62, %s7802_s18  ;;  %v1336_v62 = vsel %vm611_vm15, 1, %v13105_v36  ;;  %vm12940_vm15 = vcmask 523264  }
 0x158   : > { %1417 = vperm.xlu0 %7203, %v1334_v8   ;;  %v1475_v8 = vrot.slane %v8282_v50, 1 }
 0x15a   : > { %v8966_v50 = vsel %vm12938_vm12, %v1473_v57, %v1475_v8 }
 0x15b   : > { %v1569_v43 = vsel %vm12814_vm9, %v8966_v50, 0.0  ;;  %vm12850_vm9 = vcmp.eq.s32.totalorder %v8845_v11, 1 }
 0x15c   : > { %7326 = vrot.lane.b32.xlu0 %v7325_v21, %s7802_s18 }
 0x160   : > { %1423 = vperm.xlu0 %7203, %v1336_v62   ;;  %v1567_v62 = vsel %vm12886_vm2, %v8948_v44, 0.0 }
 0x16c   : > { %v8945_v0 = vpop.permute.xlu0 %7206 }
 0x16d   : > { %v7208_v18 = vunpack.i.l.bf16 %v8945_v0 }
 0x16f   : > { %v7217_v28 = vpop.permute.xlu1 %7216 }
 0x170   : > { %v8958_v21 = vunpack.i.l.bf16 %v7217_v28  ;;  %v7219_v27 = vunpack.i.h.bf16 %v7217_v28  ;;  %v13178_v28 = vrot.slane %v8261_v10, 1 }
 0x172   : > { %13177 = vst [vmem:[#allocation107_spill] sm:$0xff] %v8958_v21  ;;  %v7212_v41 = vpop.permute.xlu0 %7211  ;;  %v8975_v55 = vsel %vm12938_vm12, %v1475_v8, %v13178_v28  ;;  %v2097_v57 = vsel %vm12940_vm15, %v1277_v51, %v8958_v21  ;;  %v2098_v23 = vsel %vm12940_vm15, %v1278_v31, %v8958_v21  ;;  %v2131_v28 = vsel %vm12940_vm15, %v1569_v43, %v7219_v27 }
 0x173   : > { %v7214_v24 = vunpack.i.h.bf16 %v7212_v41  ;;  %v7213_v13 = vunpack.i.l.bf16 %v7212_v41  ;;  %v8987_v41 = vmax.f32 %v8311_v3, 0.0  ;;  %v8994_v31 = vmax.f32 %v8348_v38, 0.0 }
 0x174   : > { %v1570_v32 = vsel %vm12813_vm4, %v8975_v55, 0.0  ;;  %v2225_v16 = vpack.c.bf16 %v2098_v23, %v2097_v57  ;;  %v1495_v38 = vrot.slane %v8474_v6, 1  ;;  %v1499_v43 = vrot.slane %v8584_v9, 1 }
 0x175   : > { %13179 = vst [vmem:[#allocation108_spill] sm:$0xff] %v8987_v41  ;;  %v2129_v10 = vsel %vm12940_vm15, %v1567_v62, %v7213_v13  ;;  %v2130_v8 = vsel %vm12940_vm15, %v1568_v30, %v7214_v24  ;;  %13180 = vst [vmem:[#allocation109_spill] sm:$0xff] %v8994_v31  ;;  %v2132_v13 = vsel %vm12940_vm15, %v1570_v32, %v7208_v18  ;;  %v7463_v24 = vld [vmem:[%s12632_s5 + $0x110] sm:$0xff]   ;;  %v1493_v30 = vrot.slane %v8462_v60, 1 }
 0x176   : > { %v2226_v44 = vpack.c.bf16 %v2130_v8, %v2129_v10  ;;  %v2231_v10 = vpack.c.bf16 %v2132_v13, %v2131_v28  ;;  %v1238_v27 = vrot.slane %v8987_v41, 7  ;;  %v9011_v23 = vmax.f32 %v8557_v42, 0.0  ;;  %v13269_v28 = vld [vmem:[#allocation32_spill] sm:$0xff] }
 0x177   : > { %v1491_v18 = vrot.slane %v8476_v63, 1  ;;  %v1240_v57 = vrot.slane %v8994_v31, 7  ;;  %v1279_v32 = vsel %vm12876_vm7, %v8352_v40, 0.0  ;;  %v1497_v3 = vrot.slane %v8518_v19, 1  ;;  %v13198_v63 = vld [vmem:[#allocation40_spill] sm:$0xff] }
 0x178   : > { %2673 = vmatprep.mubr.bf16.mxu1 %v2226_v44  ;;  %13181 = vst [vmem:[#allocation110_spill] sm:$0xff] %v9011_v23  ;;  %v13183_v44 = vld [vmem:[#allocation24_spill] sm:$0xff]  ;;  %v1501_v42 = vrot.slane %v8618_v12, 1  ;;  %v9026_v62 = vmax.f32 %v8548_v7, 0.0  ;;  %v9029_v51 = vmax.f32 %v8575_v52, 0.0  ;;  %v13190_v7 = vrot.slane %v8913_v48, 7 }
 0x179   : > { %2674 = vmatmul.mubr.bf16.vlgmr.msra.gmra.mxu1 %v2225_v16  ;;  %v1280_v13 = vsel %vm12875_vm5, %v13183_v44, 0.0  ;;  %v7464_v44 = vld [vmem:[%s12632_s5 + $0x108] sm:$0xff]   ;;  %v13191_v52 = vrot.slane %v8866_v17, 7  ;;  %v1242_v16 = vrot.slane %v9011_v23, 7  ;;  %v13193_v12 = vrot.slane %v8424_v59, 1  ;;  %v13199_v59 = vld [vmem:[#allocation46_spill] sm:$0xff] }
 0x17a   : > { %2681 = vmatprep.mubr.bf16.mxu1 %v2231_v10  ;;  %7098 = vmatpush3.bf16.msra.mxu1 %v8822_v15  ;;  %13185 = vst [vmem:[#allocation24_spill] sm:$0xff] %v9026_v62  ;;  %13186 = vst [vmem:[#allocation111_spill] sm:$0xff] %v9029_v51  ;;  %v9038_v15 = vsel %vm12938_vm12, %v1493_v30, %v1495_v38  ;;  %v9041_v10 = vsel %vm12938_vm12, %v1497_v3, %v1499_v43  ;;  %v13196_v6 = vrot.slane %v8898_v35, 7 }
 0x17b   : > { %7099 = vmatprep.subr.bf16.mxu1 %v7463_v24  ;;  %13188 = vst [vmem:[#allocation113_spill] sm:$0xff] %v9038_v15  ;;  %13189 = vst [vmem:[#allocation114_spill] sm:$0xff] %v9041_v10  ;;  %v9048_v21 = vsel %vm12909_vm6, %v13191_v52, %v13190_v7  ;;  %v9054_v9 = vsel %vm12938_vm12, %v13193_v12, %v1491_v18  ;;  %v7209_v7 = vunpack.i.h.bf16 %v8945_v0  ;;  %v9068_v52 = vmax.f32 %v8572_v45, 0.0 }
 0x17c   : > { %v9031_v40 = vpop.permute.xlu1 %1372  ;;  %13192 = vst [vmem:[#allocation115_spill] sm:$0xff] %v9048_v21  ;;  %13194 = vst [vmem:[#allocation116_spill] sm:$0xff] %v9054_v9  ;;  %v9064_v60 = vsel %vm12909_vm6, %v13196_v6, %v1238_v27  ;;  %vm610_vm0 = vcmp.lt.s32.totalorder %v13198_v63, 15  ;;  %vm613_vm14 = vcmp.lt.s32.totalorder %v13199_v59, 15  ;;  %vm12848_vm4 = vcmp.eq.s32.totalorder %v8854_v14, 1 }
 0x17d   : > { %13187 = vst [vmem:[#allocation112_spill] sm:$0xff] %v9031_v40  ;;  %vm12859_vm11 = vcmp.eq.s32.totalorder %v9031_v40, 1  ;;  %13197 = vst [vmem:[#allocation118_spill] sm:$0xff] %v9068_v52  ;;  %v9079_v6 = vsel %vm12938_vm12, %v1491_v18, %v1493_v30  ;;  %v9082_v0 = vsel %vm12938_vm12, %v1495_v38, %v1497_v3  ;;  %v9085_v45 = vsel %vm12938_vm12, %v1499_v43, %v1501_v42 }
 0x17e   : > { %v9059_v19 = vsel %vm12859_vm11, %v9041_v10, 0.0  ;;  %7100 = vmatpush3.bf16.msra.mxu1 %v7463_v24  ;;  %13201 = vst [vmem:[#allocation46_spill] sm:$0xff] %v9079_v6  ;;  %13202 = vst [vmem:[#allocation119_spill] sm:$0xff] %v9082_v0  ;;  %v9091_v31 = vsel %vm12909_vm6, %v1238_v27, %v1240_v57  ;;  %v13205_v23 = vrot.slane %v8654_v25, 1  ;;  %v1335_v43 = vsel %vm610_vm0, 1, %v13105_v36  ;;  %v13227_v0 = vld [vmem:[#allocation21_spill] sm:$0xff] }
 0x17f   : > { %13195 = vst [vmem:[#allocation117_spill] sm:$0xff] %v9059_v19  ;;  %v9074_v12 = vpop.permute.xlu0 %1097  ;;  %13203 = vst [vmem:[#allocation120_spill] sm:$0xff] %v9085_v45  ;;  %7101 = vmatprep.subr.bf16.mxu1 %v7464_v44  ;;  %v9112_v27 = vsel %vm613_vm14, 1, %v13105_v36  ;;  %v2099_v18 = vsel %vm12940_vm15, %v1279_v32, %v7209_v7  ;;  %v9118_v54 = vsel %vm12909_vm6, %v1240_v57, %v1242_v16  ;;  %v13209_v63 = vrot.slane %v9029_v51, 7  ;;  %v13211_v7 = vld [vmem:[#allocation23_spill] sm:$0xff] }
 0x180   : > { %13200 = vst [vmem:[#allocation40_spill] sm:$0xff] %v9074_v12  ;;  %v9076_v10 = vpop.permute.xlu1 %7221  ;;  %vm12828_vm3 = vcmp.eq.s32.totalorder %v9074_v12, 1  ;;  %13204 = vst [vmem:[#allocation121_spill] sm:$0xff] %v9091_v31  ;;  %v9096_v30 = vsel %vm12938_vm12, %v1501_v42, %v13205_v23  ;;  %v1571_v32 = vsel %vm12908_vm13, %v8732_v56, 0.0  ;;  %v1677_v57 = vsel %vm12829_vm8, %v13211_v7, 0.0 }
 0x181   : > { %v7223_v24 = vunpack.i.l.bf16 %v9076_v10  ;;  %13206 = vst [vmem:[#allocation122_spill] sm:$0xff] %v9096_v30  ;;  %v1630_v3 = vsel %vm12828_vm3, %v9048_v21, 0.0  ;;  %v9104_v38 = vsel %vm12828_vm3, %v9064_v60, 0.0  ;;  %v13222_v19 = vrot.slane %v8666_v5, 1 }
 0x182   : > { %13207 = vst [vmem:[#allocation123_spill] sm:$0xff] %v9104_v38  ;;  %v7320_v23 = vpack.i.bf16 %v1630_v3, %v8827_v34  ;;  %7102 = vmatpush3.bf16.msra.mxu1 %v7464_v44  ;;  %v9125_v38 = vsel %vm12909_vm6, %v1242_v16, %v13209_v63  ;;  %v13212_v16 = vld [vmem:[#allocation18_spill] sm:$0xff]  ;;  %v13229_v53 = vrot.slane %v9068_v52, 7  ;;  %v13231_v34 = vld [vmem:[#allocation20_spill] sm:$0xff]  ;;  %v13233_v6 = vrot.slane %v8702_v61, 1 }
 0x183   : > { %v2100_v42 = vsel %vm12940_vm15, %v1280_v13, %v7223_v24  ;;  %v9120_v21 = vpop.permute.xlu0 %1375  ;;  %v1572_v13 = vsel %vm12907_vm1, %v8737_v20, 0.0  ;;  %v1678_v44 = vsel %vm12830_vm10, %v13212_v16, 0.0  ;;  %v13213_v24 = vmov 0 }
 0x184   : > { %13208 = vst [vmem:[#allocation124_spill] sm:$0xff] %v9120_v21  ;;  %v9127_v59 = vpop.permute.xlu1 %1106  ;;  %v2230_v12 = vpack.c.bf16 %v2100_v42, %v2099_v18  ;;  %vm12837_vm14 = vcmp.eq.s32.totalorder %v9120_v21, 1  ;;  %7321 = vrot.lane.b32.xlu1 %v7320_v23, %s7802_s18  ;;  %v13217_v23 = vld [vmem:[#allocation15_spill] sm:$0xff]  ;;  %v1600_v42 = vrot.slane %v9026_v62, 7  ;;  %vm12917_vm10 = vcmp.eq.s32.totalorder %v8907_v39, 1  ;;  %v13220_v62 = vld [vmem:[#allocation14_spill] sm:$0xff] }
 0x185   : > { %13210 = vst [vmem:[#allocation125_spill] sm:$0xff] %v9127_v59  ;;  %vm12878_vm0 = vcmp.eq.s32.totalorder %v9127_v59, 1  ;;  %vm9148_vm3 = vmpackc.low %vm12837_vm14, %vm12859_vm11  ;;  %v9155_v3 = vsel %vm12837_vm14, %v9085_v45, 0.0  ;;  %vm13218_vm8 = vcmp.eq.s32.totalorder %v13217_v23, 1  ;;  %vm13221_vm14 = vcmp.eq.s32.totalorder %v13220_v62, 1  ;;  %v13276_v59 = vld [vmem:[#allocation51_spill] sm:$0xff] }
 0x186   : > { %v13214_v24 = vsel %vm9148_vm3, 4294967295, %v13213_v24  ;;  %13216 = vst [vmem:[#allocation18_spill] sm:$0xff] %v9155_v3  ;;  %2682 = vmatmul.mubr.bf16.gmra.mxu1 %v2230_v12  ;;  %v1281_v18 = vsel %vm13218_vm8, %v13211_v7, 0.0  ;;  %v9171_v12 = vsel %vm12878_vm0, %v9125_v38, 0.0  ;;  %vm612_vm8 = vcmp.lt.s32.totalorder %v8554_v37, 15  ;;  %v7467_v37 = vld [vmem:[%s12632_s5 + $0xf0] sm:$0xff]  }
 0x187   : > { %13215 = vst [vmem:[#allocation23_spill] sm:$0xff] %v13214_v24  ;;  %v1633_v24 = vsel %vm12878_vm0, %v9091_v31, 0.0  ;;  %13219 = vst [vmem:[#allocation126_spill] sm:$0xff] %v9171_v12  ;;  %v9174_v7 = vpop.permute.xlu0 %7226  ;;  %v1282_v29 = vsel %vm13221_vm14, %v13212_v16, 0.0  ;;  %v13223_v3 = vrot.slane %v8654_v25, 1  ;;  %v1574_v16 = vsel %vm12850_vm9, %v8637_v47, 0.0 }
 0x188   : > { %v7237_v1 = vpop.permute.xlu1 %7236  ;;  %v7335_v63 = vpack.i.bf16 %v8913_v48, %v1633_v24  ;;  %1420 = vperm.xlu1 %7204, %v1335_v43   ;;  %v1573_v24 = vsel %vm12848_vm4, %v8632_v26, 0.0  ;;  %v13225_v48 = vld [vmem:[#allocation57_spill] sm:$0xff]  ;;  %v7224_v43 = vunpack.i.h.bf16 %v9076_v10  ;;  %v9207_v12 = vsel %vm612_vm8, 1, %v13105_v36  ;;  %v13226_v25 = vld [vmem:[#allocation30_spill] sm:$0xff] }
 0x189   : > { %v9185_v31 = vsel %vm12938_vm12, %v13223_v3, %v13222_v19  ;;  %vm615_vm14 = vcmp.lt.s32.totalorder %v13225_v48, 15  ;;  %v7465_v19 = vld [vmem:[%s12632_s5 + $0xf8] sm:$0xff]   ;;  %v7238_v45 = vunpack.i.l.bf16 %v7237_v1  ;;  %vm13228_vm4 = vcmp.eq.s32.totalorder %v13227_v0, 1 }
 0x18a   : > { %13224 = vst [vmem:[#allocation127_spill] sm:$0xff] %v9185_v31  ;;  %v7466_v3 = vld [vmem:[%s12632_s5 + $0xb8] sm:$0xff]   ;;  %7336 = vrot.lane.b32.xlu0 %v7335_v63, %s7802_s18  ;;  %v1283_v15 = vsel %vm13228_vm4, %v13226_v25, 0.0  ;;  %vm12919_vm9 = vcmp.eq.s32.totalorder %v8943_v49, 1  ;;  %v7239_v14 = vunpack.i.h.bf16 %v7237_v1  ;;  %v9216_v11 = vsel %vm12909_vm6, %v1600_v42, %v13229_v53  ;;  %6900 = vmatprep.subr.bf16.mxu0 %v7465_v19 }
 0x18b   : > { %v13230_v10 = vld [vmem:[#allocation38_spill] sm:$0xff]  ;;  %vm13232_vm11 = vcmp.eq.s32.totalorder %v13231_v34, 1  ;;  %v1679_v35 = vsel %vm12876_vm7, %v13226_v25, 0.0  ;;  %v7232_v21 = vpop.permute.xlu0 %7231  ;;  %v13234_v53 = vrot.slane %v8666_v5, 1  ;;  %v9239_v19 = vsel %vm615_vm14, 1, %v13105_v36  ;;  %6901 = vmatpush3.bf16.msra.mxu0 %v7466_v3 }
 0x18c   : > { %v1284_v63 = vsel %vm13232_vm11, %v13230_v10, 0.0  ;;  %v9227_v1 = vpop.permute.xlu1 %1378  ;;  %v13236_v34 = vrot.slane %v9029_v51, 7  ;;  %v7468_v25 = vld [vmem:[%s12632_s5 + $0xb0] sm:$0xff]   ;;  %v13238_v5 = vunpack.i.h.bf16 %v9174_v7  ;;  %v7234_v48 = vunpack.i.h.bf16 %v7232_v21  ;;  %6902 = vmatprep.subr.bf16.mxu0 %v7467_v37 }
 0x18d   : > { %v9234_v40 = vsel %vm12938_vm12, %v13234_v53, %v13233_v6  ;;  %v7228_v53 = vunpack.i.l.bf16 %v9174_v7  ;;  %vm1449_vm4 = vcmp.eq.s32.totalorder %v9227_v1, 1  ;;  %v2194_v3 = vsel %vm12940_vm15, %v1678_v44, %v7238_v45 }
 0x18e   : > { %13235 = vst [vmem:[#allocation57_spill] sm:$0xff] %v9234_v40  ;;  %v9244_v8 = vsel %vm12909_vm6, %v13236_v34, %v1600_v42  ;;  %v9252_v6 = vsel %vm12940_vm15, %v1679_v35, %v13238_v5  ;;  %v7233_v40 = vunpack.i.l.bf16 %v7232_v21  ;;  %v9259_v34 = vsel %vm1449_vm4, %v9096_v30, 0.0  ;;  %1429 = vperm.xlu0 %7203, %v9112_v27   ;;  %v7469_v30 = vld [vmem:[%s12632_s5 + $0xe8] sm:$0xff]  }
 0x18f   : > { %13237 = vst [vmem:[#allocation30_spill] sm:$0xff] %v9244_v8  ;;  %13239 = vst [vmem:[#allocation38_spill] sm:$0xff] %v9252_v6  ;;  %v2133_v42 = vsel %vm12940_vm15, %v1571_v32, %v7224_v43  ;;  %v2102_v5 = vsel %vm12940_vm15, %v1282_v29, %v7238_v45  ;;  %v2193_v21 = vsel %vm12940_vm15, %v1677_v57, %v7234_v48  ;;  %v9272_v8 = vpop.permute.xlu0 %1103  ;;  %v13242_v29 = vld [vmem:[#allocation76_spill] sm:$0xff]  ;;  %6903 = vmatpush3.bf16.msra.mxu0 %v7468_v25  ;;  %v13279_v6 = vld [vmem:[#allocation50_spill] sm:$0xff] }
 0x190   : > { %13240 = vst [vmem:[#allocation128_spill] sm:$0xff] %v9259_v34  ;;  %v2134_v35 = vsel %vm12940_vm15, %v1572_v13, %v7233_v40  ;;  %v2101_v51 = vsel %vm12940_vm15, %v1281_v18, %v7234_v48  ;;  %v2135_v37 = vsel %vm12940_vm15, %v1573_v24, %v7239_v14  ;;  %13241 = vst [vmem:[#allocation129_spill] sm:$0xff] %v9272_v8  ;;  %v9274_v43 = vpop.permute.xlu1 %7241  ;;  %v9279_v40 = vsel %vm12917_vm10, %v13242_v29, 0.0  ;;  %v7470_v14 = vld [vmem:[%s12632_s5 + $0xa8] sm:$0xff]   ;;  %v13243_v13 = vld [vmem:[#allocation35_spill] sm:$0xff] }
 0x191   : > { %v2236_v27 = vpack.c.bf16 %v2134_v35, %v2133_v42  ;;  %v2228_v32 = vpack.c.bf16 %v2194_v3, %v2193_v21  ;;  %v2235_v44 = vpack.c.bf16 %v2102_v5, %v2101_v51  ;;  %vm12877_vm11 = vcmp.eq.s32.totalorder %v9272_v8, 1  ;;  %v13244_v18 = vld [vmem:[#allocation27_spill] sm:$0xff]  ;;  %6904 = vmatprep.subr.bf16.mxu0 %v7469_v30 }
 0x192   : > { %v7243_v45 = vunpack.i.l.bf16 %v9274_v43  ;;  %v2136_v57 = vsel %vm12940_vm15, %v1574_v16, %v7228_v53  ;;  %vm13245_vm8 = vcmp.eq.s32.totalorder %v13244_v18, 1  ;;  %v1632_v24 = vsel %vm12877_vm11, %v9064_v60, 0.0  ;;  %vm9304_vm14 = vmpackc.low %vm12878_vm0, %vm12877_vm11 }
 0x193   : > { %v9290_v51 = vsel %vm13245_vm8, %v13243_v13, 0.0  ;;  %v9298_v25 = vsel %vm12877_vm11, %v9118_v54, 0.0  ;;  %v13247_v16 = vmov 0  ;;  %2689 = vmatprep.mubr.bf16.mxu1 %v2236_v27  ;;  %2834 = vmatprep.mubr.bf16.mxu0 %v2228_v32  ;;  %v2241_v30 = vpack.c.bf16 %v2136_v57, %v2135_v37  ;;  %v9319_v21 = vpop.permute.xlu0 %1381  ;;  %v13252_v32 = vld [vmem:[#allocation77_spill] sm:$0xff] }
 0x194   : > { %13246 = vst [vmem:[#allocation76_spill] sm:$0xff] %v9298_v25  ;;  %v13248_v16 = vsel %vm9304_vm14, 4294967295, %v13247_v16  ;;  %v1680_v53 = vsel %vm12875_vm5, %v13230_v10, 0.0  ;;  %2690 = vmatmul.mubr.bf16.gmra.mxu1 %v2235_v44  ;;  %v7330_v48 = vpack.i.bf16 %v1632_v24, %v8866_v17  ;;  %v13250_v42 = vunpack.i.h.bf16 %v9174_v7  ;;  %v9321_v37 = vpop.permute.xlu1 %1112  ;;  %v13253_v44 = vld [vmem:[#allocation34_spill] sm:$0xff]  ;;  %6905 = vmatpush3.bf16.msra.mxu0 %v7470_v14 }
 0x195   : > { %13249 = vst [vmem:[#allocation35_spill] sm:$0xff] %v13248_v16  ;;  %v2104_v5 = vsel %vm12940_vm15, %v1284_v63, %v7243_v45  ;;  %v9317_v35 = vsel %vm12940_vm15, %v1680_v53, %v7243_v45  ;;  %2697 = vmatprep.mubr.bf16.mxu1 %v2241_v30  ;;  %v9326_v10 = vsel %vm12919_vm9, %v13252_v32, 0.0  ;;  %v13254_v7 = vld [vmem:[#allocation26_spill] sm:$0xff]  ;;  %vm1450_vm5 = vcmp.eq.s32.totalorder %v9319_v21, 1  ;;  %v13258_v30 = vld [vmem:[#allocation61_spill] sm:$0xff]  ;;  %v13266_v63 = vld [vmem:[#allocation19_spill] sm:$0xff] }
 0x196   : > { %v2103_v3 = vsel %vm12940_vm15, %v1283_v15, %v13250_v42  ;;  %13251 = vst [vmem:[#allocation130_spill] sm:$0xff] %v9317_v35  ;;  %vm13255_vm8 = vcmp.eq.s32.totalorder %v13254_v7, 1  ;;  %7331 = vrot.lane.b32.xlu1 %v7330_v48, %s7802_s18  ;;  %vm12922_vm7 = vcmp.eq.s32.totalorder %v9321_v37, 1  ;;  %v13256_v45 = vrot.slane %v8714_v22, 1  ;;  %vm9355_vm11 = vmpackc.low %vm1450_vm5, %vm1449_vm4  ;;  %v13268_v42 = vld [vmem:[#allocation43_spill] sm:$0xff] }
 0x197   : > { %v2240_v27 = vpack.c.bf16 %v2104_v5, %v2103_v3  ;;  %v9331_v15 = vsel %vm13255_vm8, %v13253_v44, 0.0  ;;  %v13257_v57 = vrot.slane %v8702_v61, 1  ;;  %vm614_vm8 = vcmp.lt.s32.totalorder %v13258_v30, 15  ;;  %v13271_v61 = vld [vmem:[#allocation52_spill] sm:$0xff] }
 0x198   : > { %v9349_v14 = vsel %vm1450_vm5, %v9185_v31, 0.0  ;;  %v13260_v53 = vmov 0  ;;  %v1635_v48 = vsel %vm12922_vm7, %v9125_v38, 0.0  ;;  %v9365_v3 = vsel %vm12886_vm2, %v8966_v50, 0.0 }
 0x199   : > { %v9343_v24 = vsel %vm12938_vm12, %v13257_v57, %v13256_v45  ;;  %13259 = vst [vmem:[#allocation77_spill] sm:$0xff] %v9349_v14  ;;  %v13261_v53 = vsel %vm9355_vm11, 4294967295, %v13260_v53  ;;  %vm13264_vm0 = vcmp.eq.s32.totalorder %v8514_v2, 1  ;;  %v9377_v57 = vsel %vm12922_vm7, %v9216_v11, 0.0  ;;  %v7257_v45 = vpop.permute.xlu1 %7256 }
 0x19a   : > { %13262 = vst [vmem:[#allocation34_spill] sm:$0xff] %v13261_v53  ;;  %v9370_v5 = vsel %vm13264_vm0, %v8975_v55, 0.0  ;;  %13265 = vst [vmem:[#allocation61_spill] sm:$0xff] %v9377_v57  ;;  %v7345_v30 = vpack.i.bf16 %v8987_v41, %v1635_v48  ;;  %v13267_v16 = vrot.slane %v9068_v52, 7  ;;  %v7471_v55 = vld [vmem:[%s12632_s5 + $0xe0] sm:$0xff]   ;;  %v9389_v53 = vpop.permute.xlu0 %7246  ;;  %v9392_v2 = vsel %vm614_vm8, 1, %v13105_v36  ;;  %1426 = vperm.xlu1 %7204, %v9207_v12  }
 0x19b   : > { %vm13270_vm0 = vcmp.eq.s32.totalorder %v13269_v28, 1  ;;  %v13272_v57 = vld [vmem:[#allocation31_spill] sm:$0xff]  ;;  %v13274_v34 = vrot.slane %v8760_v4, 1  ;;  %v13275_v14 = vrot.slane %v8714_v22, 1  ;;  %v7258_v35 = vunpack.i.l.bf16 %v7257_v45  ;;  %v13277_v52 = vld [vmem:[#allocation37_spill] sm:$0xff]  ;;  %v13280_v41 = vld [vmem:[#allocation36_spill] sm:$0xff]  ;;  %6906 = vmatprep.subr.bf16.mxu0 %v7471_v55 }
 0x19c   : > { %v9384_v50 = vsel %vm12909_vm6, %v13267_v16, %v13266_v63  ;;  %v9397_v48 = vsel %vm13270_vm0, %v13268_v42, 0.0  ;;  %vm13273_vm2 = vcmp.eq.s32.totalorder %v13272_v57, 1  ;;  %v7472_v36 = vld [vmem:[%s12632_s5 + $0xa0] sm:$0xff]   ;;  %7346 = vrot.lane.b32.xlu0 %v7345_v30, %s7802_s18  ;;  %vm13281_vm8 = vcmp.eq.s32.totalorder %v13280_v41, 1  ;;  %v13282_v30 = vld [vmem:[#allocation58_spill] sm:$0xff]  ;;  %2698 = vmatmul.mubr.bf16.gmra.mxu1 %v2240_v27 }
 0x19d   : > { %v9402_v16 = vsel %vm13273_vm2, %v13271_v61, 0.0  ;;  %v9409_v25 = vsel %vm12938_vm12, %v13275_v14, %v13274_v34  ;;  %vm13278_vm2 = vcmp.eq.s32.totalorder %v13277_v52, 1  ;;  %v7473_v34 = vld [vmem:[%s12632_s5 + $0xd8] sm:$0xff]   ;;  %v7244_v14 = vunpack.i.h.bf16 %v9274_v43  ;;  %v7475_v43 = vld [vmem:[%s12632_s5 + $0x100] sm:$0xff]   ;;  %6907 = vmatpush3.bf16.msra.mxu0 %v7472_v36 }
 0x19e   : > { %v9422_v22 = vsel %vm13278_vm2, %v13276_v59, 0.0  ;;  %v9431_v12 = vsel %vm13281_vm8, %v13279_v6, 0.0  ;;  %vm13283_vm0 = vcmp.eq.s32.totalorder %v13282_v30, 1  ;;  %vm13284_vm2 = vcmp.eq.s32.totalorder %v8615_v46, 1  ;;  %v7252_v55 = vpop.permute.xlu0 %7251  ;;  %v9457_v46 = vpop.permute.xlu1 %1384  ;;  %7103 = vmatprep.subr.bf16.mxu1 %v7475_v43  ;;  %6908 = vmatprep.subr.bf16.mxu0 %v7473_v34  ;;  %v13292_v30 = vld [vmem:[#allocation57_spill] sm:$0xff] }
 0x19f   : > { %v9436_v8 = vsel %vm13283_vm0, %v8732_v56, 0.0  ;;  %v9441_v31 = vsel %vm13284_vm2, %v8737_v20, 0.0  ;;  %v7259_v52 = vunpack.i.h.bf16 %v7257_v45  ;;  %v9449_v41 = vsel %vm12908_vm13, %v8632_v26, 0.0  ;;  %v7474_v26 = vld [vmem:[%s12632_s5 + $0x98] sm:$0xff]   ;;  %7104 = vmatpush3.bf16.msra.mxu1 %v7475_v43 }
 0x1a0   : > { %vm13285_vm8 = vcmp.eq.s32.totalorder %v13220_v62, 1  ;;  %vm13286_vm0 = vcmp.eq.s32.totalorder %v13227_v0, 1  ;;  %v9462_v27 = vsel %vm12907_vm1, %v8637_v47, 0.0  ;;  %vm13287_vm2 = vcmp.eq.s32.totalorder %v13217_v23, 1  ;;  %1435 = vperm.xlu0 %7203, %v9239_v19  }
 0x1a1   : > { %v1682_v56 = vsel %vm13285_vm8, %v13253_v44, 0.0  ;;  %v1683_v20 = vsel %vm13286_vm0, %v13268_v42, 0.0  ;;  %v1681_v44 = vsel %vm13287_vm2, %v13243_v13, 0.0  ;;  %v13288_v45 = vunpack.i.h.bf16 %v9389_v53  ;;  %v7476_v13 = vld [vmem:[%s12632_s5 + $0xd0] sm:$0xff]   ;;  %6909 = vmatpush3.bf16.msra.mxu0 %v7474_v26 }
 0x1a2   : > { %v9471_v42 = vsel %vm12940_vm15, %v1682_v56, %v7258_v35  ;;  %v7248_v47 = vunpack.i.l.bf16 %v9389_v53  ;;  %v7254_v36 = vunpack.i.h.bf16 %v7252_v55  ;;  %v7253_v33 = vunpack.i.l.bf16 %v7252_v55  ;;  %v13290_v56 = vld [vmem:[#allocation112_spill] sm:$0xff]  ;;  %v9507_v28 = vpop.permute.xlu1 %7261  ;;  %6910 = vmatprep.subr.bf16.mxu0 %v7476_v13  ;;  %v13305_v13 = vld [vmem:[#allocation99_spill] sm:$0xff] }
 0x1a3   : > { %v9476_v58 = vsel %vm12940_vm15, %v1683_v20, %v13288_v45  ;;  %vm12939_vm8 = vcmp.eq.s32.totalorder %v9457_v46, 1  ;;  %vm13291_vm0 = vcmp.eq.s32.totalorder %v13290_v56, 1  ;;  %v2137_v55 = vsel %vm12940_vm15, %v9279_v40, %v7244_v14  ;;  %v13296_v56 = vld [vmem:[#allocation124_spill] sm:$0xff]  ;;  %v1110_v40 = vpop.permute.xlu0 %1109 }
 0x1a4   : > { %13289 = vst [vmem:[#allocation43_spill] sm:$0xff] %v9476_v58  ;;  %v1577_v0 = vsel %vm13291_vm0, %v9054_v9, 0.0  ;;  %v9490_v20 = vsel %vm12939_vm8, %v13292_v30, 0.0  ;;  %v2106_v19 = vsel %vm12940_vm15, %v9331_v15, %v7258_v35  ;;  %v2138_v34 = vsel %vm12940_vm15, %v9326_v10, %v7253_v33  ;;  %v13295_v30 = vld [vmem:[#allocation46_spill] sm:$0xff]  ;;  %v7478_v10 = vld [vmem:[%s12632_s5 + $0xc8] sm:$0xff]   ;;  %v13341_v58 = vld [vmem:[#allocation91_spill] sm:$0xff] }
 0x1a5   : > { %13293 = vst [vmem:[#allocation52_spill] sm:$0xff] %v9490_v20  ;;  %v2105_v45 = vsel %vm12940_vm15, %v9290_v51, %v7254_v36  ;;  %v2139_v62 = vsel %vm12940_vm15, %v1577_v0, %v7259_v52  ;;  %v9502_v23 = vsel %vm12940_vm15, %v1681_v44, %v7254_v36  ;;  %vm13297_vm2 = vcmp.eq.s32.totalorder %v13296_v56, 1  ;;  %v7477_v33 = vld [vmem:[%s12632_s5 + $0x90] sm:$0xff]   ;;  %v13298_v15 = vld [vmem:[#allocation20_spill] sm:$0xff] }
 0x1a6   : > { %13294 = vst [vmem:[#allocation51_spill] sm:$0xff] %v9502_v23  ;;  %v1578_v57 = vsel %vm13297_vm2, %v13295_v30, 0.0  ;;  %v2246_v14 = vpack.c.bf16 %v2138_v34, %v2137_v55  ;;  %v2245_v35 = vpack.c.bf16 %v2106_v19, %v2105_v45  ;;  %vm1148_vm0 = vcmp.eq.s32.totalorder %v1110_v40, 1  ;;  %v13300_v36 = vld [vmem:[#allocation30_spill] sm:$0xff]  ;;  %v1119_v52 = vpop.permute.xlu1 %1118  ;;  %6911 = vmatpush3.bf16.msra.mxu0 %v7477_v33 }
 0x1a7   : > { %v7263_v0 = vunpack.i.l.bf16 %v9507_v28  ;;  %v2140_v51 = vsel %vm12940_vm15, %v1578_v57, %v7248_v47  ;;  %vm13299_vm2 = vcmp.eq.s32.totalorder %v13298_v15, 1  ;;  %v9523_v26 = vsel %vm1148_vm0, %v9064_v60, 0.0  ;;  %vm9531_vm1 = vmpackc.low %vm12922_vm7, %vm1148_vm0  ;;  %v9545_v40 = vpop.permute.xlu0 %1387  ;;  %6912 = vmatprep.subr.bf16.mxu0 %v7478_v10 }
 0x1a8   : > { %v1684_v43 = vsel %vm13299_vm2, %v13271_v61, 0.0  ;;  %v1634_v44 = vsel %vm1148_vm0, %v9118_v54, 0.0  ;;  %v9527_v55 = vsel %vm1148_vm0, %v13300_v36, 0.0  ;;  %v13302_v57 = vmov 0  ;;  %2705 = vmatprep.mubr.bf16.mxu1 %v2246_v14 }
 0x1a9   : > { %13301 = vst [vmem:[#allocation50_spill] sm:$0xff] %v9527_v55  ;;  %v13303_v57 = vsel %vm9531_vm1, 4294967295, %v13302_v57  ;;  %v2251_v47 = vpack.c.bf16 %v2140_v51, %v2139_v62  ;;  %2706 = vmatmul.mubr.bf16.gmra.mxu1 %v2245_v35  ;;  %v7340_v19 = vpack.i.bf16 %v1634_v44, %v13305_v13  ;;  %v13306_v61 = vunpack.i.h.bf16 %v9389_v53  ;;  %v13308_v62 = vld [vmem:[#allocation88_spill] sm:$0xff]  ;;  %v13318_v35 = vld [vmem:[#allocation93_spill] sm:$0xff] }
 0x1aa   : > { %13304 = vst [vmem:[#allocation124_spill] sm:$0xff] %v13303_v57  ;;  %v2108_v34 = vsel %vm12940_vm15, %v9402_v16, %v7263_v0  ;;  %v9543_v45 = vsel %vm12940_vm15, %v1684_v43, %v7263_v0  ;;  %v13309_v51 = vld [vmem:[#allocation92_spill] sm:$0xff]  ;;  %vm1452_vm2 = vcmp.eq.s32.totalorder %v9545_v40, 1  ;;  %vm1151_vm13 = vcmp.eq.s32.totalorder %v1119_v52, 1 }
 0x1ab   : > { %v2107_v60 = vsel %vm12940_vm15, %v9397_v48, %v13306_v61  ;;  %13307 = vst [vmem:[#allocation30_spill] sm:$0xff] %v9543_v45  ;;  %2713 = vmatprep.mubr.bf16.mxu1 %v2251_v47  ;;  %vm13310_vm0 = vcmp.eq.s32.totalorder %v13309_v51, 1  ;;  %v7479_v48 = vld [vmem:[%s12632_s5 + $0x88] sm:$0xff]   ;;  %7341 = vrot.lane.b32.xlu1 %v7340_v19, %s7802_s18  ;;  %v9563_v0 = vsel %vm12917_vm10, %v9054_v9, 0.0  ;;  %v9573_v33 = vsel %vm1452_vm2, %v9343_v24, 0.0  ;;  %v13315_v47 = vld [vmem:[#allocation79_spill] sm:$0xff] }
 0x1ac   : > { %v2250_v14 = vpack.c.bf16 %v2108_v34, %v2107_v60  ;;  %v9551_v53 = vsel %vm13310_vm0, %v13252_v32, 0.0  ;;  %v9568_v32 = vsel %vm12919_vm9, %v13295_v30, 0.0  ;;  %13311 = vst [vmem:[#allocation131_spill] sm:$0xff] %v9573_v33  ;;  %vm9579_vm0 = vmpackc.low %vm1452_vm2, %vm12939_vm8  ;;  %v13312_v43 = vmov 0  ;;  %6913 = vmatpush3.bf16.msra.mxu0 %v7479_v48  ;;  %v13332_v33 = vld [vmem:[#allocation44_spill] sm:$0xff]  ;;  %v13339_v51 = vld [vmem:[#allocation109_spill] sm:$0xff] }
 0x1ad   : > { %v13313_v43 = vsel %vm9579_vm0, 4294967295, %v13312_v43  ;;  %v9585_v44 = vsel %vm1151_vm13, %v9125_v38, 0.0  ;;  %v13316_v19 = vrot.slane %v13315_v47, 1  ;;  %v13317_v10 = vrot.slane %v8760_v4, 1  ;;  %v13322_v4 = vld [vmem:[#allocation107_spill] sm:$0xff] }
 0x1ae   : > { %13314 = vst [vmem:[#allocation132_spill] sm:$0xff] %v13313_v43  ;;  %v1708_v16 = vsel %vm1151_vm13, %v13266_v63, 0.0  ;;  %vm13319_vm6 = vcmp.eq.s32.totalorder %v13318_v35, 1  ;;  %v1116_v43 = vpop.permute.xlu0 %1115  ;;  %v13321_v60 = vrot.slane %v13315_v47, 1  ;;  %v7481_v63 = vld [vmem:[%s12632_s5 + $0x80] sm:$0xff]   ;;  %vm13324_vm10 = vcmp.eq.s32.totalorder %v13254_v7, 1 }
 0x1af   : > { %v9592_v61 = vsel %vm12938_vm12, %v13317_v10, %v13316_v19  ;;  %v9605_v57 = vsel %vm13319_vm6, %v13242_v29, 0.0  ;;  %v9607_v19 = vpop.permute.xlu1 %7276  ;;  %v13320_v10 = vrot.slane %v13308_v62, 1  ;;  %v7480_v29 = vld [vmem:[%s12632_s5 + $0xc0] sm:$0xff]   ;;  %v9628_v47 = vsel %vm12940_vm15, %v1708_v16, %v13322_v4  ;;  %1432 = vperm.xlu1 %7204, %v9392_v2  }
 0x1b0   : > { %13323 = vst [vmem:[#allocation107_spill] sm:$0xff] %v9628_v47  ;;  %vm1150_vm6 = vcmp.eq.s32.totalorder %v1116_v43, 1  ;;  %v1686_v48 = vsel %vm13324_vm10, %v13279_v6, 0.0  ;;  %v1637_v38 = vsel %vm1151_vm13, %v9216_v11, 0.0  ;;  %6914 = vmatprep.subr.bf16.mxu0 %v7480_v29  ;;  %v13328_v43 = vld [vmem:[#allocation56_spill] sm:$0xff]  ;;  %v13329_v6 = vld [vmem:[#allocation45_spill] sm:$0xff]  ;;  %v13372_v1 = vpack.i.bf16 %v9551_v53, %v9605_v57 }
 0x1b1   : > { %v9614_v34 = vsel %vm12938_vm12, %v13321_v60, %v13320_v10  ;;  %v7264_v60 = vunpack.i.h.bf16 %v9507_v28  ;;  %v7278_v10 = vunpack.i.l.bf16 %v9607_v19  ;;  %v9639_v15 = vsel %vm1150_vm6, %v9118_v54, 0.0  ;;  %vm9644_vm9 = vmpackc.low %vm1151_vm13, %vm1150_vm6  ;;  %2714 = vmatmul.mubr.bf16.gmra.mxu1 %v2250_v14  ;;  %v13331_v11 = vld [vmem:[#allocation67_spill] sm:$0xff]  ;;  %v13335_v14 = vld [vmem:[#allocation110_spill] sm:$0xff]  ;;  %6915 = vmatpush3.bf16.msra.mxu0 %v7481_v63 }
 0x1b2   : > { %v1636_v16 = vsel %vm1150_vm6, %v13300_v36, 0.0  ;;  %v1707_v20 = vsel %vm1150_vm6, %v9384_v50, 0.0  ;;  %v13325_v28 = vmov 0  ;;  %vm13330_vm10 = vcmp.eq.s32.totalorder %v13329_v6, 1  ;;  %v13334_v50 = vld [vmem:[#allocation113_spill] sm:$0xff]  ;;  %v7267_v55 = vpop.permute.xlu0 %7266  ;;  %v13340_v30 = vld [vmem:[#allocation119_spill] sm:$0xff] }
 0x1b3   : > { %v13326_v28 = vsel %vm9644_vm9, 4294967295, %v13325_v28  ;;  %v7350_v2 = vpack.i.bf16 %v1637_v38, %v1636_v16  ;;  %v1291_v7 = vsel %vm13330_vm10, %v13328_v43, 0.0  ;;  %vm13333_vm7 = vcmp.eq.s32.totalorder %v13332_v33, 1  ;;  %v13336_v38 = vld [vmem:[#allocation111_spill] sm:$0xff]  ;;  %1797 = vrot.lane.b32.xlu1 %v13339_v51, %s7802_s18 }
 0x1b4   : > { %13327 = vst [vmem:[#allocation133_spill] sm:$0xff] %v13326_v28  ;;  %v1292_v54 = vsel %vm13333_vm7, %v13331_v11, 0.0  ;;  %v9655_v36 = vsel %vm12940_vm15, %v1686_v48, %v7278_v10  ;;  %v1579_v52 = vsel %vm1449_vm4, %v13334_v50, 0.0  ;;  %v9660_v28 = vpop.permute.xlu1 %1390  ;;  %v7355_v29 = vpack.i.bf16 %v13336_v38, %v13335_v14 }
 0x1b5   : > { %vm13337_vm13 = vcmp.eq.s32.totalorder %v13244_v18, 1  ;;  %v9669_v39 = vsel %vm12940_vm15, %v1707_v20, %v13322_v4  ;;  %v7269_v48 = vunpack.i.h.bf16 %v7267_v55  ;;  %v7268_v49 = vunpack.i.l.bf16 %v7267_v55  ;;  %7351 = vrot.lane.b32.xlu0 %v7350_v2, %s7802_s18 }
 0x1b6   : > { %v1685_v16 = vsel %vm13337_vm13, %v13276_v59, 0.0  ;;  %13338 = vst [vmem:[#allocation56_spill] sm:$0xff] %v9669_v39  ;;  %vm1453_vm7 = vcmp.eq.s32.totalorder %v9660_v28, 1  ;;  %v1580_v59 = vsel %vm1450_vm5, %v13340_v30, 0.0  ;;  %v7279_v18 = vunpack.i.h.bf16 %v9607_v19  ;;  %v7272_v47 = vpop.permute.xlu0 %7271 }
 0x1b7   : > { %v9684_v4 = vsel %vm1453_vm7, %v9409_v25, 0.0  ;;  %v2141_v20 = vsel %vm12940_vm15, %v1579_v52, %v7264_v60  ;;  %v2142_v55 = vsel %vm12940_vm15, %v1580_v59, %v7268_v49  ;;  %v2109_v2 = vsel %vm12940_vm15, %v9422_v22, %v7269_v48  ;;  %7356 = vrot.lane.b32.xlu1 %v7355_v29, %s7802_s18  ;;  %v13351_v59 = vld [vmem:[#allocation31_spill] sm:$0xff] }
 0x1b8   : > { %v2110_v63 = vsel %vm12940_vm15, %v9431_v12, %v7278_v10  ;;  %v9693_v39 = vsel %vm12940_vm15, %v1685_v16, %v7269_v48  ;;  %v7282_v19 = vpop.permute.xlu1 %7281  ;;  %v2256_v35 = vpack.c.bf16 %v2142_v55, %v2141_v20  ;;  %v13342_v45 = vrot.slane %v13341_v58, 1 }
 0x1b9   : > { %v2255_v9 = vpack.c.bf16 %v2110_v63, %v2109_v2  ;;  %v13343_v23 = vrot.slane %v13308_v62, 1  ;;  %v7274_v49 = vunpack.i.h.bf16 %v7272_v47  ;;  %v7273_v52 = vunpack.i.l.bf16 %v7272_v47  ;;  %v13348_v47 = vld [vmem:[#allocation120_spill] sm:$0xff] }
 0x1ba   : > { %v13344_v12 = vpack.i.bf16 %v9370_v5, %v9365_v3  ;;  %v7283_v10 = vunpack.i.l.bf16 %v7282_v19  ;;  %v13345_v16 = vrot.slane %v8866_v17, 1  ;;  %v13346_v48 = vmov %v13342_v45  ;;  %2721 = vmatprep.mubr.bf16.mxu1 %v2256_v35  ;;  %v13349_v3 = vld [vmem:[#allocation32_spill] sm:$0xff] }
 0x1bb   : > { %v9700_v60 = vsel %vm12938_vm12, %v13343_v23, %v13342_v45  ;;  %v13347_v45 = vld [vmem:[#allocation114_spill] sm:$0xff]  ;;  %v1582_v29 = vsel %vm1452_vm2, %v13348_v47, 0.0  ;;  %vm13350_vm6 = vcmp.eq.s32.totalorder %v13349_v3, 1  ;;  %vm13352_vm10 = vcmp.eq.s32.totalorder %v13351_v59, 1  ;;  %2722 = vmatmul.mubr.bf16.gmra.mxu1 %v2255_v9 }
 0x1bc   : > { %7361 = vrot.lane.b32.xlu0 %v13344_v12, %s7802_s18  ;;  %v9714_v23 = vsel %vm12938_vm12, %v13346_v48, %v13345_v16  ;;  %v1581_v63 = vsel %vm12939_vm8, %v13347_v45, 0.0  ;;  %v1687_v5 = vsel %vm13350_vm6, %v13328_v43, 0.0  ;;  %v1688_v20 = vsel %vm13352_vm10, %v13331_v11, 0.0  ;;  %v1394_v48 = vpop.permute.xlu0 %1393  ;;  %v9732_v22 = vpop.permute.xlu1 %1396  ;;  %v13374_v11 = vld [vmem:[#allocation127_spill] sm:$0xff] }
 0x1bd   : > { %v2143_v55 = vsel %vm12940_vm15, %v1581_v63, %v7279_v18  ;;  %v2144_v2 = vsel %vm12940_vm15, %v1582_v29, %v7273_v52  ;;  %v2111_v12 = vsel %vm12940_vm15, %v1291_v7, %v7274_v49  ;;  %v2112_v16 = vsel %vm12940_vm15, %v1292_v54, %v7283_v10  ;;  %v13363_v52 = vld [vmem:[#allocation53_spill] sm:$0xff] }
 0x1be   : > { %v2261_v35 = vpack.c.bf16 %v2144_v2, %v2143_v55  ;;  %v2260_v58 = vpack.c.bf16 %v2112_v16, %v2111_v12  ;;  %v9735_v43 = vsel %vm12940_vm15, %v1687_v5, %v7274_v49  ;;  %v9738_v59 = vsel %vm12940_vm15, %v1688_v20, %v7283_v10  ;;  %v13362_v49 = vld [vmem:[#allocation70_spill] sm:$0xff]  ;;  %v13365_v10 = vld [vmem:[#allocation112_spill] sm:$0xff] }
 0x1bf   : > { %vm13353_vm13 = vcmp.eq.s32.totalorder %v13296_v56, 1  ;;  %vm1454_vm6 = vcmp.eq.s32.totalorder %v1394_v48, 1  ;;  %v13354_v18 = vpack.i.bf16 %v9441_v31, %v9436_v8  ;;  %v13355_v7 = vpack.i.bf16 %v9462_v27, %v9449_v41  ;;  %v13359_v41 = vld [vmem:[#allocation65_spill] sm:$0xff]  ;;  %v13360_v8 = vld [vmem:[#allocation54_spill] sm:$0xff] }
 0x1c0   : > { %v1654_v9 = vsel %vm13353_vm13, %v13340_v30, 0.0  ;;  %vm1455_vm10 = vcmp.eq.s32.totalorder %v9732_v22, 1  ;;  %v7284_v54 = vunpack.i.h.bf16 %v7282_v19  ;;  %v9756_v56 = vsel %vm1454_vm6, %v9592_v61, 0.0  ;;  %vm9761_vm13 = vmpackc.low %vm1454_vm6, %vm1453_vm7  ;;  %2729 = vmatprep.mubr.bf16.mxu1 %v2261_v35  ;;  %v7287_v12 = vpop.permute.xlu0 %7286  ;;  %v7292_v16 = vpop.permute.xlu1 %7291  ;;  %v13367_v35 = vld [vmem:[#allocation37_spill] sm:$0xff] }
 0x1c1   : > { %7366 = vrot.lane.b32.xlu1 %v13354_v18, %s7802_s18  ;;  %7371 = vrot.lane.b32.xlu0 %v13355_v7, %s7802_s18  ;;  %v13356_v31 = vmov 0  ;;  %vm13361_vm12 = vcmp.eq.s32.totalorder %v13360_v8, 1  ;;  %vm13364_vm8 = vcmp.eq.s32.totalorder %v13363_v52, 1  ;;  %vm13366_vm15 = vcmp.eq.s32.totalorder %v13365_v10, 1  ;;  %v13371_v7 = vld [vmem:[#allocation122_spill] sm:$0xff]  ;;  %v13382_v48 = vld [vmem:[#allocation69_spill] sm:$0xff] }
 0x1c2   : > { %v13357_v31 = vsel %vm9761_vm13, 4294967295, %v13356_v31  ;;  %v1293_v27 = vsel %vm13361_vm12, %v13359_v41, 0.0  ;;  %v1294_v19 = vsel %vm13364_vm8, %v13362_v49, 0.0  ;;  %v1653_v63 = vsel %vm13366_vm15, %v13334_v50, 0.0 }
 0x1c3   : > { %13358 = vst [vmem:[#allocation67_spill] sm:$0xff] %v13357_v31  ;;  %v1656_v29 = vsel %vm1450_vm5, %v13348_v47, 0.0  ;;  %v9782_v20 = vsel %vm1455_vm10, %v9614_v34, 0.0  ;;  %v7385_v55 = vpack.i.bf16 %v1654_v9, %v1653_v63  ;;  %v1655_v2 = vsel %vm1449_vm4, %v13347_v45, 0.0  ;;  %v13369_v47 = vld [vmem:[#allocation36_spill] sm:$0xff]  ;;  %2730 = vmatmul.mubr.bf16.gmra.mxu1 %v2260_v58  ;;  %v13381_v58 = vld [vmem:[#allocation71_spill] sm:$0xff] }
 0x1c4   : > { %vm13368_vm12 = vcmp.eq.s32.totalorder %v13367_v35, 1  ;;  %vm13370_vm5 = vcmp.eq.s32.totalorder %v13369_v47, 1  ;;  %v1583_v10 = vsel %vm1453_vm7, %v13371_v7, 0.0  ;;  %v7289_v5 = vunpack.i.h.bf16 %v7287_v12 }
 0x1c5   : > { %v1689_v21 = vsel %vm13368_vm12, %v13359_v41, 0.0  ;;  %v1690_v18 = vsel %vm13370_vm5, %v13362_v49, 0.0  ;;  %v7288_v9 = vunpack.i.l.bf16 %v7287_v12  ;;  %7376 = vrot.lane.b32.xlu1 %v13372_v1, %s7802_s18  ;;  %v13373_v45 = vpack.i.bf16 %v9568_v32, %v9563_v0 }
 0x1c6   : > { %v7293_v41 = vunpack.i.l.bf16 %v7292_v16  ;;  %v7390_v63 = vpack.i.bf16 %v1656_v29, %v1655_v2  ;;  %v1658_v49 = vsel %vm1452_vm2, %v13374_v11, 0.0  ;;  %v1584_v31 = vsel %vm1454_vm6, %v13374_v11, 0.0  ;;  %v1400_v29 = vpop.permute.xlu0 %1399  ;;  %v9815_v2 = vpop.permute.xlu1 %1402 }
 0x1c7   : > { %7381 = vrot.lane.b32.xlu0 %v13373_v45, %s7802_s18  ;;  %vm13375_vm15 = vcmask 523264   ;;  %v1660_v57 = vsel %vm1454_vm6, %v9343_v24, 0.0  ;;  %vm1457_vm6 = vcmp.eq.s32.totalorder %v9815_v2, 1  ;;  %vm13437_vm1 = vcmask 1046528  }
 0x1c8   : > { %v2145_v12 = vsel %vm13375_vm15, %v1583_v10, %v7284_v54  ;;  %vm13376_vm4 = vmmov %vm13375_vm15  ;;  %vm1456_vm15 = vcmp.eq.s32.totalorder %v1400_v29, 1  ;;  %v9853_v28 = vsel %vm1457_vm6, %v9714_v23, 0.0  ;;  %v13400_v29 = vld [vmem:[#allocation102_spill] sm:$0xff] }
 0x1c9   : > { %v2146_v53 = vsel %vm13376_vm4, %v1584_v31, %v7288_v9  ;;  %vm13377_vm8 = vmmov %vm13376_vm4  ;;  %7386 = vrot.lane.b32.xlu1 %v7385_v55, %s7802_s18  ;;  %v7294_v55 = vunpack.i.h.bf16 %v7292_v16  ;;  %v1662_v16 = vsel %vm1456_vm15, %v9592_v61, 0.0 }
 0x1ca   : > { %v2113_v0 = vsel %vm13377_vm8, %v1293_v27, %v7289_v5  ;;  %vm13378_vm12 = vmmov %vm13376_vm4  ;;  %v2266_v40 = vpack.c.bf16 %v2146_v53, %v2145_v12  ;;  %vm13384_vm8 = vcmp.eq.s32.totalorder %v9457_v46, 1  ;;  %v7297_v9 = vpop.permute.xlu0 %7296  ;;  %v13390_v12 = vld [vmem:[#allocation68_spill] sm:$0xff] }
 0x1cb   : > { %v2114_v32 = vsel %vm13378_vm12, %v1294_v19, %v7293_v41  ;;  %vm13379_vm2 = vmmov %vm13376_vm4  ;;  %7391 = vrot.lane.b32.xlu0 %v7390_v63, %s7802_s18  ;;  %vm13383_vm4 = vcmp.eq.s32.totalorder %v13382_v48, 1  ;;  %v1657_v27 = vsel %vm13384_vm8, %v13371_v7, 0.0  ;;  %v13385_v19 = vld [vmem:[#allocation57_spill] sm:$0xff]  ;;  %v13389_v63 = vld [vmem:[#allocation84_spill] sm:$0xff] }
 0x1cc   : > { %v2265_v1 = vpack.c.bf16 %v2114_v32, %v2113_v0  ;;  %v9818_v45 = vsel %vm13379_vm2, %v1689_v21, %v7289_v5  ;;  %vm13380_vm5 = vmmov %vm13379_vm2  ;;  %v1295_v54 = vsel %vm13383_vm4, %v13381_v58, 0.0  ;;  %v1659_v5 = vsel %vm1453_vm7, %v13385_v19, 0.0  ;;  %2737 = vmatprep.mubr.bf16.mxu1 %v2266_v40 }
 0x1cd   : > { %v9821_v11 = vsel %vm13380_vm5, %v1690_v18, %v7293_v41  ;;  %v9839_v21 = vsel %vm1456_vm15, %v9700_v60, 0.0  ;;  %vm9844_vm12 = vmpackc.low %vm1456_vm15, %vm1455_vm10  ;;  %v13386_v18 = vmov 0  ;;  %v7395_v10 = vpack.i.bf16 %v1658_v49, %v1657_v27  ;;  %v7302_v41 = vpop.permute.xlu1 %7301 }
 0x1ce   : > { %v13387_v18 = vsel %vm9844_vm12, 4294967295, %v13386_v18  ;;  %v7400_v46 = vpack.i.bf16 %v1660_v57, %v1659_v5  ;;  %vm13391_vm7 = vcmp.eq.s32.totalorder %v13390_v12, 1  ;;  %vm13392_vm2 = vcmp.eq.s32.totalorder %v13329_v6, 1  ;;  %2738 = vmatmul.mubr.bf16.gmra.mxu1 %v2265_v1 }
 0x1cf   : > { %13388 = vst [vmem:[#allocation113_spill] sm:$0xff] %v13387_v18  ;;  %v1296_v53 = vsel %vm13391_vm7, %v13389_v63, 0.0  ;;  %v1691_v49 = vsel %vm13392_vm2, %v13381_v58, 0.0  ;;  %vm13393_vm5 = vcmp.eq.s32.totalorder %v13332_v33, 1  ;;  %v1585_v0 = vsel %vm1455_vm10, %v13385_v19, 0.0  ;;  %7396 = vrot.lane.b32.xlu1 %v7395_v10, %s7802_s18 }
 0x1d0   : > { %v1692_v57 = vsel %vm13393_vm5, %v13389_v63, 0.0  ;;  %v7299_v32 = vunpack.i.h.bf16 %v7297_v9  ;;  %v7298_v40 = vunpack.i.l.bf16 %v7297_v9  ;;  %7401 = vrot.lane.b32.xlu0 %v7400_v46, %s7802_s18  ;;  %v7303_v27 = vunpack.i.l.bf16 %v7302_v41  ;;  %v1406_v9 = vpop.permute.xlu0 %1405 }
 0x1d1   : > { %v1661_v5 = vsel %vm1455_vm10, %v9409_v25, 0.0  ;;  %v1586_v58 = vsel %vm1456_vm15, %v9343_v24, 0.0  ;;  %v1523_v63 = vrot.slane %v13305_v13, 1  ;;  %vm13394_vm4 = vcmask 523264   ;;  %v1409_v18 = vpop.permute.xlu1 %1408 }
 0x1d2   : > { %v2147_v7 = vsel %vm13394_vm4, %v1585_v0, %v7294_v55  ;;  %v7405_v31 = vpack.i.bf16 %v1662_v16, %v1661_v5  ;;  %vm13395_vm8 = vmmov %vm13394_vm4  ;;  %v13401_v55 = vrot.slane %v13400_v29, 1  ;;  %v13402_v1 = vrot.slane %v8866_v17, 1 }
 0x1d3   : > { %v2148_v19 = vsel %vm13395_vm8, %v1586_v58, %v7298_v40  ;;  %vm13396_vm7 = vmmov %vm13394_vm4  ;;  %vm13403_vm5 = vcmask 1046528   ;;  %vm12949_vm8 = vcmp.eq.s32.totalorder %v1409_v18, 1  ;;  %v13409_v58 = vld [vmem:[#allocation108_spill] sm:$0xff]  ;;  %v13414_v40 = vld [vmem:[#allocation87_spill] sm:$0xff] }
 0x1d4   : > { %v2115_v10 = vsel %vm13396_vm7, %v1295_v54, %v7299_v32  ;;  %vm13397_vm2 = vmmov %vm13394_vm4  ;;  %v2271_v33 = vpack.c.bf16 %v2148_v19, %v2147_v7  ;;  %v9892_v16 = vsel %vm13403_vm5, %v13402_v1, %v13401_v55  ;;  %vm1458_vm4 = vcmp.eq.s32.totalorder %v1406_v9, 1  ;;  %7406 = vrot.lane.b32.xlu1 %v7405_v31, %s7802_s18  ;;  %v13411_v1 = vld [vmem:[#allocation86_spill] sm:$0xff] }
 0x1d5   : > { %v2116_v46 = vsel %vm13397_vm2, %v1296_v53, %v7303_v27  ;;  %vm13398_vm10 = vmmov %vm13397_vm2  ;;  %v1663_v7 = vsel %vm1457_vm6, %v9614_v34, 0.0  ;;  %v1664_v53 = vsel %vm1458_vm4, %v9700_v60, 0.0  ;;  %v13404_v31 = vmov 0 }
 0x1d6   : > { %v2270_v22 = vpack.c.bf16 %v2116_v46, %v2115_v10  ;;  %v9882_v6 = vsel %vm13398_vm10, %v1691_v49, %v7299_v32  ;;  %vm13399_vm15 = vmmov %vm13397_vm2  ;;  %v9904_v49 = vsel %vm1458_vm4, %v9892_v16, 0.0  ;;  %2745 = vmatprep.mubr.bf16.mxu1 %v2271_v33  ;;  %v7304_v32 = vunpack.i.h.bf16 %v7302_v41  ;;  %v7307_v10 = vpop.permute.xlu0 %7306  ;;  %v7312_v46 = vpop.permute.xlu1 %7311  ;;  %v13413_v41 = vld [vmem:[#allocation89_spill] sm:$0xff] }
 0x1d7   : > { %v9885_v24 = vsel %vm13399_vm15, %v1692_v57, %v7303_v27  ;;  %vm9909_vm7 = vmpackc.low %vm1458_vm4, %vm1457_vm6  ;;  %v13407_v57 = vmov %v13401_v55  ;;  %v7410_v27 = vpack.i.bf16 %v1664_v53, %v1663_v7  ;;  %v1525_v19 = vrot.slane %v13409_v58, 1  ;;  %v13410_v55 = vld [vmem:[#allocation85_spill] sm:$0xff] }
 0x1d8   : > { %v13405_v31 = vsel %vm9909_vm7, 4294967295, %v13404_v31  ;;  %vm13408_vm2 = vmmov %vm13403_vm5  ;;  %vm13412_vm10 = vcmp.eq.s32.totalorder %v13411_v1, 1  ;;  %v7313_v33 = vunpack.i.l.bf16 %v7312_v46  ;;  %vm13415_vm15 = vcmp.eq.s32.totalorder %v13414_v40, 1  ;;  %2746 = vmatmul.mubr.bf16.gmra.mxu1 %v2270_v22 }
 0x1d9   : > { %13406 = vst [vmem:[#allocation119_spill] sm:$0xff] %v13405_v31  ;;  %v9916_v0 = vsel %vm13408_vm2, %v13407_v57, %v1523_v63  ;;  %v1297_v54 = vsel %vm13412_vm10, %v13410_v55, 0.0  ;;  %v7309_v57 = vunpack.i.h.bf16 %v7307_v10  ;;  %v7308_v31 = vunpack.i.l.bf16 %v7307_v10  ;;  %7411 = vrot.lane.b32.xlu0 %v7410_v27, %s7802_s18 }
 0x1da   : > { %v9922_v5 = vsel %vm12949_vm8, %v9916_v0, 0.0  ;;  %v1298_v7 = vsel %vm13415_vm15, %v13413_v41, 0.0  ;;  %v1587_v53 = vsel %vm1457_vm6, %v9409_v25, 0.0  ;;  %v1588_v47 = vsel %vm1458_vm4, %v9592_v61, 0.0  ;;  %v1412_v2 = vpop.permute.xlu0 %1411 }
 0x1db   : > { %vm13416_vm5 = vcmp.eq.s32.totalorder %v13360_v8, 1  ;;  %vm13417_vm2 = vcmp.eq.s32.totalorder %v13363_v52, 1  ;;  %vm13418_vm10 = vcmask 523264   ;;  %v13445_v52 = vld [vmem:[#allocation97_spill] sm:$0xff]  ;;  %v13447_v8 = vld [vmem:[#allocation95_spill] sm:$0xff] }
 0x1dc   : > { %v1693_v35 = vsel %vm13416_vm5, %v13410_v55, 0.0  ;;  %v1694_v27 = vsel %vm13417_vm2, %v13413_v41, 0.0  ;;  %v2149_v10 = vsel %vm13418_vm10, %v1587_v53, %v7304_v32  ;;  %vm13419_vm8 = vmmov %vm13418_vm10  ;;  %vm13424_vm5 = vcmask 1046528  }
 0x1dd   : > { %v2150_v3 = vsel %vm13419_vm8, %v1588_v47, %v7308_v31  ;;  %vm13420_vm15 = vmmov %vm13419_vm8  ;;  %v9954_v41 = vsel %vm13424_vm5, %v1523_v63, %v1525_v19  ;;  %vm1460_vm2 = vcmp.eq.s32.totalorder %v1412_v2, 1  ;;  %v7314_v63 = vunpack.i.h.bf16 %v7312_v46 }
 0x1de   : > { %v2117_v58 = vsel %vm13420_vm15, %v1297_v54, %v7309_v57  ;;  %vm13421_vm9 = vmmov %vm13419_vm8  ;;  %v2276_v9 = vpack.c.bf16 %v2150_v3, %v2149_v10  ;;  %v1666_v3 = vsel %vm1460_vm2, %v9892_v16, 0.0  ;;  %v13427_v54 = vmov 0 }
 0x1df   : > { %v2118_v25 = vsel %vm13421_vm9, %v1298_v7, %v7313_v33  ;;  %vm13422_vm6 = vmmov %vm13419_vm8  ;;  %vm13425_vm8 = vcmp.eq.s32.totalorder %v1409_v18, 1  ;;  %v1529_v7 = vrot.slane %v13335_v14, 1  ;;  %v1590_v46 = vsel %vm1460_vm2, %v9700_v60, 0.0 }
 0x1e0   : > { %v2275_v61 = vpack.c.bf16 %v2118_v25, %v2117_v58  ;;  %v9948_v13 = vsel %vm13422_vm6, %v1693_v35, %v7309_v57  ;;  %vm13423_vm4 = vmmov %vm13422_vm6  ;;  %v1665_v22 = vsel %vm13425_vm8, %v9714_v23, 0.0  ;;  %v9964_v35 = vsel %vm1460_vm2, %v9954_v41, 0.0  ;;  %2753 = vmatprep.mubr.bf16.mxu1 %v2276_v9  ;;  %v1415_v58 = vpop.permute.xlu1 %1414  ;;  %v7317_v57 = vpop.permute.xlu0 %7316  ;;  %v13431_v25 = vld [vmem:[#allocation90_spill] sm:$0xff] }
 0x1e1   : > { %v9951_v55 = vsel %vm13423_vm4, %v1694_v27, %v7313_v33  ;;  %vm13426_vm9 = vmmov %vm13425_vm8  ;;  %v7415_v32 = vpack.i.bf16 %v1666_v3, %v1665_v22  ;;  %v1527_v33 = vrot.slane %v13339_v51, 1  ;;  %v7319_v53 = vunpack.i.h.bf16 %v7317_v57 }
 0x1e2   : > { %vm9968_vm10 = vmpackc.low %vm1460_vm2, %vm13426_vm9  ;;  %v7318_v27 = vunpack.i.l.bf16 %v7317_v57  ;;  %vm13432_vm6 = vcmp.eq.s32.totalorder %v13382_v48, 1  ;;  %vm1461_vm4 = vcmp.eq.s32.totalorder %v1415_v58, 1  ;;  %2754 = vmatmul.mubr.bf16.gmra.mxu1 %v2275_v61  ;;  %vm13433_vm5 = vcmask 523264  }
 0x1e3   : > { %v13428_v54 = vsel %vm9968_vm10, 4294967295, %v13427_v54  ;;  %7416 = vrot.lane.b32.xlu1 %v7415_v32, %s7802_s18  ;;  %vm13430_vm15 = vmmov %vm13425_vm8  ;;  %v1695_v9 = vsel %vm13432_vm6, %v13431_v25, 0.0  ;;  %v1667_v18 = vsel %vm1461_vm4, %v9916_v0, 0.0  ;;  %v1591_v14 = vsel %vm1461_vm4, %v9714_v23, 0.0 }
 0x1e4   : > { %13429 = vst [vmem:[#allocation114_spill] sm:$0xff] %v13428_v54  ;;  %v1589_v10 = vsel %vm13430_vm15, %v9614_v34, 0.0  ;;  %vm13434_vm8 = vmmov %vm13433_vm5  ;;  %v1418_v32 = vpop.permute.xlu0 %1417  ;;  %v9990_v34 = vsel %vm13437_vm1, %v1525_v19, %v1527_v33  ;;  %v13439_v19 = vmov 0 }
 0x1e5   : > { %v2151_v22 = vsel %vm13433_vm5, %v1589_v10, %v7314_v63  ;;  %v2152_v3 = vsel %vm13434_vm8, %v1590_v46, %v7318_v27  ;;  %vm13435_vm9 = vmmov %vm13433_vm5  ;;  %vm1462_vm2 = vcmp.eq.s32.totalorder %v1418_v32, 1  ;;  %v9999_v2 = vsel %vm1461_vm4, %v9990_v34, 0.0  ;;  %v13442_v46 = vld [vmem:[#allocation24_spill] sm:$0xff] }
 0x1e6   : > { %v9987_v57 = vsel %vm13435_vm9, %v1695_v9, %v7319_v53  ;;  %v2281_v47 = vpack.c.bf16 %v2152_v3, %v2151_v22  ;;  %vm13438_vm15 = vmmov %vm13437_vm1  ;;  %v1668_v61 = vsel %vm1462_vm2, %v9954_v41, 0.0  ;;  %v12959_v9 = vrot.slane %v13442_v46, 1  ;;  %v13443_v3 = vld [vmem:[#allocation118_spill] sm:$0xff] }
 0x1e7   : > { %13436 = vst [vmem:[#allocation120_spill] sm:$0xff] %v9987_v57  ;;  %v9993_v60 = vsel %vm13438_vm15, %v1527_v33, %v1529_v7  ;;  %vm10009_vm1 = vmpackc.low %vm1462_vm2, %vm1461_vm4  ;;  %v7420_v27 = vpack.i.bf16 %v1668_v61, %v1667_v18  ;;  %v1531_v22 = vrot.slane %v13336_v38, 1  ;;  %v7430_v31 = vpack.i.bf16 %v13443_v3, %v13442_v46  ;;  %v7484_v18 = vld [vmem:[%s12635_s8 + $0x74] ss:$8 sps:$4 sm:$0xff]  }
 0x1e8   : > { %v10005_v63 = vsel %vm1462_vm2, %v9993_v60, 0.0  ;;  %v13440_v19 = vsel %vm10009_vm1, 4294967295, %v13439_v19  ;;  %2761 = vmatprep.mubr.bf16.mxu1 %v2281_v47  ;;  %v7327_v10 = vpop.permute.xlu0 %7326  ;;  %vm13444_vm6 = vmmov %vm13438_vm15  ;;  %4624 = vmatprep.subr.bf16.mxu0 %v7484_v18  ;;  %vm13446_vm8 = vcmp.eq.s32.totalorder %v13445_v52, 1  ;;  %v13448_v38 = vld [vmem:[#allocation98_spill] sm:$0xff]  ;;  %v1592_v51 = vsel %vm1462_vm2, %v9892_v16, 0.0 }
 0x1e9   : > { %13441 = vst [vmem:[#allocation65_spill] sm:$0xff] %v13440_v19  ;;  %7421 = vrot.lane.b32.xlu0 %v7420_v27, %s7802_s18  ;;  %v10023_v19 = vsel %vm13444_vm6, %v1531_v22, %v12959_v9  ;;  %v7328_v61 = vunpack.i.l.bf16 %v7327_v10  ;;  %v1299_v9 = vsel %vm13446_vm8, %v13431_v25, 0.0  ;;  %vm13449_vm9 = vcmp.eq.s32.totalorder %v13448_v38, 1 }
 0x1ea   : > { %vm13450_vm15 = vcmask 523264   ;;  %vm13451_vm6 = vcmp.eq.s32.totalorder %v13390_v12, 1  ;;  %vm13456_vm4 = vcmask 1046528  }
 0x1eb   : > { %v2119_v18 = vsel %vm13450_vm15, %v1299_v9, %v7319_v53 }
 0x1ec   : > { %v1424_v54 = vpop.permute.xlu0 %1423 }
 0x1ed   : > { %vm12964_vm5 = vcmp.eq.s32.totalorder %v1424_v54, 1  ;;  %7431 = vrot.lane.b32.xlu0 %v7430_v31, %s7802_s18  ;;  %v1300_v31 = vsel %vm13449_vm9, %v13447_v8, 0.0 }
 0x1ee   : > { %v10028_v47 = vsel %vm12964_vm5, %v10023_v19, 0.0  ;;  %vm13452_vm5 = vmmov %vm13450_vm15  ;;  %vm13466_vm15 = vcmp.eq.s32.totalorder %v13411_v1, 1 }
 0x1ef   : > { %vm13453_vm1 = vmmov %vm13452_vm5 }
 0x1f0   : > { %vm13454_vm8 = vmmov %vm13453_vm1 }
 0x1f1   : > { %v2154_v17 = vsel %vm13454_vm8, %v1592_v51, %v7328_v61  ;;  %vm13455_vm14 = vmmov %vm13453_vm1  ;;  %v7329_v51 = vunpack.i.h.bf16 %v7327_v10  ;;  %v13462_v61 = vld [vmem:[#allocation100_spill] sm:$0xff]  ;;  %vm13469_vm8 = vcmp.eq.s32.totalorder %v13414_v40, 1 }
 0x1f6   : > { %v7322_v27 = vpop.permute.xlu1 %7321 }
 0x1f7   : > { %v7324_v33 = vunpack.i.h.bf16 %v7322_v27  ;;  %v7323_v48 = vunpack.i.l.bf16 %v7322_v27  ;;  %v1696_v27 = vsel %vm13451_vm6, %v13447_v8, 0.0  ;;  %v10058_v8 = vsel %vm13456_vm4, %v1529_v7, %v1531_v22  ;;  %v13470_v7 = vld [vmem:[#allocation106_spill] sm:$0xff] }
 0x1f9   : > { %v2120_v29 = vsel %vm13452_vm5, %v1300_v31, %v7323_v48  ;;  %v2153_v25 = vsel %vm13453_vm1, %v1591_v14, %v7324_v33  ;;  %v10051_v62 = vsel %vm13455_vm14, %v1696_v27, %v7323_v48  ;;  %v1638_v14 = vrot.slane %v13443_v3, 1  ;;  %v13463_v31 = vld [vmem:[#allocation103_spill] sm:$0xff]  ;;  %v13465_v27 = vld [vmem:[#allocation96_spill] sm:$0xff] }
 0x1fa   : > { %v2280_v58 = vpack.c.bf16 %v2120_v29, %v2119_v18  ;;  %v2286_v23 = vpack.c.bf16 %v2154_v17, %v2153_v25  ;;  %vm13457_vm14 = vcmp.eq.s32.totalorder %v1424_v54, 1  ;;  %v13459_v33 = vmov 0 }
 0x1fb   : > { %v1670_v48 = vsel %vm13457_vm14, %v9993_v60, 0.0  ;;  %vm13458_vm1 = vmmov %vm13457_vm14  ;;  %vm13464_vm9 = vcmp.eq.s32.totalorder %v13463_v31, 1  ;;  %v1697_v25 = vsel %vm13466_vm15, %v13465_v27, 0.0  ;;  %v1640_v12 = vsel %vm13456_vm4, %v1638_v14, %v13470_v7 }
 0x1fc   : > { %2762 = vmatmul.mubr.bf16.gmra.mxu1 %v2280_v58  ;;  %v10055_v32 = vpop.permute.xlu0 %7336  ;;  %v1302_v18 = vsel %vm13464_vm9, %v13462_v61, 0.0  ;;  %v13467_v58 = vld [vmem:[#allocation40_spill] sm:$0xff]  ;;  %vm13473_vm15 = vcmp.eq.s32.totalorder %v1424_v54, 1 }
 0x1fd   : > { %2769 = vmatprep.mubr.bf16.mxu1 %v2286_v23  ;;  %v7338_v9 = vunpack.i.l.bf16 %v10055_v32  ;;  %vm13468_vm6 = vcmp.eq.s32.totalorder %v13467_v58, 1 }
 0x1fe   : > { %v1301_v23 = vsel %vm13468_vm6, %v13465_v27, 0.0  ;;  %v1594_v27 = vsel %vm13473_vm15, %v9954_v41, 0.0 }
 0x203   : > { %v1421_v53 = vpop.permute.xlu1 %1420 }
 0x204   : > { %vm1463_vm2 = vcmp.eq.s32.totalorder %v1421_v53, 1 }
 0x205   : > { %v1669_v17 = vsel %vm1463_vm2, %v9990_v34, 0.0  ;;  %v10067_v29 = vsel %vm1463_vm2, %v10058_v8, 0.0  ;;  %vm10071_vm5 = vmpackc.low %vm13458_vm1, %vm1463_vm2  ;;  %vm13471_vm1 = vcmask 523264  }
 0x206   : > { %v13460_v33 = vsel %vm10071_vm5, 4294967295, %v13459_v33  ;;  %v7425_v10 = vpack.i.bf16 %v1670_v48, %v1669_v17  ;;  %v1698_v17 = vsel %vm13469_vm8, %v13462_v61, 0.0  ;;  %v2121_v1 = vsel %vm13471_vm1, %v1301_v23, %v7329_v51  ;;  %vm13472_vm9 = vmmov %vm13471_vm1 }
 0x207   : > { %13461 = vst [vmem:[#allocation70_spill] sm:$0xff] %v13460_v33  ;;  %v10095_v3 = vsel %vm13472_vm9, %v1697_v25, %v7329_v51  ;;  %vm13474_vm6 = vmmov %vm13471_vm1  ;;  %vm13480_vm9 = vcmask 1046528  }
 0x208   : > { %v7332_v22 = vpop.permute.xlu1 %7331  ;;  %7426 = vrot.lane.b32.xlu1 %v7425_v10, %s7802_s18  ;;  %v1593_v10 = vsel %vm1463_vm2, %v9916_v0, 0.0  ;;  %vm13475_vm8 = vmmov %vm13471_vm1 }
 0x209   : > { %v7334_v16 = vunpack.i.h.bf16 %v7332_v22  ;;  %v7333_v33 = vunpack.i.l.bf16 %v7332_v22  ;;  %v1430_v48 = vpop.permute.xlu0 %1429  ;;  %vm13476_vm4 = vmmov %vm13471_vm1 }
 0x20a   : > { %vm1466_vm14 = vcmp.eq.s32.totalorder %v1430_v48, 1  ;;  %v2156_v57 = vsel %vm13476_vm4, %v1594_v27, %v7338_v9  ;;  %vm13478_vm2 = vmmov %vm13471_vm1  ;;  %vm13487_vm4 = vcmp.eq.s32.totalorder %v13448_v38, 1 }
 0x20b   : > { %v10102_v22 = vsel %vm1466_vm14, %v1640_v12, 0.0  ;;  %v2122_v61 = vsel %vm13474_vm6, %v1302_v18, %v7333_v33  ;;  %v2155_v40 = vsel %vm13475_vm8, %v1593_v10, %v7334_v16  ;;  %v10108_v23 = vsel %vm13471_vm1, %v1698_v17, %v7333_v33  ;;  %v13484_v10 = vld [vmem:[#allocation115_spill] sm:$0xff] }
 0x20c   : > { %v2285_v58 = vpack.c.bf16 %v2122_v61, %v2121_v1  ;;  %v2291_v54 = vpack.c.bf16 %v2156_v57, %v2155_v40  ;;  %v13477_v1 = vld [vmem:[#allocation123_spill] sm:$0xff]  ;;  %v13479_v33 = vrot.slane %v13442_v46, 1  ;;  %v7339_v40 = vunpack.i.h.bf16 %v10055_v32 }
 0x20d   : > { %v1672_v57 = vsel %vm1466_vm14, %v10023_v19, 0.0  ;;  %vm13485_vm8 = vcmp.eq.s32.totalorder %v13445_v52, 1 }
 0x20e   : > { %v10110_v51 = vpop.permute.xlu0 %7346  ;;  %2770 = vmatmul.mubr.bf16.gmra.mxu1 %v2285_v58  ;;  %v1639_v9 = vsel %vm13480_vm9, %v13479_v33, %v1638_v14  ;;  %v13481_v58 = vmov 0  ;;  %v1699_v61 = vsel %vm13485_vm8, %v13484_v10, 0.0  ;;  %v13488_v33 = vld [vmem:[#allocation125_spill] sm:$0xff]  ;;  %vm13492_vm9 = vcmask 523264  }
 0x20f   : > { %v12977_v0 = vunpack.i.h.bf16 %v10110_v51  ;;  %2777 = vmatprep.mubr.bf16.mxu1 %v2291_v54  ;;  %v7348_v14 = vunpack.i.l.bf16 %v10110_v51  ;;  %v13486_v54 = vld [vmem:[#allocation104_spill] sm:$0xff]  ;;  %vm13489_vm1 = vcmp.eq.s32.totalorder %v13488_v33, 1  ;;  %vm13493_vm8 = vmmov %vm13492_vm9 }
 0x210   : > { %v1304_v41 = vsel %vm13489_vm1, %v13486_v54, 0.0  ;;  %v10160_v33 = vsel %vm13493_vm8, %v1699_v61, %v7339_v40  ;;  %v13500_v61 = vld [vmem:[#allocation16_spill] sm:$0xff] }
 0x211   : > { %v10119_v16 = vsel %vm13478_vm2, %v13477_v1, %v12977_v0  ;;  %v1700_v1 = vsel %vm13487_vm4, %v13486_v54, 0.0  ;;  %v13490_v0 = vld [vmem:[#allocation129_spill] sm:$0xff]  ;;  %vm13494_vm4 = vmmov %vm13493_vm8 }
 0x212   : > { %vm13491_vm2 = vcmp.eq.s32.totalorder %v13490_v0, 1  ;;  %vm13495_vm1 = vmmov %vm13494_vm4 }
 0x215   : > { %v1427_v53 = vpop.permute.xlu1 %1426 }
 0x216   : > { %vm1465_vm15 = vcmp.eq.s32.totalorder %v1427_v53, 1 }
 0x217   : > { %v1671_v18 = vsel %vm1465_vm15, %v10058_v8, 0.0  ;;  %v10130_v25 = vsel %vm1465_vm15, %v1639_v9, 0.0  ;;  %vm10134_vm6 = vmpackc.low %vm1466_vm14, %vm1465_vm15  ;;  %v1595_v38 = vsel %vm1465_vm15, %v9990_v34, 0.0 }
 0x218   : > { %v13482_v58 = vsel %vm10134_vm6, 4294967295, %v13481_v58  ;;  %v7435_v17 = vpack.i.bf16 %v1672_v57, %v1671_v18  ;;  %v1596_v18 = vsel %vm1466_vm14, %v9993_v60, 0.0  ;;  %vm13497_vm6 = vmmov %vm13495_vm1 }
 0x219   : > { %13483 = vst [vmem:[#allocation112_spill] sm:$0xff] %v13482_v58  ;;  %v1303_v58 = vsel %vm13491_vm2, %v13484_v10, 0.0  ;;  %vm13496_vm2 = vmmov %vm13495_vm1 }
 0x21a   : > { %7436 = vrot.lane.b32.xlu1 %v7435_v17, %s7802_s18  ;;  %v2123_v52 = vsel %vm13492_vm9, %v1303_v58, %v7339_v40  ;;  %vm13501_vm9 = vmmov %vm13495_vm1 }
 0x21b   : > { %v1436_v57 = vpop.permute.xlu0 %1435 }
 0x21c   : > { %vm1468_vm14 = vcmp.eq.s32.totalorder %v1436_v57, 1  ;;  %v13513_v57 = vld [vmem:[#allocation38_spill] sm:$0xff] }
 0x21d   : > { %v7342_v27 = vpop.permute.xlu1 %7341 }
 0x21e   : > { %v7344_v46 = vunpack.i.h.bf16 %v7342_v27  ;;  %v7343_v32 = vunpack.i.l.bf16 %v7342_v27  ;;  %v2158_v27 = vsel %vm13496_vm2, %v1596_v18, %v7348_v14 }
 0x220   : > { %v2124_v54 = vsel %vm13494_vm4, %v1304_v41, %v7343_v32  ;;  %v2157_v0 = vsel %vm13495_vm1, %v1595_v38, %v7344_v46  ;;  %v10166_v17 = vsel %vm13497_vm6, %v1700_v1, %v7343_v32  ;;  %v1674_v38 = vsel %vm1468_vm14, %v1640_v12, 0.0  ;;  %v13498_v32 = vld [vmem:[#allocation17_spill] sm:$0xff]  ;;  %vm13499_vm6 = vmmov %vm13495_vm1 }
 0x221   : > { %v2290_v10 = vpack.c.bf16 %v2124_v54, %v2123_v52  ;;  %v2296_v48 = vpack.c.bf16 %v2158_v27, %v2157_v0  ;;  %v13502_v0 = vmov 0  ;;  %v10183_v12 = vsel %vm1468_vm14, %v13470_v7, 0.0 }
 0x222   : > { %vm13506_vm4 = vcmp.eq.s32.totalorder %v9321_v37, 1  ;;  %vm13507_vm1 = vcmp.eq.s32.totalorder %v13463_v31, 1 }
 0x223   : > { %2778 = vmatmul.mubr.bf16.gmra.mxu1 %v2290_v10 }
 0x224   : > { %2785 = vmatprep.mubr.bf16.mxu1 %v2296_v48 }
 0x227   : > { %v7352_v34 = vpop.permute.xlu0 %7351 }
 0x228   : > { %v7354_v46 = vunpack.i.h.bf16 %v7352_v34  ;;  %v7353_v14 = vunpack.i.l.bf16 %v7352_v34  ;;  %v7482_v34 = vld [vmem:[%s12635_s8 + $0x70] ss:$8 sps:$4 sm:$0xff]  }
 0x22a   : > { %v1433_v41 = vpop.permute.xlu1 %1432 }
 0x22b   : > { %vm1467_vm15 = vcmp.eq.s32.totalorder %v1433_v41, 1 }
 0x22c   : > { %v1597_v18 = vsel %vm1467_vm15, %v10058_v8, 0.0  ;;  %v1673_v54 = vsel %vm1467_vm15, %v1639_v9, 0.0  ;;  %vm10177_vm8 = vmpackc.low %vm1468_vm14, %vm1467_vm15  ;;  %v10186_v10 = vsel %vm1467_vm15, %v13470_v7, 0.0  ;;  %v13505_v9 = vld [vmem:[#allocation121_spill] sm:$0xff] }
 0x22d   : > { %v13503_v0 = vsel %vm10177_vm8, 4294967295, %v13502_v0  ;;  %v7440_v48 = vpack.i.bf16 %v1674_v38, %v1673_v54  ;;  %v2159_v41 = vsel %vm13496_vm2, %v1597_v18, %v7353_v14  ;;  %v7487_v38 = vld [vmem:[%s12635_s8 + $0x64] ss:$8 sps:$4 sm:$0xff]   ;;  %vm13509_vm15 = vmmov %vm13496_vm2  ;;  %v13512_v54 = vld [vmem:[#allocation130_spill] sm:$0xff] }
 0x22e   : > { %v7362_v53 = vpop.permute.xlu0 %7361  ;;  %13504 = vst [vmem:[#allocation122_spill] sm:$0xff] %v13503_v0  ;;  %v13550_v14 = vld [vmem:[#allocation92_spill] sm:$0xff] }
 0x22f   : > { %v7364_v40 = vunpack.i.h.bf16 %v7362_v53  ;;  %v7363_v58 = vunpack.i.l.bf16 %v7362_v53  ;;  %v1306_v53 = vsel %vm13506_vm4, %v13505_v9, 0.0  ;;  %7441 = vrot.lane.b32.xlu0 %v7440_v48, %s7802_s18  ;;  %vm13516_vm4 = vmmov %vm13496_vm2  ;;  %s7744_s18 = scalar_lea.vmem %s7743_s26, 32 }
 0x230   : > { %p7746_p1 = scmp.lt.s32.totalorder %s7744_s18, %s7738_s30 }
 0x231   : > { %v2162_v52 = vsel %vm13499_vm6, %v13498_v32, %v7364_v40  ;;  %v2161_v1 = vsel %vm13501_vm9, %v13500_v61, %v7363_v58  ;;  %v1702_v40 = vsel %vm13507_vm1, %v13505_v9, 0.0  ;;  %v1798_v58 = vpop.permute.xlu1 %1797  ;;  %v1598_v32 = vsel %vm1468_vm14, %v10023_v19, 0.0  ;;  %vm13510_vm6 = vmmov %vm13496_vm2 }
 0x232   : > { %v2227_v27 = vpack.c.bf16 %v2162_v52, %v2161_v1  ;;  %v13508_v52 = vunpack.i.h.bf16 %v10110_v51  ;;  %v2126_v61 = vsel %vm13510_vm6, %v1306_v53, %v1798_v58  ;;  %vm13511_vm9 = vmmov %vm13496_vm2  ;;  %v13514_v19 = vpack.c.bf16 %v13512_v54, %v13513_v57  ;;  %v13549_v57 = vld [vmem:[#allocation46_spill] sm:$0xff]  ;;  %p7747_p2 = por %p7746_p1, %p7745_p0 }
 0x233   : > { %v10211_v1 = vsel %vm13511_vm9, %v1702_v40, %v1798_v58  ;;  %vm13515_vm14 = vmmov %vm13496_vm2 }
 0x234   : > { %v2125_v37 = vsel %vm13509_vm15, %v9523_v26, %v13508_v52  ;;  %2835 = vmatmul.mubr.bf16.vlgmr.msra.gmra.mxu0 %v2227_v27  ;;  %v2160_v51 = vsel %vm13515_vm14, %v1598_v32, %v7354_v46  ;;  %v7485_v26 = vld [vmem:[%s12635_s8 + $0x60] ss:$8 sps:$4 sm:$0xff]   ;;  %v7490_v27 = vld [vmem:[%s12635_s8 + $0x54] ss:$8 sps:$4 sm:$0xff]   ;;  %vm13517_vm1 = vmmov %vm13496_vm2  ;;  %p7748_p3 = pnand %p7747_p2, %p7741_p13 }
 0x235   : > { %v2295_v18 = vpack.c.bf16 %v2126_v61, %v2125_v37  ;;  %2842 = vmatprep.mubr.bf16.mxu0 %v13514_v19  ;;  %v2301_v9 = vpack.c.bf16 %v2160_v51, %v2159_v41  ;;  %4625 = vmatpush1.bf16.msra.mxu0 %v7482_v34  ;;  %v7357_v53 = vpop.permute.xlu1 %7356  ;;  %v7488_v34 = vld [vmem:[%s12635_s8 + $0x50] ss:$8 sps:$4 sm:$0xff]   ;;  %v13518_v41 = vld [vmem:[#allocation76_spill] sm:$0xff]  ;;  %vm13519_vm2 = vmmov %vm13517_vm1 }
 0x236   : > { %4626 = vmatprep.subr.bf16.mxu0 %v7487_v38  ;;  %v7359_v48 = vunpack.i.h.bf16 %v7357_v53  ;;  %v7358_v40 = vunpack.i.l.bf16 %v7357_v53  ;;  %v7493_v37 = vld [vmem:[%s12635_s8 + $0x44] ss:$8 sps:$4 sm:$0xff]   ;;  %vm13521_vm15 = vmmov %vm13517_vm1  ;;  %v7491_v53 = vld [vmem:[%s12635_s8 + $0x40] ss:$8 sps:$4 sm:$0xff]  }
 0x237   : > { %2786 = vmatmul.mubr.bf16.gmra.mxu1 %v2295_v18  ;;  %v13522_v19 = vld [vmem:[#allocation13_spill] sm:$0xff]  ;;  %vm13523_vm6 = vmmov %vm13517_vm1 }
 0x238   : > { %2793 = vmatprep.mubr.bf16.mxu1 %v2301_v9  ;;  %v2127_v58 = vsel %vm13516_vm4, %v9639_v15, %v7358_v40  ;;  %v2128_v46 = vsel %vm13517_vm1, %v9585_v44, %v7359_v48  ;;  %v10235_v38 = vsel %vm13519_vm2, %v13518_v41, %v7358_v40  ;;  %v13520_v15 = vld [vmem:[#allocation126_spill] sm:$0xff]  ;;  %v7372_v44 = vpop.permute.xlu0 %7371  ;;  %v13524_v9 = vld [vmem:[#allocation12_spill] sm:$0xff]  ;;  %vm13525_vm9 = vmmov %vm13517_vm1 }
 0x239   : > { %4627 = vmatpush1.bf16.msra.mxu0 %v7485_v26  ;;  %v7367_v32 = vpop.permute.xlu1 %7366  ;;  %v2300_v52 = vpack.c.bf16 %v2128_v46, %v2127_v58  ;;  %v10242_v61 = vsel %vm13521_vm15, %v13520_v15, %v7359_v48  ;;  %v7496_v48 = vld [vmem:[%s12635_s8 + $0x34] ss:$8 sps:$4 sm:$0xff]   ;;  %v7374_v40 = vunpack.i.h.bf16 %v7372_v44  ;;  %v7373_v58 = vunpack.i.l.bf16 %v7372_v44  ;;  %v13526_v46 = vld [vmem:[#allocation81_spill] sm:$0xff]  ;;  %v13527_v41 = vld [vmem:[#allocation80_spill] sm:$0xff] }
 0x23a   : > { %4628 = vmatprep.subr.bf16.mxu0 %v7490_v27  ;;  %v7369_v18 = vunpack.i.h.bf16 %v7367_v32  ;;  %v7368_v54 = vunpack.i.l.bf16 %v7367_v32  ;;  %v13528_v32 = vpack.c.bf16 %v13526_v46, %v13527_v41  ;;  %vm13529_vm14 = vmmov %vm13517_vm1  ;;  %v13530_v15 = vld [vmem:[#allocation51_spill] sm:$0xff]  ;;  %v13532_v44 = vld [vmem:[#allocation22_spill] sm:$0xff] }
 0x23b   : > { %vm13533_vm4 = vmmov %vm13517_vm1 }
 0x23c   : > { %v2163_v51 = vsel %vm13523_vm6, %v13522_v19, %v7368_v54  ;;  %v2164_v26 = vsel %vm13525_vm9, %v13524_v9, %v7369_v18  ;;  %v13531_v18 = vpack.c.bf16 %v9471_v42, %v13530_v15  ;;  %v2165_v54 = vsel %vm13533_vm4, %v13532_v44, %v7373_v58  ;;  %v13534_v19 = vld [vmem:[#allocation29_spill] sm:$0xff]  ;;  %vm13538_vm2 = vmmov %vm13517_vm1  ;;  %v7502_v58 = vld [vmem:[%s12635_s8 + $0x14] ss:$8 sps:$4 sm:$0xff]  }
 0x23d   : > { %4629 = vmatpush1.bf16.msra.mxu0 %v7488_v34  ;;  %v2232_v27 = vpack.c.bf16 %v2164_v26, %v2163_v51  ;;  %v7382_v34 = vpop.permute.xlu0 %7381  ;;  %v2166_v51 = vsel %vm13517_vm1, %v13534_v19, %v7374_v40  ;;  %v7377_v9 = vpop.permute.xlu1 %7376  ;;  %v7497_v42 = vld [vmem:[%s12635_s8 + $0x20] ss:$8 sps:$4 sm:$0xff]   ;;  %v13540_v44 = vld [vmem:[#allocation82_spill] sm:$0xff]  ;;  %vm13542_vm15 = vmmov %vm13517_vm1  ;;  %vm13551_vm9 = vcmp.eq.s32.totalorder %v13550_v14, 1 }
 0x23e   : > { %4630 = vmatprep.subr.bf16.mxu0 %v7493_v37  ;;  %v7499_v37 = vld [vmem:[%s12635_s8 + $0x24] ss:$8 sps:$4 sm:$0xff]   ;;  %v6804_v26 = vpop.f32.mrf.mxu1  ;;  %v2237_v41 = vpack.c.bf16 %v2166_v51, %v2165_v54  ;;  %v7378_v15 = vunpack.i.l.bf16 %v7377_v9  ;;  %vm13555_vm4 = vmmov %vm13517_vm1 }
 0x23f   : > { %2794 = vmatmul.mubr.bf16.gmra.mxu1 %v2300_v52  ;;  %2843 = vmatmul.mubr.bf16.gmra.mxu0 %v2232_v27  ;;  %v7494_v52 = vld [vmem:[%s12635_s8 + $0x30] ss:$8 sps:$4 sm:$0xff]  }
 0x240   : > { %7105 = vmatprep.mubr.msk.bf16.mxu1 %vm13529_vm14, %v13528_v32  ;;  %2850 = vmatprep.mubr.bf16.mxu0 %v13531_v18  ;;  %v13535_v27 = vld [vmem:[#allocation63_spill] sm:$0xff]  ;;  %v7379_v32 = vunpack.i.h.bf16 %v7377_v9  ;;  %v13547_v51 = vld [vmem:[#allocation93_spill] sm:$0xff]  ;;  %v1716_v9 = vsel %vm13551_vm9, %v13549_v57, 0.0  ;;  %v13556_v57 = vld [vmem:[#allocation28_spill] sm:$0xff] }
 0x241   : > { %4631 = vmatpush1.bf16.msra.mxu0 %v7491_v53  ;;  %v6805_v53 = vpop.f32.mrf.mxu1  ;;  %v10283_v40 = vpop.permute.xlu0 %7391  ;;  %vm13548_vm6 = vcmp.eq.s32.totalorder %v13547_v51, 1  ;;  %vm13563_vm9 = vmmov %vm13517_vm1 }
 0x242   : > { %4632 = vmatprep.subr.bf16.mxu0 %v7496_v48  ;;  %v13536_v48 = vld [vmem:[#allocation62_spill] sm:$0xff]  ;;  %v10285_v18 = vadd.f32 %v6805_v53, %v6804_v26 }
 0x243   : > { %v13537_v46 = vpack.c.bf16 %v13535_v27, %v13536_v48  ;;  %v13543_v27 = vld [vmem:[#allocation30_spill] sm:$0xff]  ;;  %v13544_v48 = vld [vmem:[#allocation43_spill] sm:$0xff]  ;;  %v10303_v53 = vpop.f32.mrf.mxu1 }
 0x244   : > { %v13545_v54 = vpack.c.bf16 %v13543_v27, %v13544_v48  ;;  %v7500_v26 = vld [vmem:[%s12635_s8 + $0x10] ss:$8 sps:$4 sm:$0xff]  }
 0x245   : > { %4633 = vmatpush1.bf16.msra.mxu0 %v7494_v52  ;;  %v13539_v52 = vld [vmem:[#allocation83_spill] sm:$0xff]  ;;  %v10318_v60 = vpop.permute.xlu0 %7401 }
 0x246   : > { %4634 = vmatprep.subr.bf16.mxu0 %v7499_v37  ;;  %v13541_v19 = vpack.c.bf16 %v13539_v52, %v13540_v44  ;;  %v13546_v37 = vld [vmem:[#allocation116_spill] sm:$0xff] }
 0x247   : > { %7106 = vmatmul.mubr.msk.bf16.vlgmr.msra.gmra.mxu1 %vm13538_vm2, %v13537_v46  ;;  %2851 = vmatmul.mubr.bf16.gmra.mxu0 %v2237_v41  ;;  %v1715_v46 = vsel %vm13548_vm6, %v13546_v37, 0.0  ;;  %v13552_v41 = vld [vmem:[#allocation105_spill] sm:$0xff]  ;;  %vm13560_vm6 = vmmov %vm13517_vm1 }
 0x248   : > { %7109 = vmatprep.mubr.msk.bf16.mxu1 %vm13542_vm15, %v13541_v19  ;;  %2858 = vmatprep.mubr.bf16.mxu0 %v13545_v54  ;;  %vm13553_vm14 = vcmp.eq.s32.totalorder %v13552_v41, 1  ;;  %v7505_v44 = vld [vmem:[%s12635_s8 + $0x4] ss:$8 sps:$4 sm:$0xff]   ;;  %v2244_v48 = vpack.c.bf16 %v1716_v9, %v1715_v46  ;;  %vm13559_vm15 = vmmov %vm13517_vm1  ;;  %v7384_v46 = vunpack.i.h.bf16 %v7382_v34 }
 0x249   : > { %4635 = vmatpush1.bf16.msra.mxu0 %v7497_v42  ;;  %v1718_v52 = vsel %vm13553_vm14, %v13340_v30, 0.0  ;;  %v13554_v19 = vld [vmem:[#allocation25_spill] sm:$0xff]  ;;  %v2168_v42 = vsel %vm13517_vm1, %v13556_v57, %v7379_v32  ;;  %v7508_v32 = vld [vmem:[%s12635_s8 + $0xf4] ss:$8 sps:$4 sm:$0xff]   ;;  %vm13565_vm14 = vmmov %vm13517_vm1 }
 0x24a   : > { %4636 = vmatprep.subr.bf16.mxu0 %v7502_v58  ;;  %v2167_v27 = vsel %vm13555_vm4, %v13554_v19, %v7378_v15  ;;  %v13557_v54 = vld [vmem:[#allocation101_spill] sm:$0xff]  ;;  %v10323_v58 = vpop.f32.mrf.mxu1  ;;  %vm13569_vm4 = vmmov %vm13517_vm1 }
 0x24b   : > { %vm13558_vm2 = vcmp.eq.s32.totalorder %v13557_v54, 1  ;;  %v7503_v30 = vld [vmem:[%s12635_s8] ss:$8 sps:$4 sm:$0xff]   ;;  %v2242_v15 = vpack.c.bf16 %v2168_v42, %v2167_v27  ;;  %v13564_v42 = vld [vmem:[#allocation42_spill] sm:$0xff] }
 0x24c   : > { %v1717_v37 = vsel %vm13558_vm2, %v13334_v50, 0.0  ;;  %v7383_v50 = vunpack.i.l.bf16 %v7382_v34  ;;  %v6810_v9 = vpop.f32.mrf.mxu1  ;;  %v7511_v34 = vld [vmem:[%s12635_s8 + $0xe4] ss:$8 sps:$4 sm:$0xff]   ;;  %vm13575_vm2 = vmmov %vm13517_vm1 }
 0x24d   : > { %v2249_v8 = vpack.c.bf16 %v1718_v52, %v1717_v37  ;;  %4637 = vmatpush1.bf16.msra.mxu0 %v7500_v26  ;;  %v10330_v26 = vpop.permute.xlu0 %7411  ;;  %v13561_v52 = vpack.c.bf16 %v9655_v36, %v9693_v39  ;;  %v13562_v27 = vld [vmem:[#allocation33_spill] sm:$0xff]  ;;  %v2170_v39 = vsel %vm13565_vm14, %v13564_v42, %v7384_v46  ;;  %v7387_v36 = vpop.permute.xlu1 %7386  ;;  %vm13585_vm14 = vmmov %vm13517_vm1 }
 0x24e   : > { %4638 = vmatprep.subr.bf16.mxu0 %v7505_v44  ;;  %v7506_v44 = vld [vmem:[%s12635_s8 + $0xf0] ss:$8 sps:$4 sm:$0xff]   ;;  %v6811_v19 = vpop.f32.mrf.mxu1  ;;  %v2169_v57 = vsel %vm13563_vm9, %v13562_v27, %v7383_v50  ;;  %v7509_v37 = vld [vmem:[%s12635_s8 + $0xe0] ss:$8 sps:$4 sm:$0xff]   ;;  %v7514_v50 = vld [vmem:[%s12635_s8 + $0xd4] ss:$8 sps:$4 sm:$0xff]   ;;  %v7389_v46 = vunpack.i.h.bf16 %v7387_v36 }
 0x24f   : > { %7110 = vmatmul.mubr.msk.bf16.gmra.mxu1 %vm13559_vm15, %v2244_v48  ;;  %2859 = vmatmul.mubr.bf16.gmra.mxu0 %v2242_v15  ;;  %v13567_v15 = vld [vmem:[#allocation117_spill] sm:$0xff]  ;;  %v13571_v27 = vld [vmem:[#allocation128_spill] sm:$0xff]  ;;  %vm13577_vm15 = vmmov %vm13517_vm1 }
 0x250   : > { %7113 = vmatprep.mubr.msk.bf16.mxu1 %vm13560_vm6, %v2249_v8  ;;  %2866 = vmatprep.mubr.bf16.mxu0 %v13561_v52  ;;  %v10341_v8 = vadd.f32 %v6811_v19, %v6810_v9  ;;  %v2247_v9 = vpack.c.bf16 %v2170_v39, %v2169_v57  ;;  %v7388_v52 = vunpack.i.l.bf16 %v7387_v36  ;;  %v10359_v19 = vpop.f32.mrf.mxu1  ;;  %v7517_v36 = vld [vmem:[%s12635_s8 + $0xc4] ss:$8 sps:$4 sm:$0xff]   ;;  %vm13579_vm6 = vmmov %vm13517_vm1 }
 0x251   : > { %4639 = vmatpush1.bf16.msra.mxu0 %v7503_v30  ;;  %v13566_v30 = vld [vmem:[#allocation18_spill] sm:$0xff]  ;;  %vm13581_vm9 = vmmov %vm13517_vm1 }
 0x252   : > { %4640 = vmatprep.subr.bf16.mxu0 %v7508_v32  ;;  %v13568_v32 = vpack.c.bf16 %v13566_v30, %v13567_v15  ;;  %v13573_v30 = vpack.c.bf16 %v9738_v59, %v9735_v43  ;;  %v10374_v15 = vpop.f32.mrf.mxu1  ;;  %v7530_v43 = vld [vmem:[%s12635_s8 + $0x170] ss:$8 sps:$4 sm:$0xff]  }
 0x255   : > { %4641 = vmatpush2.bf16.msra.mxu0 %v7506_v44  ;;  %v13570_v44 = vld [vmem:[#allocation77_spill] sm:$0xff] }
 0x256   : > { %4642 = vmatprep.subr.bf16.mxu0 %v7511_v34  ;;  %v13572_v42 = vpack.c.bf16 %v13570_v44, %v13571_v27  ;;  %v7512_v34 = vld [vmem:[%s12635_s8 + $0xd0] ss:$8 sps:$4 sm:$0xff]  }
 0x257   : > { %7114 = vmatmul.mubr.msk.bf16.gmra.mxu1 %vm13569_vm4, %v13568_v32  ;;  %2867 = vmatmul.mubr.bf16.gmra.mxu0 %v2247_v9  ;;  %v13574_v32 = vld [vmem:[#allocation39_spill] sm:$0xff]  ;;  %v13576_v44 = vld [vmem:[#allocation41_spill] sm:$0xff]  ;;  %vm13587_vm4 = vmmov %vm13517_vm1 }
 0x258   : > { %7117 = vmatprep.mubr.msk.bf16.mxu1 %vm13517_vm1, %v13572_v42  ;;  %2874 = vmatprep.mubr.bf16.mxu0 %v13573_v30  ;;  %v2171_v9 = vsel %vm13575_vm2, %v13574_v32, %v7388_v52  ;;  %v2172_v59 = vsel %vm13577_vm15, %v13576_v44, %v7389_v46  ;;  %v13580_v27 = vld [vmem:[#allocation61_spill] sm:$0xff]  ;;  %v6816_v52 = vpop.f32.mrf.mxu1  ;;  %v13582_v32 = vld [vmem:[#allocation131_spill] sm:$0xff]  ;;  %v13583_v44 = vld [vmem:[#allocation52_spill] sm:$0xff]  ;;  %v13586_v46 = vpack.c.bf16 %v9756_v56, %v9684_v4 }
 0x259   : > { %4643 = vmatpush2.bf16.msra.mxu0 %v7509_v37  ;;  %v13578_v37 = vld [vmem:[#allocation50_spill] sm:$0xff]  ;;  %v7515_v30 = vld [vmem:[%s12635_s8 + $0xc0] ss:$8 sps:$4 sm:$0xff]   ;;  %v13584_v31 = vpack.c.bf16 %v13582_v32, %v13583_v44  ;;  %v13588_v4 = vpack.c.bf16 %v9821_v11, %v9818_v45  ;;  %vm13591_vm2 = vmmov %vm13517_vm1 }
 0x25a   : > { %4644 = vmatprep.subr.bf16.mxu0 %v7514_v50  ;;  %v7518_v56 = vld [vmem:[%s12635_s8 + $0xb0] ss:$8 sps:$4 sm:$0xff]   ;;  %v7541_v44 = vld [vmem:[%s12635_s8 + $0x144] ss:$8 sps:$4 sm:$0xff]   ;;  %vm13593_vm15 = vmmov %vm13517_vm1 }
 0x25b   : > { %v10347_v48 = vpop.permute.xlu0 %7421  ;;  %v13590_v32 = vld [vmem:[#allocation55_spill] sm:$0xff] }
 0x25c   : > { %v7536_v11 = vld [vmem:[%s12635_s8 + $0x150] ss:$8 sps:$4 sm:$0xff]  }
 0x25d   : > { %4645 = vmatpush2.bf16.msra.mxu0 %v7512_v34  ;;  %v7393_v34 = vunpack.i.l.bf16 %v10283_v40 }
 0x25e   : > { %4646 = vmatprep.subr.bf16.mxu0 %v7517_v36  ;;  %v7535_v36 = vld [vmem:[%s12635_s8 + $0x164] ss:$8 sps:$4 sm:$0xff]  }
 0x25f   : > { %v7432_v0 = vpop.permute.xlu0 %7431  ;;  %7118 = vmatmul.mubr.msk.bf16.gmra.mxu1 %vm13585_vm14, %v13584_v31  ;;  %v7533_v31 = vld [vmem:[%s12635_s8 + $0x160] ss:$8 sps:$4 sm:$0xff]   ;;  %vm13600_vm14 = vmmov %vm13517_vm1 }
 0x260   : > { %v7434_v57 = vunpack.i.h.bf16 %v7432_v0  ;;  %v7433_v39 = vunpack.i.l.bf16 %v7432_v0  ;;  %v7532_v0 = vld [vmem:[%s12635_s8 + $0x174] ss:$8 sps:$4 sm:$0xff]   ;;  %7121 = vmatprep.mubr.msk.bf16.mxu1 %vm13587_vm4, %v13586_v46  ;;  %vm13602_vm4 = vmmov %vm13517_vm1 }
 0x261   : > { %4817 = vmatprep.subr.bf16.mxu1 %v7532_v0  ;;  %4647 = vmatpush2.bf16.msra.mxu0 %v7515_v30  ;;  %v7397_v30 = vpop.permute.xlu1 %7396 }
 0x262   : > { %v10388_v50 = vsel %vm13579_vm6, %v13578_v37, %v7433_v39  ;;  %v10392_v42 = vsel %vm13581_vm9, %v13580_v27, %v7434_v57  ;;  %v2252_v39 = vpack.c.bf16 %v2172_v59, %v2171_v9  ;;  %v7520_v57 = vld [vmem:[%s12635_s8 + $0xb4] ss:$8 sps:$4 sm:$0xff]   ;;  %v7394_v37 = vunpack.i.h.bf16 %v10283_v40  ;;  %v6817_v27 = vpop.f32.mrf.mxu1  ;;  %4818 = vmatpush1.bf16.msra.mxu1 %v7530_v43  ;;  %v7523_v43 = vld [vmem:[%s12635_s8 + $0xa4] ss:$8 sps:$4 sm:$0xff]   ;;  %vm13595_vm6 = vmmov %vm13517_vm1 }
 0x263   : > { %v10418_v9 = vadd.f32 %v6817_v27, %v6816_v52  ;;  %v7538_v40 = vld [vmem:[%s12635_s8 + $0x154] ss:$8 sps:$4 sm:$0xff]   ;;  %4648 = vmatprep.subr.bf16.mxu0 %v7520_v57  ;;  %4819 = vmatprep.subr.bf16.mxu1 %v7535_v36  ;;  %v13589_v52 = vld [vmem:[#allocation49_spill] sm:$0xff]  ;;  %v7398_v36 = vunpack.i.l.bf16 %v7397_v30  ;;  %vm13598_vm9 = vmmov %vm13517_vm1 }
 0x264   : > { %2875 = vmatmul.mubr.bf16.gmra.mxu0 %v2252_v39  ;;  %v10423_v59 = vpop.f32.mrf.mxu1  ;;  %v2173_v46 = vsel %vm13517_vm1, %v13589_v52, %v7393_v34  ;;  %v2174_v45 = vsel %vm13591_vm2, %v13590_v32, %v7394_v37  ;;  %v7521_v57 = vld [vmem:[%s12635_s8 + $0xa0] ss:$8 sps:$4 sm:$0xff]   ;;  %v13592_v37 = vpack.c.bf16 %v9839_v21, %v9782_v20  ;;  %v7526_v27 = vld [vmem:[%s12635_s8 + $0x94] ss:$8 sps:$4 sm:$0xff]   ;;  %vm13606_vm2 = vmmov %vm13517_vm1 }
 0x265   : > { %2882 = vmatprep.mubr.bf16.mxu0 %v13588_v4  ;;  %4649 = vmatpush2.bf16.msra.mxu0 %v7518_v56  ;;  %v2257_v34 = vpack.c.bf16 %v2174_v45, %v2173_v46  ;;  %v13594_v4 = vpack.c.bf16 %v9904_v49, %v9853_v28  ;;  %v7539_v20 = vld [vmem:[%s12635_s8 + $0x140] ss:$8 sps:$4 sm:$0xff]   ;;  %v7524_v28 = vld [vmem:[%s12635_s8 + $0x90] ss:$8 sps:$4 sm:$0xff]   ;;  %v7529_v49 = vld [vmem:[%s12635_s8 + $0x84] ss:$8 sps:$4 sm:$0xff]  }
 0x266   : > { %v10434_v0 = vpop.f32.mrf.mxu1  ;;  %4820 = vmatpush1.bf16.msra.mxu1 %v7533_v31  ;;  %4650 = vmatprep.subr.bf16.mxu0 %v7523_v43  ;;  %v7399_v31 = vunpack.i.h.bf16 %v7397_v30  ;;  %v13596_v43 = vpack.c.bf16 %v9885_v24, %v9882_v6  ;;  %v13597_v46 = vld [vmem:[#allocation60_spill] sm:$0xff]  ;;  %v7542_v6 = vld [vmem:[%s12635_s8 + $0x130] ss:$8 sps:$4 sm:$0xff]   ;;  %v7544_v24 = vld [vmem:[%s12635_s8 + $0x134] ss:$8 sps:$4 sm:$0xff]  }
 0x267   : > { %4821 = vmatprep.subr.bf16.mxu1 %v7538_v40  ;;  %7122 = vmatmul.mubr.msk.bf16.gmra.mxu1 %vm13593_vm15, %v13592_v37  ;;  %v2175_v32 = vsel %vm13598_vm9, %v13597_v46, %v7398_v36  ;;  %v13599_v45 = vld [vmem:[#allocation64_spill] sm:$0xff]  ;;  %v7404_v37 = vunpack.i.h.bf16 %v10318_v60  ;;  %vm13608_vm15 = vmmov %vm13517_vm1  ;;  %v13609_v46 = vpack.c.bf16 %v10028_v47, %v10067_v29 }
 0x268   : > { %v6822_v39 = vpop.f32.mrf.mxu1  ;;  %7125 = vmatprep.mubr.msk.bf16.mxu1 %vm13595_vm6, %v13594_v4  ;;  %v7545_v36 = vld [vmem:[%s12635_s8 + $0x120] ss:$8 sps:$4 sm:$0xff]   ;;  %vm13610_vm6 = vmmov %vm13517_vm1  ;;  %v7553_v47 = vld [vmem:[%s12635_s8 + $0x104] ss:$8 sps:$4 sm:$0xff]  }
 0x269   : > { %4651 = vmatpush2.bf16.msra.mxu0 %v7521_v57  ;;  %vm13612_vm9 = vmmov %vm13517_vm1 }
 0x26a   : > { %v6823_v40 = vpop.f32.mrf.mxu1  ;;  %4822 = vmatpush1.bf16.msra.mxu1 %v7536_v11  ;;  %4652 = vmatprep.subr.bf16.mxu0 %v7526_v27  ;;  %v2176_v11 = vsel %vm13600_vm14, %v13599_v45, %v7399_v31  ;;  %v13603_v31 = vpack.c.bf16 %v10005_v63, %v9999_v2  ;;  %v13605_v63 = vld [vmem:[#allocation66_spill] sm:$0xff]  ;;  %vm13616_vm14 = vmmov %vm13517_vm1 }
 0x26b   : > { %v10463_v21 = vadd.f32 %v6823_v40, %v6822_v39  ;;  %4823 = vmatprep.subr.bf16.mxu1 %v7541_v44  ;;  %v7527_v44 = vld [vmem:[%s12635_s8 + $0x80] ss:$8 sps:$4 sm:$0xff]   ;;  %v13601_v39 = vpack.c.bf16 %v9964_v35, %v9922_v5  ;;  %v2262_v57 = vpack.c.bf16 %v2176_v11, %v2175_v32  ;;  %v7547_v5 = vld [vmem:[%s12635_s8 + $0x124] ss:$8 sps:$4 sm:$0xff]  }
 0x26c   : > { %2883 = vmatmul.mubr.bf16.gmra.mxu0 %v2257_v34  ;;  %v10465_v56 = vpop.f32.mrf.mxu1  ;;  %v7403_v34 = vunpack.i.l.bf16 %v10318_v60  ;;  %v13604_v60 = vpack.c.bf16 %v9951_v55, %v9948_v13  ;;  %v7550_v13 = vld [vmem:[%s12635_s8 + $0x114] ss:$8 sps:$4 sm:$0xff]   ;;  %v7407_v55 = vpop.permute.xlu1 %7406 }
 0x26d   : > { %2890 = vmatprep.mubr.bf16.mxu0 %v13596_v43  ;;  %4653 = vmatpush2.bf16.msra.mxu0 %v7524_v28  ;;  %v7548_v28 = vld [vmem:[%s12635_s8 + $0x110] ss:$8 sps:$4 sm:$0xff]   ;;  %v7409_v45 = vunpack.i.h.bf16 %v7407_v55  ;;  %v7408_v11 = vunpack.i.l.bf16 %v7407_v55 }
 0x26e   : > { %v10476_v52 = vpop.f32.mrf.mxu1  ;;  %4824 = vmatpush1.bf16.msra.mxu1 %v7539_v20  ;;  %4654 = vmatprep.subr.bf16.mxu0 %v7529_v49  ;;  %v2177_v4 = vsel %vm13606_vm2, %v13605_v63, %v7403_v34  ;;  %v13607_v20 = vld [vmem:[#allocation72_spill] sm:$0xff]  ;;  %vm13622_vm2 = vmmov %vm13517_vm1 }
 0x26f   : > { %4825 = vmatprep.subr.bf16.mxu1 %v7544_v24  ;;  %7126 = vmatmul.mubr.msk.bf16.gmra.mxu1 %vm13602_vm4, %v13601_v39  ;;  %v2178_v43 = vsel %vm13608_vm15, %v13607_v20, %v7404_v37  ;;  %v13611_v24 = vpack.c.bf16 %v10102_v22, %v10130_v25  ;;  %v13613_v39 = vld [vmem:[#allocation120_spill] sm:$0xff]  ;;  %v7556_v22 = vld [vmem:[%s12635_s8 + $0x1f4] ss:$8 sps:$4 sm:$0xff]   ;;  %v13615_v37 = vld [vmem:[#allocation73_spill] sm:$0xff]  ;;  %v7413_v20 = vunpack.i.l.bf16 %v10330_v26 }
 0x270   : > { %v6828_v30 = vpop.f32.mrf.mxu1  ;;  %7129 = vmatprep.mubr.msk.bf16.mxu1 %vm13517_vm1, %v13603_v31  ;;  %v2267_v32 = vpack.c.bf16 %v2178_v43, %v2177_v4  ;;  %v2179_v34 = vsel %vm13616_vm14, %v13615_v37, %v7408_v11  ;;  %vm13618_vm4 = vmmov %vm13517_vm1  ;;  %v7559_v63 = vld [vmem:[%s12635_s8 + $0x1e4] ss:$8 sps:$4 sm:$0xff]   ;;  %v7414_v4 = vunpack.i.h.bf16 %v10330_v26  ;;  %v7562_v11 = vld [vmem:[%s12635_s8 + $0x1d4] ss:$8 sps:$4 sm:$0xff]  }
 0x271   : > { %4655 = vmatpush2.bf16.msra.mxu0 %v7527_v44  ;;  %vm13624_vm15 = vmmov %vm13517_vm1 }
 0x272   : > { %v6829_v27 = vpop.f32.mrf.mxu1  ;;  %4826 = vmatpush1.bf16.msra.mxu1 %v7542_v6  ;;  %vm13632_vm14 = vmmov %vm13517_vm1 }
 0x273   : > { %v10507_v35 = vadd.f32 %v6829_v27, %v6828_v30  ;;  %4827 = vmatprep.subr.bf16.mxu1 %v7547_v5  ;;  %v7551_v30 = vld [vmem:[%s12635_s8 + $0x100] ss:$8 sps:$4 sm:$0xff]   ;;  %v13617_v27 = vld [vmem:[#allocation78_spill] sm:$0xff]  ;;  %v13619_v5 = vpack.c.bf16 %v10183_v12, %v10186_v10  ;;  %v13620_v10 = vpack.c.bf16 %v10108_v23, %v10095_v3 }
 0x274   : > { %2891 = vmatmul.mubr.bf16.gmra.mxu0 %v2262_v57  ;;  %v10509_v40 = vpop.f32.mrf.mxu1  ;;  %v13614_v57 = vpack.c.bf16 %v10051_v62, %v13613_v39  ;;  %v2180_v31 = vsel %vm13618_vm4, %v13617_v27, %v7409_v45  ;;  %v7560_v45 = vld [vmem:[%s12635_s8 + $0x1d0] ss:$8 sps:$4 sm:$0xff]   ;;  %vm13634_vm4 = vmmov %vm13517_vm1 }
 0x275   : > { %2898 = vmatprep.mubr.bf16.mxu0 %v13604_v60  ;;  %v2272_v60 = vpack.c.bf16 %v2180_v31, %v2179_v34  ;;  %v13626_v34 = vld [vmem:[#allocation91_spill] sm:$0xff]  ;;  %v13628_v31 = vld [vmem:[#allocation94_spill] sm:$0xff] }
 0x276   : > { %v10514_v2 = vpop.f32.mrf.mxu1  ;;  %4828 = vmatpush1.bf16.msra.mxu1 %v7545_v36  ;;  %v7554_v36 = vld [vmem:[%s12635_s8 + $0x1f0] ss:$8 sps:$4 sm:$0xff]  }
 0x277   : > { %4829 = vmatprep.subr.bf16.mxu1 %v7550_v13  ;;  %7130 = vmatmul.mubr.msk.bf16.gmra.mxu1 %vm13610_vm6, %v13609_v46  ;;  %v13623_v46 = vld [vmem:[#allocation88_spill] sm:$0xff]  ;;  %vm13627_vm6 = vmmov %vm13517_vm1 }
 0x278   : > { %v6834_v49 = vpop.f32.mrf.mxu1  ;;  %7133 = vmatprep.mubr.msk.bf16.mxu1 %vm13612_vm9, %v13611_v24  ;;  %vm13629_vm9 = vmmov %vm13517_vm1 }
 0x27a   : > { %v6835_v6 = vpop.f32.mrf.mxu1  ;;  %4830 = vmatpush1.bf16.msra.mxu1 %v7548_v28  ;;  %v7557_v28 = vld [vmem:[%s12635_s8 + $0x1e0] ss:$8 sps:$4 sm:$0xff]  }
 0x27b   : > { %v10540_v29 = vadd.f32 %v6835_v6, %v6834_v49  ;;  %4831 = vmatprep.subr.bf16.mxu1 %v7553_v47  ;;  %v13621_v49 = vld [vmem:[#allocation79_spill] sm:$0xff]  ;;  %v7417_v6 = vpop.permute.xlu1 %7416 }
 0x27c   : > { %2899 = vmatmul.mubr.bf16.gmra.mxu0 %v2267_v32  ;;  %v10542_v44 = vpop.f32.mrf.mxu1  ;;  %v2181_v26 = vsel %vm13622_vm2, %v13621_v49, %v7413_v20  ;;  %v2182_v32 = vsel %vm13624_vm15, %v13623_v46, %v7414_v4  ;;  %v7419_v24 = vunpack.i.h.bf16 %v7417_v6  ;;  %vm13638_vm2 = vmmov %vm13517_vm1 }
 0x27d   : > { %2906 = vmatprep.mubr.bf16.mxu0 %v13614_v57  ;;  %v2277_v23 = vpack.c.bf16 %v2182_v32, %v2181_v26  ;;  %v13633_v26 = vld [vmem:[#allocation99_spill] sm:$0xff]  ;;  %vm13641_vm15 = vmmov %vm13517_vm1 }
 0x27e   : > { %v10550_v25 = vpop.f32.mrf.mxu1  ;;  %4832 = vmatpush1.bf16.msra.mxu1 %v7551_v30  ;;  %v7418_v30 = vunpack.i.l.bf16 %v7417_v6  ;;  %v7571_v6 = vld [vmem:[%s12635_s8 + $0x1a4] ss:$8 sps:$4 sm:$0xff]  }
 0x27f   : > { %4833 = vmatprep.subr.bf16.mxu1 %v7556_v22  ;;  %7134 = vmatmul.mubr.msk.bf16.gmra.mxu1 %vm13517_vm1, %v13619_v5  ;;  %v13625_v22 = vpack.c.bf16 %v10166_v17, %v10160_v33  ;;  %v7563_v33 = vld [vmem:[%s12635_s8 + $0x1c0] ss:$8 sps:$4 sm:$0xff]   ;;  %v7565_v17 = vld [vmem:[%s12635_s8 + $0x1c4] ss:$8 sps:$4 sm:$0xff]   ;;  %v7427_v32 = vpop.permute.xlu1 %7426 }
 0x280   : > { %v6840_v62 = vpop.f32.mrf.mxu1  ;;  %v2183_v27 = vsel %vm13627_vm6, %v13626_v34, %v7418_v30  ;;  %v7569_v30 = vld [vmem:[%s12635_s8 + $0x1a0] ss:$8 sps:$4 sm:$0xff]   ;;  %v13635_v34 = vpack.c.bf16 %v10242_v61, %v10235_v38  ;;  %v7575_v38 = vld [vmem:[%s12635_s8 + $0x190] ss:$8 sps:$4 sm:$0xff]   ;;  %v7577_v61 = vld [vmem:[%s12635_s8 + $0x194] ss:$8 sps:$4 sm:$0xff]  }
 0x281   : > { %vm13643_vm6 = vmmov %vm13517_vm1 }
 0x282   : > { %v6841_v43 = vpop.f32.mrf.mxu1  ;;  %4834 = vmatpush2.bf16.msra.mxu1 %v7554_v36  ;;  %v2184_v36 = vsel %vm13629_vm9, %v13628_v31, %v7419_v24  ;;  %vm13648_vm9 = vmmov %vm13517_vm1 }
 0x283   : > { %v10571_v13 = vadd.f32 %v6841_v43, %v6840_v62  ;;  %4835 = vmatprep.subr.bf16.mxu1 %v7559_v63  ;;  %v2282_v5 = vpack.c.bf16 %v2184_v36, %v2183_v27  ;;  %v7423_v63 = vunpack.i.l.bf16 %v10347_v48  ;;  %v7574_v27 = vld [vmem:[%s12635_s8 + $0x274] ss:$8 sps:$4 sm:$0xff]   ;;  %v13636_v36 = vld [vmem:[#allocation108_spill] sm:$0xff] }
 0x284   : > { %2907 = vmatmul.mubr.bf16.gmra.mxu0 %v2272_v60  ;;  %v10573_v12 = vpop.f32.mrf.mxu1  ;;  %v7424_v60 = vunpack.i.h.bf16 %v10347_v48  ;;  %5010 = vmatprep.subr.bf16.mxu0 %v7574_v27 }
 0x285   : > { %2914 = vmatprep.mubr.bf16.mxu0 %v13620_v10  ;;  %v13631_v10 = vld [vmem:[#allocation102_spill] sm:$0xff] }
 0x286   : > { %v10578_v55 = vpop.f32.mrf.mxu1  ;;  %4836 = vmatpush2.bf16.msra.mxu1 %v7557_v28  ;;  %v13630_v28 = vpack.c.bf16 %v10211_v1, %v10119_v16  ;;  %v2185_v49 = vsel %vm13632_vm14, %v13631_v10, %v7423_v63  ;;  %v2186_v46 = vsel %vm13634_vm4, %v13633_v26, %v7424_v60  ;;  %v7568_v16 = vld [vmem:[%s12635_s8 + $0x1b4] ss:$8 sps:$4 sm:$0xff]   ;;  %v7578_v26 = vld [vmem:[%s12635_s8 + $0x180] ss:$8 sps:$4 sm:$0xff]   ;;  %vm13650_vm14 = vmmov %vm13517_vm1 }
 0x287   : > { %4837 = vmatprep.subr.bf16.mxu1 %v7562_v11  ;;  %v2287_v11 = vpack.c.bf16 %v2186_v46, %v2185_v49 }
 0x288   : > { %v6846_v3 = vpop.f32.mrf.mxu1 }
 0x28a   : > { %v6847_v47 = vpop.f32.mrf.mxu1  ;;  %4838 = vmatpush2.bf16.msra.mxu1 %v7560_v45  ;;  %v7566_v45 = vld [vmem:[%s12635_s8 + $0x1b0] ss:$8 sps:$4 sm:$0xff]  }
 0x28b   : > { %v10590_v39 = vadd.f32 %v6847_v47, %v6846_v3  ;;  %4839 = vmatprep.subr.bf16.mxu1 %v7565_v17  ;;  %v7429_v3 = vunpack.i.h.bf16 %v7427_v32 }
 0x28c   : > { %2915 = vmatmul.mubr.bf16.gmra.mxu0 %v2277_v23  ;;  %v10592_v57 = vpop.f32.mrf.mxu1  ;;  %v7428_v23 = vunpack.i.l.bf16 %v7427_v32  ;;  %v7437_v63 = vpop.permute.xlu1 %7436  ;;  %v13639_v32 = vpack.c.bf16 %v10392_v42, %v10388_v50  ;;  %v13649_v42 = vld [vmem:[#allocation118_spill] sm:$0xff] }
 0x28d   : > { %2922 = vmatprep.mubr.bf16.mxu0 %v13625_v22  ;;  %v7438_v10 = vunpack.i.l.bf16 %v7437_v63 }
 0x28e   : > { %v10597_v37 = vpop.f32.mrf.mxu1  ;;  %4840 = vmatpush2.bf16.msra.mxu1 %v7563_v33  ;;  %v7580_v33 = vld [vmem:[%s12635_s8 + $0x184] ss:$8 sps:$4 sm:$0xff]  }
 0x28f   : > { %4841 = vmatprep.subr.bf16.mxu1 %v7568_v16 }
 0x290   : > { %v6852_v62 = vpop.f32.mrf.mxu1 }
 0x292   : > { %v6853_v4 = vpop.f32.mrf.mxu1  ;;  %4842 = vmatpush2.bf16.msra.mxu1 %v7566_v45  ;;  %v13640_v45 = vld [vmem:[#allocation110_spill] sm:$0xff] }
 0x293   : > { %v10611_v20 = vadd.f32 %v6853_v4, %v6852_v62  ;;  %4843 = vmatprep.subr.bf16.mxu1 %v7571_v6  ;;  %v2187_v62 = vsel %vm13517_vm1, %v13636_v36, %v7428_v23  ;;  %v2189_v16 = vsel %vm13641_vm15, %v13640_v45, %v7438_v10  ;;  %v13647_v36 = vld [vmem:[#allocation24_spill] sm:$0xff]  ;;  %vm13672_vm15 = vcmask 1046528  }
 0x294   : > { %2923 = vmatmul.mubr.bf16.gmra.mxu0 %v2282_v5  ;;  %v10613_v43 = vpop.f32.mrf.mxu1  ;;  %v13637_v5 = vld [vmem:[#allocation109_spill] sm:$0xff] }
 0x295   : > { %2930 = vmatprep.mubr.bf16.mxu0 %v13630_v28  ;;  %v2188_v60 = vsel %vm13638_vm2, %v13637_v5, %v7429_v3  ;;  %v7439_v28 = vunpack.i.h.bf16 %v7437_v63  ;;  %v13651_v63 = vld [vmem:[#allocation19_spill] sm:$0xff] }
 0x296   : > { %v10618_v48 = vpop.f32.mrf.mxu1  ;;  %4844 = vmatpush2.bf16.msra.mxu1 %v7569_v30  ;;  %v2292_v17 = vpack.c.bf16 %v2188_v60, %v2187_v62  ;;  %v13644_v30 = vld [vmem:[#allocation107_spill] sm:$0xff]  ;;  %v12987_v60 = vmov 0.0|0.0  }
 0x297   : > { %4845 = vmatprep.subr.bf16.mxu1 %v7577_v61  ;;  %v7572_v61 = vld [vmem:[%s12635_s8 + $0x270] ss:$8 sps:$4 sm:$0xff]   ;;  %v7581_v10 = vld [vmem:[%s12635_s8 + $0x260] ss:$8 sps:$4 sm:$0xff]  }
 0x298   : > { %v6858_v1 = vpop.f32.mrf.mxu1 }
 0x29a   : > { %v6859_v24 = vpop.f32.mrf.mxu1  ;;  %4846 = vmatpush2.bf16.msra.mxu1 %v7575_v38  ;;  %v6456_v38 = vpack.c.bf16 %v13651_v63, %v13651_v63 }
 0x29b   : > { %v10636_v47 = vadd.f32 %v6859_v24, %v6858_v1  ;;  %4847 = vmatprep.subr.bf16.mxu1 %v7580_v33  ;;  %v13642_v1 = vld [vmem:[#allocation111_spill] sm:$0xff]  ;;  %v13652_v33 = vld [vmem:[#allocation9_spill] sm:$0xff] }
 0x29c   : > { %2931 = vmatmul.mubr.bf16.gmra.mxu0 %v2287_v11  ;;  %v10638_v22 = vpop.f32.mrf.mxu1  ;;  %v2190_v11 = vsel %vm13643_vm6, %v13642_v1, %v7439_v28  ;;  %vm13653_vm4 = vcmp.eq.s32.totalorder %v13652_v33, 1  ;;  %v13656_v28 = vmov 0  ;;  %v7592_v1 = vld [vmem:[%s12635_s8 + $0x234] ss:$8 sps:$4 sm:$0xff]   ;;  %vm13673_vm6 = vcmask 1040384  }
 0x29d   : > { %2938 = vmatprep.mubr.bf16.mxu0 %v13635_v34  ;;  %v2297_v3 = vpack.c.bf16 %v2190_v11, %v2189_v16  ;;  %v13645_v34 = vld [vmem:[#allocation56_spill] sm:$0xff] }
 0x29e   : > { %v10646_v31 = vpop.f32.mrf.mxu1  ;;  %4848 = vmatpush2.bf16.msra.mxu1 %v7578_v26  ;;  %v13646_v27 = vpack.c.bf16 %v13644_v30, %v13645_v34  ;;  %v7584_v26 = vld [vmem:[%s12635_s8 + $0x250] ss:$8 sps:$4 sm:$0xff]   ;;  %v7587_v16 = vld [vmem:[%s12635_s8 + $0x240] ss:$8 sps:$4 sm:$0xff]  }
 0x29f   : > { %v7593_v30 = vld [vmem:[%s12635_s8 + $0x220] ss:$8 sps:$4 sm:$0xff]  }
 0x2a1   : > { %v7442_v6 = vpop.permute.xlu0 %7441 }
 0x2a2   : > { %v6864_v4 = vpop.f32.mrf.mxu1  ;;  %v7444_v23 = vunpack.i.h.bf16 %v7442_v6  ;;  %v7443_v24 = vunpack.i.l.bf16 %v7442_v6  ;;  %v7590_v6 = vld [vmem:[%s12635_s8 + $0x230] ss:$8 sps:$4 sm:$0xff]  }
 0x2a4   : > { %v6865_v49 = vpop.f32.mrf.mxu1  ;;  %2939 = vmatmul.mubr.bf16.gmra.mxu0 %v2292_v17  ;;  %v2191_v50 = vsel %vm13648_vm9, %v13647_v36, %v7443_v24  ;;  %v2192_v62 = vsel %vm13650_vm14, %v13649_v42, %v7444_v23  ;;  %v13654_v17 = vld [vmem:[#allocation11_spill] sm:$0xff]  ;;  %vm13674_vm9 = vmmov %vm13673_vm6 }
 0x2a5   : > { %v10664_v46 = vadd.f32 %v6865_v49, %v6864_v4  ;;  %2946 = vmatprep.mubr.bf16.mxu0 %v13639_v32  ;;  %v2302_v5 = vpack.c.bf16 %v2192_v62, %v2191_v50  ;;  %v7583_v4 = vld [vmem:[%s12635_s8 + $0x264] ss:$8 sps:$4 sm:$0xff]   ;;  %vm13655_vm1 = vcmp.eq.s32.totalorder %v13654_v17, 1  ;;  %v7586_v49 = vld [vmem:[%s12635_s8 + $0x254] ss:$8 sps:$4 sm:$0xff]   ;;  %vm13676_vm14 = vmmov %vm13672_vm15 }
 0x2a6   : > { %vm10693_vm2 = vmpackc.low %vm13655_vm1, %vm13653_vm4  ;;  %v7589_v32 = vld [vmem:[%s12635_s8 + $0x244] ss:$8 sps:$4 sm:$0xff]   ;;  %v10711_v45 = vpop.f32.mrf.mxu1  ;;  %v7596_v36 = vld [vmem:[%s12635_s8 + $0x210] ss:$8 sps:$4 sm:$0xff]  }
 0x2a7   : > { %v13657_v28 = vsel %vm10693_vm2, 4294967295, %v13656_v28  ;;  %v7601_v50 = vld [vmem:[%s12635_s8 + $0x204] ss:$8 sps:$4 sm:$0xff]   ;;  %v7599_v42 = vld [vmem:[%s12635_s8 + $0x200] ss:$8 sps:$4 sm:$0xff]   ;;  %vm13677_vm4 = vmmov %vm13673_vm6 }
 0x2a8   : > { %v10719_v11 = vpop.f32.mrf.mxu1  ;;  %vm13678_vm1 = vmmov %vm13677_vm4 }
 0x2ac   : > { %2947 = vmatmul.mubr.bf16.gmra.mxu0 %v2297_v3  ;;  %v7595_v3 = vld [vmem:[%s12635_s8 + $0x224] ss:$8 sps:$4 sm:$0xff]  }
 0x2ad   : > { %2954 = vmatprep.mubr.bf16.mxu0 %v13646_v27  ;;  %v7598_v27 = vld [vmem:[%s12635_s8 + $0x214] ss:$8 sps:$4 sm:$0xff]  }
 0x2b4   : > { %2955 = vmatmul.mubr.bf16.gmra.mxu0 %v2302_v5  ;;  %v7602_v5 = vld [vmem:[%s12635_s8 + $0x2f0] ss:$8 sps:$4 sm:$0xff]  }
 0x2b5   : > { %4656 = vmatprep.mubr.bf16.mxu0 %v12987_v60 }
 0x2bc   : > { %6457 = vmatmul.mubr.msk.bf16.vlgmr.msra.gmra.mxu0 %vm10693_vm2, %v6456_v38  ;;  %v6870_v23 = vpop.f32.mrf.mxu1  ;;  %v7604_v38 = vld [vmem:[%s12635_s8 + $0x2f4] ss:$8 sps:$4 sm:$0xff]  }
 0x2bd   : > { %5011 = vmatpush1.bf16.msra.mxu0 %v7572_v61 }
 0x2be   : > { %5012 = vmatprep.subr.bf16.mxu0 %v7583_v4  ;;  %v6871_v24 = vpop.f32.mrf.mxu1 }
 0x2bf   : > { %v10730_v34 = vadd.f32 %v6871_v24, %v6870_v23 }
 0x2c0   : > { %v10744_v62 = vpop.f32.mrf.mxu1 }
 0x2c1   : > { %5013 = vmatpush1.bf16.msra.mxu0 %v7581_v10  ;;  %13658 = vst [vmem:[#allocation127_spill] sm:$0xff] %v10744_v62  ;;  %v7605_v10 = vld [vmem:[%s12635_s8 + $0x2e0] ss:$8 sps:$4 sm:$0xff]  }
 0x2c2   : > { %5014 = vmatprep.subr.bf16.mxu0 %v7586_v49  ;;  %v10752_v61 = vpop.f32.mrf.mxu1  ;;  %v7607_v49 = vld [vmem:[%s12635_s8 + $0x2e4] ss:$8 sps:$4 sm:$0xff]  }
 0x2c3   : > { %13659 = vst [vmem:[#allocation71_spill] sm:$0xff] %v10752_v61 }
 0x2c5   : > { %5015 = vmatpush1.bf16.msra.mxu0 %v7584_v26 }
 0x2c6   : > { %5016 = vmatprep.subr.bf16.mxu0 %v7589_v32  ;;  %v7610_v32 = vld [vmem:[%s12635_s8 + $0x374] ss:$8 sps:$4 sm:$0xff]  }
 0x2c7   : > { %5203 = vmatprep.subr.bf16.mxu1 %v7610_v32 }
 0x2c9   : > { %5017 = vmatpush1.bf16.msra.mxu0 %v7587_v16  ;;  %v7614_v16 = vld [vmem:[%s12635_s8 + $0x2d0] ss:$8 sps:$4 sm:$0xff]  }
 0x2ca   : > { %5018 = vmatprep.subr.bf16.mxu0 %v7592_v1 }
 0x2cd   : > { %5019 = vmatpush1.bf16.msra.mxu0 %v7590_v6  ;;  %v7616_v6 = vld [vmem:[%s12635_s8 + $0x2d4] ss:$8 sps:$4 sm:$0xff]  }
 0x2ce   : > { %5020 = vmatprep.subr.bf16.mxu0 %v7595_v3  ;;  %v6876_v4 = vpop.f32.mrf.mxu1 }
 0x2d0   : > { %v6877_v33 = vpop.f32.mrf.mxu1 }
 0x2d1   : > { %5021 = vmatpush1.bf16.msra.mxu0 %v7593_v30  ;;  %v10754_v17 = vadd.f32 %v6877_v33, %v6876_v4  ;;  %v7623_v30 = vld [vmem:[%s12635_s8 + $0x2c0] ss:$8 sps:$4 sm:$0xff]   ;;  %v7634_v33 = vld [vmem:[%s12635_s8 + $0x2b4] ss:$8 sps:$4 sm:$0xff]  }
 0x2d2   : > { %5022 = vmatprep.subr.bf16.mxu0 %v7598_v27  ;;  %v10762_v26 = vpop.f32.mrf.mxu1  ;;  %v7625_v27 = vld [vmem:[%s12635_s8 + $0x2c4] ss:$8 sps:$4 sm:$0xff]  }
 0x2d3   : > { %13660 = vst [vmem:[#allocation57_spill] sm:$0xff] %v10754_v17  ;;  %13661 = vst [vmem:[#allocation84_spill] sm:$0xff] %v10762_v26 }
 0x2d4   : > { %v10770_v1 = vpop.f32.mrf.mxu1 }
 0x2d5   : > { %5023 = vmatpush1.bf16.msra.mxu0 %v7596_v36  ;;  %13662 = vst [vmem:[#allocation85_spill] sm:$0xff] %v10770_v1 }
 0x2d6   : > { %5024 = vmatprep.subr.bf16.mxu0 %v7601_v50 }
 0x2d9   : > { %5025 = vmatpush1.bf16.msra.mxu0 %v7599_v42 }
 0x2da   : > { %5026 = vmatprep.subr.bf16.mxu0 %v7604_v38 }
 0x2dd   : > { %5027 = vmatpush2.bf16.msra.mxu0 %v7602_v5  ;;  %v7632_v5 = vld [vmem:[%s12635_s8 + $0x2b0] ss:$8 sps:$4 sm:$0xff]  }
 0x2de   : > { %5028 = vmatprep.subr.bf16.mxu0 %v7607_v49 }
 0x2e1   : > { %5029 = vmatpush2.bf16.msra.mxu0 %v7605_v10 }
 0x2e2   : > { %5030 = vmatprep.subr.bf16.mxu0 %v7616_v6 }
 0x2e3   : > { %v6882_v3 = vpop.f32.mrf.mxu1 }
 0x2e5   : > { %5031 = vmatpush2.bf16.msra.mxu0 %v7614_v16  ;;  %v6883_v23 = vpop.f32.mrf.mxu1 }
 0x2e6   : > { %v10775_v24 = vadd.f32 %v6883_v23, %v6882_v3  ;;  %5032 = vmatprep.subr.bf16.mxu0 %v7625_v27 }
 0x2e7   : > { %v10783_v36 = vpop.f32.mrf.mxu1 }
 0x2e8   : > { %13663 = vst [vmem:[#allocation89_spill] sm:$0xff] %v10775_v24  ;;  %13664 = vst [vmem:[#allocation90_spill] sm:$0xff] %v10783_v36 }
 0x2e9   : > { %5033 = vmatpush2.bf16.msra.mxu0 %v7623_v30  ;;  %v10785_v42 = vpop.f32.mrf.mxu1 }
 0x2ea   : > { %13665 = vst [vmem:[#allocation95_spill] sm:$0xff] %v10785_v42  ;;  %5034 = vmatprep.subr.bf16.mxu0 %v7634_v33  ;;  %v7641_v42 = vld [vmem:[%s12635_s8 + $0x2a0] ss:$8 sps:$4 sm:$0xff]  }
 0x2ed   : > { %5035 = vmatpush2.bf16.msra.mxu0 %v7632_v5  ;;  %v7643_v5 = vld [vmem:[%s12635_s8 + $0x2a4] ss:$8 sps:$4 sm:$0xff]  }
 0x2ee   : > { %5036 = vmatprep.subr.bf16.mxu0 %v7643_v5 }
 0x2f1   : > { %5037 = vmatpush2.bf16.msra.mxu0 %v7641_v42  ;;  %v7661_v42 = vld [vmem:[%s12635_s8 + $0x284] ss:$8 sps:$4 sm:$0xff]  }
 0x2f4   : > { %v6916_v50 = vpop.f32.mrf.mxu0 }
 0x2f6   : > { %v6917_v38 = vpop.f32.mrf.mxu0 }
 0x2f7   : > { %v6888_v4 = vpop.f32.mrf.mxu1  ;;  %v6918_v33 = vadd.f32 %v6917_v38, %v6916_v50  ;;  %v10821_v50 = vld [vmem:[%s12633_s6] ss:$0 sm:$0xff]  ;;  %v6815_v38 = vadd.f32 %v10374_v15, %v10359_v19 }
 0x2f8   : > { %v6919_v32 = vpop.f32.mrf.mxu0 }
 0x2f9   : > { %v6889_v10 = vpop.f32.mrf.mxu1 }
 0x2fa   : > { %v10793_v49 = vadd.f32 %v6889_v10, %v6888_v4  ;;  %v6920_v3 = vpop.f32.mrf.mxu0 }
 0x2fb   : > { %v10795_v16 = vpop.f32.mrf.mxu1 }
 0x2fc   : > { %13666 = vst [vmem:[#allocation100_spill] sm:$0xff] %v10793_v49  ;;  %13667 = vst [vmem:[#allocation96_spill] sm:$0xff] %v10795_v16 }
 0x2fd   : > { %v10797_v6 = vpop.f32.mrf.mxu1 }
 0x2fe   : > { %13668 = vst [vmem:[#allocation123_spill] sm:$0xff] %v10797_v6 }
 0x2ff   : > { %v6894_v23 = vpop.f32.mrf.mxu1  ;;  %v6922_v27 = vpop.f32.mrf.mxu0 }
 0x301   : > { %v6895_v30 = vpop.f32.mrf.mxu1  ;;  %v6923_v4 = vpop.f32.mrf.mxu0 }
 0x302   : > { %v10799_v60 = vadd.f32 %v6895_v30, %v6894_v23  ;;  %v6924_v10 = vadd.f32 %v6923_v4, %v6922_v27  ;;  %v7652_v23 = vld [vmem:[%s12635_s8 + $0x294] ss:$8 sps:$4 sm:$0xff]  }
 0x303   : > { %v10804_v36 = vpop.f32.mrf.mxu1  ;;  %v6925_v16 = vpop.f32.mrf.mxu0  ;;  %5038 = vmatprep.subr.bf16.mxu0 %v7652_v23 }
 0x304   : > { %13669 = vst [vmem:[#allocation115_spill] sm:$0xff] %v10799_v60  ;;  %13670 = vst [vmem:[#allocation104_spill] sm:$0xff] %v10804_v36  ;;  %v2845_v30 = vadd.f32 %v6924_v10, %v10341_v8  ;;  %v7650_v36 = vld [vmem:[%s12635_s8 + $0x290] ss:$8 sps:$4 sm:$0xff]   ;;  %v6921_v60 = vadd.f32 %v6920_v3, %v6919_v32  ;;  %v2837_v8 = vadd.f32 %v6918_v33, %v10285_v18  ;;  %v10834_v3 = vld [vmem:[%s12634_s7] ss:$0 sm:$0xff] }
 0x305   : > { %v10809_v6 = vpop.f32.mrf.mxu1  ;;  %v6926_v49 = vpop.f32.mrf.mxu0  ;;  %v6809_v32 = vadd.f32 %v10323_v58, %v10303_v53  ;;  %5039 = vmatpush2.bf16.msra.mxu0 %v7650_v36  ;;  %v7659_v18 = vld [vmem:[%s12635_s8 + $0x280] ss:$8 sps:$4 sm:$0xff]  }
 0x306   : > { %13671 = vst [vmem:[#allocation125_spill] sm:$0xff] %v10809_v6  ;;  %v6927_v27 = vadd.f32 %v6926_v49, %v6925_v16  ;;  %5040 = vmatprep.subr.bf16.mxu0 %v7661_v42 }
 0x307   : > { %v7107_v24 = vpop.f32.mrf.mxu1  ;;  %v6928_v5 = vpop.f32.mrf.mxu0  ;;  %v2840_v33 = vadd.f32 %v6921_v60, %v6809_v32 }
 0x308   : > { %v3006_v4 = vadd.f32 %v7107_v24, %v2845_v30  ;;  %v2848_v24 = vadd.f32 %v6927_v27, %v6815_v38 }
 0x309   : > { %v2997_v10 = vpop.f32.mrf.mxu1  ;;  %v6929_v49 = vpop.f32.mrf.mxu0  ;;  %5041 = vmatpush2.bf16.msra.mxu0 %v7659_v18 }
 0x30a   : > { %v3133_v19 = vmul.f32 %v10821_v50, %v3006_v4  ;;  %v2998_v15 = vadd.f32 %v2997_v10, %v2837_v8  ;;  %v6930_v23 = vadd.f32 %v6929_v49, %v6928_v5  ;;  %v7670_v5 = vld [vmem:[%s12635_s8 + $0x474] ss:$8 sps:$4 sm:$0xff]  }
 0x30b   : > { %v7108_v16 = vpop.f32.mrf.mxu1  ;;  %v6931_v6 = vpop.f32.mrf.mxu0  ;;  %5396 = vmatprep.subr.bf16.mxu0 %v7670_v5 }
 0x30c   : > { %v3172_v53 = vadd.f32 %v10834_v3, %v3133_v19  ;;  %v3131_v58 = vmul.f32 %v10821_v50, %v2998_v15  ;;  %v3009_v30 = vadd.f32 %v7108_v16, %v2848_v24  ;;  %v2853_v32 = vadd.f32 %v6930_v23, %v10418_v9 }
 0x30d   : > { %v3000_v1 = vpop.f32.mrf.mxu1  ;;  %v6932_v8 = vpop.f32.mrf.mxu0  ;;  %v6821_v19 = vadd.f32 %v10434_v0, %v10423_v59 }
 0x30e   : > { %v3170_v4 = vadd.f32 %v10834_v3, %v3131_v58  ;;  %v3134_v36 = vmul.f32 %v10821_v50, %v3009_v30  ;;  %v3001_v38 = vadd.f32 %v3000_v1, %v2840_v33  ;;  %v10844_v27 = vmax.f32 %v3172_v53, 0.0 }
 0x30f   : > { %v7111_v10 = vpop.f32.mrf.mxu1  ;;  %v6827_v1 = vadd.f32 %v10476_v52, %v10465_v56  ;;  %v6933_v24 = vadd.f32 %v6932_v8, %v6931_v6  ;;  %v6934_v18 = vpop.f32.mrf.mxu0 }
 0x310   : > { %v3202_v60 = vmax.f32 %v3170_v4, 0.0  ;;  %v3173_v42 = vadd.f32 %v10834_v3, %v3134_v36  ;;  %v3132_v15 = vmul.f32 %v10821_v50, %v3001_v38  ;;  %v3268_v58 = vrot.slane %v10844_v27, 7 }
 0x311   : > { %v3013_v49 = vpop.f32.mrf.mxu1  ;;  %v3389_v23 = vrot.slane %v10844_v27, 1  ;;  %v6935_v0 = vpop.f32.mrf.mxu0  ;;  %v2856_v56 = vadd.f32 %v6933_v24, %v6821_v19 }
 0x312   : > { %v3264_v16 = vrot.slane %v3202_v60, 7  ;;  %v3385_v33 = vrot.slane %v3202_v60, 1  ;;  %v10856_v53 = vmax.f32 %v3173_v42, 0.0  ;;  %v3014_v9 = vadd.f32 %v3013_v49, %v2853_v32 }
 0x313   : > { %v3171_v59 = vadd.f32 %v10834_v3, %v3132_v15  ;;  %v7112_v30 = vpop.f32.mrf.mxu1  ;;  %v6936_v42 = vadd.f32 %v6935_v0, %v6934_v18  ;;  %v6937_v32 = vpop.f32.mrf.mxu0 }
 0x314   : > { %v3386_v52 = vsel %vm13672_vm15, %v13470_v7, %v3385_v33  ;;  %v3270_v6 = vrot.slane %v10856_v53, 7  ;;  %v3391_v4 = vrot.slane %v10856_v53, 1  ;;  %v3135_v36 = vmul.f32 %v10821_v50, %v3014_v9  ;;  %vm13679_vm15 = vmmov %vm13676_vm14 }
 0x315   : > { %v6507_v38 = vpack.c.bf16 %v3386_v52, %v13470_v7  ;;  %v3203_v8 = vmax.f32 %v3171_v59, 0.0  ;;  %v3016_v5 = vpop.f32.mrf.mxu1  ;;  %v3265_v15 = vsel %vm13673_vm6, %v13651_v63, %v3264_v16  ;;  %v10872_v49 = vpack.c.bf16 %v10856_v53, %v10844_v27  ;;  %v6938_v59 = vpop.f32.mrf.mxu0  ;;  %vm13680_vm6 = vmmov %vm13676_vm14 }
 0x316   : > { %v3174_v19 = vadd.f32 %v10834_v3, %v3135_v36  ;;  %v3017_v24 = vadd.f32 %v3016_v5, %v2856_v56  ;;  %v3271_v26 = vsel %vm13674_vm9, %v3268_v58, %v3270_v6  ;;  %v2861_v52 = vadd.f32 %v6936_v42, %v10463_v21 }
 0x317   : > { %v3266_v17 = vrot.slane %v3203_v8, 7  ;;  %v3387_v9 = vrot.slane %v3203_v8, 1  ;;  %v10876_v18 = vpop.f32.mrf.mxu1  ;;  %v10878_v0 = vpack.c.bf16 %v3203_v8, %v3202_v60  ;;  %v6939_v36 = vadd.f32 %v6938_v59, %v6937_v32  ;;  %v6940_v27 = vpop.f32.mrf.mxu0 }
 0x318   : > { %v3206_v7 = vmax.f32 %v3174_v19, 0.0  ;;  %v3136_v63 = vmul.f32 %v10821_v50, %v3017_v24  ;;  %v3392_v56 = vsel %vm13676_vm14, %v3389_v23, %v3391_v4  ;;  %v3022_v5 = vadd.f32 %v7111_v10, %v2861_v52 }
 0x319   : > { %13675 = vst [vmem:[#allocation129_spill] sm:$0xff] %v10878_v0  ;;  %4666 = vmatprep.mubr.bf16.mxu0 %v10878_v0  ;;  %v3267_v53 = vsel %vm13677_vm4, %v3264_v16, %v3266_v17  ;;  %v3269_v61 = vsel %vm13678_vm1, %v3266_v17, %v3268_v58  ;;  %v3388_v21 = vsel %vm13679_vm15, %v3385_v33, %v3387_v9  ;;  %v3029_v32 = vpop.f32.mrf.mxu1  ;;  %v6941_v24 = vpop.f32.mrf.mxu0  ;;  %v7608_v17 = vld [vmem:[%s12635_s8 + $0x370] ss:$8 sps:$4 sm:$0xff]   ;;  %v13681_v0 = vld [vmem:[#allocation8_spill] sm:$0xff] }
 0x31a   : > { %v3272_v42 = vrot.slane %v3206_v7, 7  ;;  %v3393_v62 = vrot.slane %v3206_v7, 1  ;;  %v3175_v60 = vadd.f32 %v10834_v3, %v3136_v63  ;;  %v2864_v8 = vadd.f32 %v6939_v36, %v6827_v1  ;;  %v13683_v63 = vld [vmem:[#allocation10_spill] sm:$0xff] }
 0x31b   : > { %v3137_v19 = vmul.f32 %v10821_v50, %v3022_v5  ;;  %v6459_v59 = vpack.c.bf16 %v3267_v53, %v3265_v15  ;;  %v10888_v10 = vpack.c.bf16 %v3271_v26, %v3269_v61  ;;  %v3390_v52 = vsel %vm13680_vm6, %v3387_v9, %v3389_v23  ;;  %v7613_v61 = vld [vmem:[%s12635_s8 + $0x364] ss:$8 sps:$4 sm:$0xff]   ;;  %v13689_v23 = vld [vmem:[#allocation47_spill] sm:$0xff] }
 0x31c   : > { %v3207_v16 = vmax.f32 %v3175_v60, 0.0  ;;  %v3025_v33 = vadd.f32 %v7112_v30, %v2864_v8  ;;  %v6942_v58 = vadd.f32 %v6941_v24, %v6940_v27  ;;  %vm13682_vm9 = vcmp.eq.s32.totalorder %v13681_v0, 1  ;;  %v13687_v26 = vld [vmem:[#allocation48_spill] sm:$0xff]  ;;  %v6943_v0 = vpop.f32.mrf.mxu0 }
 0x31d   : > { %vm13684_vm14 = vcmp.eq.s32.totalorder %v13683_v63, 1  ;;  %v13685_v1 = vmov 0  ;;  %v10902_v15 = vpack.c.bf16 %v3390_v52, %v3388_v21  ;;  %vm13688_vm1 = vcmp.eq.s32.totalorder %v13687_v26, 1  ;;  %6505 = vmatprep.mubr.msk.bf16.mxu1 %vm10693_vm2, %v6459_v59 }
 0x31e   : > { %vm10898_vm4 = vmpackc.low %vm13684_vm14, %vm13682_vm9  ;;  %vm13690_vm15 = vcmp.eq.s32.totalorder %v13689_v23, 1  ;;  %v3176_v9 = vadd.f32 %v10834_v3, %v3137_v19  ;;  %vm13693_vm9 = vcmask 1040384   ;;  %vm13694_vm14 = vcmask 1046528   ;;  %v10929_v19 = vpop.f32.mrf.mxu1 }
 0x31f   : > { %v13686_v1 = vsel %vm10898_vm4, 4294967295, %v13685_v1  ;;  %vm10911_vm6 = vmpackc.low %vm13690_vm15, %vm13688_vm1  ;;  %6460 = vmatmul.mubr.msk.bf16.gmra.mxu0 %vm10898_vm4, %v6459_v59  ;;  %v3273_v36 = vsel %vm13693_vm9, %v3270_v6, %v3272_v42  ;;  %v3394_v5 = vsel %vm13694_vm14, %v3391_v4, %v3393_v62  ;;  %v3274_v27 = vrot.slane %v3207_v16, 7  ;;  %v6944_v6 = vpop.f32.mrf.mxu0 }
 0x320   : > { %v3395_v53 = vrot.slane %v3207_v16, 1  ;;  %v3138_v21 = vmul.f32 %v10821_v50, %v3025_v33  ;;  %v2869_v60 = vadd.f32 %v6942_v58, %v10507_v35  ;;  %4676 = vmatprep.mubr.bf16.mxu0 %v10872_v49  ;;  %6508 = vmatmul.mubr.msk.bf16.vlgmr.msra.gmra.mxu1 %vm10911_vm6, %v6507_v38  ;;  %v6833_v8 = vadd.f32 %v10514_v2, %v10509_v40  ;;  %v7611_v35 = vld [vmem:[%s12635_s8 + $0x360] ss:$8 sps:$4 sm:$0xff]   ;;  %vm13695_vm1 = vmmov %vm13693_vm9  ;;  %v3032_v23 = vpop.f32.mrf.mxu1 }
 0x321   : > { %6511 = vmatprep.mubr.msk.bf16.mxu1 %vm10898_vm4, %v10888_v10  ;;  %v10934_v4 = vpack.c.bf16 %v3207_v16, %v3206_v7  ;;  %v3208_v24 = vmax.f32 %v3176_v9, 0.0  ;;  %v10936_v59 = vpack.c.bf16 %v3394_v5, %v3392_v56  ;;  %5204 = vmatpush1.bf16.msra.mxu1 %v7608_v17  ;;  %v6945_v52 = vadd.f32 %v6944_v6, %v6943_v0  ;;  %v7619_v7 = vld [vmem:[%s12635_s8 + $0x354] ss:$8 sps:$4 sm:$0xff]   ;;  %vm13696_vm15 = vmmov %vm13694_vm14  ;;  %v7617_v0 = vld [vmem:[%s12635_s8 + $0x350] ss:$8 sps:$4 sm:$0xff]  }
 0x322   : > { %v3030_v38 = vadd.f32 %v3029_v32, %v2869_v60  ;;  %v3275_v40 = vsel %vm13695_vm1, %v3272_v42, %v3274_v27  ;;  %v3177_v2 = vadd.f32 %v10834_v3, %v3138_v21  ;;  %5205 = vmatprep.subr.bf16.mxu1 %v7613_v61  ;;  %v3396_v58 = vsel %vm13696_vm15, %v3393_v62, %v3395_v53  ;;  %vm13697_vm9 = vmmov %vm13695_vm1  ;;  %v13698_v62 = vld [vmem:[#allocation15_spill] sm:$0xff]  ;;  %v13700_v60 = vld [vmem:[#allocation14_spill] sm:$0xff] }
 0x323   : > { %v10946_v33 = vpack.c.bf16 %v3275_v40, %v3273_v36  ;;  %v3397_v56 = vrot.slane %v3208_v24, 1  ;;  %v3276_v17 = vrot.slane %v3208_v24, 7  ;;  %v2872_v32 = vadd.f32 %v6945_v52, %v6833_v8  ;;  %v13705_v6 = vld [vmem:[#allocation58_spill] sm:$0xff] }
 0x324   : > { %v6946_v16 = vpop.f32.mrf.mxu0  ;;  %v3139_v63 = vmul.f32 %v10821_v50, %v3030_v38  ;;  %v3209_v26 = vmax.f32 %v3177_v2, 0.0  ;;  %vm13699_vm1 = vcmp.eq.s32.totalorder %v13698_v62, 1  ;;  %vm13701_vm15 = vcmp.eq.s32.totalorder %v13700_v60, 1 }
 0x325   : > { %v3277_v9 = vsel %vm13697_vm9, %v3274_v27, %v3276_v17  ;;  %v3398_v61 = vsel %vm13694_vm14, %v3395_v53, %v3397_v56  ;;  %5206 = vmatpush1.bf16.msra.mxu1 %v7611_v35  ;;  %v3033_v5 = vadd.f32 %v3032_v23, %v2872_v32  ;;  %vm10960_vm4 = vmpackc.low %vm13701_vm15, %vm13699_vm1  ;;  %v13702_v8 = vmov 0  ;;  %v7622_v53 = vld [vmem:[%s12635_s8 + $0x344] ss:$8 sps:$4 sm:$0xff]   ;;  %v13707_v35 = vld [vmem:[#allocation59_spill] sm:$0xff] }
 0x326   : > { %v6947_v42 = vpop.f32.mrf.mxu0  ;;  %v3178_v36 = vadd.f32 %v10834_v3, %v3139_v63  ;;  %v13703_v8 = vsel %vm10960_vm4, 4294967295, %v13702_v8  ;;  %v3399_v27 = vrot.slane %v3209_v26, 1  ;;  %5207 = vmatprep.subr.bf16.mxu1 %v7619_v7  ;;  %vm13706_vm9 = vcmp.eq.s32.totalorder %v13705_v6, 1 }
 0x327   : > { %v6948_v21 = vadd.f32 %v6947_v42, %v6946_v16  ;;  %13704 = vst [vmem:[#allocation17_spill] sm:$0xff] %v13703_v8  ;;  %vm13708_vm14 = vcmp.eq.s32.totalorder %v13707_v35, 1  ;;  %v13709_v38 = vmov 0  ;;  %6463 = vmatmul.mubr.msk.bf16.gmra.mxu0 %vm10960_vm4, %v10888_v10  ;;  %v10978_v40 = vpack.c.bf16 %v3209_v26, %v3208_v24  ;;  %v10991_v42 = vpop.f32.mrf.mxu1 }
 0x328   : > { %vm10971_vm2 = vmpackc.low %vm13708_vm14, %vm13706_vm9  ;;  %v6949_v52 = vpop.f32.mrf.mxu0  ;;  %v3278_v2 = vrot.slane %v3209_v26, 7  ;;  %v10980_v7 = vpack.c.bf16 %v3398_v61, %v3396_v58  ;;  %v3140_v16 = vmul.f32 %v10821_v50, %v3033_v5  ;;  %4686 = vmatprep.mubr.bf16.mxu0 %v10934_v4  ;;  %v3210_v32 = vmax.f32 %v3178_v36, 0.0  ;;  %v7620_v26 = vld [vmem:[%s12635_s8 + $0x340] ss:$8 sps:$4 sm:$0xff]  }
 0x329   : > { %v13710_v38 = vsel %vm10971_vm2, 4294967295, %v13709_v38  ;;  %v2877_v63 = vadd.f32 %v6948_v21, %v10540_v29  ;;  %6514 = vmatmul.mubr.msk.bf16.gmra.mxu1 %vm10971_vm2, %v10902_v15  ;;  %vm13711_vm1 = vcmask 1046528   ;;  %v6839_v24 = vadd.f32 %v10550_v25, %v10542_v44  ;;  %v7628_v25 = vld [vmem:[%s12635_s8 + $0x334] ss:$8 sps:$4 sm:$0xff]   ;;  %v3045_v6 = vpop.f32.mrf.mxu1 }
 0x32a   : > { %v3400_v23 = vsel %vm13711_vm1, %v3397_v56, %v3399_v27  ;;  %6517 = vmatprep.mubr.msk.bf16.mxu1 %vm10960_vm4, %v10946_v33  ;;  %v6950_v58 = vpop.f32.mrf.mxu0  ;;  %vm13712_vm15 = vcmask 1040384   ;;  %5208 = vmatpush1.bf16.msra.mxu1 %v7617_v0  ;;  %v3179_v44 = vadd.f32 %v10834_v3, %v3140_v16  ;;  %v3401_v21 = vrot.slane %v3210_v32, 1  ;;  %vm13714_vm14 = vmmov %vm13711_vm1 }
 0x32b   : > { %v3279_v29 = vsel %vm13712_vm15, %v3276_v17, %v3278_v2  ;;  %v3038_v61 = vadd.f32 %v10876_v18, %v2877_v63  ;;  %v6951_v56 = vadd.f32 %v6950_v58, %v6949_v52  ;;  %5209 = vmatprep.subr.bf16.mxu1 %v7622_v53  ;;  %v3280_v17 = vrot.slane %v3210_v32, 7  ;;  %vm13713_vm9 = vmmov %vm13712_vm15  ;;  %v7626_v53 = vld [vmem:[%s12635_s8 + $0x330] ss:$8 sps:$4 sm:$0xff]  }
 0x32c   : > { %v11001_v36 = vpack.c.bf16 %v3279_v29, %v3277_v9  ;;  %v6952_v5 = vpop.f32.mrf.mxu0  ;;  %v3211_v60 = vmax.f32 %v3179_v44, 0.0  ;;  %v3402_v9 = vsel %vm13714_vm14, %v3399_v27, %v3401_v21  ;;  %v13715_v58 = vld [vmem:[#allocation21_spill] sm:$0xff]  ;;  %v13719_v29 = vmov 0 }
 0x32d   : > { %v3141_v0 = vmul.f32 %v10821_v50, %v3038_v61  ;;  %v2880_v62 = vadd.f32 %v6951_v56, %v6839_v24  ;;  %v3281_v18 = vsel %vm13713_vm9, %v3278_v2, %v3280_v17  ;;  %vm13716_vm1 = vcmp.eq.s32.totalorder %v13715_v58, 1  ;;  %v13717_v24 = vld [vmem:[#allocation20_spill] sm:$0xff]  ;;  %v13724_v61 = vld [vmem:[#allocation75_spill] sm:$0xff] }
 0x32e   : > { %v6953_v35 = vpop.f32.mrf.mxu0  ;;  %5210 = vmatpush1.bf16.msra.mxu1 %v7620_v26  ;;  %vm13718_vm15 = vcmp.eq.s32.totalorder %v13717_v24, 1  ;;  %v3403_v2 = vrot.slane %v3211_v60, 1  ;;  %v7631_v27 = vld [vmem:[%s12635_s8 + $0x324] ss:$8 sps:$4 sm:$0xff]   ;;  %v13722_v26 = vld [vmem:[#allocation74_spill] sm:$0xff]  ;;  %vm13725_vm14 = vcmp.eq.s32.totalorder %v13724_v61, 1  ;;  %v11037_v44 = vpack.c.bf16 %v3211_v60, %v3210_v32  ;;  %v11050_v24 = vpop.f32.mrf.mxu1 }
 0x32f   : > { %v3180_v52 = vadd.f32 %v10834_v3, %v3141_v0  ;;  %v3041_v16 = vadd.f32 %v10929_v19, %v2880_v62  ;;  %v6954_v63 = vadd.f32 %v6953_v35, %v6952_v5  ;;  %vm11019_vm4 = vmpackc.low %vm13718_vm15, %vm13716_vm1  ;;  %5211 = vmatprep.subr.bf16.mxu1 %v7628_v25  ;;  %vm13723_vm9 = vcmp.eq.s32.totalorder %v13722_v26, 1 }
 0x330   : > { %v13720_v29 = vsel %vm11019_vm4, 4294967295, %v13719_v29  ;;  %vm11030_vm2 = vmpackc.low %vm13725_vm14, %vm13723_vm9  ;;  %v13726_v19 = vmov 0  ;;  %6466 = vmatmul.mubr.msk.bf16.gmra.mxu0 %vm11019_vm4, %v10946_v33  ;;  %v6955_v56 = vpop.f32.mrf.mxu0  ;;  %v3282_v25 = vrot.slane %v3211_v60, 7  ;;  %v11039_v5 = vpack.c.bf16 %v3402_v9, %v3400_v23  ;;  %v7629_v60 = vld [vmem:[%s12635_s8 + $0x320] ss:$8 sps:$4 sm:$0xff]  }
 0x331   : > { %13721 = vst [vmem:[#allocation16_spill] sm:$0xff] %v13720_v29  ;;  %v13727_v19 = vsel %vm11030_vm2, 4294967295, %v13726_v19  ;;  %v3142_v0 = vmul.f32 %v10821_v50, %v3041_v16  ;;  %v2885_v62 = vadd.f32 %v6954_v63, %v10571_v13  ;;  %4696 = vmatprep.mubr.bf16.mxu0 %v10978_v40  ;;  %6520 = vmatmul.mubr.msk.bf16.gmra.mxu1 %vm11030_vm2, %v10936_v59  ;;  %v3212_v35 = vmax.f32 %v3180_v52, 0.0  ;;  %v3048_v29 = vpop.f32.mrf.mxu1 }
 0x332   : > { %vm13728_vm1 = vcmask 1046528   ;;  %v6845_v32 = vadd.f32 %v10578_v55, %v10573_v12  ;;  %6523 = vmatprep.mubr.msk.bf16.mxu1 %vm11019_vm4, %v11001_v36  ;;  %v6956_v23 = vpop.f32.mrf.mxu0  ;;  %vm13729_vm15 = vcmask 1040384   ;;  %5212 = vmatpush1.bf16.msra.mxu1 %v7626_v53  ;;  %v7637_v55 = vld [vmem:[%s12635_s8 + $0x314] ss:$8 sps:$4 sm:$0xff]  }
 0x333   : > { %v3404_v58 = vsel %vm13728_vm1, %v3401_v21, %v3403_v2  ;;  %v3283_v13 = vsel %vm13729_vm15, %v3280_v17, %v3282_v25  ;;  %v3046_v9 = vadd.f32 %v3045_v6, %v2885_v62  ;;  %v6957_v52 = vadd.f32 %v6956_v23, %v6955_v56  ;;  %5213 = vmatprep.subr.bf16.mxu1 %v7631_v27  ;;  %vm13730_vm9 = vmmov %vm13729_vm15  ;;  %v7635_v27 = vld [vmem:[%s12635_s8 + $0x310] ss:$8 sps:$4 sm:$0xff]  }
 0x334   : > { %v11059_v21 = vpack.c.bf16 %v3283_v13, %v3281_v18  ;;  %v3181_v12 = vadd.f32 %v10834_v3, %v3142_v0  ;;  %v6958_v16 = vpop.f32.mrf.mxu0  ;;  %v3405_v63 = vrot.slane %v3212_v35, 1  ;;  %v3284_v26 = vrot.slane %v3212_v35, 7  ;;  %vm13731_vm14 = vmmov %vm13728_vm1  ;;  %v13732_v23 = vld [vmem:[#allocation27_spill] sm:$0xff]  ;;  %v13734_v13 = vld [vmem:[#allocation26_spill] sm:$0xff] }
 0x335   : > { %v3143_v17 = vmul.f32 %v10821_v50, %v3046_v9  ;;  %v2888_v53 = vadd.f32 %v6957_v52, %v6845_v32  ;;  %vm13733_vm1 = vcmp.eq.s32.totalorder %v13732_v23, 1  ;;  %vm13735_vm15 = vcmp.eq.s32.totalorder %v13734_v13, 1 }
 0x336   : > { %v3213_v61 = vmax.f32 %v3181_v12, 0.0  ;;  %v6959_v8 = vpop.f32.mrf.mxu0  ;;  %v3285_v6 = vsel %vm13730_vm9, %v3282_v25, %v3284_v26  ;;  %v3406_v18 = vsel %vm13731_vm14, %v3403_v2, %v3405_v63  ;;  %5214 = vmatpush1.bf16.msra.mxu1 %v7629_v60  ;;  %vm11076_vm4 = vmpackc.low %vm13735_vm15, %vm13733_vm1  ;;  %v13736_v32 = vmov 0  ;;  %v7640_v2 = vld [vmem:[%s12635_s8 + $0x304] ss:$8 sps:$4 sm:$0xff]  }
 0x337   : > { %v3182_v56 = vadd.f32 %v10834_v3, %v3143_v17  ;;  %v3049_v0 = vadd.f32 %v3048_v29, %v2888_v53  ;;  %v6960_v62 = vadd.f32 %v6959_v8, %v6958_v16  ;;  %v13737_v32 = vsel %vm11076_vm4, 4294967295, %v13736_v32  ;;  %5215 = vmatprep.subr.bf16.mxu1 %v7637_v55  ;;  %v11107_v16 = vpop.f32.mrf.mxu1  ;;  %v7638_v17 = vld [vmem:[%s12635_s8 + $0x300] ss:$8 sps:$4 sm:$0xff]  }
 0x338   : > { %v3407_v25 = vrot.slane %v3213_v61, 1  ;;  %vm13738_vm9 = vcmp.eq.s32.totalorder %v13547_v51, 1  ;;  %vm13739_vm14 = vcmp.eq.s32.totalorder %v13550_v14, 1  ;;  %v13740_v8 = vmov 0  ;;  %6469 = vmatmul.mubr.msk.bf16.gmra.mxu0 %vm11076_vm4, %v11001_v36  ;;  %v6961_v29 = vpop.f32.mrf.mxu0 }
 0x339   : > { %vm11087_vm2 = vmpackc.low %vm13739_vm14, %vm13738_vm9  ;;  %v11094_v60 = vpack.c.bf16 %v3213_v61, %v3212_v35  ;;  %v3286_v9 = vrot.slane %v3213_v61, 7  ;;  %v11096_v52 = vpack.c.bf16 %v3406_v18, %v3404_v58  ;;  %v3144_v12 = vmul.f32 %v10821_v50, %v3049_v0  ;;  %4706 = vmatprep.mubr.bf16.mxu0 %v11037_v44  ;;  %v3061_v23 = vpop.f32.mrf.mxu1 }
 0x33a   : > { %v13741_v8 = vsel %vm11087_vm2, 4294967295, %v13740_v8  ;;  %v2893_v51 = vadd.f32 %v6960_v62, %v10590_v39  ;;  %6526 = vmatmul.mubr.msk.bf16.gmra.mxu1 %vm11087_vm2, %v10980_v7  ;;  %v3214_v14 = vmax.f32 %v3182_v56, 0.0  ;;  %vm13742_vm1 = vcmask 1046528   ;;  %v6962_v58 = vpop.f32.mrf.mxu0 }
 0x33b   : > { %v3408_v55 = vsel %vm13742_vm1, %v3405_v63, %v3407_v25  ;;  %v6851_v35 = vadd.f32 %v10597_v37, %v10592_v57  ;;  %6529 = vmatprep.mubr.msk.bf16.mxu1 %vm11076_vm4, %v11059_v21  ;;  %vm13743_vm15 = vcmask 1040384   ;;  %5216 = vmatpush1.bf16.msra.mxu1 %v7635_v27  ;;  %v6963_v63 = vadd.f32 %v6962_v58, %v6961_v29  ;;  %v7646_v37 = vld [vmem:[%s12635_s8 + $0x3f4] ss:$8 sps:$4 sm:$0xff]   ;;  %vm13745_vm14 = vmmov %vm13742_vm1  ;;  %v13746_v58 = vld [vmem:[#allocation32_spill] sm:$0xff] }
 0x33c   : > { %v3287_v39 = vsel %vm13743_vm15, %v3284_v26, %v3286_v9  ;;  %v3054_v53 = vadd.f32 %v10991_v42, %v2893_v51  ;;  %v3183_v57 = vadd.f32 %v10834_v3, %v3144_v12  ;;  %5217 = vmatprep.subr.bf16.mxu1 %v7640_v2  ;;  %v6964_v18 = vpop.f32.mrf.mxu0  ;;  %v3409_v56 = vrot.slane %v3214_v14, 1  ;;  %vm13744_vm9 = vmmov %vm13743_vm15  ;;  %v7644_v2 = vld [vmem:[%s12635_s8 + $0x3f0] ss:$8 sps:$4 sm:$0xff]  }
 0x33d   : > { %v11117_v61 = vpack.c.bf16 %v3287_v39, %v3285_v6  ;;  %v3288_v26 = vrot.slane %v3214_v14, 7  ;;  %v2896_v0 = vadd.f32 %v6963_v63, %v6851_v35  ;;  %vm13747_vm1 = vcmp.eq.s32.totalorder %v13746_v58, 1  ;;  %v13748_v35 = vld [vmem:[#allocation31_spill] sm:$0xff] }
 0x33e   : > { %v3145_v27 = vmul.f32 %v10821_v50, %v3054_v53  ;;  %v3215_v62 = vmax.f32 %v3183_v57, 0.0  ;;  %v6965_v13 = vpop.f32.mrf.mxu0  ;;  %v3410_v6 = vsel %vm13745_vm14, %v3407_v25, %v3409_v56  ;;  %vm13749_vm15 = vcmp.eq.s32.totalorder %v13748_v35, 1  ;;  %v7649_v25 = vld [vmem:[%s12635_s8 + $0x3e4] ss:$8 sps:$4 sm:$0xff]  }
 0x33f   : > { %v3289_v42 = vsel %vm13744_vm9, %v3286_v9, %v3288_v26  ;;  %5218 = vmatpush1.bf16.msra.mxu1 %v7638_v17  ;;  %v3057_v12 = vadd.f32 %v11050_v24, %v2896_v0  ;;  %v6966_v51 = vadd.f32 %v6965_v13, %v6964_v18  ;;  %vm11135_vm4 = vmpackc.low %vm13749_vm15, %vm13747_vm1  ;;  %v13750_v39 = vmov 0  ;;  %v7647_v0 = vld [vmem:[%s12635_s8 + $0x3e0] ss:$8 sps:$4 sm:$0xff]  }
 0x340   : > { %v3184_v29 = vadd.f32 %v10834_v3, %v3145_v27  ;;  %v13751_v39 = vsel %vm11135_vm4, 4294967295, %v13750_v39  ;;  %v3411_v9 = vrot.slane %v3215_v62, 1  ;;  %5219 = vmatprep.subr.bf16.mxu1 %v7646_v37  ;;  %vm13753_vm9 = vcmp.eq.s32.totalorder %v13557_v54, 1  ;;  %6472 = vmatmul.mubr.msk.bf16.gmra.mxu0 %vm11135_vm4, %v11059_v21  ;;  %v6967_v17 = vpop.f32.mrf.mxu0  ;;  %v11166_v27 = vpop.f32.mrf.mxu1 }
 0x341   : > { %13752 = vst [vmem:[#allocation121_spill] sm:$0xff] %v13751_v39  ;;  %vm13754_vm14 = vcmp.eq.s32.totalorder %v13552_v41, 1  ;;  %v13755_v24 = vmov 0  ;;  %v11153_v53 = vpack.c.bf16 %v3215_v62, %v3214_v14  ;;  %v3290_v63 = vrot.slane %v3215_v62, 7  ;;  %4716 = vmatprep.mubr.bf16.mxu0 %v11094_v60 }
 0x342   : > { %vm11146_vm2 = vmpackc.low %vm13754_vm14, %vm13753_vm9  ;;  %v11155_v57 = vpack.c.bf16 %v3410_v6, %v3408_v55  ;;  %v3146_v37 = vmul.f32 %v10821_v50, %v3057_v12  ;;  %v2901_v54 = vadd.f32 %v6966_v51, %v10611_v20  ;;  %v3216_v41 = vmax.f32 %v3184_v29, 0.0  ;;  %v6968_v55 = vpop.f32.mrf.mxu0  ;;  %v3064_v58 = vpop.f32.mrf.mxu1 }
 0x343   : > { %v13756_v24 = vsel %vm11146_vm2, 4294967295, %v13755_v24  ;;  %6532 = vmatmul.mubr.msk.bf16.gmra.mxu1 %vm11146_vm2, %v11039_v5  ;;  %vm13757_vm1 = vcmask 1046528   ;;  %v6857_v14 = vadd.f32 %v10618_v48, %v10613_v43  ;;  %vm13758_vm15 = vcmask 1040384   ;;  %v7655_v48 = vld [vmem:[%s12635_s8 + $0x3d4] ss:$8 sps:$4 sm:$0xff]  }
 0x344   : > { %v3412_v18 = vsel %vm13757_vm1, %v3409_v56, %v3411_v9  ;;  %6535 = vmatprep.mubr.msk.bf16.mxu1 %vm11135_vm4, %v11117_v61  ;;  %v3291_v20 = vsel %vm13758_vm15, %v3288_v26, %v3290_v63  ;;  %5220 = vmatpush2.bf16.msra.mxu1 %v7644_v2  ;;  %v3062_v62 = vadd.f32 %v3061_v23, %v2901_v54  ;;  %v6970_v6 = vpop.f32.mrf.mxu0  ;;  %v3413_v29 = vrot.slane %v3216_v41, 1  ;;  %vm13760_vm9 = vmmov %vm13758_vm15 }
 0x345   : > { %v6969_v13 = vadd.f32 %v6968_v55, %v6967_v17  ;;  %v11175_v56 = vpack.c.bf16 %v3291_v20, %v3289_v42  ;;  %v3185_v43 = vadd.f32 %v10834_v3, %v3146_v37  ;;  %5221 = vmatprep.subr.bf16.mxu1 %v7649_v25  ;;  %v3292_v12 = vrot.slane %v3216_v41, 7  ;;  %vm13761_vm14 = vmmov %vm13757_vm1  ;;  %v7653_v25 = vld [vmem:[%s12635_s8 + $0x3d0] ss:$8 sps:$4 sm:$0xff]   ;;  %v13764_v20 = vld [vmem:[#allocation36_spill] sm:$0xff] }
 0x346   : > { %v3147_v26 = vmul.f32 %v10821_v50, %v3062_v62  ;;  %v6971_v35 = vpop.f32.mrf.mxu0  ;;  %v3414_v42 = vsel %vm13761_vm14, %v3411_v9, %v3413_v29  ;;  %v13762_v55 = vld [vmem:[#allocation37_spill] sm:$0xff]  ;;  %vm13765_vm15 = vcmp.eq.s32.totalorder %v13764_v20, 1 }
 0x347   : > { %13759 = vst [vmem:[#allocation130_spill] sm:$0xff] %v11175_v56  ;;  %v2904_v2 = vadd.f32 %v6969_v13, %v6857_v14  ;;  %v3217_v51 = vmax.f32 %v3185_v43, 0.0  ;;  %v3293_v23 = vsel %vm13760_vm9, %v3290_v63, %v3292_v12  ;;  %v6972_v54 = vadd.f32 %v6971_v35, %v6970_v6  ;;  %v7658_v9 = vld [vmem:[%s12635_s8 + $0x3c4] ss:$8 sps:$4 sm:$0xff]   ;;  %vm13771_vm9 = vmmov %vm13761_vm14  ;;  %v11215_v35 = vpop.f32.mrf.mxu1 }
 0x348   : > { %5222 = vmatpush2.bf16.msra.mxu1 %v7647_v0  ;;  %v3186_v17 = vadd.f32 %v10834_v3, %v3147_v26  ;;  %vm13763_vm1 = vcmp.eq.s32.totalorder %v13762_v55, 1  ;;  %v13766_v14 = vmov 0  ;;  %v6973_v0 = vpop.f32.mrf.mxu0  ;;  %v11204_v43 = vpack.c.bf16 %v3414_v42, %v3412_v18 }
 0x349   : > { %v3065_v37 = vadd.f32 %v3064_v58, %v2904_v2  ;;  %vm11192_vm4 = vmpackc.low %vm13765_vm15, %vm13763_vm1  ;;  %v3415_v63 = vrot.slane %v3217_v51, 1  ;;  %5223 = vmatprep.subr.bf16.mxu1 %v7655_v48  ;;  %v11202_v62 = vpack.c.bf16 %v3217_v51, %v3216_v41  ;;  %v3294_v13 = vrot.slane %v3217_v51, 7  ;;  %v7656_v51 = vld [vmem:[%s12635_s8 + $0x3c0] ss:$8 sps:$4 sm:$0xff]  }
 0x34a   : > { %v13767_v14 = vsel %vm11192_vm4, 4294967295, %v13766_v14  ;;  %6475 = vmatmul.mubr.msk.bf16.gmra.mxu0 %vm11192_vm4, %v11117_v61  ;;  %v2909_v26 = vadd.f32 %v6972_v54, %v10636_v47  ;;  %v3218_v2 = vmax.f32 %v3186_v17, 0.0  ;;  %v6863_v41 = vadd.f32 %v10646_v31, %v10638_v22  ;;  %v6974_v18 = vpop.f32.mrf.mxu0  ;;  %v7664_v31 = vld [vmem:[%s12635_s8 + $0x3b4] ss:$8 sps:$4 sm:$0xff]   ;;  %vm13775_vm15 = vmmov %vm13771_vm9 }
 0x34b   : > { %13768 = vst [vmem:[#allocation38_spill] sm:$0xff] %v13767_v14  ;;  %13769 = vst [vmem:[#allocation76_spill] sm:$0xff] %v11202_v62  ;;  %v3148_v6 = vmul.f32 %v10821_v50, %v3065_v37  ;;  %4726 = vmatprep.mubr.bf16.mxu0 %v11153_v53  ;;  %6538 = vmatmul.mubr.msk.bf16.gmra.mxu1 %vm9148_vm3, %v11096_v52  ;;  %v3416_v58 = vsel %vm13771_vm9, %v3413_v29, %v3415_v63  ;;  %vm13772_vm14 = vcmask 1040384   ;;  %v3077_v14 = vpop.f32.mrf.mxu1 }
 0x34c   : > { %6541 = vmatprep.mubr.msk.bf16.mxu1 %vm11192_vm4, %v11175_v56  ;;  %v3295_v47 = vsel %vm13772_vm14, %v3292_v12, %v3294_v13  ;;  %5224 = vmatpush2.bf16.msra.mxu1 %v7653_v25  ;;  %v3070_v42 = vadd.f32 %v11107_v16, %v2909_v26  ;;  %v6975_v29 = vadd.f32 %v6974_v18, %v6973_v0  ;;  %v6976_v37 = vpop.f32.mrf.mxu0  ;;  %v3417_v54 = vrot.slane %v3218_v2, 1  ;;  %vm13774_vm1 = vmmov %vm13772_vm14  ;;  %v13776_v18 = vld [vmem:[#allocation45_spill] sm:$0xff] }
 0x34d   : > { %v11225_v17 = vpack.c.bf16 %v3295_v47, %v3293_v23  ;;  %v3187_v22 = vadd.f32 %v10834_v3, %v3148_v6  ;;  %5225 = vmatprep.subr.bf16.mxu1 %v7658_v9  ;;  %v3296_v12 = vrot.slane %v3218_v2, 7  ;;  %v7662_v9 = vld [vmem:[%s12635_s8 + $0x3b0] ss:$8 sps:$4 sm:$0xff]   ;;  %vm13777_vm9 = vcmp.eq.s32.totalorder %v13776_v18, 1 }
 0x34e   : > { %v3149_v25 = vmul.f32 %v10821_v50, %v3070_v42  ;;  %v2912_v55 = vadd.f32 %v6975_v29, %v6863_v41  ;;  %v6977_v39 = vpop.f32.mrf.mxu0  ;;  %v3418_v23 = vsel %vm13775_vm15, %v3415_v63, %v3417_v54  ;;  %v13778_v41 = vld [vmem:[#allocation44_spill] sm:$0xff]  ;;  %v13780_v47 = vmov 0 }
 0x34f   : > { %13773 = vst [vmem:[#allocation126_spill] sm:$0xff] %v11225_v17  ;;  %v3219_v20 = vmax.f32 %v3187_v22, 0.0  ;;  %v3297_v16 = vsel %vm13774_vm1, %v3294_v13, %v3296_v12  ;;  %v6978_v26 = vadd.f32 %v6977_v39, %v6976_v37  ;;  %vm13779_vm14 = vcmp.eq.s32.totalorder %v13778_v41, 1  ;;  %v7667_v63 = vld [vmem:[%s12635_s8 + $0x3a4] ss:$8 sps:$4 sm:$0xff]   ;;  %vm13785_vm1 = vmmov %vm13775_vm15 }
 0x350   : > { %5226 = vmatpush2.bf16.msra.mxu1 %v7656_v51  ;;  %v3188_v0 = vadd.f32 %v10834_v3, %v3149_v25  ;;  %v3073_v6 = vadd.f32 %v11166_v27, %v2912_v55  ;;  %vm11243_vm4 = vmpackc.low %vm13779_vm14, %vm13777_vm9  ;;  %v6979_v27 = vpop.f32.mrf.mxu0  ;;  %v11255_v42 = vpack.c.bf16 %v3418_v23, %v3416_v58  ;;  %v11266_v55 = vpop.f32.mrf.mxu1  ;;  %vm13786_vm15 = vcmask 1040384  }
 0x351   : > { %v13781_v47 = vsel %vm11243_vm4, 4294967295, %v13780_v47  ;;  %v3419_v13 = vrot.slane %v3219_v20, 1  ;;  %5227 = vmatprep.subr.bf16.mxu1 %v7664_v31  ;;  %v11253_v39 = vpack.c.bf16 %v3219_v20, %v3218_v2  ;;  %v3298_v51 = vrot.slane %v3219_v20, 7  ;;  %v7665_v20 = vld [vmem:[%s12635_s8 + $0x3a0] ss:$8 sps:$4 sm:$0xff]   ;;  %vm13788_vm9 = vmmov %vm13786_vm15 }
 0x352   : > { %13782 = vst [vmem:[#allocation13_spill] sm:$0xff] %v13781_v47  ;;  %6478 = vmatmul.mubr.msk.bf16.gmra.mxu0 %vm11243_vm4, %v11175_v56  ;;  %v3150_v29 = vmul.f32 %v10821_v50, %v3073_v6  ;;  %v2917_v22 = vadd.f32 %v6978_v26, %v10664_v46  ;;  %v3220_v37 = vmax.f32 %v3188_v0, 0.0  ;;  %v6869_v2 = vadd.f32 %v10719_v11, %v10711_v45  ;;  %v6980_v58 = vpop.f32.mrf.mxu0  ;;  %v7673_v11 = vld [vmem:[%s12635_s8 + $0x394] ss:$8 sps:$4 sm:$0xff]   ;;  %v3080_v47 = vpop.f32.mrf.mxu1  ;;  %vm13789_vm14 = vmmov %vm13785_vm1 }
 0x353   : > { %13783 = vst [vmem:[#allocation12_spill] sm:$0xff] %v11253_v39  ;;  %4736 = vmatprep.mubr.bf16.mxu0 %v11202_v62  ;;  %6544 = vmatmul.mubr.msk.bf16.gmra.mxu1 %vm9355_vm11, %v11155_v57  ;;  %v3420_v25 = vsel %vm13785_vm1, %v3417_v54, %v3419_v13  ;;  %v3299_v46 = vsel %vm13786_vm15, %v3296_v12, %v3298_v51 }
 0x354   : > { %6547 = vmatprep.mubr.msk.bf16.mxu1 %vm11243_vm4, %v11225_v17  ;;  %5228 = vmatpush2.bf16.msra.mxu1 %v7662_v9  ;;  %v3078_v23 = vadd.f32 %v3077_v14, %v2917_v22  ;;  %v6981_v0 = vadd.f32 %v6980_v58, %v6979_v27  ;;  %v11275_v54 = vpack.c.bf16 %v3299_v46, %v3297_v16  ;;  %v6982_v6 = vpop.f32.mrf.mxu0  ;;  %v3421_v26 = vrot.slane %v3220_v37, 1  ;;  %v13790_v27 = vld [vmem:[#allocation54_spill] sm:$0xff] }
 0x355   : > { %v3189_v45 = vadd.f32 %v10834_v3, %v3150_v29  ;;  %5229 = vmatprep.subr.bf16.mxu1 %v7667_v63  ;;  %v3300_v18 = vrot.slane %v3220_v37, 7  ;;  %v7671_v63 = vld [vmem:[%s12635_s8 + $0x390] ss:$8 sps:$4 sm:$0xff]   ;;  %vm13791_vm1 = vcmp.eq.s32.totalorder %v13790_v27, 1  ;;  %v13794_v22 = vmov 0 }
 0x356   : > { %13787 = vst [vmem:[#allocation81_spill] sm:$0xff] %v11275_v54  ;;  %v3151_v12 = vmul.f32 %v10821_v50, %v3078_v23  ;;  %v2920_v9 = vadd.f32 %v6981_v0, %v6869_v2  ;;  %v6983_v62 = vpop.f32.mrf.mxu0  ;;  %v3422_v16 = vsel %vm13789_vm14, %v3419_v13, %v3421_v26  ;;  %v13792_v29 = vld [vmem:[#allocation53_spill] sm:$0xff]  ;;  %v13802_v27 = vld [vmem:[#allocation71_spill] sm:$0xff] }
 0x357   : > { %v3221_v41 = vmax.f32 %v3189_v45, 0.0  ;;  %v3301_v14 = vsel %vm13788_vm9, %v3298_v51, %v3300_v18  ;;  %vm13793_vm15 = vcmp.eq.s32.totalorder %v13792_v29, 1  ;;  %v6984_v46 = vadd.f32 %v6983_v62, %v6982_v6  ;;  %v7676_v13 = vld [vmem:[%s12635_s8 + $0x384] ss:$8 sps:$4 sm:$0xff]   ;;  %vm13800_vm9 = vmmov %vm13789_vm14  ;;  %v11315_v29 = vpop.f32.mrf.mxu1 }
 0x358   : > { %5230 = vmatpush2.bf16.msra.mxu1 %v7665_v20  ;;  %vm11291_vm4 = vmpackc.low %vm13793_vm15, %vm13791_vm1  ;;  %v3190_v2 = vadd.f32 %v10834_v3, %v3151_v12  ;;  %v3081_v58 = vadd.f32 %v3080_v47, %v2920_v9  ;;  %v6985_v20 = vpop.f32.mrf.mxu0  ;;  %v11304_v45 = vpack.c.bf16 %v3422_v16, %v3420_v25  ;;  %v13801_v9 = vld [vmem:[#allocation127_spill] sm:$0xff]  ;;  %vm13803_vm14 = vcmask 1040384  }
 0x359   : > { %v13795_v22 = vsel %vm11291_vm4, 4294967295, %v13794_v22  ;;  %v3423_v51 = vrot.slane %v3221_v41, 1  ;;  %5231 = vmatprep.subr.bf16.mxu1 %v7673_v11  ;;  %v11302_v23 = vpack.c.bf16 %v3221_v41, %v3220_v37  ;;  %v3302_v0 = vrot.slane %v3221_v41, 7  ;;  %v7674_v41 = vld [vmem:[%s12635_s8 + $0x380] ss:$8 sps:$4 sm:$0xff]   ;;  %vm13805_vm1 = vmmov %vm13803_vm14 }
 0x35a   : > { %13796 = vst [vmem:[#allocation80_spill] sm:$0xff] %v13795_v22  ;;  %6481 = vmatmul.mubr.msk.bf16.gmra.mxu0 %vm11291_vm4, %v11225_v17  ;;  %13798 = vst [vmem:[#allocation22_spill] sm:$0xff] %v11304_v45  ;;  %v3152_v12 = vmul.f32 %v10821_v50, %v3081_v58  ;;  %v2925_v62 = vadd.f32 %v6984_v46, %v10730_v34  ;;  %v3222_v11 = vmax.f32 %v3190_v2, 0.0  ;;  %v6986_v25 = vpop.f32.mrf.mxu0 }
 0x35b   : > { %13797 = vst [vmem:[#allocation51_spill] sm:$0xff] %v11302_v23  ;;  %4746 = vmatprep.mubr.bf16.mxu0 %v11253_v39  ;;  %6550 = vmatmul.mubr.msk.bf16.gmra.mxu1 %vm9579_vm0, %v11204_v43  ;;  %v3424_v6 = vsel %vm13800_vm9, %v3421_v26, %v3423_v51  ;;  %v6875_v37 = vadd.f32 %v13802_v27, %v13801_v9  ;;  %vm13806_vm15 = vmmov %vm13800_vm9 }
 0x35c   : > { %6553 = vmatprep.mubr.msk.bf16.mxu1 %vm11291_vm4, %v11275_v54  ;;  %v3303_v34 = vsel %vm13803_vm14, %v3300_v18, %v3302_v0  ;;  %5232 = vmatpush2.bf16.msra.mxu1 %v7671_v63  ;;  %v3086_v16 = vadd.f32 %v11215_v35, %v2925_v62  ;;  %v6987_v26 = vadd.f32 %v6986_v25, %v6985_v20  ;;  %v6988_v46 = vpop.f32.mrf.mxu0  ;;  %v3425_v9 = vrot.slane %v3222_v11, 1  ;;  %v3093_v63 = vpop.f32.mrf.mxu1  ;;  %v13807_v35 = vld [vmem:[#allocation69_spill] sm:$0xff] }
 0x35d   : > { %v11325_v2 = vpack.c.bf16 %v3303_v34, %v3301_v14  ;;  %v3191_v58 = vadd.f32 %v10834_v3, %v3152_v12  ;;  %5233 = vmatprep.subr.bf16.mxu1 %v7676_v13  ;;  %v3304_v27 = vrot.slane %v3222_v11, 7  ;;  %vm13808_vm9 = vcmp.eq.s32.totalorder %v13807_v35, 1  ;;  %v13809_v14 = vld [vmem:[#allocation68_spill] sm:$0xff] }
 0x35e   : > { %v3153_v22 = vmul.f32 %v10821_v50, %v3086_v16  ;;  %v2928_v39 = vadd.f32 %v6987_v26, %v6875_v37  ;;  %v6989_v17 = vpop.f32.mrf.mxu0  ;;  %v3426_v47 = vsel %vm13806_vm15, %v3423_v51, %v3425_v9  ;;  %vm13810_vm14 = vcmp.eq.s32.totalorder %v13809_v14, 1  ;;  %v13815_v16 = vld [vmem:[#allocation57_spill] sm:$0xff] }
 0x35f   : > { %13804 = vst [vmem:[#allocation29_spill] sm:$0xff] %v11325_v2  ;;  %v3223_v18 = vmax.f32 %v3191_v58, 0.0  ;;  %v3305_v56 = vsel %vm13805_vm1, %v3302_v0, %v3304_v27  ;;  %vm11335_vm4 = vmpackc.low %vm13810_vm14, %vm13808_vm9  ;;  %v13811_v13 = vmov 0  ;;  %v6990_v62 = vadd.f32 %v6989_v17, %v6988_v46  ;;  %v13819_v58 = vld [vmem:[#allocation85_spill] sm:$0xff]  ;;  %v7132_v46 = vpop.f32.mrf.mxu1 }
 0x360   : > { %5234 = vmatpush2.bf16.msra.mxu1 %v7674_v41  ;;  %v13812_v13 = vsel %vm11335_vm4, 4294967295, %v13811_v13  ;;  %v3192_v20 = vadd.f32 %v10834_v3, %v3153_v22  ;;  %v3089_v12 = vadd.f32 %v11266_v55, %v2928_v39  ;;  %v6991_v51 = vpop.f32.mrf.mxu0  ;;  %v11346_v34 = vpack.c.bf16 %v3426_v47, %v3424_v6  ;;  %vm13817_vm1 = vmmov %vm13806_vm15  ;;  %v13818_v22 = vld [vmem:[#allocation84_spill] sm:$0xff] }
 0x361   : > { %13813 = vst [vmem:[#allocation63_spill] sm:$0xff] %v13812_v13  ;;  %v3427_v37 = vrot.slane %v3223_v18, 1  ;;  %v11344_v0 = vpack.c.bf16 %v3223_v18, %v3222_v11  ;;  %v3306_v25 = vrot.slane %v3223_v18, 7  ;;  %v2933_v26 = vadd.f32 %v6990_v62, %v13815_v16  ;;  %vm13823_vm14 = vmmov %vm13817_vm1 }
 0x362   : > { %6484 = vmatmul.mubr.msk.bf16.gmra.mxu0 %vm11335_vm4, %v11275_v54  ;;  %v3154_v41 = vmul.f32 %v10821_v50, %v3089_v12  ;;  %v3224_v17 = vmax.f32 %v3192_v20, 0.0  ;;  %v6881_v11 = vadd.f32 %v13819_v58, %v13818_v22  ;;  %v6992_v47 = vpop.f32.mrf.mxu0  ;;  %vm13820_vm15 = vcmask 1040384  }
 0x363   : > { %13814 = vst [vmem:[#allocation62_spill] sm:$0xff] %v11344_v0  ;;  %4756 = vmatprep.mubr.bf16.mxu0 %v11302_v23  ;;  %6556 = vmatmul.mubr.msk.bf16.gmra.mxu1 %vm9761_vm13, %v11255_v42  ;;  %v3428_v55 = vsel %vm13817_vm1, %v3425_v9, %v3427_v37  ;;  %v3307_v6 = vsel %vm13820_vm15, %v3304_v27, %v3306_v25  ;;  %v3096_v23 = vpop.f32.mrf.mxu1  ;;  %vm13822_vm9 = vmmov %vm13820_vm15  ;;  %v13824_v27 = vld [vmem:[#allocation86_spill] sm:$0xff] }
 0x364   : > { %6559 = vmatprep.mubr.msk.bf16.mxu1 %vm11335_vm4, %v11325_v2  ;;  %v3094_v18 = vadd.f32 %v3093_v63, %v2933_v26  ;;  %v6993_v35 = vadd.f32 %v6992_v47, %v6991_v51  ;;  %v11361_v14 = vpack.c.bf16 %v3307_v6, %v3305_v56  ;;  %v3193_v12 = vadd.f32 %v10834_v3, %v3154_v41  ;;  %v6994_v20 = vpop.f32.mrf.mxu0  ;;  %v13826_v63 = vld [vmem:[#allocation87_spill] sm:$0xff] }
 0x365   : > { %v3429_v62 = vrot.slane %v3224_v17, 1  ;;  %v3308_v9 = vrot.slane %v3224_v17, 7  ;;  %vm13825_vm1 = vcmp.eq.s32.totalorder %v13824_v27, 1  ;;  %vm13827_vm15 = vcmp.eq.s32.totalorder %v13826_v63, 1  ;;  %v11392_v27 = vpop.f32.mrf.mxu1 }
 0x366   : > { %13821 = vst [vmem:[#allocation83_spill] sm:$0xff] %v11361_v14  ;;  %v3155_v16 = vmul.f32 %v10821_v50, %v3094_v18  ;;  %v2936_v22 = vadd.f32 %v6993_v35, %v6881_v11  ;;  %v3225_v58 = vmax.f32 %v3193_v12, 0.0  ;;  %v6995_v54 = vpop.f32.mrf.mxu0  ;;  %vm11371_vm4 = vmpackc.low %vm13827_vm15, %vm13825_vm1  ;;  %v13828_v56 = vmov 0  ;;  %v13833_v35 = vld [vmem:[#allocation89_spill] sm:$0xff] }
 0x367   : > { %v3309_v13 = vsel %vm13822_vm9, %v3306_v25, %v3308_v9  ;;  %v3430_v39 = vsel %vm13823_vm14, %v3427_v37, %v3429_v62  ;;  %v13829_v56 = vsel %vm11371_vm4, 4294967295, %v13828_v56  ;;  %v6996_v26 = vadd.f32 %v6995_v54, %v6994_v20  ;;  %vm13835_vm9 = vmmov %vm13823_vm14 }
 0x368   : > { %13830 = vst [vmem:[#allocation82_spill] sm:$0xff] %v13829_v56  ;;  %v3194_v51 = vadd.f32 %v10834_v3, %v3155_v16  ;;  %v3097_v41 = vadd.f32 %v3096_v23, %v2936_v22  ;;  %v3431_v11 = vrot.slane %v3225_v58, 1  ;;  %v6997_v25 = vpop.f32.mrf.mxu0  ;;  %v11379_v47 = vpack.c.bf16 %v3225_v58, %v3224_v17  ;;  %v13836_v16 = vld [vmem:[#allocation90_spill] sm:$0xff]  ;;  %v13837_v22 = vld [vmem:[#allocation95_spill] sm:$0xff]  ;;  %vm13841_vm15 = vmmov %vm13835_vm9 }
 0x369   : > { %v3310_v37 = vrot.slane %v3225_v58, 7  ;;  %v11381_v6 = vpack.c.bf16 %v3430_v39, %v3428_v55  ;;  %v2941_v12 = vadd.f32 %v6996_v26, %v13833_v35  ;;  %v6887_v17 = vadd.f32 %v13837_v22, %v13836_v16 }
 0x36a   : > { %6487 = vmatmul.mubr.msk.bf16.gmra.mxu0 %vm11371_vm4, %v11325_v2  ;;  %13831 = vst [vmem:[#allocation30_spill] sm:$0xff] %v11379_v47  ;;  %v3156_v18 = vmul.f32 %v10821_v50, %v3097_v41  ;;  %v3226_v54 = vmax.f32 %v3194_v51, 0.0  ;;  %v3432_v20 = vsel %vm13835_vm9, %v3429_v62, %v3431_v11  ;;  %v6998_v39 = vpop.f32.mrf.mxu0  ;;  %vm13838_vm14 = vcmask 1040384   ;;  %v3109_v2 = vpop.f32.mrf.mxu1 }
 0x36b   : > { %13832 = vst [vmem:[#allocation43_spill] sm:$0xff] %v11381_v6  ;;  %4766 = vmatprep.mubr.bf16.mxu0 %v11344_v0  ;;  %6562 = vmatmul.mubr.msk.bf16.gmra.mxu1 %vm9844_vm12, %v11304_v45  ;;  %v3311_v55 = vsel %vm13838_vm14, %v3308_v9, %v3310_v37  ;;  %v3102_v58 = vadd.f32 %v11315_v29, %v2941_v12  ;;  %vm13840_vm1 = vmmov %vm13838_vm14  ;;  %v13842_v45 = vld [vmem:[#allocation97_spill] sm:$0xff]  ;;  %v13844_v29 = vld [vmem:[#allocation98_spill] sm:$0xff] }
 0x36c   : > { %6565 = vmatprep.mubr.msk.bf16.mxu1 %vm11371_vm4, %v11361_v14  ;;  %v6999_v63 = vadd.f32 %v6998_v39, %v6997_v25  ;;  %v11399_v41 = vpack.c.bf16 %v3311_v55, %v3309_v13  ;;  %v3195_v51 = vadd.f32 %v10834_v3, %v3156_v18  ;;  %v7000_v62 = vpop.f32.mrf.mxu0  ;;  %v3433_v26 = vrot.slane %v3226_v54, 1  ;;  %v11424_v39 = vld [vmem:[%s12633_s6] ss:$0 sm:$0xff] }
 0x36d   : > { %v3312_v35 = vrot.slane %v3226_v54, 7  ;;  %v3157_v16 = vmul.f32 %v10821_v50, %v3102_v58  ;;  %vm13843_vm9 = vcmp.eq.s32.totalorder %v13842_v45, 1  ;;  %vm13845_vm14 = vcmp.eq.s32.totalorder %v13844_v29, 1  ;;  %v13855_v58 = vld [vmem:[#allocation123_spill] sm:$0xff] }
 0x36e   : > { %13839 = vst [vmem:[#allocation116_spill] sm:$0xff] %v11399_v41  ;;  %v2944_v22 = vadd.f32 %v6999_v63, %v6887_v17  ;;  %v3227_v0 = vmax.f32 %v3195_v51, 0.0  ;;  %v7001_v56 = vpop.f32.mrf.mxu0  ;;  %v3434_v9 = vsel %vm13841_vm15, %v3431_v11, %v3433_v26  ;;  %vm11409_vm4 = vmpackc.low %vm13845_vm14, %vm13843_vm9  ;;  %v13846_v13 = vmov 0  ;;  %v7136_v51 = vpop.f32.mrf.mxu1 }
 0x36f   : > { %v3313_v23 = vsel %vm13840_vm1, %v3310_v37, %v3312_v35  ;;  %v13847_v13 = vsel %vm11409_vm4, 4294967295, %v13846_v13  ;;  %v3196_v25 = vadd.f32 %v10834_v3, %v3157_v16  ;;  %v7002_v50 = vadd.f32 %v7001_v56, %v7000_v62  ;;  %vm13853_vm1 = vmmov %vm13841_vm15 }
 0x370   : > { %13848 = vst [vmem:[#allocation93_spill] sm:$0xff] %v13847_v13  ;;  %v3105_v18 = vadd.f32 %v7132_v46, %v2944_v22  ;;  %v3435_v12 = vrot.slane %v3227_v0, 1  ;;  %v7003_v37 = vpop.f32.mrf.mxu0  ;;  %v11417_v17 = vpack.c.bf16 %v3227_v0, %v3226_v54  ;;  %v3314_v11 = vrot.slane %v3227_v0, 7  ;;  %v13851_v46 = vld [vmem:[#allocation100_spill] sm:$0xff]  ;;  %vm13858_vm14 = vmmov %vm13853_vm1 }
 0x371   : > { %v11419_v45 = vpack.c.bf16 %v3434_v9, %v3432_v20  ;;  %v2949_v56 = vadd.f32 %v7002_v50, %v13851_v46  ;;  %v3228_v54 = vmax.f32 %v3196_v25, 0.0  ;;  %v13854_v20 = vld [vmem:[#allocation96_spill] sm:$0xff]  ;;  %vm13856_vm15 = vcmask 1040384   ;;  %v7737_v25 = vld [vmem:[%s12634_s7] ss:$0 sm:$0xff] }
 0x372   : > { %6490 = vmatmul.mubr.msk.bf16.gmra.mxu0 %vm11409_vm4, %v11361_v14  ;;  %13849 = vst [vmem:[#allocation46_spill] sm:$0xff] %v11417_v17  ;;  %v3158_v3 = vmul.f32 %v11424_v39, %v3105_v18  ;;  %v3436_v0 = vsel %vm13853_vm1, %v3433_v26, %v3435_v12  ;;  %v6893_v63 = vadd.f32 %v13855_v58, %v13854_v20  ;;  %v7004_v62 = vpop.f32.mrf.mxu0  ;;  %vm13857_vm9 = vmmov %vm13856_vm15 }
 0x373   : > { %13850 = vst [vmem:[#allocation92_spill] sm:$0xff] %v11419_v45  ;;  %4776 = vmatprep.mubr.bf16.mxu0 %v11379_v47  ;;  %6568 = vmatmul.mubr.msk.bf16.gmra.mxu1 %vm9909_vm7, %v11346_v34  ;;  %v3315_v16 = vsel %vm13856_vm15, %v3312_v35, %v3314_v11  ;;  %v3110_v22 = vadd.f32 %v3109_v2, %v2949_v56  ;;  %v3437_v50 = vrot.slane %v3228_v54, 1  ;;  %v3316_v46 = vrot.slane %v3228_v54, 7  ;;  %v3112_v47 = vpop.f32.mrf.mxu1 }
 0x374   : > { %6571 = vmatprep.mubr.msk.bf16.mxu1 %vm11409_vm4, %v11399_v41  ;;  %v7005_v9 = vadd.f32 %v7004_v62, %v7003_v37  ;;  %v11439_v29 = vpack.c.bf16 %v3315_v16, %v3313_v23  ;;  %v3197_v26 = vadd.f32 %v7737_v25, %v3158_v3  ;;  %v7006_v18 = vpop.f32.mrf.mxu0  ;;  %v13859_v23 = vld [vmem:[#allocation40_spill] sm:$0xff]  ;;  %v13861_v37 = vld [vmem:[#allocation103_spill] sm:$0xff]  ;;  %v13863_v56 = vmov 0 }
 0x375   : > { %v3159_v20 = vmul.f32 %v11424_v39, %v3110_v22  ;;  %v3317_v35 = vsel %vm13857_vm9, %v3314_v11, %v3316_v46  ;;  %v3438_v2 = vsel %vm13858_vm14, %v3435_v12, %v3437_v50  ;;  %vm13860_vm1 = vcmp.eq.s32.totalorder %v13859_v23, 1  ;;  %v13867_v23 = vld [vmem:[#allocation115_spill] sm:$0xff]  ;;  %vm13869_vm9 = vmmov %vm13858_vm14 }
 0x376   : > { %v2952_v58 = vadd.f32 %v7005_v9, %v6893_v63  ;;  %v3229_v13 = vmax.f32 %v3197_v26, 0.0  ;;  %v7007_v14 = vpop.f32.mrf.mxu0  ;;  %vm13862_vm15 = vcmp.eq.s32.totalorder %v13861_v37, 1  ;;  %v11460_v9 = vpack.c.bf16 %v3438_v2, %v3436_v0 }
 0x377   : > { %vm11451_vm4 = vmpackc.low %vm13862_vm15, %vm13860_vm1  ;;  %v3198_v3 = vadd.f32 %v7737_v25, %v3159_v20  ;;  %v7008_v16 = vadd.f32 %v7007_v14, %v7006_v18  ;;  %v13870_v20 = vld [vmem:[#allocation104_spill] sm:$0xff]  ;;  %vm13872_vm14 = vcmask 1040384  }
 0x378   : > { %v13864_v56 = vsel %vm11451_vm4, 4294967295, %v13863_v56  ;;  %v3113_v62 = vadd.f32 %v3112_v47, %v2952_v58  ;;  %v3439_v22 = vrot.slane %v3229_v13, 1  ;;  %v7009_v63 = vpop.f32.mrf.mxu0  ;;  %v11458_v11 = vpack.c.bf16 %v3229_v13, %v3228_v54  ;;  %13866 = vst [vmem:[#allocation25_spill] sm:$0xff] %v11460_v9  ;;  %v13871_v58 = vld [vmem:[#allocation125_spill] sm:$0xff]  ;;  %vm13873_vm1 = vmmov %vm13872_vm14 }
 0x379   : > { %13865 = vst [vmem:[#allocation105_spill] sm:$0xff] %v13864_v56  ;;  %v3318_v12 = vrot.slane %v3229_v13, 7  ;;  %v2957_v37 = vadd.f32 %v7008_v16, %v13867_v23  ;;  %v3230_v14 = vmax.f32 %v3198_v3, 0.0  ;;  %v6899_v54 = vadd.f32 %v13871_v58, %v13870_v20  ;;  %vm13874_vm15 = vmmov %vm13869_vm9 }
 0x37a   : > { %6493 = vmatmul.mubr.msk.bf16.gmra.mxu0 %vm11451_vm4, %v11399_v41  ;;  %v3160_v26 = vmul.f32 %v11424_v39, %v3113_v62  ;;  %v3440_v18 = vsel %vm13869_vm9, %v3437_v50, %v3439_v22  ;;  %v7010_v13 = vpop.f32.mrf.mxu0 }
 0x37b   : > { %4786 = vmatprep.mubr.bf16.mxu0 %v11417_v17  ;;  %6574 = vmatmul.mubr.msk.bf16.gmra.mxu1 %vm9968_vm10, %v11381_v6  ;;  %v3319_v0 = vsel %vm13872_vm14, %v3316_v46, %v3318_v12  ;;  %v3118_v2 = vadd.f32 %v11392_v27, %v2957_v37  ;;  %v7011_v62 = vadd.f32 %v7010_v13, %v7009_v63  ;;  %v3441_v17 = vrot.slane %v3230_v14, 1  ;;  %v13875_v27 = vld [vmem:[#allocation35_spill] sm:$0xff] }
 0x37c   : > { %6577 = vmatprep.mubr.msk.bf16.mxu1 %vm11451_vm4, %v11439_v29  ;;  %v11476_v16 = vpack.c.bf16 %v3319_v0, %v3317_v35  ;;  %v3199_v23 = vadd.f32 %v7737_v25, %v3160_v26  ;;  %v3320_v3 = vrot.slane %v3230_v14, 7  ;;  %vm13876_vm9 = vnez %v13875_v27 }
 0x37d   : > { %v3161_v50 = vmul.f32 %v11424_v39, %v3118_v2  ;;  %v2960_v41 = vadd.f32 %v7011_v62, %v6899_v54  ;;  %v3442_v58 = vsel %vm13874_vm15, %v3439_v22, %v3441_v17 }
 0x37e   : > { %v3231_v47 = vmax.f32 %v3199_v23, 0.0  ;;  %v3321_v20 = vsel %vm13873_vm1, %v3318_v12, %v3320_v3  ;;  %v11486_v63 = vpack.c.bf16 %v3442_v58, %v3440_v18  ;;  %v13878_v12 = vld [vmem:[#allocation65_spill] sm:$0xff]  ;;  %vm13880_vm1 = vmmov %vm13874_vm15  ;;  %vm13881_vm15 = vcmask 1040384   ;;  %v13889_v23 = vld [vmem:[#allocation106_spill] sm:$0xff] }
 0x37f   : > { %v3200_v56 = vadd.f32 %v7737_v25, %v3161_v50  ;;  %v3121_v55 = vadd.f32 %v7136_v51, %v2960_v41  ;;  %vm13879_vm14 = vnez %v13878_v12  ;;  %vm13882_vm4 = vmmov %vm13881_vm15  ;;  %v13892_v58 = vld [vmem:[#allocation133_spill] sm:$0xff] }
 0x380   : > { %v3443_v6 = vrot.slane %v3231_v47, 1  ;;  %v11481_v46 = vpack.c.bf16 %v3231_v47, %v3230_v14  ;;  %v3322_v35 = vrot.slane %v3231_v47, 7  ;;  %13877 = vst [vmem:[#allocation28_spill] sm:$0xff] %v11486_v63  ;;  %vm13883_vm10 = vmmov %vm13880_vm1 }
 0x381   : > { %v3232_v26 = vmax.f32 %v3200_v56, 0.0  ;;  %v3162_v37 = vmul.f32 %v11424_v39, %v3121_v55 }
 0x382   : > { %6496 = vmatmul.mubr.msk.bf16.gmra.mxu0 %vm13876_vm9, %v11439_v29  ;;  %v3444_v41 = vsel %vm13880_vm1, %v3441_v17, %v3443_v6  ;;  %v3323_v51 = vsel %vm13881_vm15, %v3320_v3, %v3322_v35 }
 0x383   : > { %4796 = vmatprep.mubr.bf16.mxu0 %v11458_v11  ;;  %6580 = vmatmul.mubr.msk.bf16.gmra.mxu1 %vm13879_vm14, %v11419_v45  ;;  %v3445_v22 = vrot.slane %v3232_v26, 1  ;;  %v3201_v47 = vadd.f32 %v7737_v25, %v3162_v37  ;;  %v11498_v14 = vpack.c.bf16 %v3323_v51, %v3321_v20  ;;  %v3510_v56 = vrot.slane %v3232_v26, 7  ;;  %v13884_v25 = vld [vmem:[#allocation124_spill] sm:$0xff] }
 0x384   : > { %6583 = vmatprep.mubr.msk.bf16.mxu1 %vm13876_vm9, %v11476_v16  ;;  %vm13885_vm1 = vnez %v13884_v25  ;;  %vm13893_vm9 = vnez %v13892_v58  ;;  %v7679_v37 = vld [vmem:[%s12635_s8 + $0x464] ss:$8 sps:$4 sm:$0xff]  }
 0x385   : > { %v11500_v39 = vmax.f32 %v3201_v47, 0.0  ;;  %v3511_v55 = vsel %vm13882_vm4, %v3322_v35, %v3510_v56  ;;  %v3446_v18 = vsel %vm13883_vm10, %v3443_v6, %v3445_v22  ;;  %vm13887_vm10 = vmmov %vm13882_vm4  ;;  %vm13888_vm4 = vcmask 1046528   ;;  %v13894_v35 = vld [vmem:[#allocation112_spill] sm:$0xff]  ;;  %v7680_v47 = vld [vmem:[%s12635_s8 + $0x450] ss:$8 sps:$4 sm:$0xff]  }
 0x386   : > { %v11504_v54 = vpack.c.bf16 %v3446_v18, %v3444_v41  ;;  %vm13890_vm15 = vmmov %vm13888_vm4  ;;  %v13896_v41 = vld [vmem:[#allocation129_spill] sm:$0xff] }
 0x387   : > { %v13046_v17 = vrot.slane %v11500_v39, 7  ;;  %v3548_v13 = vrot.slane %v11500_v39, 1  ;;  %v11509_v0 = vpack.c.bf16 %v11500_v39, %v3232_v26  ;;  %v7668_v26 = vld [vmem:[%s12635_s8 + $0x470] ss:$8 sps:$4 sm:$0xff]  }
 0x388   : > { %v7686_v18 = vld [vmem:[%s12635_s8 + $0x430] ss:$8 sps:$4 sm:$0xff]  }
 0x389   : > { %v3513_v6 = vsel %vm13887_vm10, %v3510_v56, %v13046_v17  ;;  %v3549_v62 = vsel %vm13888_vm4, %v3445_v22, %v3548_v13  ;;  %v3550_v3 = vsel %vm13890_vm15, %v3548_v13, %v13889_v23  ;;  %vm13895_vm10 = vnez %v13894_v35  ;;  %v7682_v22 = vld [vmem:[%s12635_s8 + $0x454] ss:$8 sps:$4 sm:$0xff]   ;;  %v7685_v56 = vld [vmem:[%s12635_s8 + $0x444] ss:$8 sps:$4 sm:$0xff]   ;;  %v7692_v13 = vld [vmem:[%s12635_s8 + $0x410] ss:$8 sps:$4 sm:$0xff]  }
 0x38a   : > { %6499 = vmatmul.mubr.msk.bf16.gmra.mxu0 %vm13885_vm1, %v11476_v16  ;;  %v11527_v50 = vpack.c.bf16 %v3513_v6, %v3511_v55  ;;  %v11529_v20 = vpack.c.bf16 %v3550_v3, %v3549_v62  ;;  %vm13898_vm4 = vnez %v13710_v38  ;;  %vm13899_vm15 = vnez %v13727_v19  ;;  %v7683_v55 = vld [vmem:[%s12635_s8 + $0x440] ss:$8 sps:$4 sm:$0xff]   ;;  %v13913_v62 = vld [vmem:[#allocation22_spill] sm:$0xff] }
 0x38b   : > { %4806 = vmatprep.mubr.bf16.mxu0 %v11481_v46  ;;  %6586 = vmatmul.mubr.msk.bf16.gmra.mxu1 %vm10071_vm5, %v11460_v9  ;;  %v7695_v6 = vld [vmem:[%s12635_s8 + $0x400] ss:$8 sps:$4 sm:$0xff]   ;;  %v13935_v17 = vld [vmem:[#allocation30_spill] sm:$0xff] }
 0x38c   : > { %6589 = vmatprep.mubr.msk.bf16.mxu1 %vm13885_vm1, %v11498_v14  ;;  %13891 = vst [vmem:[#allocation101_spill] sm:$0xff] %v11529_v20 }
 0x392   : > { %6502 = vmatmul.mubr.msk.bf16.gmra.mxu0 %vm13893_vm9, %v11498_v14 }
 0x393   : > { %6592 = vmatmul.mubr.msk.bf16.gmra.mxu1 %vm13895_vm10, %v11486_v63  ;;  %6601 = vmatprep.mubr.msk.bf16.mxu0 %vm10911_vm6, %v10902_v15  ;;  %v7677_v15 = vld [vmem:[%s12635_s8 + $0x460] ss:$8 sps:$4 sm:$0xff]  }
 0x394   : > { %6595 = vmatprep.mubr.msk.bf16.mxu1 %vm13893_vm9, %v11527_v50 }
 0x39a   : > { %5043 = vmatmul.mubr.bf16.vlgmr.msra.gmra.mxu0 %v13896_v41 }
 0x39b   : > { %5397 = vmatpush1.bf16.msra.mxu0 %v7668_v26  ;;  %6598 = vmatmul.mubr.msk.bf16.gmra.mxu1 %vm10177_vm8, %v11504_v54  ;;  %v13918_v26 = vld [vmem:[#allocation12_spill] sm:$0xff] }
 0x39c   : > { %6604 = vmatprep.mubr.msk.bf16.mxu0 %vm13898_vm4, %v10936_v59  ;;  %5235 = vmatprep.mubr.bf16.mxu1 %v10872_v49  ;;  %vm13900_vm4 = vnez %v13657_v28  ;;  %v7691_v28 = vld [vmem:[%s12635_s8 + $0x424] ss:$8 sps:$4 sm:$0xff]  }
 0x39d   : > { %5398 = vmatprep.subr.bf16.mxu0 %v7679_v37 }
 0x39f   : > { %5399 = vmatpush1.bf16.msra.mxu0 %v7677_v15  ;;  %v13920_v15 = vld [vmem:[#allocation81_spill] sm:$0xff] }
 0x3a0   : > { %5400 = vmatprep.subr.bf16.mxu0 %v7682_v22  ;;  %v13921_v22 = vld [vmem:[#allocation13_spill] sm:$0xff] }
 0x3a2   : > { %5053 = vmatmul.mubr.bf16.gmra.mxu0 %v10872_v49  ;;  %v7688_v49 = vld [vmem:[%s12635_s8 + $0x434] ss:$8 sps:$4 sm:$0xff]  }
 0x3a3   : > { %6607 = vmatprep.mubr.msk.bf16.mxu0 %vm13899_vm15, %v10980_v7  ;;  %6649 = vmatmul.mubr.msk.bf16.vlgmr.msra.gmra.mxu1 %vm13900_vm4, %v10888_v10  ;;  %vm13901_vm4 = vnez %v13741_v8  ;;  %vm13902_vm15 = vnez %v13686_v1  ;;  %v7689_v10 = vld [vmem:[%s12635_s8 + $0x420] ss:$8 sps:$4 sm:$0xff]   ;;  %v7697_v1 = vld [vmem:[%s12635_s8 + $0x404] ss:$8 sps:$4 sm:$0xff]  }
 0x3a4   : > { %5245 = vmatprep.mubr.bf16.mxu1 %v10934_v4  ;;  %5401 = vmatpush1.bf16.msra.mxu0 %v7680_v47 }
 0x3a5   : > { %5402 = vmatprep.subr.bf16.mxu0 %v7685_v56  ;;  %v13923_v56 = vld [vmem:[#allocation51_spill] sm:$0xff] }
 0x3a8   : > { %5403 = vmatpush1.bf16.msra.mxu0 %v7683_v55 }
 0x3a9   : > { %5404 = vmatprep.subr.bf16.mxu0 %v7688_v49 }
 0x3aa   : > { %5063 = vmatmul.mubr.bf16.gmra.mxu0 %v10934_v4  ;;  %v7694_v4 = vld [vmem:[%s12635_s8 + $0x414] ss:$8 sps:$4 sm:$0xff]  }
 0x3ab   : > { %6610 = vmatprep.mubr.msk.bf16.mxu0 %vm13901_vm4, %v11039_v5  ;;  %6652 = vmatmul.mubr.msk.bf16.gmra.mxu1 %vm13902_vm15, %v10946_v33  ;;  %v13903_v33 = vld [vmem:[#allocation17_spill] sm:$0xff] }
 0x3ac   : > { %5255 = vmatprep.mubr.bf16.mxu1 %v10978_v40  ;;  %5405 = vmatpush1.bf16.msra.mxu0 %v7686_v18  ;;  %vm13904_vm15 = vnez %v13903_v33  ;;  %v13929_v33 = vld [vmem:[#allocation62_spill] sm:$0xff] }
 0x3ad   : > { %5406 = vmatprep.subr.bf16.mxu0 %v7691_v28  ;;  %v13924_v28 = vld [vmem:[#allocation43_spill] sm:$0xff] }
 0x3b0   : > { %5407 = vmatpush1.bf16.msra.mxu0 %v7689_v10 }
 0x3b1   : > { %5408 = vmatprep.subr.bf16.mxu0 %v7694_v4  ;;  %v13926_v4 = vld [vmem:[#allocation29_spill] sm:$0xff] }
 0x3b2   : > { %5073 = vmatmul.mubr.bf16.gmra.mxu0 %v10978_v40  ;;  %v13905_v40 = vld [vmem:[#allocation16_spill] sm:$0xff] }
 0x3b3   : > { %6613 = vmatprep.mubr.msk.bf16.mxu0 %vm11146_vm2, %v11096_v52  ;;  %6655 = vmatmul.mubr.msk.bf16.gmra.mxu1 %vm13904_vm15, %v11001_v36  ;;  %vm13906_vm2 = vnez %v13905_v40  ;;  %vm13907_vm15 = vnez %v13737_v32  ;;  %v13915_v32 = vld [vmem:[#allocation126_spill] sm:$0xff] }
 0x3b4   : > { %5265 = vmatprep.mubr.bf16.mxu1 %v11037_v44  ;;  %5409 = vmatpush1.bf16.msra.mxu0 %v7692_v13  ;;  %v13927_v13 = vld [vmem:[#allocation80_spill] sm:$0xff] }
 0x3b5   : > { %5410 = vmatprep.subr.bf16.mxu0 %v7697_v1 }
 0x3b8   : > { %5411 = vmatpush1.bf16.msra.mxu0 %v7695_v6 }
 0x3ba   : > { %5083 = vmatmul.mubr.bf16.gmra.mxu0 %v11037_v44  ;;  %v13909_v44 = vld [vmem:[#allocation130_spill] sm:$0xff] }
 0x3bb   : > { %6616 = vmatprep.mubr.msk.bf16.mxu0 %vm9148_vm3, %v11155_v57  ;;  %6658 = vmatmul.mubr.msk.bf16.gmra.mxu1 %vm13906_vm2, %v11059_v21  ;;  %v13910_v21 = vld [vmem:[#allocation121_spill] sm:$0xff] }
 0x3bc   : > { %5275 = vmatprep.mubr.bf16.mxu1 %v11094_v60  ;;  %vm13911_vm2 = vnez %v13910_v21 }
 0x3c2   : > { %5093 = vmatmul.mubr.bf16.gmra.mxu0 %v11094_v60  ;;  %v13912_v60 = vld [vmem:[#allocation76_spill] sm:$0xff] }
 0x3c3   : > { %6619 = vmatprep.mubr.msk.bf16.mxu0 %vm9355_vm11, %v11204_v43  ;;  %6661 = vmatmul.mubr.msk.bf16.gmra.mxu1 %vm13907_vm15, %v11117_v61  ;;  %v13916_v61 = vld [vmem:[#allocation38_spill] sm:$0xff] }
 0x3c4   : > { %5285 = vmatprep.mubr.bf16.mxu1 %v11153_v53  ;;  %vm13917_vm15 = vnez %v13916_v61 }
 0x3ca   : > { %5103 = vmatmul.mubr.bf16.gmra.mxu0 %v11153_v53  ;;  %v11651_v53 = vpop.f32.mrf.mxu0 }
 0x3cb   : > { %6622 = vmatprep.mubr.msk.bf16.mxu0 %vm9579_vm0, %v11255_v42  ;;  %6664 = vmatmul.mubr.msk.bf16.gmra.mxu1 %vm13911_vm2, %v13909_v44  ;;  %vm13922_vm2 = vnez %v13921_v22  ;;  %v13932_v22 = vld [vmem:[#allocation83_spill] sm:$0xff] }
 0x3cc   : > { %5295 = vmatprep.mubr.bf16.mxu1 %v13912_v60  ;;  %v11654_v37 = vpop.f32.mrf.mxu0 }
 0x3ce   : > { %v11663_v47 = vpop.f32.mrf.mxu0 }
 0x3d0   : > { %v4664_v55 = vpop.f32.mrf.mxu0 }
 0x3d2   : > { %5113 = vmatmul.mubr.bf16.gmra.mxu0 %v13912_v60 }
 0x3d3   : > { %6625 = vmatprep.mubr.msk.bf16.mxu0 %vm9761_vm13, %v13913_v62  ;;  %6667 = vmatmul.mubr.msk.bf16.gmra.mxu1 %vm13917_vm15, %v13915_v32  ;;  %vm13928_vm15 = vnez %v13927_v13 }
 0x3d4   : > { %5305 = vmatprep.mubr.bf16.mxu1 %v13918_v26 }
 0x3da   : > { %5123 = vmatmul.mubr.bf16.gmra.mxu0 %v13918_v26 }
 0x3db   : > { %6628 = vmatprep.mubr.msk.bf16.mxu0 %vm9844_vm12, %v11346_v34  ;;  %6670 = vmatmul.mubr.msk.bf16.gmra.mxu1 %vm13922_vm2, %v13920_v15  ;;  %v13930_v15 = vld [vmem:[#allocation114_spill] sm:$0xff] }
 0x3dc   : > { %5315 = vmatprep.mubr.bf16.mxu1 %v13923_v56  ;;  %vm13931_vm2 = vnez %v13930_v15 }
 0x3df   : > { %v4668_v49 = vpop.f32.mrf.mxu0 }
 0x3e0   : > { %v11667_v18 = vpop.f32.mrf.mxu1 }
 0x3e1   : > { %v4670_v1 = vpop.f32.mrf.mxu0 }
 0x3e2   : > { %5133 = vmatmul.mubr.bf16.gmra.mxu0 %v13923_v56  ;;  %v11676_v6 = vpop.f32.mrf.mxu1  ;;  %v13933_v56 = vld [vmem:[#allocation63_spill] sm:$0xff] }
 0x3e3   : > { %6631 = vmatprep.mubr.msk.bf16.mxu0 %vm9909_vm7, %v13924_v28  ;;  %6673 = vmatmul.mubr.msk.bf16.gmra.mxu1 %vm13928_vm15, %v13926_v4  ;;  %v4672_v40 = vpop.f32.mrf.mxu0  ;;  %vm13934_vm15 = vnez %v13933_v56 }
 0x3e4   : > { %5325 = vmatprep.mubr.bf16.mxu1 %v13929_v33  ;;  %v11678_v44 = vpop.f32.mrf.mxu1 }
 0x3e5   : > { %v4674_v21 = vpop.f32.mrf.mxu0 }
 0x3e6   : > { %v4857_v60 = vpop.f32.mrf.mxu1 }
 0x3e7   : > { %v11680_v32 = vadd.f32 %v4857_v60, %v4664_v55  ;;  %v4678_v61 = vpop.f32.mrf.mxu0 }
 0x3e9   : > { %v4861_v26 = vpop.f32.mrf.mxu1  ;;  %v4680_v13 = vpop.f32.mrf.mxu0 }
 0x3ea   : > { %5143 = vmatmul.mubr.bf16.gmra.mxu0 %v13929_v33  ;;  %v11689_v4 = vadd.f32 %v4861_v26, %v4668_v49  ;;  %v13938_v49 = vld [vmem:[#allocation116_spill] sm:$0xff]  ;;  %v13939_v26 = vld [vmem:[#allocation82_spill] sm:$0xff] }
 0x3eb   : > { %6634 = vmatprep.mubr.msk.bf16.mxu0 %vm13931_vm2, %v11419_v45  ;;  %6676 = vmatmul.mubr.msk.bf16.gmra.mxu1 %vm13934_vm15, %v13932_v22  ;;  %v4863_v23 = vpop.f32.mrf.mxu1  ;;  %v4682_v60 = vpop.f32.mrf.mxu0  ;;  %vm13940_vm15 = vnez %v13939_v26 }
 0x3ec   : > { %5335 = vmatprep.mubr.bf16.mxu1 %v13935_v17  ;;  %v11692_v55 = vadd.f32 %v4863_v23, %v4670_v1  ;;  %v13941_v1 = vld [vmem:[#allocation46_spill] sm:$0xff] }
 0x3ed   : > { %v4865_v10 = vpop.f32.mrf.mxu1  ;;  %v4684_v41 = vpop.f32.mrf.mxu0 }
 0x3ee   : > { %v11694_v33 = vadd.f32 %v4865_v10, %v4672_v40 }
 0x3ef   : > { %v4867_v28 = vpop.f32.mrf.mxu1 }
 0x3f0   : > { %13936 = vst [vmem:[#allocation33_spill] sm:$0xff] %v11694_v33  ;;  %v11696_v15 = vadd.f32 %v4867_v28, %v4674_v21  ;;  %v4688_v45 = vpop.f32.mrf.mxu0 }
 0x3f1   : > { %v4871_v22 = vpop.f32.mrf.mxu1 }
 0x3f2   : > { %13937 = vst [vmem:[#allocation42_spill] sm:$0xff] %v11696_v15  ;;  %5153 = vmatmul.mubr.bf16.gmra.mxu0 %v13935_v17  ;;  %v11705_v23 = vadd.f32 %v4871_v22, %v4678_v61  ;;  %v4690_v10 = vpop.f32.mrf.mxu0  ;;  %v13942_v61 = vld [vmem:[#allocation93_spill] sm:$0xff] }
 0x3f3   : > { %6637 = vmatprep.mubr.msk.bf16.mxu0 %vm13879_vm14, %v11460_v9  ;;  %6679 = vmatmul.mubr.msk.bf16.gmra.mxu1 %vm13940_vm15, %v13938_v49  ;;  %v4873_v40 = vpop.f32.mrf.mxu1  ;;  %vm13943_vm15 = vnez %v13942_v61 }
 0x3f4   : > { %5345 = vmatprep.mubr.bf16.mxu1 %v13941_v1  ;;  %v11708_v28 = vadd.f32 %v4873_v40, %v4680_v13  ;;  %v4692_v21 = vpop.f32.mrf.mxu0 }
 0x3f5   : > { %v4875_v56 = vpop.f32.mrf.mxu1 }
 0x3f6   : > { %v11710_v17 = vadd.f32 %v4875_v56, %v4682_v60  ;;  %v4694_v15 = vpop.f32.mrf.mxu0 }
 0x3f7   : > { %v4877_v33 = vpop.f32.mrf.mxu1 }
 0x3f8   : > { %v11712_v12 = vadd.f32 %v4877_v33, %v4684_v41  ;;  %v4698_v9 = vpop.f32.mrf.mxu0 }
 0x3fa   : > { %5163 = vmatmul.mubr.bf16.gmra.mxu0 %v13941_v1  ;;  %v4881_v49 = vpop.f32.mrf.mxu1  ;;  %v4700_v60 = vpop.f32.mrf.mxu0 }
 0x3fb   : > { %6640 = vmatprep.mubr.msk.bf16.mxu0 %vm10071_vm5, %v11486_v63  ;;  %6682 = vmatmul.mubr.msk.bf16.gmra.mxu1 %vm13943_vm15, %v11439_v29  ;;  %v11721_v13 = vadd.f32 %v4881_v49, %v4688_v45  ;;  %v13944_v29 = vld [vmem:[#allocation105_spill] sm:$0xff] }
 0x3fc   : > { %5355 = vmatprep.mubr.bf16.mxu1 %v11458_v11  ;;  %v4883_v22 = vpop.f32.mrf.mxu1  ;;  %v4702_v33 = vpop.f32.mrf.mxu0  ;;  %vm13945_vm15 = vnez %v13944_v29 }
 0x3fd   : > { %v11724_v41 = vadd.f32 %v4883_v22, %v4690_v10 }
 0x3fe   : > { %v4885_v26 = vpop.f32.mrf.mxu1  ;;  %v11728_v40 = vpop.f32.mrf.mxu0 }
 0x3ff   : > { %v11726_v1 = vadd.f32 %v4885_v26, %v4692_v21 }
 0x400   : > { %v4887_v56 = vpop.f32.mrf.mxu1  ;;  %v4708_v63 = vpop.f32.mrf.mxu0 }
 0x401   : > { %v11730_v2 = vadd.f32 %v4887_v56, %v4694_v15 }
 0x402   : > { %5173 = vmatmul.mubr.bf16.gmra.mxu0 %v11458_v11  ;;  %v4710_v21 = vpop.f32.mrf.mxu0 }
 0x403   : > { %v4891_v45 = vpop.f32.mrf.mxu1  ;;  %6643 = vmatprep.mubr.msk.bf16.mxu0 %vm13895_vm10, %v11504_v54  ;;  %6685 = vmatmul.mubr.msk.bf16.gmra.mxu1 %vm13945_vm15, %v11476_v16  ;;  %vm13947_vm15 = vnez %v13875_v27 }
 0x404   : > { %v11739_v10 = vadd.f32 %v4891_v45, %v4698_v9  ;;  %5365 = vmatprep.mubr.bf16.mxu1 %v11481_v46  ;;  %v4712_v61 = vpop.f32.mrf.mxu0 }
 0x405   : > { %v4893_v49 = vpop.f32.mrf.mxu1 }
 0x406   : > { %v11742_v15 = vadd.f32 %v4893_v49, %v4700_v60  ;;  %v11746_v26 = vpop.f32.mrf.mxu0 }
 0x407   : > { %v4895_v22 = vpop.f32.mrf.mxu1  ;;  %13946 = vst [vmem:[#allocation18_spill] sm:$0xff] %v11746_v26 }
 0x408   : > { %v11744_v11 = vadd.f32 %v4895_v22, %v4702_v33 }
 0x409   : > { %v11748_v56 = vpop.f32.mrf.mxu1 }
 0x40a   : > { %v4718_v35 = vpop.f32.mrf.mxu0  ;;  %5183 = vmatmul.mubr.bf16.gmra.mxu0 %v11481_v46 }
 0x40b   : > { %v4901_v16 = vpop.f32.mrf.mxu1  ;;  %6646 = vmatprep.mubr.msk.bf16.mxu0 %vm10177_vm8, %v11529_v20  ;;  %6688 = vmatmul.mubr.msk.bf16.gmra.mxu1 %vm13947_vm15, %v11498_v14  ;;  %v13954_v20 = vld [vmem:[#allocation19_spill] sm:$0xff]  ;;  %vm13956_vm15 = vcmask 1040384  }
 0x40c   : > { %v11757_v9 = vadd.f32 %v4901_v16, %v4708_v63  ;;  %v4720_v60 = vpop.f32.mrf.mxu0  ;;  %5375 = vmatprep.mubr.bf16.mxu1 %v11509_v0  ;;  %v13951_v63 = vmov 0   ;;  %v13953_v16 = vmov 0.0|0.0  }
 0x40d   : > { %v4903_v33 = vpop.f32.mrf.mxu1 }
 0x40e   : > { %v11760_v45 = vadd.f32 %v4903_v33, %v4710_v21  ;;  %v4722_v29 = vpop.f32.mrf.mxu0 }
 0x40f   : > { %v4905_v49 = vpop.f32.mrf.mxu1 }
 0x410   : > { %13948 = vst [vmem:[#allocation117_spill] sm:$0xff] %v11760_v45  ;;  %v11762_v46 = vadd.f32 %v4905_v49, %v4712_v61  ;;  %v4724_v22 = vpop.f32.mrf.mxu0 }
 0x411   : > { %v11764_v26 = vpop.f32.mrf.mxu1 }
 0x412   : > { %13949 = vst [vmem:[#allocation77_spill] sm:$0xff] %v11762_v46  ;;  %13950 = vst [vmem:[#allocation128_spill] sm:$0xff] %v11764_v26  ;;  %v4728_v51 = vpop.f32.mrf.mxu0  ;;  %5193 = vmatmul.mubr.bf16.gmra.mxu0 %v11509_v0  ;;  %v13955_v46 = vrot.slane %v11500_v39, 7 }
 0x413   : > { %v4911_v27 = vpop.f32.mrf.mxu1  ;;  %6691 = vmatmul.mubr.msk.bf16.gmra.mxu1 %vm13885_vm1, %v11527_v50  ;;  %5428 = vmatprep.mubr.bf16.mxu0 %v13951_v63  ;;  %vm13966_vm1 = vnez %v13756_v24 }
 0x414   : > { %v11771_v14 = vadd.f32 %v4911_v27, %v4718_v35  ;;  %v4730_v21 = vpop.f32.mrf.mxu0  ;;  %5385 = vmatprep.mubr.bf16.mxu1 %v13953_v16  ;;  %v3585_v0 = vsel %vm13956_vm15, %v13955_v46, %v13954_v20 }
 0x415   : > { %v4913_v61 = vpop.f32.mrf.mxu1  ;;  %v6693_v35 = vpack.c.bf16 %v13954_v20, %v3585_v0 }
 0x416   : > { %13952 = vst [vmem:[#allocation39_spill] sm:$0xff] %v11771_v14  ;;  %v11774_v33 = vadd.f32 %v4913_v61, %v4720_v60  ;;  %v4732_v49 = vpop.f32.mrf.mxu0 }
 0x417   : > { %v4915_v26 = vpop.f32.mrf.mxu1 }
 0x418   : > { %v11780_v45 = vadd.f32 %v4915_v26, %v4722_v29  ;;  %v4734_v25 = vpop.f32.mrf.mxu0 }
 0x419   : > { %v4917_v50 = vpop.f32.mrf.mxu1 }
 0x41a   : > { %v11783_v27 = vadd.f32 %v4917_v50, %v4724_v22  ;;  %v4738_v14 = vpop.f32.mrf.mxu0  ;;  %6697 = vmatmul.mubr.msk.bf16.vlgmr.msra.gmra.mxu0 %vm10911_vm6, %v10936_v59  ;;  %vm13958_vm6 = vnez %v13710_v38 }
 0x41b   : > { %v4921_v60 = vpop.f32.mrf.mxu1  ;;  %6694 = vmatmul.mubr.msk.bf16.gmra.mxu1 %vm13893_vm9, %v6693_v35  ;;  %5438 = vmatprep.mubr.bf16.mxu0 %v13951_v63  ;;  %vm13961_vm9 = vnez %v13727_v19 }
 0x41c   : > { %v11791_v39 = vadd.f32 %v4921_v60, %v4728_v51  ;;  %v4740_v26 = vpop.f32.mrf.mxu0 }
 0x41d   : > { %v4923_v29 = vpop.f32.mrf.mxu1 }
 0x41e   : > { %v11793_v46 = vadd.f32 %v4923_v29, %v4730_v21  ;;  %v4742_v20 = vpop.f32.mrf.mxu0 }
 0x41f   : > { %v4925_v22 = vpop.f32.mrf.mxu1 }
 0x420   : > { %v11795_v16 = vadd.f32 %v4925_v22, %v4732_v49  ;;  %v4744_v61 = vpop.f32.mrf.mxu0 }
 0x421   : > { %v4927_v0 = vpop.f32.mrf.mxu1 }
 0x422   : > { %v11797_v30 = vadd.f32 %v4927_v0, %v4734_v25  ;;  %v4748_v59 = vpop.f32.mrf.mxu0  ;;  %6700 = vmatmul.mubr.msk.bf16.gmra.mxu0 %vm13958_vm6, %v10980_v7 }
 0x423   : > { %v4931_v58 = vpop.f32.mrf.mxu1  ;;  %5448 = vmatprep.mubr.bf16.mxu0 %v13951_v63 }
 0x424   : > { %13957 = vst [vmem:[#allocation41_spill] sm:$0xff] %v11797_v30  ;;  %v11803_v51 = vadd.f32 %v4931_v58, %v4738_v14  ;;  %v4750_v21 = vpop.f32.mrf.mxu0 }
 0x425   : > { %v4933_v50 = vpop.f32.mrf.mxu1 }
 0x426   : > { %v11805_v35 = vadd.f32 %v4933_v50, %v4740_v26  ;;  %v4752_v49 = vpop.f32.mrf.mxu0 }
 0x427   : > { %v4935_v60 = vpop.f32.mrf.mxu1 }
 0x428   : > { %v11807_v29 = vadd.f32 %v4935_v60, %v4742_v20  ;;  %v4754_v25 = vpop.f32.mrf.mxu0 }
 0x429   : > { %v4937_v22 = vpop.f32.mrf.mxu1 }
 0x42a   : > { %13959 = vst [vmem:[#allocation50_spill] sm:$0xff] %v11807_v29  ;;  %v11809_v0 = vadd.f32 %v4937_v22, %v4744_v61  ;;  %v4758_v30 = vpop.f32.mrf.mxu0  ;;  %6703 = vmatmul.mubr.msk.bf16.gmra.mxu0 %vm13961_vm9, %v11039_v5 }
 0x42b   : > { %v4941_v38 = vpop.f32.mrf.mxu1  ;;  %5458 = vmatprep.mubr.bf16.mxu0 %v13951_v63 }
 0x42c   : > { %13960 = vst [vmem:[#allocation61_spill] sm:$0xff] %v11809_v0  ;;  %v11815_v7 = vadd.f32 %v4941_v38, %v4748_v59  ;;  %v4760_v14 = vpop.f32.mrf.mxu0 }
 0x42d   : > { %v4943_v26 = vpop.f32.mrf.mxu1 }
 0x42e   : > { %v11817_v58 = vadd.f32 %v4943_v26, %v4750_v21  ;;  %v4762_v20 = vpop.f32.mrf.mxu0 }
 0x42f   : > { %v4945_v50 = vpop.f32.mrf.mxu1 }
 0x430   : > { %v11819_v60 = vadd.f32 %v4945_v50, %v4752_v49  ;;  %v4764_v61 = vpop.f32.mrf.mxu0 }
 0x431   : > { %v4947_v22 = vpop.f32.mrf.mxu1 }
 0x432   : > { %13962 = vst [vmem:[#allocation131_spill] sm:$0xff] %v11819_v60  ;;  %v11821_v0 = vadd.f32 %v4947_v22, %v4754_v25  ;;  %v4768_v29 = vpop.f32.mrf.mxu0  ;;  %6706 = vmatmul.mubr.msk.bf16.gmra.mxu0 %vm13901_vm4, %v11096_v52 }
 0x433   : > { %v4951_v19 = vpop.f32.mrf.mxu1  ;;  %5468 = vmatprep.mubr.bf16.mxu0 %v13951_v63 }
 0x434   : > { %13963 = vst [vmem:[#allocation52_spill] sm:$0xff] %v11821_v0  ;;  %v11827_v5 = vadd.f32 %v4951_v19, %v4758_v30  ;;  %v4770_v59 = vpop.f32.mrf.mxu0 }
 0x435   : > { %v4953_v21 = vpop.f32.mrf.mxu1 }
 0x436   : > { %v11829_v38 = vadd.f32 %v4953_v21, %v4760_v14  ;;  %v4772_v49 = vpop.f32.mrf.mxu0 }
 0x437   : > { %v4955_v26 = vpop.f32.mrf.mxu1 }
 0x438   : > { %v11831_v50 = vadd.f32 %v4955_v26, %v4762_v20  ;;  %v4774_v25 = vpop.f32.mrf.mxu0 }
 0x439   : > { %v4957_v22 = vpop.f32.mrf.mxu1 }
 0x43a   : > { %13964 = vst [vmem:[#allocation49_spill] sm:$0xff] %v11831_v50  ;;  %v11833_v0 = vadd.f32 %v4957_v22, %v4764_v61  ;;  %v4778_v60 = vpop.f32.mrf.mxu0  ;;  %6709 = vmatmul.mubr.msk.bf16.gmra.mxu0 %vm13966_vm1, %v11155_v57 }
 0x43b   : > { %v4961_v8 = vpop.f32.mrf.mxu1  ;;  %5478 = vmatprep.mubr.bf16.mxu0 %v13951_v63 }
 0x43c   : > { %13965 = vst [vmem:[#allocation55_spill] sm:$0xff] %v11833_v0  ;;  %v11839_v52 = vadd.f32 %v4961_v8, %v4768_v29  ;;  %v4780_v30 = vpop.f32.mrf.mxu0 }
 0x43d   : > { %v4963_v14 = vpop.f32.mrf.mxu1 }
 0x43e   : > { %v11841_v19 = vadd.f32 %v4963_v14, %v4770_v59  ;;  %v4782_v20 = vpop.f32.mrf.mxu0 }
 0x43f   : > { %v4965_v21 = vpop.f32.mrf.mxu1 }
 0x440   : > { %v11843_v26 = vadd.f32 %v4965_v21, %v4772_v49  ;;  %v4784_v61 = vpop.f32.mrf.mxu0 }
 0x441   : > { %v4967_v22 = vpop.f32.mrf.mxu1 }
 0x442   : > { %13967 = vst [vmem:[#allocation60_spill] sm:$0xff] %v11843_v26  ;;  %v11845_v0 = vadd.f32 %v4967_v22, %v4774_v25  ;;  %v4788_v50 = vpop.f32.mrf.mxu0  ;;  %6712 = vmatmul.mubr.msk.bf16.gmra.mxu0 %vm9148_vm3, %v11204_v43  ;;  %vm7804_vm3 = vmmov 0  }
 0x443   : > { %v4971_v24 = vpop.f32.mrf.mxu1  ;;  %5488 = vmatprep.mubr.bf16.mxu0 %v13951_v63 }
 0x444   : > { %13968 = vst [vmem:[#allocation64_spill] sm:$0xff] %v11845_v0  ;;  %v11851_v57 = vadd.f32 %v4971_v24, %v4778_v60  ;;  %v4790_v29 = vpop.f32.mrf.mxu0 }
 0x445   : > { %v4973_v59 = vpop.f32.mrf.mxu1 }
 0x446   : > { %v11853_v8 = vadd.f32 %v4973_v59, %v4780_v30  ;;  %v4792_v49 = vpop.f32.mrf.mxu0 }
 0x447   : > { %v4975_v14 = vpop.f32.mrf.mxu1 }
 0x448   : > { %v11855_v21 = vadd.f32 %v4975_v14, %v4782_v20  ;;  %v4794_v25 = vpop.f32.mrf.mxu0 }
 0x449   : > { %v4977_v22 = vpop.f32.mrf.mxu1 }
 0x44a   : > { %13969 = vst [vmem:[#allocation66_spill] sm:$0xff] %v11855_v21  ;;  %v11857_v0 = vadd.f32 %v4977_v22, %v4784_v61  ;;  %v4798_v26 = vpop.f32.mrf.mxu0  ;;  %6715 = vmatmul.mubr.msk.bf16.gmra.mxu0 %vm9355_vm11, %v11255_v42 }
 0x44b   : > { %v4981_v43 = vpop.f32.mrf.mxu1  ;;  %5498 = vmatprep.mubr.bf16.mxu0 %v13951_v63 }
 0x44c   : > { %13970 = vst [vmem:[#allocation72_spill] sm:$0xff] %v11857_v0  ;;  %v11863_v48 = vadd.f32 %v4981_v43, %v4788_v50  ;;  %v4800_v60 = vpop.f32.mrf.mxu0 }
 0x44d   : > { %v4983_v30 = vpop.f32.mrf.mxu1 }
 0x44e   : > { %v11865_v24 = vadd.f32 %v4983_v30, %v4790_v29  ;;  %v4802_v20 = vpop.f32.mrf.mxu0 }
 0x44f   : > { %v4985_v59 = vpop.f32.mrf.mxu1 }
 0x450   : > { %v11867_v14 = vadd.f32 %v4985_v59, %v4792_v49  ;;  %v4804_v61 = vpop.f32.mrf.mxu0 }
 0x451   : > { %v4987_v22 = vpop.f32.mrf.mxu1 }
 0x452   : > { %v11869_v0 = vadd.f32 %v4987_v22, %v4794_v25  ;;  %v4808_v21 = vpop.f32.mrf.mxu0  ;;  %6718 = vmatmul.mubr.msk.bf16.gmra.mxu0 %vm9579_vm0, %v13913_v62  ;;  %v4852_v22 = vadd.f32 %v11667_v18, %v11651_v53  ;;  %v4856_v53 = vadd.f32 %v11678_v44, %v11663_v47 }
 0x453   : > { %v4991_v42 = vpop.f32.mrf.mxu1  ;;  %5508 = vmatprep.mubr.bf16.mxu0 %v13951_v63 }
 0x454   : > { %13971 = vst [vmem:[#allocation120_spill] sm:$0xff] %v11869_v0  ;;  %v11875_v31 = vadd.f32 %v4991_v42, %v4798_v26  ;;  %v4810_v50 = vpop.f32.mrf.mxu0  ;;  %v4854_v26 = vadd.f32 %v11676_v6, %v11654_v37 }
 0x455   : > { %v4993_v29 = vpop.f32.mrf.mxu1 }
 0x456   : > { %v11877_v43 = vadd.f32 %v4993_v29, %v4800_v60  ;;  %v4812_v49 = vpop.f32.mrf.mxu0 }
 0x457   : > { %v4995_v30 = vpop.f32.mrf.mxu1 }
 0x458   : > { %v11879_v59 = vadd.f32 %v4995_v30, %v4802_v20  ;;  %v4814_v25 = vpop.f32.mrf.mxu0 }
 0x459   : > { %v4997_v0 = vpop.f32.mrf.mxu1 }
 0x45a   : > { %v11883_v36 = vadd.f32 %v4997_v0, %v4804_v61  ;;  %v5044_v62 = vpop.f32.mrf.mxu0  ;;  %6721 = vmatmul.mubr.msk.bf16.gmra.mxu0 %vm9761_vm13, %v11346_v34 }
 0x45b   : > { %v5045_v60 = vadd.f32 %v5044_v62, %v4852_v22  ;;  %v5001_v42 = vpop.f32.mrf.mxu1  ;;  %5518 = vmatprep.mubr.bf16.mxu0 %v13951_v63 }
 0x45c   : > { %13972 = vst [vmem:[#allocation73_spill] sm:$0xff] %v11883_v36  ;;  %v11891_v20 = vadd.f32 %v5001_v42, %v4808_v21  ;;  %v5046_v29 = vpop.f32.mrf.mxu0  ;;  %v13973_v42 = vld [vmem:[#allocation43_spill] sm:$0xff] }
 0x45d   : > { %v5047_v18 = vadd.f32 %v5046_v29, %v4854_v26  ;;  %v5003_v0 = vpop.f32.mrf.mxu1 }
 0x45e   : > { %v11895_v61 = vadd.f32 %v5003_v0, %v4810_v50  ;;  %v5048_v30 = vpop.f32.mrf.mxu0  ;;  %v13975_v0 = vld [vmem:[#allocation33_spill] sm:$0xff] }
 0x45f   : > { %v11897_v3 = vadd.f32 %v5048_v30, %v4856_v53  ;;  %v5005_v34 = vpop.f32.mrf.mxu1 }
 0x460   : > { %v11899_v36 = vadd.f32 %v5005_v34, %v4812_v49  ;;  %v5050_v37 = vpop.f32.mrf.mxu0 }
 0x461   : > { %v11902_v6 = vadd.f32 %v5050_v37, %v11680_v32  ;;  %v5007_v21 = vpop.f32.mrf.mxu1  ;;  %v13976_v37 = vld [vmem:[#allocation42_spill] sm:$0xff] }
 0x462   : > { %v11904_v22 = vadd.f32 %v5007_v21, %v4814_v25  ;;  %v5054_v62 = vpop.f32.mrf.mxu0  ;;  %6724 = vmatmul.mubr.msk.bf16.gmra.mxu0 %vm9844_vm12, %v13973_v42  ;;  %v13977_v42 = vld [vmem:[#allocation92_spill] sm:$0xff] }
 0x463   : > { %v11910_v44 = vadd.f32 %v5054_v62, %v11689_v4  ;;  %v5237_v50 = vpop.f32.mrf.mxu1  ;;  %5528 = vmatprep.mubr.bf16.mxu0 %v13951_v63 }
 0x464   : > { %v11913_v49 = vadd.f32 %v5237_v50, %v5045_v60  ;;  %v5056_v26 = vpop.f32.mrf.mxu0 }
 0x465   : > { %v11916_v32 = vadd.f32 %v5056_v26, %v11692_v55  ;;  %v5239_v29 = vpop.f32.mrf.mxu1 }
 0x466   : > { %v11918_v25 = vadd.f32 %v5239_v29, %v5047_v18  ;;  %v5058_v53 = vpop.f32.mrf.mxu0 }
 0x467   : > { %v11921_v30 = vadd.f32 %v5058_v53, %v13975_v0  ;;  %v11923_v34 = vpop.f32.mrf.mxu1 }
 0x468   : > { %v5060_v4 = vpop.f32.mrf.mxu0 }
 0x469   : > { %v11926_v21 = vadd.f32 %v5060_v4, %v13976_v37  ;;  %v11928_v62 = vpop.f32.mrf.mxu1 }
 0x46a   : > { %v5064_v60 = vpop.f32.mrf.mxu0  ;;  %6727 = vmatmul.mubr.msk.bf16.gmra.mxu0 %vm9909_vm7, %v13977_v42  ;;  %v13982_v42 = vld [vmem:[#allocation25_spill] sm:$0xff] }
 0x46b   : > { %v11934_v55 = vadd.f32 %v5064_v60, %v11705_v23  ;;  %v11936_v18 = vpop.f32.mrf.mxu1  ;;  %5538 = vmatprep.mubr.bf16.mxu0 %v13951_v63 }
 0x46c   : > { %v5066_v50 = vpop.f32.mrf.mxu0 }
 0x46d   : > { %13979 = vst [vmem:[#allocation78_spill] sm:$0xff] %v11934_v55  ;;  %v11940_v26 = vadd.f32 %v5066_v50, %v11708_v28  ;;  %v11942_v29 = vpop.f32.mrf.mxu1 }
 0x46e   : > { %v5068_v53 = vpop.f32.mrf.mxu0 }
 0x46f   : > { %v11945_v0 = vadd.f32 %v5068_v53, %v11710_v17  ;;  %v11947_v4 = vpop.f32.mrf.mxu1 }
 0x470   : > { %v5070_v37 = vpop.f32.mrf.mxu0 }
 0x471   : > { %13980 = vst [vmem:[#allocation79_spill] sm:$0xff] %v11945_v0  ;;  %v11950_v23 = vadd.f32 %v5070_v37, %v11712_v12  ;;  %v11955_v55 = vpop.f32.mrf.mxu1 }
 0x472   : > { %v5074_v60 = vpop.f32.mrf.mxu0  ;;  %6730 = vmatmul.mubr.msk.bf16.gmra.mxu0 %vm13931_vm2, %v13982_v42 }
 0x473   : > { %13981 = vst [vmem:[#allocation88_spill] sm:$0xff] %v11950_v23  ;;  %v11958_v28 = vadd.f32 %v5074_v60, %v11721_v13  ;;  %5548 = vmatprep.mubr.bf16.mxu0 %v13951_v63  ;;  %v11964_v0 = vpop.f32.mrf.mxu1  ;;  %v13986_v23 = vld [vmem:[#allocation28_spill] sm:$0xff] }
 0x474   : > { %v5076_v17 = vpop.f32.mrf.mxu0 }
 0x475   : > { %v11962_v50 = vadd.f32 %v5076_v17, %v11724_v41  ;;  %v11975_v60 = vpop.f32.mrf.mxu1 }
 0x476   : > { %v5078_v53 = vpop.f32.mrf.mxu0 }
 0x477   : > { %v11967_v12 = vadd.f32 %v5078_v53, %v11726_v1  ;;  %v7698_v1 = vld [vmem:[%s12638_s11 + $0x78] sm:$0xff]  }
 0x478   : > { %v5080_v37 = vpop.f32.mrf.mxu0  ;;  %7032 = vmatprep.subr.bf16.mxu1 %v7698_v1 }
 0x479   : > { %13984 = vst [vmem:[#allocation91_spill] sm:$0xff] %v11967_v12  ;;  %v11970_v42 = vadd.f32 %v5080_v37, %v11730_v2  ;;  %v11992_v37 = vpop.f32.mrf.mxu1 }
 0x47a   : > { %v5084_v47 = vpop.f32.mrf.mxu0  ;;  %6733 = vmatmul.mubr.msk.bf16.gmra.mxu0 %vm13879_vm14, %v13986_v23  ;;  %v7699_v23 = vld [vmem:[%s12638_s11 + $0x38] sm:$0xff]  }
 0x47b   : > { %13985 = vst [vmem:[#allocation94_spill] sm:$0xff] %v11970_v42  ;;  %v11978_v41 = vadd.f32 %v5084_v47, %v11739_v10  ;;  %5558 = vmatprep.mubr.bf16.mxu0 %v13951_v63  ;;  %v4898_v10 = vadd.f32 %v11748_v56, %v11728_v40  ;;  %7033 = vmatpush3.bf16.msra.mxu1 %v7699_v23  ;;  %v13994_v56 = vld [vmem:[#allocation117_spill] sm:$0xff] }
 0x47c   : > { %v5086_v17 = vpop.f32.mrf.mxu0 }
 0x47d   : > { %13988 = vst [vmem:[#allocation102_spill] sm:$0xff] %v11978_v41  ;;  %v11985_v2 = vadd.f32 %v5086_v17, %v11742_v15  ;;  %v12002_v17 = vpop.f32.mrf.mxu1 }
 0x47e   : > { %v5088_v53 = vpop.f32.mrf.mxu0 }
 0x47f   : > { %13989 = vst [vmem:[#allocation99_spill] sm:$0xff] %v11985_v2  ;;  %v11995_v47 = vadd.f32 %v5088_v53, %v11744_v11  ;;  %v13995_v53 = vld [vmem:[#allocation18_spill] sm:$0xff] }
 0x480   : > { %v5090_v13 = vpop.f32.mrf.mxu0 }
 0x481   : > { %13990 = vst [vmem:[#allocation108_spill] sm:$0xff] %v11995_v47  ;;  %v11997_v41 = vadd.f32 %v5090_v13, %v4898_v10  ;;  %v13996_v10 = vld [vmem:[#allocation128_spill] sm:$0xff]  ;;  %v13997_v47 = vld [vmem:[#allocation77_spill] sm:$0xff] }
 0x482   : > { %v5094_v15 = vpop.f32.mrf.mxu0  ;;  %6736 = vmatmul.mubr.msk.bf16.gmra.mxu0 %vm10071_vm5, %v11504_v54  ;;  %v4908_v13 = vadd.f32 %v13996_v10, %v13995_v53 }
 0x483   : > { %13991 = vst [vmem:[#allocation109_spill] sm:$0xff] %v11997_v41  ;;  %v12005_v2 = vadd.f32 %v5094_v15, %v11757_v9  ;;  %5568 = vmatprep.mubr.bf16.mxu0 %v13951_v63  ;;  %v12013_v41 = vpop.f32.mrf.mxu1  ;;  %v13998_v15 = vld [vmem:[#allocation101_spill] sm:$0xff] }
 0x484   : > { %v5096_v40 = vpop.f32.mrf.mxu0 }
 0x485   : > { %13993 = vst [vmem:[#allocation110_spill] sm:$0xff] %v12005_v2  ;;  %v12009_v11 = vadd.f32 %v5096_v40, %v13994_v56  ;;  %v12023_v12 = vpop.f32.mrf.mxu1  ;;  %v14000_v40 = vld [vmem:[#allocation39_spill] sm:$0xff] }
 0x486   : > { %v5098_v23 = vpop.f32.mrf.mxu0 }
 0x487   : > { %v12016_v1 = vadd.f32 %v5098_v23, %v13997_v47  ;;  %v7700_v47 = vld [vmem:[%s12638_s11 + $0x70] sm:$0xff]  }
 0x488   : > { %v5100_v54 = vpop.f32.mrf.mxu0  ;;  %7034 = vmatprep.subr.bf16.mxu1 %v7700_v47 }
 0x489   : > { %v12018_v42 = vadd.f32 %v5100_v54, %v4908_v13  ;;  %v14003_v13 = vld [vmem:[#allocation106_spill] sm:$0xff] }
 0x48a   : > { %v5104_v9 = vpop.f32.mrf.mxu0  ;;  %6739 = vmatmul.mubr.msk.bf16.gmra.mxu0 %vm13895_vm10, %v13998_v15  ;;  %v6741_v2 = vpack.c.bf16 %v14003_v13, %v14003_v13  ;;  %v7701_v54 = vld [vmem:[%s12638_s11 + $0x30] sm:$0xff]  }
 0x48b   : > { %v12026_v56 = vadd.f32 %v5104_v9, %v14000_v40  ;;  %5578 = vmatprep.mubr.bf16.mxu0 %v13951_v63  ;;  %v12040_v9 = vpop.f32.mrf.mxu1  ;;  %7035 = vmatpush3.bf16.msra.mxu1 %v7701_v54 }
 0x48c   : > { %v5106_v23 = vpop.f32.mrf.mxu0 }
 0x48d   : > { %14001 = vst [vmem:[#allocation111_spill] sm:$0xff] %v12026_v56  ;;  %v12033_v53 = vadd.f32 %v5106_v23, %v11774_v33  ;;  %v12050_v23 = vpop.f32.mrf.mxu1 }
 0x48e   : > { %v5108_v10 = vpop.f32.mrf.mxu0 }
 0x48f   : > { %14002 = vst [vmem:[#allocation107_spill] sm:$0xff] %v12033_v53  ;;  %v12043_v63 = vadd.f32 %v5108_v10, %v11780_v45  ;;  %v12058_v10 = vpop.f32.mrf.mxu1 }
 0x490   : > { %v5110_v15 = vpop.f32.mrf.mxu0 }
 0x491   : > { %v12046_v40 = vadd.f32 %v5110_v15, %v11783_v27  ;;  %v14009_v15 = vld [vmem:[#allocation41_spill] sm:$0xff]  ;;  %v12066_v47 = vpop.f32.mrf.mxu1 }
 0x492   : > { %v5114_v33 = vpop.f32.mrf.mxu0  ;;  %6742 = vmatmul.mubr.msk.bf16.gmra.mxu0 %vm10177_vm8, %v6741_v2 }
 0x493   : > { %14004 = vst [vmem:[#allocation56_spill] sm:$0xff] %v12046_v40  ;;  %v12053_v13 = vadd.f32 %v5114_v33, %v11791_v39 }
 0x494   : > { %v5116_v53 = vpop.f32.mrf.mxu0 }
 0x495   : > { %14006 = vst [vmem:[#allocation24_spill] sm:$0xff] %v12053_v13  ;;  %v12056_v56 = vadd.f32 %v5116_v53, %v11793_v46  ;;  %v7702_v46 = vld [vmem:[%s12638_s11 + $0x68] sm:$0xff]  }
 0x496   : > { %v5118_v45 = vpop.f32.mrf.mxu0  ;;  %7036 = vmatprep.subr.bf16.mxu1 %v7702_v46 }
 0x497   : > { %14007 = vst [vmem:[#allocation118_spill] sm:$0xff] %v12056_v56  ;;  %v12061_v54 = vadd.f32 %v5118_v45, %v11795_v16  ;;  %v7703_v16 = vld [vmem:[%s12638_s11 + $0x28] sm:$0xff]  }
 0x498   : > { %v5120_v27 = vpop.f32.mrf.mxu0  ;;  %7037 = vmatpush3.bf16.msra.mxu1 %v7703_v16 }
 0x499   : > { %14008 = vst [vmem:[#allocation9_spill] sm:$0xff] %v12061_v54  ;;  %v12064_v40 = vadd.f32 %v5120_v27, %v14009_v15  ;;  %v12080_v27 = vpop.f32.mrf.mxu1  ;;  %v14013_v15 = vld [vmem:[#allocation50_spill] sm:$0xff] }
 0x49a   : > { %v5124_v2 = vpop.f32.mrf.mxu0 }
 0x49b   : > { %14010 = vst [vmem:[#allocation11_spill] sm:$0xff] %v12064_v40  ;;  %v12069_v39 = vadd.f32 %v5124_v2, %v11803_v51  ;;  %v14015_v2 = vld [vmem:[#allocation61_spill] sm:$0xff]  ;;  %v12088_v56 = vpop.f32.mrf.mxu1 }
 0x49c   : > { %v5126_v53 = vpop.f32.mrf.mxu0 }
 0x49d   : > { %14011 = vst [vmem:[#allocation8_spill] sm:$0xff] %v12069_v39  ;;  %v12075_v33 = vadd.f32 %v5126_v53, %v11805_v35  ;;  %v12096_v13 = vpop.f32.mrf.mxu1 }
 0x49e   : > { %v5128_v45 = vpop.f32.mrf.mxu0 }
 0x49f   : > { %14012 = vst [vmem:[#allocation10_spill] sm:$0xff] %v12075_v33  ;;  %v12083_v40 = vadd.f32 %v5128_v45, %v14013_v15  ;;  %v14019_v45 = vld [vmem:[#allocation131_spill] sm:$0xff] }
 0x4a0   : > { %v5130_v51 = vpop.f32.mrf.mxu0 }
 0x4a1   : > { %14014 = vst [vmem:[#allocation48_spill] sm:$0xff] %v12083_v40  ;;  %v12086_v39 = vadd.f32 %v5130_v51, %v14015_v2  ;;  %v14021_v40 = vld [vmem:[#allocation52_spill] sm:$0xff] }
 0x4a2   : > { %v5134_v54 = vpop.f32.mrf.mxu0 }
 0x4a3   : > { %14016 = vst [vmem:[#allocation47_spill] sm:$0xff] %v12086_v39  ;;  %v12091_v35 = vadd.f32 %v5134_v54, %v11815_v7  ;;  %v12104_v39 = vpop.f32.mrf.mxu1 }
 0x4a4   : > { %v5136_v46 = vpop.f32.mrf.mxu0 }
 0x4a5   : > { %14017 = vst [vmem:[#allocation15_spill] sm:$0xff] %v12091_v35  ;;  %v12094_v53 = vadd.f32 %v5136_v46, %v11817_v58  ;;  %v7704_v58 = vld [vmem:[%s12638_s11 + $0x60] sm:$0xff]  }
 0x4a6   : > { %v5138_v33 = vpop.f32.mrf.mxu0  ;;  %7038 = vmatprep.subr.bf16.mxu1 %v7704_v58 }
 0x4a7   : > { %14018 = vst [vmem:[#allocation14_spill] sm:$0xff] %v12094_v53  ;;  %v12099_v15 = vadd.f32 %v5138_v33, %v14019_v45  ;;  %v7705_v33 = vld [vmem:[%s12638_s11 + $0x20] sm:$0xff]   ;;  %v12118_v45 = vpop.f32.mrf.mxu1 }
 0x4a8   : > { %v5140_v16 = vpop.f32.mrf.mxu0  ;;  %7039 = vmatpush3.bf16.msra.mxu1 %v7705_v33 }
 0x4a9   : > { %14020 = vst [vmem:[#allocation58_spill] sm:$0xff] %v12099_v15  ;;  %v12102_v51 = vadd.f32 %v5140_v16, %v14021_v40  ;;  %v14025_v16 = vld [vmem:[#allocation49_spill] sm:$0xff]  ;;  %v12126_v53 = vpop.f32.mrf.mxu1 }
 0x4aa   : > { %v5144_v2 = vpop.f32.mrf.mxu0 }
 0x4ab   : > { %14022 = vst [vmem:[#allocation59_spill] sm:$0xff] %v12102_v51  ;;  %v12107_v7 = vadd.f32 %v5144_v2, %v11827_v5  ;;  %v14027_v2 = vld [vmem:[#allocation55_spill] sm:$0xff]  ;;  %v12134_v35 = vpop.f32.mrf.mxu1 }
 0x4ac   : > { %v5146_v54 = vpop.f32.mrf.mxu0 }
 0x4ad   : > { %14023 = vst [vmem:[#allocation21_spill] sm:$0xff] %v12107_v7  ;;  %v12113_v46 = vadd.f32 %v5146_v54, %v11829_v38 }
 0x4ae   : > { %v5148_v40 = vpop.f32.mrf.mxu0 }
 0x4af   : > { %14024 = vst [vmem:[#allocation20_spill] sm:$0xff] %v12113_v46  ;;  %v12121_v51 = vadd.f32 %v5148_v40, %v14025_v16  ;;  %v14031_v40 = vld [vmem:[#allocation60_spill] sm:$0xff] }
 0x4b0   : > { %v5150_v5 = vpop.f32.mrf.mxu0 }
 0x4b1   : > { %14026 = vst [vmem:[#allocation74_spill] sm:$0xff] %v12121_v51  ;;  %v12124_v7 = vadd.f32 %v5150_v5, %v14027_v2  ;;  %v14033_v51 = vld [vmem:[#allocation64_spill] sm:$0xff] }
 0x4b2   : > { %v5154_v15 = vpop.f32.mrf.mxu0 }
 0x4b3   : > { %14028 = vst [vmem:[#allocation75_spill] sm:$0xff] %v12124_v7  ;;  %v12129_v38 = vadd.f32 %v5154_v15, %v11839_v52  ;;  %v12142_v7 = vpop.f32.mrf.mxu1 }
 0x4b4   : > { %v5156_v54 = vpop.f32.mrf.mxu0 }
 0x4b5   : > { %14029 = vst [vmem:[#allocation27_spill] sm:$0xff] %v12129_v38  ;;  %v12132_v46 = vadd.f32 %v5156_v54, %v11841_v19  ;;  %v7706_v19 = vld [vmem:[%s12638_s11 + $0x58] sm:$0xff]  }
 0x4b6   : > { %v5158_v58 = vpop.f32.mrf.mxu0  ;;  %7040 = vmatprep.subr.bf16.mxu1 %v7706_v19 }
 0x4b7   : > { %14030 = vst [vmem:[#allocation26_spill] sm:$0xff] %v12132_v46  ;;  %v12137_v16 = vadd.f32 %v5158_v58, %v14031_v40  ;;  %v12156_v40 = vpop.f32.mrf.mxu1 }
 0x4b8   : > { %v5160_v33 = vpop.f32.mrf.mxu0 }
 0x4b9   : > { %14032 = vst [vmem:[#allocation32_spill] sm:$0xff] %v12137_v16  ;;  %v12140_v5 = vadd.f32 %v5160_v33, %v14033_v51  ;;  %v7707_v51 = vld [vmem:[%s12638_s11 + $0x18] sm:$0xff]   ;;  %v12164_v46 = vpop.f32.mrf.mxu1 }
 0x4ba   : > { %v5164_v2 = vpop.f32.mrf.mxu0  ;;  %v14037_v33 = vld [vmem:[#allocation66_spill] sm:$0xff]  ;;  %7041 = vmatpush3.bf16.msra.mxu1 %v7707_v51 }
 0x4bb   : > { %14034 = vst [vmem:[#allocation31_spill] sm:$0xff] %v12140_v5  ;;  %v12145_v52 = vadd.f32 %v5164_v2, %v11851_v57  ;;  %v14039_v2 = vld [vmem:[#allocation72_spill] sm:$0xff]  ;;  %v12172_v38 = vpop.f32.mrf.mxu1 }
 0x4bc   : > { %v5166_v15 = vpop.f32.mrf.mxu0 }
 0x4bd   : > { %14035 = vst [vmem:[#allocation37_spill] sm:$0xff] %v12145_v52  ;;  %v12151_v54 = vadd.f32 %v5166_v15, %v11853_v8 }
 0x4be   : > { %v5168_v58 = vpop.f32.mrf.mxu0 }
 0x4bf   : > { %14036 = vst [vmem:[#allocation36_spill] sm:$0xff] %v12151_v54  ;;  %v12159_v5 = vadd.f32 %v5168_v58, %v14037_v33  ;;  %v14044_v33 = vld [vmem:[#allocation120_spill] sm:$0xff] }
 0x4c0   : > { %v5170_v57 = vpop.f32.mrf.mxu0 }
 0x4c1   : > { %14038 = vst [vmem:[#allocation23_spill] sm:$0xff] %v12159_v5  ;;  %v12162_v52 = vadd.f32 %v5170_v57, %v14039_v2 }
 0x4c2   : > { %v5174_v16 = vpop.f32.mrf.mxu0 }
 0x4c3   : > { %14040 = vst [vmem:[#allocation45_spill] sm:$0xff] %v12162_v52  ;;  %v12167_v8 = vadd.f32 %v5174_v16, %v11863_v48  ;;  %v12180_v52 = vpop.f32.mrf.mxu1 }
 0x4c4   : > { %v5176_v19 = vpop.f32.mrf.mxu0 }
 0x4c5   : > { %14041 = vst [vmem:[#allocation44_spill] sm:$0xff] %v12167_v8  ;;  %v12170_v15 = vadd.f32 %v5176_v19, %v11865_v24  ;;  %v7708_v24 = vld [vmem:[%s12638_s11 + $0x50] sm:$0xff]  }
 0x4c6   : > { %v5178_v54 = vpop.f32.mrf.mxu0  ;;  %7042 = vmatprep.subr.bf16.mxu1 %v7708_v24 }
 0x4c7   : > { %14042 = vst [vmem:[#allocation34_spill] sm:$0xff] %v12170_v15  ;;  %v12175_v58 = vadd.f32 %v5178_v54, %v11867_v14  ;;  %v5591_v14 = vlaneseq  ;;  %v7709_v54 = vld [vmem:[%s12638_s11 + $0x10] sm:$0xff]  }
 0x4c8   : > { %v5180_v51 = vpop.f32.mrf.mxu0  ;;  %7043 = vmatpush3.bf16.msra.mxu1 %v7709_v54 }
 0x4c9   : > { %14043 = vst [vmem:[#allocation54_spill] sm:$0xff] %v12175_v58  ;;  %v12178_v57 = vadd.f32 %v5180_v51, %v14044_v33  ;;  %v12194_v33 = vpop.f32.mrf.mxu1  ;;  %v5592_v58 = vshrl.u32 %v5591_v14, 7 }
 0x4ca   : > { %v5184_v2 = vpop.f32.mrf.mxu0 }
 0x4cb   : > { %14045 = vst [vmem:[#allocation53_spill] sm:$0xff] %v12178_v57  ;;  %v12183_v48 = vadd.f32 %v5184_v2, %v11875_v31  ;;  %v5593_v8 = vsub.s32 0, %v5592_v58  ;;  %v5597_v14 = vsub.s32 1, %v5592_v58  ;;  %v5242_v58 = vadd.f32 %v11923_v34, %v11897_v3 }
 0x4cc   : > { %v5186_v16 = vpop.f32.mrf.mxu0 }
 0x4cd   : > { %14046 = vst [vmem:[#allocation127_spill] sm:$0xff] %v12183_v48  ;;  %v12189_v19 = vadd.f32 %v5186_v16, %v11877_v43  ;;  %v14049_v48 = vld [vmem:[#allocation73_spill] sm:$0xff]  ;;  %v12202_v16 = vpop.f32.mrf.mxu1 }
 0x4ce   : > { %v5188_v51 = vpop.f32.mrf.mxu0 }
 0x4cf   : > { %14047 = vst [vmem:[#allocation71_spill] sm:$0xff] %v12189_v19  ;;  %v12197_v31 = vadd.f32 %v5188_v51, %v11879_v59  ;;  %v5589_v59 = vld [vmem:[%s12636_s9] sm:$0x3]  ;;  %v12213_v54 = vpop.f32.mrf.mxu1 }
 0x4d0   : > { %v5190_v2 = vpop.f32.mrf.mxu0 }
 0x4d1   : > { %14048 = vst [vmem:[#allocation69_spill] sm:$0xff] %v12197_v31  ;;  %v12200_v57 = vadd.f32 %v5190_v2, %v14049_v48  ;;  %v12221_v2 = vrot.slane %v5589_v59, %v5593_v8 }
 0x4d2   : > { %v5194_v43 = vpop.f32.mrf.mxu0 }
 0x4d3   : > { %14050 = vst [vmem:[#allocation68_spill] sm:$0xff] %v12200_v57  ;;  %v12205_v24 = vadd.f32 %v5194_v43, %v11891_v20  ;;  %v12226_v43 = vpop.f32.mrf.mxu1 }
 0x4d4   : > { %v5196_v19 = vpop.f32.mrf.mxu0 }
 0x4d5   : > { %14051 = vst [vmem:[#allocation57_spill] sm:$0xff] %v12205_v24  ;;  %v12208_v15 = vadd.f32 %v5196_v19, %v11895_v61  ;;  %v5665_v61 = vld [vmem:[%s12637_s10] sm:$0x3]  ;;  %v12229_v24 = vrot.slane %v5589_v59, %v5597_v14  ;;  %v7711_v59 = vld [vmem:[%s12638_s11 + $0x8] sm:$0xff]  }
 0x4d6   : > { %v5198_v5 = vpop.f32.mrf.mxu0 }
 0x4d7   : > { %14052 = vst [vmem:[#allocation84_spill] sm:$0xff] %v12208_v15  ;;  %v12216_v48 = vadd.f32 %v5198_v5, %v11899_v36  ;;  %v7710_v36 = vld [vmem:[%s12638_s11 + $0x48] sm:$0xff]   ;;  %v12234_v5 = vrot.slane %v5665_v61, %v5593_v8  ;;  %v5244_v8 = vadd.f32 %v11928_v62, %v11902_v6  ;;  %v5250_v6 = vadd.f32 %v11942_v29, %v11916_v32 }
 0x4d8   : > { %v5200_v51 = vpop.f32.mrf.mxu0  ;;  %7044 = vmatprep.subr.bf16.mxu1 %v7710_v36  ;;  %v5254_v32 = vadd.f32 %v11955_v55, %v11926_v21  ;;  %v5260_v55 = vadd.f32 %v11975_v60, %v11940_v26 }
 0x4d9   : > { %14053 = vst [vmem:[#allocation85_spill] sm:$0xff] %v12216_v48  ;;  %v12219_v20 = vadd.f32 %v5200_v51, %v11904_v22  ;;  %v12240_v48 = vrot.slane %v5665_v61, %v5597_v14  ;;  %7045 = vmatpush3.bf16.msra.mxu1 %v7711_v59 }
 0x4da   : > { %v5430_v19 = vpop.f32.mrf.mxu0 }
 0x4db   : > { %14054 = vst [vmem:[#allocation86_spill] sm:$0xff] %v12219_v20  ;;  %v5431_v15 = vadd.f32 %v5430_v19, %v11913_v49  ;;  %v12247_v19 = vpop.f32.mrf.mxu1 }
 0x4dc   : > { %v5432_v22 = vpop.f32.mrf.mxu0 }
 0x4dd   : > { %v5601_v51 = vmul.f32 %v12221_v2, %v5431_v15  ;;  %v5433_v20 = vadd.f32 %v5432_v22, %v11918_v25  ;;  %v5248_v25 = vadd.f32 %v11936_v18, %v11910_v44  ;;  %v12257_v62 = vpop.f32.mrf.mxu1 }
 0x4de   : > { %v5434_v49 = vpop.f32.mrf.mxu0 }
 0x4df   : > { %v5602_v57 = vmul.f32 %v12229_v24, %v5433_v20  ;;  %v5435_v3 = vadd.f32 %v5434_v49, %v5242_v58  ;;  %v5677_v34 = vadd.f32 %v12234_v5, %v5601_v51 }
 0x4e0   : > { %v5436_v15 = vpop.f32.mrf.mxu0 }
 0x4e1   : > { %v5603_v14 = vmul.f32 %v12221_v2, %v5435_v3  ;;  %v5437_v61 = vadd.f32 %v5436_v15, %v5244_v8  ;;  %v5678_v36 = vadd.f32 %v12240_v48, %v5602_v57  ;;  %v5741_v49 = vmax.f32 %v5677_v34, 0.0  ;;  %v12267_v15 = vpop.f32.mrf.mxu1 }
 0x4e2   : > { %v5440_v22 = vpop.f32.mrf.mxu0  ;;  %v5252_v57 = vadd.f32 %v11947_v4, %v11921_v30 }
 0x4e3   : > { %v5679_v20 = vadd.f32 %v12234_v5, %v5603_v14  ;;  %v5604_v58 = vmul.f32 %v12229_v24, %v5437_v61  ;;  %v5441_v51 = vadd.f32 %v5440_v22, %v5248_v25  ;;  %v5742_v29 = vmax.f32 %v5678_v36, 0.0  ;;  %v14055_v22 = vld [vmem:[#allocation78_spill] sm:$0xff] }
 0x4e4   : > { %v5442_v59 = vpop.f32.mrf.mxu0 }
 0x4e5   : > { %v5743_v31 = vmax.f32 %v5679_v20, 0.0  ;;  %v5680_v44 = vadd.f32 %v12240_v48, %v5604_v58  ;;  %v5605_v18 = vmul.f32 %v12221_v2, %v5441_v51  ;;  %v5443_v8 = vadd.f32 %v5442_v59, %v5250_v6 }
 0x4e6   : > { %v5444_v3 = vpop.f32.mrf.mxu0  ;;  %v5258_v20 = vadd.f32 %v11964_v0, %v14055_v22 }
 0x4e7   : > { %v5805_v14 = vadd.f32 %v5743_v31, %v5741_v49  ;;  %v5744_v25 = vmax.f32 %v5680_v44, 0.0  ;;  %v5681_v34 = vadd.f32 %v12234_v5, %v5605_v18  ;;  %v5606_v61 = vmul.f32 %v12229_v24, %v5443_v8  ;;  %v12277_v49 = vpop.f32.mrf.mxu1  ;;  %v14056_v8 = vld [vmem:[#allocation79_spill] sm:$0xff] }
 0x4e8   : > { %v5445_v6 = vadd.f32 %v5444_v3, %v5252_v57  ;;  %v5446_v58 = vpop.f32.mrf.mxu0  ;;  %v5262_v57 = vadd.f32 %v11992_v37, %v14056_v8  ;;  %v7712_v37 = vld [vmem:[%s12638_s11 + $0x40] sm:$0xff]   ;;  %v5270_v8 = vadd.f32 %v12023_v12, %v11962_v50 }
 0x4e9   : > { %v5842_v51 = vadd.f32 %v5744_v25, %v5742_v29  ;;  %v5745_v30 = vmax.f32 %v5681_v34, 0.0  ;;  %v5682_v4 = vadd.f32 %v12240_v48, %v5606_v61  ;;  %v5447_v21 = vadd.f32 %v5446_v58, %v5254_v32  ;;  %v12285_v22 = vpop.f32.mrf.mxu1  ;;  %7046 = vmatprep.subr.bf16.mxu1 %v7712_v37 }
 0x4ea   : > { %v5607_v31 = vmul.f32 %v12221_v2, %v5445_v6  ;;  %v5450_v36 = vpop.f32.mrf.mxu0 }
 0x4eb   : > { %v5806_v59 = vadd.f32 %v5805_v14, %v5745_v30  ;;  %v5746_v44 = vmax.f32 %v5682_v4, 0.0  ;;  %v5608_v18 = vmul.f32 %v12229_v24, %v5447_v21  ;;  %v5451_v0 = vadd.f32 %v5450_v36, %v5258_v20  ;;  %v14057_v30 = vld [vmem:[#allocation88_spill] sm:$0xff] }
 0x4ec   : > { %v5683_v29 = vadd.f32 %v12234_v5, %v5607_v31  ;;  %v5452_v3 = vpop.f32.mrf.mxu0  ;;  %v5264_v4 = vadd.f32 %v12002_v17, %v14057_v30  ;;  %v5268_v21 = vadd.f32 %v12013_v41, %v11958_v28 }
 0x4ed   : > { %v5843_v32 = vadd.f32 %v5842_v51, %v5746_v44  ;;  %v5684_v25 = vadd.f32 %v12240_v48, %v5608_v18  ;;  %v5609_v26 = vmul.f32 %v12221_v2, %v5451_v0  ;;  %v5453_v60 = vadd.f32 %v5452_v3, %v5260_v55  ;;  %v7713_v51 = vld [vmem:[%s12638_s11] sm:$0xff]   ;;  %v12303_v3 = vpop.f32.mrf.mxu1 }
 0x4ee   : > { %v5747_v34 = vmax.f32 %v5683_v29, 0.0  ;;  %v5454_v61 = vpop.f32.mrf.mxu0  ;;  %7047 = vmatpush3.bf16.msra.mxu1 %v7713_v51 }
 0x4ef   : > { %v5748_v14 = vmax.f32 %v5684_v25, 0.0  ;;  %v5685_v6 = vadd.f32 %v12234_v5, %v5609_v26  ;;  %v5610_v20 = vmul.f32 %v12229_v24, %v5453_v60  ;;  %v5455_v58 = vadd.f32 %v5454_v61, %v5262_v57  ;;  %v12314_v51 = vpop.f32.mrf.mxu1 }
 0x4f0   : > { %v5807_v55 = vadd.f32 %v5806_v59, %v5747_v34  ;;  %v5456_v31 = vpop.f32.mrf.mxu0  ;;  %v14058_v59 = vmov 0.0  }
 0x4f1   : > { %v5844_v36 = vadd.f32 %v5843_v32, %v5748_v14  ;;  %v5749_v44 = vmax.f32 %v5685_v6, 0.0  ;;  %v5686_v18 = vadd.f32 %v12240_v48, %v5610_v20  ;;  %v5611_v0 = vmul.f32 %v12221_v2, %v5455_v58  ;;  %7137 = vmatprep.subr.bf16.mxu1 %v14058_v59  ;;  %v14059_v32 = vld [vmem:[#allocation91_spill] sm:$0xff]  ;;  %v14060_v6 = vld [vmem:[#allocation94_spill] sm:$0xff] }
 0x4f2   : > { %v5457_v57 = vadd.f32 %v5456_v31, %v5264_v4  ;;  %v5460_v29 = vpop.f32.mrf.mxu0  ;;  %v5272_v26 = vadd.f32 %v12040_v9, %v14059_v32  ;;  %v5274_v20 = vadd.f32 %v12050_v23, %v14060_v6  ;;  %v14061_v23 = vld [vmem:[#allocation102_spill] sm:$0xff] }
 0x4f3   : > { %v5808_v17 = vadd.f32 %v5807_v55, %v5749_v44  ;;  %v5750_v25 = vmax.f32 %v5686_v18, 0.0  ;;  %v5687_v28 = vadd.f32 %v12234_v5, %v5611_v0  ;;  %v5461_v41 = vadd.f32 %v5460_v29, %v5268_v21 }
 0x4f4   : > { %v5612_v60 = vmul.f32 %v12229_v24, %v5457_v57  ;;  %v5462_v34 = vpop.f32.mrf.mxu0  ;;  %v14062_v57 = vld [vmem:[#allocation99_spill] sm:$0xff] }
 0x4f5   : > { %v5845_v61 = vadd.f32 %v5844_v36, %v5750_v25  ;;  %v5751_v50 = vmax.f32 %v5687_v28, 0.0  ;;  %v5613_v12 = vmul.f32 %v12221_v2, %v5461_v41  ;;  %v5463_v14 = vadd.f32 %v5462_v34, %v5270_v8  ;;  %v12324_v28 = vpop.f32.mrf.mxu1  ;;  %v14063_v34 = vld [vmem:[#allocation108_spill] sm:$0xff] }
 0x4f6   : > { %v5688_v58 = vadd.f32 %v12240_v48, %v5612_v60  ;;  %v5464_v37 = vpop.f32.mrf.mxu0  ;;  %v5278_v8 = vadd.f32 %v12058_v10, %v14061_v23  ;;  %v5280_v29 = vadd.f32 %v12066_v47, %v14062_v57 }
 0x4f7   : > { %v5809_v30 = vadd.f32 %v5808_v17, %v5751_v50  ;;  %v5689_v4 = vadd.f32 %v12234_v5, %v5613_v12  ;;  %v5614_v9 = vmul.f32 %v12229_v24, %v5463_v14  ;;  %v5465_v21 = vadd.f32 %v5464_v37, %v5272_v26 }
 0x4f8   : > { %v5752_v55 = vmax.f32 %v5688_v58, 0.0  ;;  %v5466_v31 = vpop.f32.mrf.mxu0  ;;  %v5282_v50 = vadd.f32 %v12080_v27, %v14063_v34 }
 0x4f9   : > { %v5753_v36 = vmax.f32 %v5689_v4, 0.0  ;;  %v5690_v44 = vadd.f32 %v12240_v48, %v5614_v9  ;;  %v5615_v18 = vmul.f32 %v12221_v2, %v5465_v21  ;;  %v5467_v0 = vadd.f32 %v5466_v31, %v5274_v20  ;;  %v12334_v4 = vpop.f32.mrf.mxu1  ;;  %v14065_v31 = vld [vmem:[#allocation110_spill] sm:$0xff] }
 0x4fa   : > { %v5846_v17 = vadd.f32 %v5845_v61, %v5752_v55  ;;  %v5470_v25 = vpop.f32.mrf.mxu0  ;;  %v14064_v61 = vld [vmem:[#allocation109_spill] sm:$0xff] }
 0x4fb   : > { %v5810_v41 = vadd.f32 %v5809_v30, %v5753_v36  ;;  %v5754_v32 = vmax.f32 %v5690_v44, 0.0  ;;  %v5691_v26 = vadd.f32 %v12234_v5, %v5615_v18  ;;  %v5616_v60 = vmul.f32 %v12229_v24, %v5467_v0 }
 0x4fc   : > { %v5471_v12 = vadd.f32 %v5470_v25, %v5278_v8  ;;  %v5472_v14 = vpop.f32.mrf.mxu0  ;;  %v5284_v58 = vadd.f32 %v12088_v56, %v14064_v61  ;;  %v5288_v36 = vadd.f32 %v12096_v13, %v14065_v31  ;;  %v5290_v13 = vadd.f32 %v12104_v39, %v12009_v11 }
 0x4fd   : > { %v5847_v6 = vadd.f32 %v5846_v17, %v5754_v32  ;;  %v5755_v10 = vmax.f32 %v5691_v26, 0.0  ;;  %v5692_v20 = vadd.f32 %v12240_v48, %v5616_v60  ;;  %v5473_v47 = vadd.f32 %v5472_v14, %v5280_v29  ;;  %v12342_v17 = vpop.f32.mrf.mxu1 }
 0x4fe   : > { %v5617_v37 = vmul.f32 %v12221_v2, %v5471_v12  ;;  %v5474_v30 = vpop.f32.mrf.mxu0  ;;  %v5292_v60 = vadd.f32 %v12118_v45, %v12016_v1  ;;  %v14066_v45 = vld [vmem:[#allocation111_spill] sm:$0xff] }
 0x4ff   : > { %v5811_v9 = vadd.f32 %v5810_v41, %v5755_v10  ;;  %v5756_v21 = vmax.f32 %v5692_v20, 0.0  ;;  %v5618_v55 = vmul.f32 %v12229_v24, %v5473_v47  ;;  %v5475_v27 = vadd.f32 %v5474_v30, %v5282_v50 }
 0x500   : > { %v5693_v44 = vadd.f32 %v12234_v5, %v5617_v37  ;;  %v5476_v18 = vpop.f32.mrf.mxu0  ;;  %v5294_v20 = vadd.f32 %v12126_v53, %v12018_v42  ;;  %v5298_v30 = vadd.f32 %v12134_v35, %v14066_v45  ;;  %v14067_v53 = vld [vmem:[#allocation107_spill] sm:$0xff] }
 0x501   : > { %v5848_v0 = vadd.f32 %v5847_v6, %v5756_v21  ;;  %v5694_v23 = vadd.f32 %v12240_v48, %v5618_v55  ;;  %v5619_v56 = vmul.f32 %v12221_v2, %v5475_v27  ;;  %v5477_v8 = vadd.f32 %v5476_v18, %v5284_v58  ;;  %v12354_v58 = vpop.f32.mrf.mxu1 }
 0x502   : > { %v5757_v57 = vmax.f32 %v5693_v44, 0.0  ;;  %v5480_v29 = vpop.f32.mrf.mxu0 }
 0x503   : > { %v5758_v25 = vmax.f32 %v5694_v23, 0.0  ;;  %v5695_v41 = vadd.f32 %v12234_v5, %v5619_v56  ;;  %v5620_v32 = vmul.f32 %v12229_v24, %v5477_v8  ;;  %v5481_v26 = vadd.f32 %v5480_v29, %v5288_v36 }
 0x504   : > { %v5812_v34 = vadd.f32 %v5811_v9, %v5757_v57  ;;  %v5482_v50 = vpop.f32.mrf.mxu0  ;;  %v5300_v36 = vadd.f32 %v12142_v7, %v14067_v53  ;;  %v5302_v7 = vadd.f32 %v12156_v40, %v12043_v63 }
 0x505   : > { %v5849_v12 = vadd.f32 %v5848_v0, %v5758_v25  ;;  %v5759_v14 = vmax.f32 %v5695_v41, 0.0  ;;  %v5696_v6 = vadd.f32 %v12240_v48, %v5620_v32  ;;  %v5621_v10 = vmul.f32 %v12221_v2, %v5481_v26  ;;  %v12364_v0 = vpop.f32.mrf.mxu1 }
 0x506   : > { %v5483_v47 = vadd.f32 %v5482_v50, %v5290_v13  ;;  %v5484_v61 = vpop.f32.mrf.mxu0  ;;  %v14068_v13 = vld [vmem:[#allocation56_spill] sm:$0xff] }
 0x507   : > { %v5813_v37 = vadd.f32 %v5812_v34, %v5759_v14  ;;  %v5760_v11 = vmax.f32 %v5696_v6, 0.0  ;;  %v5697_v39 = vadd.f32 %v12234_v5, %v5621_v10  ;;  %v5485_v1 = vadd.f32 %v5484_v61, %v5292_v60 }
 0x508   : > { %v5622_v9 = vmul.f32 %v12229_v24, %v5483_v47  ;;  %v5486_v21 = vpop.f32.mrf.mxu0  ;;  %v5304_v60 = vadd.f32 %v12164_v46, %v14068_v13  ;;  %v14069_v47 = vld [vmem:[#allocation24_spill] sm:$0xff] }
 0x509   : > { %v5850_v55 = vadd.f32 %v5849_v12, %v5760_v11  ;;  %v5761_v27 = vmax.f32 %v5697_v39, 0.0  ;;  %v5623_v31 = vmul.f32 %v12221_v2, %v5485_v1  ;;  %v5487_v42 = vadd.f32 %v5486_v21, %v5294_v20  ;;  %v12374_v12 = vpop.f32.mrf.mxu1  ;;  %v14070_v1 = vld [vmem:[#allocation118_spill] sm:$0xff] }
 0x50a   : > { %v5698_v44 = vadd.f32 %v12240_v48, %v5622_v9  ;;  %v5490_v18 = vpop.f32.mrf.mxu0  ;;  %v5308_v61 = vadd.f32 %v12172_v38, %v14069_v47  ;;  %v5310_v45 = vadd.f32 %v12180_v52, %v14070_v1 }
 0x50b   : > { %v5814_v23 = vadd.f32 %v5813_v37, %v5761_v27  ;;  %v5699_v56 = vadd.f32 %v12234_v5, %v5623_v31  ;;  %v5624_v35 = vmul.f32 %v12229_v24, %v5487_v42  ;;  %v5491_v8 = vadd.f32 %v5490_v18, %v5298_v30  ;;  %v12384_v21 = vpop.f32.mrf.mxu1  ;;  %v14071_v42 = vld [vmem:[#allocation9_spill] sm:$0xff] }
 0x50c   : > { %v5762_v57 = vmax.f32 %v5698_v44, 0.0  ;;  %v5492_v29 = vpop.f32.mrf.mxu0  ;;  %v5312_v53 = vadd.f32 %v12194_v33, %v14071_v42  ;;  %v14072_v33 = vld [vmem:[#allocation11_spill] sm:$0xff] }
 0x50d   : > { %v5763_v25 = vmax.f32 %v5699_v56, 0.0  ;;  %v5700_v41 = vadd.f32 %v12240_v48, %v5624_v35  ;;  %v5625_v32 = vmul.f32 %v12221_v2, %v5491_v8  ;;  %v5493_v26 = vadd.f32 %v5492_v29, %v5300_v36 }
 0x50e   : > { %v5851_v34 = vadd.f32 %v5850_v55, %v5762_v57  ;;  %v5494_v50 = vpop.f32.mrf.mxu0  ;;  %v12392_v57 = vpop.f32.mrf.mxu1 }
 0x50f   : > { %v5815_v14 = vadd.f32 %v5814_v23, %v5763_v25  ;;  %v5764_v6 = vmax.f32 %v5700_v41, 0.0  ;;  %v5701_v10 = vadd.f32 %v12234_v5, %v5625_v32  ;;  %v5626_v20 = vmul.f32 %v12229_v24, %v5493_v26 }
 0x510   : > { %v5495_v37 = vadd.f32 %v5494_v50, %v5302_v7  ;;  %v5496_v11 = vpop.f32.mrf.mxu0  ;;  %v5314_v26 = vadd.f32 %v12202_v16, %v14072_v33  ;;  %v14073_v7 = vld [vmem:[#allocation8_spill] sm:$0xff] }
 0x511   : > { %v5852_v39 = vadd.f32 %v5851_v34, %v5764_v6  ;;  %v5765_v63 = vmax.f32 %v5701_v10, 0.0  ;;  %v5702_v40 = vadd.f32 %v12240_v48, %v5626_v20  ;;  %v5497_v46 = vadd.f32 %v5496_v11, %v5304_v60  ;;  %v14074_v20 = vld [vmem:[#allocation10_spill] sm:$0xff]  ;;  %v12404_v11 = vpop.f32.mrf.mxu1 }
 0x512   : > { %v5627_v30 = vmul.f32 %v12221_v2, %v5495_v37  ;;  %v5500_v9 = vpop.f32.mrf.mxu0  ;;  %v5318_v13 = vadd.f32 %v12213_v54, %v14073_v7  ;;  %v5320_v47 = vadd.f32 %v12226_v43, %v14074_v20 }
 0x513   : > { %v5816_v55 = vadd.f32 %v5815_v14, %v5765_v63  ;;  %v5766_v27 = vmax.f32 %v5702_v40, 0.0  ;;  %v5628_v31 = vmul.f32 %v12229_v24, %v5497_v46  ;;  %v5501_v38 = vadd.f32 %v5500_v9, %v5308_v61  ;;  %v14075_v40 = vld [vmem:[#allocation48_spill] sm:$0xff] }
 0x514   : > { %v5703_v36 = vadd.f32 %v12234_v5, %v5627_v30  ;;  %v5502_v44 = vpop.f32.mrf.mxu0  ;;  %v5322_v46 = vadd.f32 %v12247_v19, %v14075_v40 }
 0x515   : > { %v5853_v18 = vadd.f32 %v5852_v39, %v5766_v27  ;;  %v5704_v23 = vadd.f32 %v12240_v48, %v5628_v31  ;;  %v5629_v52 = vmul.f32 %v12221_v2, %v5501_v38  ;;  %v5503_v56 = vadd.f32 %v5502_v44, %v5310_v45  ;;  %v14076_v27 = vld [vmem:[#allocation47_spill] sm:$0xff] }
 0x516   : > { %v5767_v35 = vmax.f32 %v5703_v36, 0.0  ;;  %v5504_v8 = vpop.f32.mrf.mxu0  ;;  %v5324_v31 = vadd.f32 %v12257_v62, %v14076_v27  ;;  %v14077_v62 = vld [vmem:[#allocation15_spill] sm:$0xff] }
 0x517   : > { %v5768_v29 = vmax.f32 %v5704_v23, 0.0  ;;  %v5705_v25 = vadd.f32 %v12234_v5, %v5629_v52  ;;  %v5630_v41 = vmul.f32 %v12229_v24, %v5503_v56  ;;  %v5505_v32 = vadd.f32 %v5504_v8, %v5312_v53  ;;  %v12414_v53 = vpop.f32.mrf.mxu1 }
 0x518   : > { %v5817_v60 = vadd.f32 %v5816_v55, %v5767_v35  ;;  %v5506_v34 = vpop.f32.mrf.mxu0 }
 0x519   : > { %v5854_v50 = vadd.f32 %v5853_v18, %v5768_v29  ;;  %v5769_v14 = vmax.f32 %v5705_v25, 0.0  ;;  %v5706_v6 = vadd.f32 %v12240_v48, %v5630_v41  ;;  %v5631_v10 = vmul.f32 %v12221_v2, %v5505_v32  ;;  %v14078_v41 = vld [vmem:[#allocation14_spill] sm:$0xff]  ;;  %v12424_v7 = vpop.f32.mrf.mxu1 }
 0x51a   : > { %v5507_v61 = vadd.f32 %v5506_v34, %v5314_v26  ;;  %v5510_v37 = vpop.f32.mrf.mxu0  ;;  %v5328_v25 = vadd.f32 %v12267_v15, %v14077_v62  ;;  %v5330_v32 = vadd.f32 %v12277_v49, %v14078_v41 }
 0x51b   : > { %v5818_v39 = vadd.f32 %v5817_v60, %v5769_v14  ;;  %v5770_v16 = vmax.f32 %v5706_v6, 0.0  ;;  %v5707_v63 = vadd.f32 %v12234_v5, %v5631_v10  ;;  %v5511_v54 = vadd.f32 %v5510_v37, %v5318_v13  ;;  %v14079_v14 = vld [vmem:[#allocation58_spill] sm:$0xff]  ;;  %v14080_v37 = vld [vmem:[#allocation59_spill] sm:$0xff] }
 0x51c   : > { %v5632_v1 = vmul.f32 %v12229_v24, %v5507_v61  ;;  %v5512_v45 = vpop.f32.mrf.mxu0  ;;  %v5332_v6 = vadd.f32 %v12285_v22, %v14079_v14 }
 0x51d   : > { %v5855_v30 = vadd.f32 %v5854_v50, %v5770_v16  ;;  %v5771_v9 = vmax.f32 %v5707_v63, 0.0  ;;  %v5633_v55 = vmul.f32 %v12221_v2, %v5511_v54  ;;  %v5513_v43 = vadd.f32 %v5512_v45, %v5320_v47  ;;  %v12434_v54 = vpop.f32.mrf.mxu1  ;;  %v14081_v45 = vld [vmem:[#allocation21_spill] sm:$0xff] }
 0x51e   : > { %v5708_v38 = vadd.f32 %v12240_v48, %v5632_v1  ;;  %v5514_v42 = vpop.f32.mrf.mxu0 }
 0x51f   : > { %v5819_v36 = vadd.f32 %v5818_v39, %v5771_v9  ;;  %v5709_v44 = vadd.f32 %v12234_v5, %v5633_v55  ;;  %v5634_v19 = vmul.f32 %v12229_v24, %v5513_v43  ;;  %v5515_v18 = vadd.f32 %v5514_v42, %v5322_v46 }
 0x520   : > { %v5772_v23 = vmax.f32 %v5708_v38, 0.0  ;;  %v5516_v52 = vpop.f32.mrf.mxu0  ;;  %v5334_v39 = vadd.f32 %v12303_v3, %v14080_v37  ;;  %v14086_v37 = vld [vmem:[#allocation26_spill] sm:$0xff] }
 0x521   : > { %v5773_v56 = vmax.f32 %v5709_v44, 0.0  ;;  %v5710_v35 = vadd.f32 %v12240_v48, %v5634_v19  ;;  %v5635_v8 = vmul.f32 %v12221_v2, %v5515_v18  ;;  %v5517_v29 = vadd.f32 %v5516_v52, %v5324_v31 }
 0x522   : > { %v5856_v33 = vadd.f32 %v5855_v30, %v5772_v23  ;;  %v5520_v26 = vpop.f32.mrf.mxu0  ;;  %v5338_v30 = vadd.f32 %v12314_v51, %v14081_v45  ;;  %v14082_v51 = vld [vmem:[#allocation20_spill] sm:$0xff] }
 0x523   : > { %v5820_v13 = vadd.f32 %v5819_v36, %v5773_v56  ;;  %v5774_v60 = vmax.f32 %v5710_v35, 0.0  ;;  %v5711_v34 = vadd.f32 %v12234_v5, %v5635_v8  ;;  %v5636_v50 = vmul.f32 %v12229_v24, %v5517_v29  ;;  %v12442_v36 = vpop.f32.mrf.mxu1  ;;  %v14083_v56 = vld [vmem:[#allocation74_spill] sm:$0xff] }
 0x524   : > { %v5521_v10 = vadd.f32 %v5520_v26, %v5328_v25  ;;  %v5522_v20 = vpop.f32.mrf.mxu0  ;;  %v5340_v52 = vadd.f32 %v12324_v28, %v14082_v51  ;;  %v5342_v35 = vadd.f32 %v12334_v4, %v14083_v56  ;;  %v14089_v56 = vld [vmem:[#allocation37_spill] sm:$0xff] }
 0x525   : > { %v5857_v47 = vadd.f32 %v5856_v33, %v5774_v60  ;;  %v5775_v15 = vmax.f32 %v5711_v34, 0.0  ;;  %v5712_v61 = vadd.f32 %v12240_v48, %v5636_v50  ;;  %v5523_v49 = vadd.f32 %v5522_v20, %v5330_v32  ;;  %v14084_v33 = vld [vmem:[#allocation75_spill] sm:$0xff]  ;;  %v12454_v34 = vpop.f32.mrf.mxu1 }
 0x526   : > { %v5637_v16 = vmul.f32 %v12221_v2, %v5521_v10  ;;  %v5524_v63 = vpop.f32.mrf.mxu0  ;;  %v5344_v26 = vadd.f32 %v12342_v17, %v14084_v33 }
 0x527   : > { %v5821_v40 = vadd.f32 %v5820_v13, %v5775_v15  ;;  %v5776_v46 = vmax.f32 %v5712_v61, 0.0  ;;  %v5638_v1 = vmul.f32 %v12229_v24, %v5523_v49  ;;  %v5525_v22 = vadd.f32 %v5524_v63, %v5332_v6  ;;  %v14085_v6 = vld [vmem:[#allocation27_spill] sm:$0xff] }
 0x528   : > { %v5713_v9 = vadd.f32 %v12234_v5, %v5637_v16  ;;  %v5526_v55 = vpop.f32.mrf.mxu0  ;;  %v5348_v10 = vadd.f32 %v12354_v58, %v14085_v6 }
 0x529   : > { %v5858_v43 = vadd.f32 %v5857_v47, %v5776_v46  ;;  %v5714_v27 = vadd.f32 %v12240_v48, %v5638_v1  ;;  %v5639_v3 = vmul.f32 %v12221_v2, %v5525_v22  ;;  %v5527_v31 = vadd.f32 %v5526_v55, %v5334_v39 }
 0x52a   : > { %v5777_v38 = vmax.f32 %v5713_v9, 0.0  ;;  %v5530_v42 = vpop.f32.mrf.mxu0  ;;  %v5350_v39 = vadd.f32 %v12364_v0, %v14086_v37  ;;  %v14087_v0 = vld [vmem:[#allocation32_spill] sm:$0xff] }
 0x52b   : > { %v5778_v44 = vmax.f32 %v5714_v27, 0.0  ;;  %v5715_v19 = vadd.f32 %v12234_v5, %v5639_v3  ;;  %v5640_v18 = vmul.f32 %v12229_v24, %v5527_v31  ;;  %v5531_v23 = vadd.f32 %v5530_v42, %v5338_v30  ;;  %v14088_v31 = vld [vmem:[#allocation31_spill] sm:$0xff] }
 0x52c   : > { %v5822_v8 = vadd.f32 %v5821_v40, %v5777_v38  ;;  %v5532_v29 = vpop.f32.mrf.mxu0  ;;  %v12464_v40 = vpop.f32.mrf.mxu1  ;;  %v5352_v3 = vadd.f32 %v12374_v12, %v14087_v0  ;;  %v5354_v38 = vadd.f32 %v12384_v21, %v14088_v31 }
 0x52d   : > { %v5859_v62 = vadd.f32 %v5858_v43, %v5778_v44  ;;  %v5779_v25 = vmax.f32 %v5715_v19, 0.0  ;;  %v5716_v41 = vadd.f32 %v12240_v48, %v5640_v18  ;;  %v5641_v32 = vmul.f32 %v12221_v2, %v5531_v23 }
 0x52e   : > { %v5533_v13 = vadd.f32 %v5532_v29, %v5340_v52  ;;  %v5534_v60 = vpop.f32.mrf.mxu0  ;;  %v12474_v19 = vpop.f32.mrf.mxu1 }
 0x52f   : > { %v5823_v50 = vadd.f32 %v5822_v8, %v5779_v25  ;;  %v5780_v28 = vmax.f32 %v5716_v41, 0.0  ;;  %v5717_v14 = vadd.f32 %v12234_v5, %v5641_v32  ;;  %v5535_v4 = vadd.f32 %v5534_v60, %v5342_v35  ;;  %v14090_v41 = vld [vmem:[#allocation36_spill] sm:$0xff] }
 0x530   : > { %v5642_v20 = vmul.f32 %v12229_v24, %v5533_v13  ;;  %v5536_v47 = vpop.f32.mrf.mxu0  ;;  %v5358_v35 = vadd.f32 %v12392_v57, %v14089_v56  ;;  %v5360_v32 = vadd.f32 %v12404_v11, %v14090_v41  ;;  %v5379_v13 = vpop.f32.mrf.mxu1  ;;  %v14091_v57 = vld [vmem:[#allocation23_spill] sm:$0xff] }
 0x531   : > { %v5860_v15 = vadd.f32 %v5859_v62, %v5780_v28  ;;  %v5781_v61 = vmax.f32 %v5717_v14, 0.0  ;;  %v5643_v49 = vmul.f32 %v12221_v2, %v5535_v4  ;;  %v5537_v17 = vadd.f32 %v5536_v47, %v5344_v26 }
 0x532   : > { %v5718_v16 = vadd.f32 %v12240_v48, %v5642_v20  ;;  %v5540_v63 = vpop.f32.mrf.mxu0  ;;  %v5362_v4 = vadd.f32 %v12414_v53, %v14091_v57 }
 0x533   : > { %v5824_v46 = vadd.f32 %v5823_v50, %v5781_v61  ;;  %v5719_v1 = vadd.f32 %v12234_v5, %v5643_v49  ;;  %v5644_v58 = vmul.f32 %v12229_v24, %v5537_v17  ;;  %v5541_v22 = vadd.f32 %v5540_v63, %v5348_v10  ;;  %v5381_v17 = vpop.f32.mrf.mxu1 }
 0x534   : > { %v5782_v45 = vmax.f32 %v5718_v16, 0.0  ;;  %v5542_v30 = vpop.f32.mrf.mxu0 }
 0x535   : > { %v5783_v9 = vmax.f32 %v5719_v1, 0.0  ;;  %v5720_v55 = vadd.f32 %v12240_v48, %v5644_v58  ;;  %v5645_v43 = vmul.f32 %v12221_v2, %v5541_v22  ;;  %v5543_v27 = vadd.f32 %v5542_v30, %v5350_v39  ;;  %v14093_v1 = vld [vmem:[#allocation44_spill] sm:$0xff] }
 0x536   : > { %v5861_v42 = vadd.f32 %v5860_v15, %v5782_v45  ;;  %v5544_v44 = vpop.f32.mrf.mxu0  ;;  %v5368_v58 = vadd.f32 %v12434_v54, %v14093_v1  ;;  %v14095_v54 = vld [vmem:[#allocation54_spill] sm:$0xff] }
 0x537   : > { %v5825_v18 = vadd.f32 %v5824_v46, %v5783_v9  ;;  %v5784_v23 = vmax.f32 %v5720_v55, 0.0  ;;  %v5721_v51 = vadd.f32 %v12234_v5, %v5645_v43  ;;  %v5646_v52 = vmul.f32 %v12229_v24, %v5543_v27  ;;  %v14092_v46 = vld [vmem:[#allocation45_spill] sm:$0xff]  ;;  %v14094_v27 = vld [vmem:[#allocation34_spill] sm:$0xff] }
 0x538   : > { %v5545_v8 = vadd.f32 %v5544_v44, %v5352_v3  ;;  %v5546_v29 = vpop.f32.mrf.mxu0  ;;  %v5364_v53 = vadd.f32 %v12424_v7, %v14092_v46  ;;  %v5370_v0 = vadd.f32 %v12442_v36, %v14094_v27  ;;  %v14096_v36 = vld [vmem:[#allocation53_spill] sm:$0xff] }
 0x539   : > { %v5862_v62 = vadd.f32 %v5861_v42, %v5784_v23  ;;  %v5785_v12 = vmax.f32 %v5721_v51, 0.0  ;;  %v5722_v25 = vadd.f32 %v12240_v48, %v5646_v52  ;;  %v5547_v21 = vadd.f32 %v5546_v29, %v5354_v38  ;;  %v5383_v38 = vpop.f32.mrf.mxu1 }
 0x53a   : > { %v5647_v33 = vmul.f32 %v12221_v2, %v5545_v8  ;;  %v5550_v26 = vpop.f32.mrf.mxu0  ;;  %v5372_v23 = vadd.f32 %v12454_v34, %v14095_v54 }
 0x53b   : > { %v5826_v60 = vadd.f32 %v5825_v18, %v5785_v12  ;;  %v5786_v50 = vmax.f32 %v5722_v25, 0.0  ;;  %v5648_v28 = vmul.f32 %v12229_v24, %v5547_v21  ;;  %v5551_v14 = vadd.f32 %v5550_v26, %v5358_v35  ;;  %v5387_v21 = vpop.f32.mrf.mxu1 }
 0x53c   : > { %v5723_v6 = vadd.f32 %v12234_v5, %v5647_v33  ;;  %v5552_v10 = vpop.f32.mrf.mxu0 }
 0x53d   : > { %v5863_v20 = vadd.f32 %v5862_v62, %v5786_v50  ;;  %v5724_v47 = vadd.f32 %v12240_v48, %v5648_v28  ;;  %v5649_v11 = vmul.f32 %v12221_v2, %v5551_v14  ;;  %v5553_v15 = vadd.f32 %v5552_v10, %v5360_v32 }
 0x53e   : > { %v5787_v61 = vmax.f32 %v5723_v6, 0.0  ;;  %v5554_v49 = vpop.f32.mrf.mxu0  ;;  %v5374_v62 = vadd.f32 %v12464_v40, %v14096_v36  ;;  %v14098_v6 = vld [vmem:[#allocation71_spill] sm:$0xff] }
 0x53f   : > { %v5788_v37 = vmax.f32 %v5724_v47, 0.0  ;;  %v5725_v39 = vadd.f32 %v12234_v5, %v5649_v11  ;;  %v5650_v16 = vmul.f32 %v12229_v24, %v5553_v15  ;;  %v5555_v63 = vadd.f32 %v5554_v49, %v5362_v4  ;;  %v14097_v4 = vld [vmem:[#allocation127_spill] sm:$0xff]  ;;  %v5389_v11 = vpop.f32.mrf.mxu1 }
 0x540   : > { %v5827_v22 = vadd.f32 %v5826_v60, %v5787_v61  ;;  %v5556_v45 = vpop.f32.mrf.mxu0  ;;  %v5378_v40 = vadd.f32 %v12474_v19, %v14097_v4  ;;  %v5380_v10 = vadd.f32 %v5379_v13, %v14098_v6 }
 0x541   : > { %v5864_v30 = vadd.f32 %v5863_v20, %v5788_v37  ;;  %v5789_v9 = vmax.f32 %v5725_v39, 0.0  ;;  %v5726_v55 = vadd.f32 %v12240_v48, %v5650_v16  ;;  %v5651_v43 = vmul.f32 %v12221_v2, %v5555_v63  ;;  %v14099_v39 = vld [vmem:[#allocation69_spill] sm:$0xff] }
 0x542   : > { %v5557_v3 = vadd.f32 %v5556_v45, %v5364_v53  ;;  %v5560_v31 = vpop.f32.mrf.mxu0  ;;  %v5382_v16 = vadd.f32 %v5381_v17, %v14099_v39 }
 0x543   : > { %v5828_v42 = vadd.f32 %v5827_v22, %v5789_v9  ;;  %v5790_v44 = vmax.f32 %v5726_v55, 0.0  ;;  %v5727_v7 = vadd.f32 %v12234_v5, %v5651_v43  ;;  %v5561_v18 = vadd.f32 %v5560_v31, %v5368_v58  ;;  %v14100_v22 = vld [vmem:[#allocation68_spill] sm:$0xff]  ;;  %v5391_v9 = vpop.f32.mrf.mxu1 }
 0x544   : > { %v5652_v51 = vmul.f32 %v12229_v24, %v5557_v3  ;;  %v5562_v52 = vpop.f32.mrf.mxu0  ;;  %v5384_v13 = vadd.f32 %v5383_v38, %v14100_v22  ;;  %v14101_v3 = vld [vmem:[#allocation57_spill] sm:$0xff] }
 0x545   : > { %v5865_v56 = vadd.f32 %v5864_v30, %v5790_v44  ;;  %v5791_v35 = vmax.f32 %v5727_v7, 0.0  ;;  %v5653_v8 = vmul.f32 %v12221_v2, %v5561_v18  ;;  %v5563_v29 = vadd.f32 %v5562_v52, %v5370_v0 }
 0x546   : > { %v5728_v12 = vadd.f32 %v12240_v48, %v5652_v51  ;;  %v5564_v25 = vpop.f32.mrf.mxu0  ;;  %v5388_v17 = vadd.f32 %v5387_v21, %v14101_v3  ;;  %v5393_v51 = vpop.f32.mrf.mxu1 }
 0x547   : > { %v5829_v41 = vadd.f32 %v5828_v42, %v5791_v35  ;;  %v5729_v32 = vadd.f32 %v12234_v5, %v5653_v8  ;;  %v5654_v34 = vmul.f32 %v12229_v24, %v5563_v29  ;;  %v5565_v33 = vadd.f32 %v5564_v25, %v5372_v23  ;;  %v14102_v29 = vld [vmem:[#allocation84_spill] sm:$0xff] }
 0x548   : > { %v5792_v26 = vmax.f32 %v5728_v12, 0.0  ;;  %v5566_v60 = vpop.f32.mrf.mxu0  ;;  %v5390_v36 = vadd.f32 %v5389_v11, %v14102_v29  ;;  %v6054_v29 = vld [vmem:[%s12640_s13] sm:$0x1] }
 0x549   : > { %v5793_v50 = vmax.f32 %v5729_v32, 0.0  ;;  %v5730_v28 = vadd.f32 %v12240_v48, %v5654_v34  ;;  %v5655_v14 = vmul.f32 %v12221_v2, %v5565_v33  ;;  %v5567_v57 = vadd.f32 %v5566_v60, %v5374_v62  ;;  %v14103_v62 = vld [vmem:[#allocation85_spill] sm:$0xff] }
 0x54a   : > { %v5866_v20 = vadd.f32 %v5865_v56, %v5792_v26  ;;  %v5570_v47 = vpop.f32.mrf.mxu0  ;;  %v5392_v12 = vadd.f32 %v5391_v9, %v14103_v62  ;;  %v14104_v26 = vld [vmem:[#allocation86_spill] sm:$0xff] }
 0x54b   : > { %v5830_v15 = vadd.f32 %v5829_v41, %v5793_v50  ;;  %v5794_v61 = vmax.f32 %v5730_v28, 0.0  ;;  %v5731_v49 = vadd.f32 %v12234_v5, %v5655_v14  ;;  %v5656_v37 = vmul.f32 %v12229_v24, %v5567_v57 }
 0x54c   : > { %v5571_v63 = vadd.f32 %v5570_v47, %v5378_v40  ;;  %v5572_v46 = vpop.f32.mrf.mxu0  ;;  %v5394_v60 = vadd.f32 %v5393_v51, %v14104_v26  ;;  %v7721_v51 = vld [vmem:[%s12641_s14] sm:$0xff]  }
 0x54d   : > { %v5867_v53 = vadd.f32 %v5866_v20, %v5794_v61  ;;  %v5795_v1 = vmax.f32 %v5731_v49, 0.0  ;;  %v5732_v58 = vadd.f32 %v12240_v48, %v5656_v37  ;;  %v5573_v19 = vadd.f32 %v5572_v46, %v5380_v10 }
 0x54e   : > { %v5657_v45 = vmul.f32 %v12221_v2, %v5571_v63  ;;  %v5574_v30 = vpop.f32.mrf.mxu0 }
 0x54f   : > { %v5831_v55 = vadd.f32 %v5830_v15, %v5795_v1  ;;  %v5796_v43 = vmax.f32 %v5732_v58, 0.0  ;;  %v5658_v27 = vmul.f32 %v12229_v24, %v5573_v19  ;;  %v5575_v0 = vadd.f32 %v5574_v30, %v5382_v16 }
 0x550   : > { %v5733_v31 = vadd.f32 %v12234_v5, %v5657_v45  ;;  %v5576_v42 = vpop.f32.mrf.mxu0 }
 0x551   : > { %v5868_v44 = vadd.f32 %v5867_v53, %v5796_v43  ;;  %v5734_v7 = vadd.f32 %v12240_v48, %v5658_v27  ;;  %v5659_v18 = vmul.f32 %v12221_v2, %v5575_v0  ;;  %v5577_v38 = vadd.f32 %v5576_v42, %v5384_v13 }
 0x552   : > { %v5797_v54 = vmax.f32 %v5733_v31, 0.0  ;;  %v5580_v23 = vpop.f32.mrf.mxu0 }
 0x553   : > { %v5798_v52 = vmax.f32 %v5734_v7, 0.0  ;;  %v5735_v56 = vadd.f32 %v12234_v5, %v5659_v18  ;;  %v5660_v35 = vmul.f32 %v12229_v24, %v5577_v38  ;;  %v5581_v8 = vadd.f32 %v5580_v23, %v5388_v17  ;;  %v7716_v7 = vld [vmem:[%s12641_s14 + $0x28] sm:$0xff]   ;;  %v7717_v18 = vld [vmem:[%s12641_s14 + $0x20] sm:$0xff]   ;;  %v7718_v38 = vld [vmem:[%s12641_s14 + $0x18] sm:$0xff]  }
 0x554   : > { %v5832_v25 = vadd.f32 %v5831_v55, %v5797_v54  ;;  %v5582_v21 = vpop.f32.mrf.mxu0  ;;  %v7719_v54 = vld [vmem:[%s12641_s14 + $0x10] sm:$0xff]   ;;  %v7720_v23 = vld [vmem:[%s12641_s14 + $0x8] sm:$0xff]  }
 0x555   : > { %v5869_v41 = vadd.f32 %v5868_v44, %v5798_v52  ;;  %v5799_v32 = vmax.f32 %v5735_v56, 0.0  ;;  %v5736_v34 = vadd.f32 %v12240_v48, %v5660_v35  ;;  %v5661_v33 = vmul.f32 %v12221_v2, %v5581_v8  ;;  %v7715_v44 = vld [vmem:[%s12641_s14 + $0x30] sm:$0xff]   ;;  %v6052_v35 = vld [vmem:[%s12639_s12] sm:$0x1] }
 0x556   : > { %v5583_v50 = vadd.f32 %v5582_v21, %v5390_v36  ;;  %v5584_v28 = vpop.f32.mrf.mxu0 }
 0x557   : > { %v5833_v14 = vadd.f32 %v5832_v25, %v5799_v32  ;;  %v5800_v57 = vmax.f32 %v5736_v34, 0.0  ;;  %v5737_v4 = vadd.f32 %v12234_v5, %v5661_v33  ;;  %v5585_v40 = vadd.f32 %v5584_v28, %v5392_v12 }
 0x558   : > { %v5662_v6 = vmul.f32 %v12229_v24, %v5583_v50  ;;  %v5586_v10 = vpop.f32.mrf.mxu0 }
 0x559   : > { %v5870_v20 = vadd.f32 %v5869_v41, %v5800_v57  ;;  %v5801_v47 = vmax.f32 %v5737_v4, 0.0  ;;  %v5663_v11 = vmul.f32 %v12221_v2, %v5585_v40  ;;  %v5587_v15 = vadd.f32 %v5586_v10, %v5394_v60 }
 0x55a   : > { %v5738_v61 = vadd.f32 %v12240_v48, %v5662_v6 }
 0x55b   : > { %v5834_v49 = vadd.f32 %v5833_v14, %v5801_v47  ;;  %v5739_v37 = vadd.f32 %v12234_v5, %v5663_v11  ;;  %v5664_v39 = vmul.f32 %v12229_v24, %v5587_v15 }
 0x55c   : > { %v5802_v16 = vmax.f32 %v5738_v61, 0.0 }
 0x55d   : > { %v5803_v63 = vmax.f32 %v5739_v37, 0.0  ;;  %v5740_v46 = vadd.f32 %v12240_v48, %v5664_v39  ;;  %v7714_v48 = vld [vmem:[%s12641_s14 + $0x38] sm:$0xff]  }
 0x55e   : > { %v5871_v53 = vadd.f32 %v5870_v20, %v5802_v16 }
 0x55f   : > { %v5835_v1 = vadd.f32 %v5834_v49, %v5803_v63  ;;  %v5804_v58 = vmax.f32 %v5740_v46, 0.0 }
 0x561   : > { %v5836_v19 = vrot.slane %v5835_v1, 4  ;;  %v5872_v22 = vadd.f32 %v5871_v53, %v5804_v58 }
 0x563   : > { %v5837_v13 = vadd.f32 %v5836_v19, %v5835_v1  ;;  %v5873_v45 = vrot.slane %v5872_v22, 4 }
 0x565   : > { %v5838_v2 = vrot.slane %v5837_v13, 2  ;;  %v5874_v30 = vadd.f32 %v5873_v45, %v5872_v22 }
 0x567   : > { %v5839_v9 = vadd.f32 %v5838_v2, %v5837_v13  ;;  %v5875_v55 = vrot.slane %v5874_v30, 2 }
 0x569   : > { %v5840_v43 = vrot.slane %v5839_v9, 1  ;;  %v5876_v27 = vadd.f32 %v5875_v55, %v5874_v30 }
 0x56b   : > { %v5841_v5 = vadd.f32 %v5840_v43, %v5839_v9  ;;  %v5877_v0 = vrot.slane %v5876_v27, 1 }
 0x56d   : > { %v5878_v24 = vadd.f32 %v5877_v0, %v5876_v27  ;;  %v5880_v3 = vmul.f32 0.00390625, %v5841_v5 }
 0x56f   : > { %v5881_v17 = vmul.f32 0.00390625, %v5878_v24  ;;  %v5882_v42 = vpack.c.bf16 %v5880_v3, %v5880_v3 }
 0x571   : > { %v5883_v31 = vpack.c.bf16 %v5881_v17, %v5881_v17 }
 0x573   : > { %6044 = vmatprep.mubr.bf16.mxu1 %v5883_v31 }
 0x574   : > { %6045 = vmatmul.mubr.bf16.vlgmr.msra.gmra.mxu1 %v5882_v42 }
 0x575   : > { %7138 = vmatpush3.bf16.msra.mxu1 %v7714_v48  ;;  %7153 = vmatprep.mubr.msk.bf16.mxu1 %vm7804_vm3, %v14058_v59 }
 0x576   : > { %7139 = vmatprep.subr.bf16.mxu1 %v14058_v59 }
 0x579   : > { %7140 = vmatpush3.bf16.msra.mxu1 %v7715_v44 }
 0x57a   : > { %7141 = vmatprep.subr.bf16.mxu1 %v14058_v59 }
 0x57d   : > { %7142 = vmatpush3.bf16.msra.mxu1 %v7716_v7 }
 0x57e   : > { %7143 = vmatprep.subr.bf16.mxu1 %v14058_v59 }
 0x581   : > { %7144 = vmatpush3.bf16.msra.mxu1 %v7717_v18 }
 0x582   : > { %7145 = vmatprep.subr.bf16.mxu1 %v14058_v59 }
 0x585   : > { %7146 = vmatpush3.bf16.msra.mxu1 %v7718_v38 }
 0x586   : > { %7147 = vmatprep.subr.bf16.mxu1 %v14058_v59 }
 0x589   : > { %7148 = vmatpush3.bf16.msra.mxu1 %v7719_v54 }
 0x58a   : > { %7149 = vmatprep.subr.bf16.mxu1 %v14058_v59 }
 0x58d   : > { %7150 = vmatpush3.bf16.msra.mxu1 %v7720_v23 }
 0x58e   : > { %7151 = vmatprep.subr.bf16.mxu1 %v14058_v59  ;;  %v6074_v59 = vld [vmem:[%s12642_s15] sm:$0x1] }
 0x591   : > { %7152 = vmatpush3.bf16.msra.mxu1 %v7721_v51 }
 0x634   : > { %v7048_v52 = vpop.f32.mrf.mxu1 }
 0x636   : > { %v7049_v56 = vpop.f32.mrf.mxu1 }
 0x637   : > { %v7050_v8 = vadd.f32 %v7049_v56, %v7048_v52 }
 0x638   : > { %v7051_v36 = vpop.f32.mrf.mxu1 }
 0x639   : > { %v6053_v62 = vmul.f32 %v7050_v8, %v6052_v35 }
 0x63a   : > { %v7052_v12 = vpop.f32.mrf.mxu1 }
 0x63b   : > { %v6055_v25 = vadd.f32 %v6054_v29, %v6053_v62 }
 0x63d   : > { %v6056_v21 = vmax.f32 %v6055_v25, 0.0 }
 0x63f   : > { %v6057_v41 = vpack.c.bf16 %v6056_v21, %v6056_v21 }
 0x641   : > { %7154 = vmatmul.mubr.bf16.vlgmr.msra.gmra.mxu1 %v6057_v41 }
 0x701   : > { %v6157_v32 = vpop.f32.mrf.mxu1 }
 0x702   : > { %v6158_v34 = vadd.f32 %v6157_v32, %v6074_v59 }
 0x703   : > { %v7155_v33 = vpop.f32.mrf.mxu1 }
 0x704   : > { %6163 = vst [vmem:[%s513_s1] sm:$0x1] %v6158_v34 }
 0x705   : > { %v6160_v26 = vpop.f32.mrf.mxu1 }
 0x706   : > { %7751 = shalt.err (!%p7748_p3)
}
 0x707   : > { %s7752_s29 = scalar_lea.hbm %s12586_s19, 16  ;;  %s7756_s20 = scalar_lea.hbm %s12643_s16, 32 }
 0x708   : > { %p7753_p4 = scmp.ne.s32.totalorder %s12586_s19, %s7752_s29  ;;  %p7757_p9 = scmp.lt.s32.totalorder %s12586_s19, %s12643_s16 }
 0x709   : > { %p7758_p10 = scmp.lt.s32.totalorder %s7756_s20, %s7752_s29 }
 0x70a   : > { %p7754_p7 = pnand %p7753_p4, %p7929_p5 }
 0x70b   : > { %p7759_p11 = por %p7758_p10, %p7757_p9 }
 0x70c   : > { %p7755_p8 = pneg %p7754_p7 }
 0x70e   : > { %p7760_p12 = pnand %p7759_p11, %p7755_p8 }
 0x710   : > { %7763 = shalt.err (!%p7760_p12)
}
 0x711   : > { %7159 = dma.vmem_to_hbm [thread:$0]  (%p7929_p5), %s12588_s2, 16, %s12586_s19, %s6165_s27   ;;  %v7156_v60 = vpop.f32.mrf.mxu1 }
 0x712 PF: > { %p7165_p13 = scmp.ge.s32.totalorder %s7798_s24, 2  ;;  %s6189_s30 = sand.u32 1, %s7786_s21  }
 0x713   : > { %s6190_s3 = scalar_lea.sflag [#allocation3], %s6189_s30 }
 0x714   : > { %p7162_p0 = pnand %p7165_p13, %p7933_p6 }
 0x716   : > { %p7163_p1 = pneg %p7162_p0 }
 0x718   : > { %7781 = dma.done.wait (%p7163_p1), %s6190_s3, 16  }
 0x719   : > { %7783 = vsyncadd (%p7163_p1), %s6190_s3, 4294967280  ;;  %s14105_s24 = sld [smem:[#allocation6_spill]]  ;;  %s14108_s21 = smov %s7790_s22 }
 0x71a   : > { %s14106_s26 = sld [smem:[#allocation5_spill]] }
 0x71b   : > { %s14107_s23 = sld [smem:[#allocation7_spill]] }
 0x71f   : > { %p26_p2 = scmp.ge.s32.totalorder %s14105_s24, 4  }
 0x720   : > { %s14109_s22 = smov %s14106_s26 }
 0x721   :  { %28 = sbr.rel (!%p26_p2) target bundleno = 8 (0x8), region = 119 }
 0x726   :  { %6194 = vsyncpa [#allocation3], 1 }
 0x727   :  { %6196 = vsyncpa [#allocation3 + $0x1], 1 }

</bundles_post_ra>
